<compile_context>
chip_gen: v7x
topology: tpu7x:2x2x1
jax: 0.10.0
libtpu: 0.0.40
codegen_flags: <defaults>
</compile_context>

<pallas_src>
import functools
import math

import jax
import jax.numpy as jnp
from jax.experimental import pallas as pl
from jax.experimental.pallas import tpu as pltpu

LANE = 128


def _cpad(n):
    return ((n + LANE - 1) // LANE) * LANE


def pad_lanes(x):
    c = x.shape[-1]
    cp = _cpad(c)
    if cp == c:
        return x
    return jnp.pad(x, [(0, 0)] * (x.ndim - 1) + [(0, cp - c)])


# ----------------------------------------------------------------------------
# Pallas kernel: fused chain of 1-2 matmuls + bias + activation (+ residual)
# ----------------------------------------------------------------------------
def _fused_mm_kernel(*refs, acts, has_residual):
    """refs = (x, [w,b] per layer, [residual], out).

    y = x; for each layer: y = act(y@w + b)  (MXU bf16, f32 accum)
    optionally y += residual; store y[:, :n_store] cast to out dtype.
    """
    x_ref = refs[0]
    pos = 1
    y = x_ref[...]
    for act in acts:
        w_ref, b_ref = refs[pos], refs[pos + 1]
        pos += 2
        y = jnp.dot(y.astype(jnp.bfloat16), w_ref[...],
                    preferred_element_type=jnp.float32) + b_ref[...]
        if act == "leaky_relu":
            y = jnp.where(y >= 0.0, y, 0.01 * y)
        elif act == "one_minus_sigmoid":
            y = 1.0 - jax.nn.sigmoid(y)
    if has_residual:
        y = y + refs[pos][...].astype(jnp.float32)
        pos += 1
    o_ref = refs[pos]
    o_ref[...] = y[:, :o_ref.shape[-1]].astype(o_ref.dtype)


def _pick_tm(m, cap=512):
    # Largest tile <= cap that still yields >=2 grid steps (keeps both v7x TCs
    # busy); fall back to a single block for tiny m.
    for c in (512, 256, 128, 64, 32, 16, 8):
        if c <= cap and m % c == 0 and m // c >= 2:
            return c
    return min(m, cap)


def fused_matmul(x2d, layers, residual2d=None, out_dtype=jnp.bfloat16):
    """x2d: (m, K) bf16.  layers: list of folded-conv dicts.  One pallas_call."""
    m, k = x2d.shape
    n_out = layers[-1]["n_store"]
    tm = _pick_tm(m)
    args = [x2d]
    in_specs = [pl.BlockSpec((tm, k), lambda i: (i, 0))]
    acts = []
    for lyr in layers:
        kk, nn = lyr["w"].shape
        in_specs.append(pl.BlockSpec((kk, nn), lambda i: (0, 0)))
        in_specs.append(pl.BlockSpec((1, nn), lambda i: (0, 0)))
        args += [lyr["w"], lyr["b"]]
        acts.append(lyr["act"])
    if residual2d is not None:
        in_specs.append(pl.BlockSpec((tm, n_out), lambda i: (i, 0)))
        args.append(residual2d)
    return pl.pallas_call(
        functools.partial(_fused_mm_kernel, acts=tuple(acts),
                          has_residual=residual2d is not None),
        out_shape=jax.ShapeDtypeStruct((m, n_out), out_dtype),
        grid=(pl.cdiv(m, tm),),
        in_specs=in_specs,
        out_specs=pl.BlockSpec((tm, n_out), lambda i: (i, 0)),
        compiler_params=pltpu.CompilerParams(
            dimension_semantics=("parallel",)),
    )(*args)


def im2col3x3(x, c_real):
    """Pack the 9 taps of a 3x3 'same' conv into the K (lane) dim.

    x: (B,H,W,Cp) bf16 lane-padded with c_real valid channels.
    Returns (B*H*W, _cpad(9*c_real)) bf16 — same HBM footprint as a 128-lane
    padded input when 9*c_real <= 128.
    """
    B, H, W, _ = x.shape
    xr = x[..., :c_real]
    xp = jnp.pad(xr, ((0, 0), (1, 1), (1, 1), (0, 0)))
    cols = [xp[:, dy:dy + H, dx:dx + W, :] for dy in range(3) for dx in range(3)]
    patches = pad_lanes(jnp.concatenate(cols, axis=-1))
    return patches.reshape(B * H * W, patches.shape[-1])


def run_layers(x, layers, residual=None, out_dtype=jnp.bfloat16):
    """Apply a fused chain of folded conv layers to NHWC lane-padded x."""
    B, H, W, Cp = x.shape
    first = layers[0]
    if first["ksize"] == 3:
        x2 = im2col3x3(x, first["cin"])
    else:
        x2 = x.reshape(B * H * W, Cp)
        kp = first["w"].shape[0]
        if Cp < kp:
            x2 = jnp.pad(x2, ((0, 0), (0, kp - Cp)))
        elif Cp > kp:
            x2 = x2[:, :kp]
    res2 = None
    if residual is not None:
        n_out = layers[-1]["n_store"]
        res2 = residual.reshape(B * H * W, residual.shape[-1])[:, :n_out]
    y = fused_matmul(x2, layers, res2, out_dtype)
    return y.reshape(B, H, W, y.shape[-1])


# ----------------------------------------------------------------------------
# Geometric resampling glue (plain JAX, NHWC)
# ----------------------------------------------------------------------------
def bilinear_sample_pix(x, ix, iy):
    """Bilinear sample NHWC x at pixel coords ix,iy (B,Hg,Wg), zero padding."""
    B, H, W, C = x.shape
    ix0 = jnp.floor(ix)
    iy0 = jnp.floor(iy)
    ix1 = ix0 + 1.0
    iy1 = iy0 + 1.0
    wx1 = ix - ix0
    wx0 = 1.0 - wx1
    wy1 = iy - iy0
    wy0 = 1.0 - wy1
    bidx = jnp.arange(B)[:, None, None]

    def gather(iy_, ix_):
        valid = ((ix_ >= 0) & (ix_ <= W - 1) & (iy_ >= 0) & (iy_ <= H - 1)).astype(jnp.float32)
        ixc = jnp.clip(ix_, 0, W - 1).astype(jnp.int32)
        iyc = jnp.clip(iy_, 0, H - 1).astype(jnp.int32)
        return x[bidx, iyc, ixc].astype(jnp.float32) * valid[..., None]

    return (gather(iy0, ix0) * (wy0 * wx0)[..., None]
            + gather(iy0, ix1) * (wy0 * wx1)[..., None]
            + gather(iy1, ix0) * (wy1 * wx0)[..., None]
            + gather(iy1, ix1) * (wy1 * wx1)[..., None])


def grid_sample_zeros(x, grid):
    """F.grid_sample, bilinear, zeros padding, align_corners=False (NHWC)."""
    B, H, W, C = x.shape
    gx = grid[..., 0]
    gy = grid[..., 1]
    ix = ((gx + 1.0) * W - 1.0) * 0.5
    iy = ((gy + 1.0) * H - 1.0) * 0.5
    return bilinear_sample_pix(x, ix, iy)


def warp_perspective(src, M, dsize):
    """dst(p) = src(M^-1 p) on NHWC."""
    # TODO(synk): kornia warp_perspective uses normalized coords (align_corners=True);
    # this stand-in samples directly in pixel coordinates with the same homography.
    Ho, Wo = dsize
    Minv = jnp.linalg.inv(M)
    ys, xs = jnp.meshgrid(jnp.arange(Ho, dtype=jnp.float32),
                          jnp.arange(Wo, dtype=jnp.float32), indexing="ij")
    dst = jnp.stack([xs, ys, jnp.ones_like(xs)], axis=-1)
    pts = jnp.einsum("bij,hwj->bhwi", Minv, dst)
    ix = pts[..., 0] / (pts[..., 2] + 1e-8)
    iy = pts[..., 1] / (pts[..., 2] + 1e-8)
    return bilinear_sample_pix(src, ix, iy)


def interpolate_bilinear_ac(x, out_h, out_w):
    """F.interpolate bilinear align_corners=True (NHWC)."""
    B, H, W, C = x.shape
    if (H, W) == (out_h, out_w):
        return x
    ys = jnp.linspace(0.0, H - 1.0, out_h)
    xs = jnp.linspace(0.0, W - 1.0, out_w)
    iy, ix = jnp.meshgrid(ys, xs, indexing="ij")
    ix = jnp.broadcast_to(ix[None], (B, out_h, out_w))
    iy = jnp.broadcast_to(iy[None], (B, out_h, out_w))
    return bilinear_sample_pix(x, ix, iy)


def warper_fwd(features, intrinsics, cfg):
    """Perspective2OrthographicWarper.forward (NHWC features)."""
    K = intrinsics * cfg["img_scale"]
    K = K.at[:, 2, 2].set(1.0)
    K2 = K[:, jnp.array([0, 2])][:, :, jnp.array([0, 2])]           # (B,2,2)
    grid = cfg["warp_grid"]                                          # (Zg, Xg, 2) = (x, z)
    cam = jnp.einsum("bij,zxj->bzxi", K2, grid)
    u = cam[..., 0] / (cam[..., 1] + 1e-8)
    u = u / features.shape[2] * 2.0 - 1.0                            # W is axis 2 in NHWC
    z = (cam[..., 1] - cfg["near"]) / (cfg["far"] - cfg["near"]) * 2.0 - 1.0
    gc = jnp.clip(jnp.stack([u, z], axis=-1), -1.1, 1.1)
    return grid_sample_zeros(features, gc)


def make_theta_ipm(intrinsics, cfg):
    # TODO(synk): get_init_homography needs external extrinsics/bev_params calibration
    # code; use a deterministic feature->BEV scaling homography of matching shape.
    B = intrinsics.shape[0]
    sx = cfg["W_feat"] / cfg["W_out"]
    sy = cfg["H_feat"] / cfg["Z_out"]
    base = jnp.array([[sx, 0.0, 0.0], [0.0, sy, 0.0], [0.0, 0.0, 1.0]], jnp.float32)
    return jnp.tile(base[None], (B, 1, 1))


# ----------------------------------------------------------------------------
# FlatTransformer forward
# ----------------------------------------------------------------------------
def ecm_swap(t, old_c_real):
    """NCHW permute(0,2,1,3) expressed in the lane-padded NHWC bf16 layout:
    real channels become spatial rows, old H becomes the (re-lane-padded)
    channel axis."""
    return pad_lanes(jnp.transpose(t[..., :old_c_real], (0, 3, 2, 1)))


def flat_transformer_fwd(p, feat_nchw, intrinsics, cfg):
    B, _, H, W = feat_nchw.shape
    Zo, Wo = cfg["Z_out"], cfg["W_out"]
    f2d = cfg["f2d"]

    # NCHW f32 -> NHWC bf16, lane-padded (one layout pass at module entry)
    x = pad_lanes(jnp.transpose(feat_nchw, (0, 2, 3, 1)).astype(jnp.bfloat16))

    # ch_mapper_in (+ABN) + f_dummy fused in one kernel (two chained matmuls)
    x = run_layers(x, p["cmi_fdummy"])                               # (B,H,W,128) bf16

    theta = make_theta_ipm(intrinsics, cfg)
    feat_bev_ipm = warp_perspective(x, theta, (Zo, Wo)).astype(jnp.bfloat16)
    feat_bev_ipm = jnp.rot90(feat_bev_ipm, k=2, axes=(1, 2))

    # ipm confidence head: 3x3+ABN -> 1x1 -> (1 - sigmoid), one fused kernel,
    # storing only the single real channel.
    ipm_incorrect = run_layers(feat_bev_ipm, p["ipm_head"], out_dtype=jnp.float32)
    ipm_incorrect = jnp.rot90(ipm_incorrect, k=2, axes=(1, 2))
    ipm_incorrect_fv = warp_perspective(ipm_incorrect, jnp.linalg.inv(theta), (H, W))
    # feat*m + feat*(m==0) == feat*(m + (m==0)); tiny elementwise left to XLA.
    mask = (ipm_incorrect_fv
            + (ipm_incorrect_fv == 0.0).astype(jnp.float32)).astype(x.dtype)
    feat_ecm_fv = x * mask

    # ErrorCorrectionModule
    f = run_layers(ecm_swap(feat_ecm_fv, f2d), p["ecm_flat"])
    f = run_layers(ecm_swap(f, f2d), p["ecm_bott"])
    f = run_layers(f, p["ecm_exp"])
    f = run_layers(ecm_swap(f, cfg["Z_ecm"]), p["ecm_bev"])

    feat_bev_ecm = warper_fwd(f, intrinsics, cfg)
    feat_bev_ecm = interpolate_bilinear_ac(feat_bev_ecm, Zo, Wo)
    feat_bev_ecm = feat_bev_ecm[:, :, ::-1, :]                       # flip W
    f_feat = (feat_bev_ecm + feat_bev_ipm.astype(jnp.float32)).astype(jnp.bfloat16)

    # post_process_residual; the final residual add is fused into ppr2's epilogue
    r = run_layers(f_feat, p["ppr0"])
    r = run_layers(r, p["ppr1"])
    f_feat = run_layers(r, p["ppr2"], residual=f_feat)

    # f_region head (3x3+ABN -> 1x1) and ch_mapper_out, both storing real channels
    f_logits = run_layers(f_feat, p["fre_head"], out_dtype=jnp.float32)
    f_out = run_layers(f_feat, p["cmo"], out_dtype=jnp.float32)

    return (jnp.transpose(f_out, (0, 3, 1, 2)),
            jnp.transpose(f_logits, (0, 3, 1, 2)))


# ----------------------------------------------------------------------------
# Deterministic parameter init (ABN folded into weights, taps packed into K)
# ----------------------------------------------------------------------------
class KeyGen:
    def __init__(self, key):
        self.key = key

    def __call__(self):
        self.key, sub = jax.random.split(self.key)
        return sub


def _fold_conv(w, b, abn, *, act_override=None, store_real=False):
    """Fold ABN scale into w, bias into (1,Np); pack 3x3 taps into K; pad to lanes."""
    cout = w.shape[-1]
    cb = jnp.zeros((cout,), jnp.float32) if b is None else b
    if abn is None:
        bias, act = cb, "none"
    else:
        gamma, beta, mean, var = abn
        scale = gamma / jnp.sqrt(var + 1e-5)
        bias = (cb - mean) * scale + beta
        w = w * scale                                               # fold BN scale
        act = "leaky_relu"
    if act_override is not None:
        act = act_override
    if w.ndim == 4:                                                 # (3,3,cin,cout)
        cin = w.shape[2]
        w2 = w.reshape(9 * cin, cout)                               # taps -> K dim
        ksize = 3
    else:                                                           # (cin, cout)
        cin = w.shape[0]
        w2 = w
        ksize = 1
    kp, np_ = _cpad(w2.shape[0]), _cpad(cout)
    w2 = jnp.pad(w2, ((0, kp - w2.shape[0]), (0, np_ - cout))).astype(jnp.bfloat16)
    bias = jnp.pad(bias, (0, np_ - cout)).reshape(1, np_).astype(jnp.float32)
    return {"w": w2, "b": bias, "act": act, "cin": cin, "ksize": ksize,
            "n_store": cout if store_real else np_}


def _abn_stats(kg, c):
    gamma = 1.0 + 0.1 * jax.random.normal(kg(), (c,), jnp.float32)
    beta = 0.05 * jax.random.normal(kg(), (c,), jnp.float32)
    mean = 0.05 * jax.random.normal(kg(), (c,), jnp.float32)
    var = 1.0 + 0.1 * jnp.abs(jax.random.normal(kg(), (c,), jnp.float32))
    return gamma, beta, mean, var


def _make_conv(kg, cin, cout, k, bias, abn, act_override=None, store_real=False):
    fan = cin * k * k
    shape = (cin, cout) if k == 1 else (k, k, cin, cout)
    w = jax.random.normal(kg(), shape, jnp.float32) * (0.3 / math.sqrt(fan))
    b = 0.05 * jax.random.normal(kg(), (cout,), jnp.float32) if bias else None
    stats = _abn_stats(kg, cout) if abn else None
    return _fold_conv(w, b, stats, act_override=act_override, store_real=store_real)


def init_params(kg, cfg):
    f2d, in_ch = cfg["f2d"], cfg["in_ch"]
    h_in, z_ecm = cfg["H_feat"], cfg["Z_ecm"]
    p = {}
    p["cmi_fdummy"] = [
        _make_conv(kg, in_ch, f2d, 1, bias=False, abn=True),
        _make_conv(kg, f2d, f2d, 1, bias=False, abn=False),
    ]
    p["ipm_head"] = [
        _make_conv(kg, f2d, f2d, 3, bias=True, abn=True),
        _make_conv(kg, f2d, 1, 1, bias=True, abn=False,
                   act_override="one_minus_sigmoid", store_real=True),
    ]
    p["ecm_flat"] = [_make_conv(kg, h_in, f2d, 3, bias=False, abn=False)]
    p["ecm_bott"] = [_make_conv(kg, f2d, f2d, 3, bias=False, abn=False)]
    p["ecm_exp"] = [_make_conv(kg, f2d, z_ecm, 3, bias=False, abn=False)]
    p["ecm_bev"] = [_make_conv(kg, f2d, f2d, 3, bias=False, abn=False)]
    p["ppr0"] = [_make_conv(kg, f2d, f2d, 3, bias=True, abn=True)]
    p["ppr1"] = [_make_conv(kg, f2d, f2d, 3, bias=True, abn=True)]
    p["ppr2"] = [_make_conv(kg, f2d, f2d, 3, bias=True, abn=False)]
    p["fre_head"] = [
        _make_conv(kg, f2d, f2d, 3, bias=True, abn=True),
        _make_conv(kg, f2d, 1, 1, bias=True, abn=False, store_real=True),
    ]
    p["cmo"] = [_make_conv(kg, f2d, in_ch, 1, bias=False, abn=True, store_real=True)]
    return p


# ----------------------------------------------------------------------------
# Main
# ----------------------------------------------------------------------------
if __name__ == "__main__":
    B = 2
    in_ch, f_2d_ch = 8, 8
    H_in, W_in = 16, 16
    out_img_size = (16, 16)          # (W_out_raw, Z_out_raw)
    img_scale = 1.0
    bev_params = {"cam_z": 1.0, "f": 1.0}

    resolution = bev_params["cam_z"] / bev_params["f"] / img_scale
    W_out = int(out_img_size[0] * img_scale)
    Z_out = int(out_img_size[1] * img_scale)
    extents = [-(W_out * resolution / 2), 0.0, W_out * resolution / 2, Z_out * resolution]

    zs = jnp.arange(extents[1], extents[3], resolution, dtype=jnp.float32)
    xs = jnp.arange(extents[0], extents[2], resolution, dtype=jnp.float32)
    zz, xx = jnp.meshgrid(zs, xs, indexing="ij")
    warp_grid = jnp.stack([xx, zz], axis=-1)                         # (Z_out, W_out, 2)

    cfg = dict(
        in_ch=in_ch, f2d=f_2d_ch,
        H_feat=int(H_in * img_scale), W_feat=int(W_in * img_scale),
        Z_out=Z_out, W_out=W_out, Z_ecm=int(out_img_size[0] * img_scale),
        img_scale=img_scale, near=extents[1], far=extents[3], warp_grid=warp_grid,
    )

    key = jax.random.PRNGKey(0)
    kfeat, kparam = jax.random.split(key)
    feat = jax.random.normal(kfeat, (B, in_ch, H_in, W_in), jnp.float32)
    Kmat = jnp.array([[4.0, 0.0, W_in / 2.0],
                      [0.0, 4.0, H_in / 2.0],
                      [0.0, 0.0, 1.0]], jnp.float32)
    intrinsics = jnp.tile(Kmat[None], (B, 1, 1))

    params = init_params(KeyGen(kparam), cfg)

    fwd = jax.jit(lambda f_, k_: flat_transformer_fwd(params, f_, k_, cfg))
    f_feat, f_logits = jax.block_until_ready(fwd(feat, intrinsics))

    assert f_feat.shape == (B, in_ch, Z_out, W_out), f_feat.shape
    assert f_logits.shape == (B, 1, Z_out, W_out), f_logits.shape
    assert bool(jnp.all(jnp.isfinite(f_feat))) and bool(jnp.all(jnp.isfinite(f_logits)))
    print("KERNEL_OK")
</pallas_src>

<mosaic_0001>
module attributes {stable_mosaic.version = 11 : i64} {
  func.func @_fused_mm_kernel(%arg0: i32, %arg1: memref<256x128xbf16, #tpu.memory_space<vmem>>, %arg2: memref<128x128xbf16, #tpu.memory_space<vmem>>, %arg3: memref<1x128xf32, #tpu.memory_space<vmem>>, %arg4: memref<128x128xbf16, #tpu.memory_space<vmem>>, %arg5: memref<1x128xf32, #tpu.memory_space<vmem>>, %arg6: memref<256x128xbf16, #tpu.memory_space<vmem>>) attributes {dimension_semantics = [#tpu.dimension_semantics<parallel>], iteration_bounds = array<i64: 2>, scalar_prefetch = 0 : i64, scratch_operands = 0 : i64, tpu.core_type = #tpu.core_type<tc>, window_params = [{transform_indices = @transform_0, window_bounds = array<i64: 256, 128>}, {pipeline_mode = #tpu.pipeline_mode<synchronous>, transform_indices = @transform_1, window_bounds = array<i64: 128, 128>}, {pipeline_mode = #tpu.pipeline_mode<synchronous>, transform_indices = @transform_2, window_bounds = array<i64: 1, 128>}, {pipeline_mode = #tpu.pipeline_mode<synchronous>, transform_indices = @transform_3, window_bounds = array<i64: 128, 128>}, {pipeline_mode = #tpu.pipeline_mode<synchronous>, transform_indices = @transform_4, window_bounds = array<i64: 1, 128>}, {transform_indices = @transform_5, window_bounds = array<i64: 256, 128>}]} {
    %c0 = arith.constant 0 : index
    %c0_0 = arith.constant 0 : index
    %0 = vector.load %arg1[%c0, %c0_0] : memref<256x128xbf16, #tpu.memory_space<vmem>>, vector<256x128xbf16>
    %c0_1 = arith.constant 0 : index
    %c0_2 = arith.constant 0 : index
    %1 = vector.load %arg2[%c0_1, %c0_2] : memref<128x128xbf16, #tpu.memory_space<vmem>>, vector<128x128xbf16>
    %cst = arith.constant dense<0.000000e+00> : vector<256x128xf32>
    %2 = tpu.matmul %0, %1, %cst {dimension_numbers = #tpu.dot_dimension_numbers<[1], [0], [0], [1], [0, 0, 1, 1], [], []>} : vector<256x128xbf16>, vector<128x128xbf16>, vector<256x128xf32> -> vector<256x128xf32>
    %c0_3 = arith.constant 0 : index
    %c0_4 = arith.constant 0 : index
    %3 = vector.load %arg3[%c0_3, %c0_4] : memref<1x128xf32, #tpu.memory_space<vmem>>, vector<1x128xf32>
    %4 = vector.broadcast %3 : vector<1x128xf32> to vector<256x128xf32>
    %5 = arith.addf %2, %4 : vector<256x128xf32>
    %cst_5 = arith.constant 0.000000e+00 : f32
    %6 = vector.broadcast %cst_5 : f32 to vector<256x128xf32>
    %7 = arith.cmpf oge, %5, %6 : vector<256x128xf32>
    %cst_6 = arith.constant 0.00999999977 : f32
    %8 = vector.broadcast %cst_6 : f32 to vector<256x128xf32>
    %9 = arith.mulf %8, %5 : vector<256x128xf32>
    %10 = arith.select %7, %5, %9 : vector<256x128xi1>, vector<256x128xf32>
    %11 = arith.truncf %10 : vector<256x128xf32> to vector<256x128xbf16>
    %c0_7 = arith.constant 0 : index
    %c0_8 = arith.constant 0 : index
    %12 = vector.load %arg4[%c0_7, %c0_8] : memref<128x128xbf16, #tpu.memory_space<vmem>>, vector<128x128xbf16>
    %cst_9 = arith.constant dense<0.000000e+00> : vector<256x128xf32>
    %13 = tpu.matmul %11, %12, %cst_9 {dimension_numbers = #tpu.dot_dimension_numbers<[1], [0], [0], [1], [0, 0, 1, 1], [], []>} : vector<256x128xbf16>, vector<128x128xbf16>, vector<256x128xf32> -> vector<256x128xf32>
    %c0_10 = arith.constant 0 : index
    %c0_11 = arith.constant 0 : index
    %14 = vector.load %arg5[%c0_10, %c0_11] : memref<1x128xf32, #tpu.memory_space<vmem>>, vector<1x128xf32>
    %15 = vector.broadcast %14 : vector<1x128xf32> to vector<256x128xf32>
    %16 = arith.addf %13, %15 : vector<256x128xf32>
    %17 = arith.truncf %16 : vector<256x128xf32> to vector<256x128xbf16>
    %c0_12 = arith.constant 0 : index
    %c0_13 = arith.constant 0 : index
    %18 = vector.load %arg6[%c0_12, %c0_13] : memref<256x128xbf16, #tpu.memory_space<vmem>>, vector<256x128xbf16>
    tpu.vector_store %arg6[%c0_12, %c0_13], %17 {strides = array<i32>} : memref<256x128xbf16, #tpu.memory_space<vmem>>, vector<256x128xbf16>,
    return
  }
  func.func @transform_0(%arg0: i32) -> (i32, i32) {
    %c0_i32 = arith.constant 0 : i32
    %c0_i32_0 = arith.constant 0 : i32
    return %arg0, %c0_i32 : i32, i32
  }
  func.func @transform_1(%arg0: i32) -> (i32, i32) {
    %c0_i32 = arith.constant 0 : i32
    %c0_i32_0 = arith.constant 0 : i32
    %c0_i32_1 = arith.constant 0 : i32
    return %c0_i32, %c0_i32_0 : i32, i32
  }
  func.func @transform_2(%arg0: i32) -> (i32, i32) {
    %c0_i32 = arith.constant 0 : i32
    %c0_i32_0 = arith.constant 0 : i32
    %c0_i32_1 = arith.constant 0 : i32
    return %c0_i32, %c0_i32_0 : i32, i32
  }
  func.func @transform_3(%arg0: i32) -> (i32, i32) {
    %c0_i32 = arith.constant 0 : i32
    %c0_i32_0 = arith.constant 0 : i32
    %c0_i32_1 = arith.constant 0 : i32
    return %c0_i32, %c0_i32_0 : i32, i32
  }
  func.func @transform_4(%arg0: i32) -> (i32, i32) {
    %c0_i32 = arith.constant 0 : i32
    %c0_i32_0 = arith.constant 0 : i32
    %c0_i32_1 = arith.constant 0 : i32
    return %c0_i32, %c0_i32_0 : i32, i32
  }
  func.func @transform_5(%arg0: i32) -> (i32, i32) {
    %c0_i32 = arith.constant 0 : i32
    %c0_i32_0 = arith.constant 0 : i32
    return %arg0, %c0_i32 : i32, i32
  }
}

module attributes {stable_mosaic.version = 11 : i64} {
  func.func @_fused_mm_kernel(%arg0: i32, %arg1: memref<256x128xbf16, #tpu.memory_space<vmem>>, %arg2: memref<128x128xbf16, #tpu.memory_space<vmem>>, %arg3: memref<1x128xf32, #tpu.memory_space<vmem>>, %arg4: memref<128x128xbf16, #tpu.memory_space<vmem>>, %arg5: memref<1x128xf32, #tpu.memory_space<vmem>>, %arg6: memref<256x1xf32, #tpu.memory_space<vmem>>) attributes {dimension_semantics = [#tpu.dimension_semantics<parallel>], iteration_bounds = array<i64: 2>, scalar_prefetch = 0 : i64, scratch_operands = 0 : i64, tpu.core_type = #tpu.core_type<tc>, window_params = [{transform_indices = @transform_0, window_bounds = array<i64: 256, 128>}, {pipeline_mode = #tpu.pipeline_mode<synchronous>, transform_indices = @transform_1, window_bounds = array<i64: 128, 128>}, {pipeline_mode = #tpu.pipeline_mode<synchronous>, transform_indices = @transform_2, window_bounds = array<i64: 1, 128>}, {pipeline_mode = #tpu.pipeline_mode<synchronous>, transform_indices = @transform_3, window_bounds = array<i64: 128, 128>}, {pipeline_mode = #tpu.pipeline_mode<synchronous>, transform_indices = @transform_4, window_bounds = array<i64: 1, 128>}, {transform_indices = @transform_5, window_bounds = array<i64: 256, 1>}]} {
    %c0 = arith.constant 0 : index
    %c0_0 = arith.constant 0 : index
    %0 = vector.load %arg1[%c0, %c0_0] : memref<256x128xbf16, #tpu.memory_space<vmem>>, vector<256x128xbf16>
    %c0_1 = arith.constant 0 : index
    %c0_2 = arith.constant 0 : index
    %1 = vector.load %arg2[%c0_1, %c0_2] : memref<128x128xbf16, #tpu.memory_space<vmem>>, vector<128x128xbf16>
    %cst = arith.constant dense<0.000000e+00> : vector<256x128xf32>
    %2 = tpu.matmul %0, %1, %cst {dimension_numbers = #tpu.dot_dimension_numbers<[1], [0], [0], [1], [0, 0, 1, 1], [], []>} : vector<256x128xbf16>, vector<128x128xbf16>, vector<256x128xf32> -> vector<256x128xf32>
    %c0_3 = arith.constant 0 : index
    %c0_4 = arith.constant 0 : index
    %3 = vector.load %arg3[%c0_3, %c0_4] : memref<1x128xf32, #tpu.memory_space<vmem>>, vector<1x128xf32>
    %4 = vector.broadcast %3 : vector<1x128xf32> to vector<256x128xf32>
    %5 = arith.addf %2, %4 : vector<256x128xf32>
    %cst_5 = arith.constant 0.000000e+00 : f32
    %6 = vector.broadcast %cst_5 : f32 to vector<256x128xf32>
    %7 = arith.cmpf oge, %5, %6 : vector<256x128xf32>
    %cst_6 = arith.constant 0.00999999977 : f32
    %8 = vector.broadcast %cst_6 : f32 to vector<256x128xf32>
    %9 = arith.mulf %8, %5 : vector<256x128xf32>
    %10 = arith.select %7, %5, %9 : vector<256x128xi1>, vector<256x128xf32>
    %11 = arith.truncf %10 : vector<256x128xf32> to vector<256x128xbf16>
    %c0_7 = arith.constant 0 : index
    %c0_8 = arith.constant 0 : index
    %12 = vector.load %arg4[%c0_7, %c0_8] : memref<128x128xbf16, #tpu.memory_space<vmem>>, vector<128x128xbf16>
    %cst_9 = arith.constant dense<0.000000e+00> : vector<256x128xf32>
    %13 = tpu.matmul %11, %12, %cst_9 {dimension_numbers = #tpu.dot_dimension_numbers<[1], [0], [0], [1], [0, 0, 1, 1], [], []>} : vector<256x128xbf16>, vector<128x128xbf16>, vector<256x128xf32> -> vector<256x128xf32>
    %c0_10 = arith.constant 0 : index
    %c0_11 = arith.constant 0 : index
    %14 = vector.load %arg5[%c0_10, %c0_11] : memref<1x128xf32, #tpu.memory_space<vmem>>, vector<1x128xf32>
    %15 = vector.broadcast %14 : vector<1x128xf32> to vector<256x128xf32>
    %16 = arith.addf %13, %15 : vector<256x128xf32>
    %17 = arith.negf %16 : vector<256x128xf32>
    %18 = math.exp %17 : vector<256x128xf32>
    %cst_12 = arith.constant 1.000000e+00 : f32
    %19 = vector.broadcast %cst_12 : f32 to vector<256x128xf32>
    %20 = arith.addf %19, %18 : vector<256x128xf32>
    %21 = arith.divf %19, %20 : vector<256x128xf32>
    %cst_13 = arith.constant 1.000000e+00 : f32
    %22 = vector.broadcast %cst_13 : f32 to vector<256x128xf32>
    %23 = arith.subf %22, %21 : vector<256x128xf32>
    %24 = vector.extract_strided_slice %23 {offsets = [0, 0], sizes = [256, 1], strides = [1, 1]} : vector<256x128xf32> to vector<256x1xf32>
    %c0_14 = arith.constant 0 : index
    %c0_15 = arith.constant 0 : index
    %25 = vector.load %arg6[%c0_14, %c0_15] : memref<256x1xf32, #tpu.memory_space<vmem>>, vector<256x1xf32>
    tpu.vector_store %arg6[%c0_14, %c0_15], %24 {strides = array<i32>} : memref<256x1xf32, #tpu.memory_space<vmem>>, vector<256x1xf32>,
    return
  }
  func.func @transform_0(%arg0: i32) -> (i32, i32) {
    %c0_i32 = arith.constant 0 : i32
    %c0_i32_0 = arith.constant 0 : i32
    return %arg0, %c0_i32 : i32, i32
  }
  func.func @transform_1(%arg0: i32) -> (i32, i32) {
    %c0_i32 = arith.constant 0 : i32
    %c0_i32_0 = arith.constant 0 : i32
    %c0_i32_1 = arith.constant 0 : i32
    return %c0_i32, %c0_i32_0 : i32, i32
  }
  func.func @transform_2(%arg0: i32) -> (i32, i32) {
    %c0_i32 = arith.constant 0 : i32
    %c0_i32_0 = arith.constant 0 : i32
    %c0_i32_1 = arith.constant 0 : i32
    return %c0_i32, %c0_i32_0 : i32, i32
  }
  func.func @transform_3(%arg0: i32) -> (i32, i32) {
    %c0_i32 = arith.constant 0 : i32
    %c0_i32_0 = arith.constant 0 : i32
    %c0_i32_1 = arith.constant 0 : i32
    return %c0_i32, %c0_i32_0 : i32, i32
  }
  func.func @transform_4(%arg0: i32) -> (i32, i32) {
    %c0_i32 = arith.constant 0 : i32
    %c0_i32_0 = arith.constant 0 : i32
    %c0_i32_1 = arith.constant 0 : i32
    return %c0_i32, %c0_i32_0 : i32, i32
  }
  func.func @transform_5(%arg0: i32) -> (i32, i32) {
    %c0_i32 = arith.constant 0 : i32
    %c0_i32_0 = arith.constant 0 : i32
    return %arg0, %c0_i32 : i32, i32
  }
}

module attributes {stable_mosaic.version = 11 : i64} {
  func.func @_fused_mm_kernel(%arg0: i32, %arg1: memref<128x256xbf16, #tpu.memory_space<vmem>>, %arg2: memref<256x128xbf16, #tpu.memory_space<vmem>>, %arg3: memref<1x128xf32, #tpu.memory_space<vmem>>, %arg4: memref<128x128xbf16, #tpu.memory_space<vmem>>) attributes {dimension_semantics = [#tpu.dimension_semantics<parallel>], iteration_bounds = array<i64: 2>, scalar_prefetch = 0 : i64, scratch_operands = 0 : i64, tpu.core_type = #tpu.core_type<tc>, window_params = [{transform_indices = @transform_0, window_bounds = array<i64: 128, 256>}, {pipeline_mode = #tpu.pipeline_mode<synchronous>, transform_indices = @transform_1, window_bounds = array<i64: 256, 128>}, {pipeline_mode = #tpu.pipeline_mode<synchronous>, transform_indices = @transform_2, window_bounds = array<i64: 1, 128>}, {transform_indices = @transform_3, window_bounds = array<i64: 128, 128>}]} {
    %c0 = arith.constant 0 : index
    %c0_0 = arith.constant 0 : index
    %0 = vector.load %arg1[%c0, %c0_0] : memref<128x256xbf16, #tpu.memory_space<vmem>>, vector<128x256xbf16>
    %c0_1 = arith.constant 0 : index
    %c0_2 = arith.constant 0 : index
    %1 = vector.load %arg2[%c0_1, %c0_2] : memref<256x128xbf16, #tpu.memory_space<vmem>>, vector<256x128xbf16>
    %cst = arith.constant dense<0.000000e+00> : vector<128x128xf32>
    %2 = tpu.matmul %0, %1, %cst {dimension_numbers = #tpu.dot_dimension_numbers<[1], [0], [0], [1], [0, 0, 1, 1], [], []>} : vector<128x256xbf16>, vector<256x128xbf16>, vector<128x128xf32> -> vector<128x128xf32>
    %c0_3 = arith.constant 0 : index
    %c0_4 = arith.constant 0 : index
    %3 = vector.load %arg3[%c0_3, %c0_4] : memref<1x128xf32, #tpu.memory_space<vmem>>, vector<1x128xf32>
    %4 = vector.broadcast %3 : vector<1x128xf32> to vector<128x128xf32>
    %5 = arith.addf %2, %4 : vector<128x128xf32>
    %6 = arith.truncf %5 : vector<128x128xf32> to vector<128x128xbf16>
    %c0_5 = arith.constant 0 : index
    %c0_6 = arith.constant 0 : index
    %7 = vector.load %arg4[%c0_5, %c0_6] : memref<128x128xbf16, #tpu.memory_space<vmem>>, vector<128x128xbf16>
    tpu.vector_store %arg4[%c0_5, %c0_6], %6 {strides = array<i32>} : memref<128x128xbf16, #tpu.memory_space<vmem>>, vector<128x128xbf16>,
    return
  }
  func.func @transform_0(%arg0: i32) -> (i32, i32) {
    %c0_i32 = arith.constant 0 : i32
    %c0_i32_0 = arith.constant 0 : i32
    return %arg0, %c0_i32 : i32, i32
  }
  func.func @transform_1(%arg0: i32) -> (i32, i32) {
    %c0_i32 = arith.constant 0 : i32
    %c0_i32_0 = arith.constant 0 : i32
    %c0_i32_1 = arith.constant 0 : i32
    return %c0_i32, %c0_i32_0 : i32, i32
  }
  func.func @transform_2(%arg0: i32) -> (i32, i32) {
    %c0_i32 = arith.constant 0 : i32
    %c0_i32_0 = arith.constant 0 : i32
    %c0_i32_1 = arith.constant 0 : i32
    return %c0_i32, %c0_i32_0 : i32, i32
  }
  func.func @transform_3(%arg0: i32) -> (i32, i32) {
    %c0_i32 = arith.constant 0 : i32
    %c0_i32_0 = arith.constant 0 : i32
    return %arg0, %c0_i32 : i32, i32
  }
}

module attributes {stable_mosaic.version = 11 : i64} {
  func.func @_fused_mm_kernel(%arg0: i32, %arg1: memref<128x128xbf16, #tpu.memory_space<vmem>>, %arg2: memref<128x128xbf16, #tpu.memory_space<vmem>>, %arg3: memref<1x128xf32, #tpu.memory_space<vmem>>, %arg4: memref<128x128xbf16, #tpu.memory_space<vmem>>) attributes {dimension_semantics = [#tpu.dimension_semantics<parallel>], iteration_bounds = array<i64: 2>, scalar_prefetch = 0 : i64, scratch_operands = 0 : i64, tpu.core_type = #tpu.core_type<tc>, window_params = [{transform_indices = @transform_0, window_bounds = array<i64: 128, 128>}, {pipeline_mode = #tpu.pipeline_mode<synchronous>, transform_indices = @transform_1, window_bounds = array<i64: 128, 128>}, {pipeline_mode = #tpu.pipeline_mode<synchronous>, transform_indices = @transform_2, window_bounds = array<i64: 1, 128>}, {transform_indices = @transform_3, window_bounds = array<i64: 128, 128>}]} {
    %c0 = arith.constant 0 : index
    %c0_0 = arith.constant 0 : index
    %0 = vector.load %arg1[%c0, %c0_0] : memref<128x128xbf16, #tpu.memory_space<vmem>>, vector<128x128xbf16>
    %c0_1 = arith.constant 0 : index
    %c0_2 = arith.constant 0 : index
    %1 = vector.load %arg2[%c0_1, %c0_2] : memref<128x128xbf16, #tpu.memory_space<vmem>>, vector<128x128xbf16>
    %cst = arith.constant dense<0.000000e+00> : vector<128x128xf32>
    %2 = tpu.matmul %0, %1, %cst {dimension_numbers = #tpu.dot_dimension_numbers<[1], [0], [0], [1], [0, 0, 1, 1], [], []>} : vector<128x128xbf16>, vector<128x128xbf16>, vector<128x128xf32> -> vector<128x128xf32>
    %c0_3 = arith.constant 0 : index
    %c0_4 = arith.constant 0 : index
    %3 = vector.load %arg3[%c0_3, %c0_4] : memref<1x128xf32, #tpu.memory_space<vmem>>, vector<1x128xf32>
    %4 = vector.broadcast %3 : vector<1x128xf32> to vector<128x128xf32>
    %5 = arith.addf %2, %4 : vector<128x128xf32>
    %6 = arith.truncf %5 : vector<128x128xf32> to vector<128x128xbf16>
    %c0_5 = arith.constant 0 : index
    %c0_6 = arith.constant 0 : index
    %7 = vector.load %arg4[%c0_5, %c0_6] : memref<128x128xbf16, #tpu.memory_space<vmem>>, vector<128x128xbf16>
    tpu.vector_store %arg4[%c0_5, %c0_6], %6 {strides = array<i32>} : memref<128x128xbf16, #tpu.memory_space<vmem>>, vector<128x128xbf16>,
    return
  }
  func.func @transform_0(%arg0: i32) -> (i32, i32) {
    %c0_i32 = arith.constant 0 : i32
    %c0_i32_0 = arith.constant 0 : i32
    return %arg0, %c0_i32 : i32, i32
  }
  func.func @transform_1(%arg0: i32) -> (i32, i32) {
    %c0_i32 = arith.constant 0 : i32
    %c0_i32_0 = arith.constant 0 : i32
    %c0_i32_1 = arith.constant 0 : i32
    return %c0_i32, %c0_i32_0 : i32, i32
  }
  func.func @transform_2(%arg0: i32) -> (i32, i32) {
    %c0_i32 = arith.constant 0 : i32
    %c0_i32_0 = arith.constant 0 : i32
    %c0_i32_1 = arith.constant 0 : i32
    return %c0_i32, %c0_i32_0 : i32, i32
  }
  func.func @transform_3(%arg0: i32) -> (i32, i32) {
    %c0_i32 = arith.constant 0 : i32
    %c0_i32_0 = arith.constant 0 : i32
    return %arg0, %c0_i32 : i32, i32
  }
}

module attributes {stable_mosaic.version = 11 : i64} {
  func.func @_fused_mm_kernel(%arg0: i32, %arg1: memref<256x128xbf16, #tpu.memory_space<vmem>>, %arg2: memref<128x128xbf16, #tpu.memory_space<vmem>>, %arg3: memref<1x128xf32, #tpu.memory_space<vmem>>, %arg4: memref<256x128xbf16, #tpu.memory_space<vmem>>) attributes {dimension_semantics = [#tpu.dimension_semantics<parallel>], iteration_bounds = array<i64: 2>, scalar_prefetch = 0 : i64, scratch_operands = 0 : i64, tpu.core_type = #tpu.core_type<tc>, window_params = [{transform_indices = @transform_0, window_bounds = array<i64: 256, 128>}, {pipeline_mode = #tpu.pipeline_mode<synchronous>, transform_indices = @transform_1, window_bounds = array<i64: 128, 128>}, {pipeline_mode = #tpu.pipeline_mode<synchronous>, transform_indices = @transform_2, window_bounds = array<i64: 1, 128>}, {transform_indices = @transform_3, window_bounds = array<i64: 256, 128>}]} {
    %c0 = arith.constant 0 : index
    %c0_0 = arith.constant 0 : index
    %0 = vector.load %arg1[%c0, %c0_0] : memref<256x128xbf16, #tpu.memory_space<vmem>>, vector<256x128xbf16>
    %c0_1 = arith.constant 0 : index
    %c0_2 = arith.constant 0 : index
    %1 = vector.load %arg2[%c0_1, %c0_2] : memref<128x128xbf16, #tpu.memory_space<vmem>>, vector<128x128xbf16>
    %cst = arith.constant dense<0.000000e+00> : vector<256x128xf32>
    %2 = tpu.matmul %0, %1, %cst {dimension_numbers = #tpu.dot_dimension_numbers<[1], [0], [0], [1], [0, 0, 1, 1], [], []>} : vector<256x128xbf16>, vector<128x128xbf16>, vector<256x128xf32> -> vector<256x128xf32>
    %c0_3 = arith.constant 0 : index
    %c0_4 = arith.constant 0 : index
    %3 = vector.load %arg3[%c0_3, %c0_4] : memref<1x128xf32, #tpu.memory_space<vmem>>, vector<1x128xf32>
    %4 = vector.broadcast %3 : vector<1x128xf32> to vector<256x128xf32>
    %5 = arith.addf %2, %4 : vector<256x128xf32>
    %6 = arith.truncf %5 : vector<256x128xf32> to vector<256x128xbf16>
    %c0_5 = arith.constant 0 : index
    %c0_6 = arith.constant 0 : index
    %7 = vector.load %arg4[%c0_5, %c0_6] : memref<256x128xbf16, #tpu.memory_space<vmem>>, vector<256x128xbf16>
    tpu.vector_store %arg4[%c0_5, %c0_6], %6 {strides = array<i32>} : memref<256x128xbf16, #tpu.memory_space<vmem>>, vector<256x128xbf16>,
    return
  }
  func.func @transform_0(%arg0: i32) -> (i32, i32) {
    %c0_i32 = arith.constant 0 : i32
    %c0_i32_0 = arith.constant 0 : i32
    return %arg0, %c0_i32 : i32, i32
  }
  func.func @transform_1(%arg0: i32) -> (i32, i32) {
    %c0_i32 = arith.constant 0 : i32
    %c0_i32_0 = arith.constant 0 : i32
    %c0_i32_1 = arith.constant 0 : i32
    return %c0_i32, %c0_i32_0 : i32, i32
  }
  func.func @transform_2(%arg0: i32) -> (i32, i32) {
    %c0_i32 = arith.constant 0 : i32
    %c0_i32_0 = arith.constant 0 : i32
    %c0_i32_1 = arith.constant 0 : i32
    return %c0_i32, %c0_i32_0 : i32, i32
  }
  func.func @transform_3(%arg0: i32) -> (i32, i32) {
    %c0_i32 = arith.constant 0 : i32
    %c0_i32_0 = arith.constant 0 : i32
    return %arg0, %c0_i32 : i32, i32
  }
}

module attributes {stable_mosaic.version = 11 : i64} {
  func.func @_fused_mm_kernel(%arg0: i32, %arg1: memref<256x128xbf16, #tpu.memory_space<vmem>>, %arg2: memref<128x128xbf16, #tpu.memory_space<vmem>>, %arg3: memref<1x128xf32, #tpu.memory_space<vmem>>, %arg4: memref<256x128xbf16, #tpu.memory_space<vmem>>) attributes {dimension_semantics = [#tpu.dimension_semantics<parallel>], iteration_bounds = array<i64: 2>, scalar_prefetch = 0 : i64, scratch_operands = 0 : i64, tpu.core_type = #tpu.core_type<tc>, window_params = [{transform_indices = @transform_0, window_bounds = array<i64: 256, 128>}, {pipeline_mode = #tpu.pipeline_mode<synchronous>, transform_indices = @transform_1, window_bounds = array<i64: 128, 128>}, {pipeline_mode = #tpu.pipeline_mode<synchronous>, transform_indices = @transform_2, window_bounds = array<i64: 1, 128>}, {transform_indices = @transform_3, window_bounds = array<i64: 256, 128>}]} {
    %c0 = arith.constant 0 : index
    %c0_0 = arith.constant 0 : index
    %0 = vector.load %arg1[%c0, %c0_0] : memref<256x128xbf16, #tpu.memory_space<vmem>>, vector<256x128xbf16>
    %c0_1 = arith.constant 0 : index
    %c0_2 = arith.constant 0 : index
    %1 = vector.load %arg2[%c0_1, %c0_2] : memref<128x128xbf16, #tpu.memory_space<vmem>>, vector<128x128xbf16>
    %cst = arith.constant dense<0.000000e+00> : vector<256x128xf32>
    %2 = tpu.matmul %0, %1, %cst {dimension_numbers = #tpu.dot_dimension_numbers<[1], [0], [0], [1], [0, 0, 1, 1], [], []>} : vector<256x128xbf16>, vector<128x128xbf16>, vector<256x128xf32> -> vector<256x128xf32>
    %c0_3 = arith.constant 0 : index
    %c0_4 = arith.constant 0 : index
    %3 = vector.load %arg3[%c0_3, %c0_4] : memref<1x128xf32, #tpu.memory_space<vmem>>, vector<1x128xf32>
    %4 = vector.broadcast %3 : vector<1x128xf32> to vector<256x128xf32>
    %5 = arith.addf %2, %4 : vector<256x128xf32>
    %cst_5 = arith.constant 0.000000e+00 : f32
    %6 = vector.broadcast %cst_5 : f32 to vector<256x128xf32>
    %7 = arith.cmpf oge, %5, %6 : vector<256x128xf32>
    %cst_6 = arith.constant 0.00999999977 : f32
    %8 = vector.broadcast %cst_6 : f32 to vector<256x128xf32>
    %9 = arith.mulf %8, %5 : vector<256x128xf32>
    %10 = arith.select %7, %5, %9 : vector<256x128xi1>, vector<256x128xf32>
    %11 = arith.truncf %10 : vector<256x128xf32> to vector<256x128xbf16>
    %c0_7 = arith.constant 0 : index
    %c0_8 = arith.constant 0 : index
    %12 = vector.load %arg4[%c0_7, %c0_8] : memref<256x128xbf16, #tpu.memory_space<vmem>>, vector<256x128xbf16>
    tpu.vector_store %arg4[%c0_7, %c0_8], %11 {strides = array<i32>} : memref<256x128xbf16, #tpu.memory_space<vmem>>, vector<256x128xbf16>,
    return
  }
  func.func @transform_0(%arg0: i32) -> (i32, i32) {
    %c0_i32 = arith.constant 0 : i32
    %c0_i32_0 = arith.constant 0 : i32
    return %arg0, %c0_i32 : i32, i32
  }
  func.func @transform_1(%arg0: i32) -> (i32, i32) {
    %c0_i32 = arith.constant 0 : i32
    %c0_i32_0 = arith.constant 0 : i32
    %c0_i32_1 = arith.constant 0 : i32
    return %c0_i32, %c0_i32_0 : i32, i32
  }
  func.func @transform_2(%arg0: i32) -> (i32, i32) {
    %c0_i32 = arith.constant 0 : i32
    %c0_i32_0 = arith.constant 0 : i32
    %c0_i32_1 = arith.constant 0 : i32
    return %c0_i32, %c0_i32_0 : i32, i32
  }
  func.func @transform_3(%arg0: i32) -> (i32, i32) {
    %c0_i32 = arith.constant 0 : i32
    %c0_i32_0 = arith.constant 0 : i32
    return %arg0, %c0_i32 : i32, i32
  }
}

module attributes {stable_mosaic.version = 11 : i64} {
  func.func @_fused_mm_kernel(%arg0: i32, %arg1: memref<256x128xbf16, #tpu.memory_space<vmem>>, %arg2: memref<128x128xbf16, #tpu.memory_space<vmem>>, %arg3: memref<1x128xf32, #tpu.memory_space<vmem>>, %arg4: memref<256x128xbf16, #tpu.memory_space<vmem>>, %arg5: memref<256x128xbf16, #tpu.memory_space<vmem>>) attributes {dimension_semantics = [#tpu.dimension_semantics<parallel>], iteration_bounds = array<i64: 2>, scalar_prefetch = 0 : i64, scratch_operands = 0 : i64, tpu.core_type = #tpu.core_type<tc>, window_params = [{transform_indices = @transform_0, window_bounds = array<i64: 256, 128>}, {pipeline_mode = #tpu.pipeline_mode<synchronous>, transform_indices = @transform_1, window_bounds = array<i64: 128, 128>}, {pipeline_mode = #tpu.pipeline_mode<synchronous>, transform_indices = @transform_2, window_bounds = array<i64: 1, 128>}, {transform_indices = @transform_3, window_bounds = array<i64: 256, 128>}, {transform_indices = @transform_4, window_bounds = array<i64: 256, 128>}]} {
    %c0 = arith.constant 0 : index
    %c0_0 = arith.constant 0 : index
    %0 = vector.load %arg1[%c0, %c0_0] : memref<256x128xbf16, #tpu.memory_space<vmem>>, vector<256x128xbf16>
    %c0_1 = arith.constant 0 : index
    %c0_2 = arith.constant 0 : index
    %1 = vector.load %arg2[%c0_1, %c0_2] : memref<128x128xbf16, #tpu.memory_space<vmem>>, vector<128x128xbf16>
    %cst = arith.constant dense<0.000000e+00> : vector<256x128xf32>
    %2 = tpu.matmul %0, %1, %cst {dimension_numbers = #tpu.dot_dimension_numbers<[1], [0], [0], [1], [0, 0, 1, 1], [], []>} : vector<256x128xbf16>, vector<128x128xbf16>, vector<256x128xf32> -> vector<256x128xf32>
    %c0_3 = arith.constant 0 : index
    %c0_4 = arith.constant 0 : index
    %3 = vector.load %arg3[%c0_3, %c0_4] : memref<1x128xf32, #tpu.memory_space<vmem>>, vector<1x128xf32>
    %4 = vector.broadcast %3 : vector<1x128xf32> to vector<256x128xf32>
    %5 = arith.addf %2, %4 : vector<256x128xf32>
    %c0_5 = arith.constant 0 : index
    %c0_6 = arith.constant 0 : index
    %6 = vector.load %arg4[%c0_5, %c0_6] : memref<256x128xbf16, #tpu.memory_space<vmem>>, vector<256x128xbf16>
    %7 = arith.extf %6 : vector<256x128xbf16> to vector<256x128xf32>
    %8 = arith.addf %5, %7 : vector<256x128xf32>
    %9 = arith.truncf %8 : vector<256x128xf32> to vector<256x128xbf16>
    %c0_7 = arith.constant 0 : index
    %c0_8 = arith.constant 0 : index
    %10 = vector.load %arg5[%c0_7, %c0_8] : memref<256x128xbf16, #tpu.memory_space<vmem>>, vector<256x128xbf16>
    tpu.vector_store %arg5[%c0_7, %c0_8], %9 {strides = array<i32>} : memref<256x128xbf16, #tpu.memory_space<vmem>>, vector<256x128xbf16>,
    return
  }
  func.func @transform_0(%arg0: i32) -> (i32, i32) {
    %c0_i32 = arith.constant 0 : i32
    %c0_i32_0 = arith.constant 0 : i32
    return %arg0, %c0_i32 : i32, i32
  }
  func.func @transform_1(%arg0: i32) -> (i32, i32) {
    %c0_i32 = arith.constant 0 : i32
    %c0_i32_0 = arith.constant 0 : i32
    %c0_i32_1 = arith.constant 0 : i32
    return %c0_i32, %c0_i32_0 : i32, i32
  }
  func.func @transform_2(%arg0: i32) -> (i32, i32) {
    %c0_i32 = arith.constant 0 : i32
    %c0_i32_0 = arith.constant 0 : i32
    %c0_i32_1 = arith.constant 0 : i32
    return %c0_i32, %c0_i32_0 : i32, i32
  }
  func.func @transform_3(%arg0: i32) -> (i32, i32) {
    %c0_i32 = arith.constant 0 : i32
    %c0_i32_0 = arith.constant 0 : i32
    return %arg0, %c0_i32 : i32, i32
  }
  func.func @transform_4(%arg0: i32) -> (i32, i32) {
    %c0_i32 = arith.constant 0 : i32
    %c0_i32_0 = arith.constant 0 : i32
    return %arg0, %c0_i32 : i32, i32
  }
}

module attributes {stable_mosaic.version = 11 : i64} {
  func.func @_fused_mm_kernel(%arg0: i32, %arg1: memref<256x128xbf16, #tpu.memory_space<vmem>>, %arg2: memref<128x128xbf16, #tpu.memory_space<vmem>>, %arg3: memref<1x128xf32, #tpu.memory_space<vmem>>, %arg4: memref<128x128xbf16, #tpu.memory_space<vmem>>, %arg5: memref<1x128xf32, #tpu.memory_space<vmem>>, %arg6: memref<256x1xf32, #tpu.memory_space<vmem>>) attributes {dimension_semantics = [#tpu.dimension_semantics<parallel>], iteration_bounds = array<i64: 2>, scalar_prefetch = 0 : i64, scratch_operands = 0 : i64, tpu.core_type = #tpu.core_type<tc>, window_params = [{transform_indices = @transform_0, window_bounds = array<i64: 256, 128>}, {pipeline_mode = #tpu.pipeline_mode<synchronous>, transform_indices = @transform_1, window_bounds = array<i64: 128, 128>}, {pipeline_mode = #tpu.pipeline_mode<synchronous>, transform_indices = @transform_2, window_bounds = array<i64: 1, 128>}, {pipeline_mode = #tpu.pipeline_mode<synchronous>, transform_indices = @transform_3, window_bounds = array<i64: 128, 128>}, {pipeline_mode = #tpu.pipeline_mode<synchronous>, transform_indices = @transform_4, window_bounds = array<i64: 1, 128>}, {transform_indices = @transform_5, window_bounds = array<i64: 256, 1>}]} {
    %c0 = arith.constant 0 : index
    %c0_0 = arith.constant 0 : index
    %0 = vector.load %arg1[%c0, %c0_0] : memref<256x128xbf16, #tpu.memory_space<vmem>>, vector<256x128xbf16>
    %c0_1 = arith.constant 0 : index
    %c0_2 = arith.constant 0 : index
    %1 = vector.load %arg2[%c0_1, %c0_2] : memref<128x128xbf16, #tpu.memory_space<vmem>>, vector<128x128xbf16>
    %cst = arith.constant dense<0.000000e+00> : vector<256x128xf32>
    %2 = tpu.matmul %0, %1, %cst {dimension_numbers = #tpu.dot_dimension_numbers<[1], [0], [0], [1], [0, 0, 1, 1], [], []>} : vector<256x128xbf16>, vector<128x128xbf16>, vector<256x128xf32> -> vector<256x128xf32>
    %c0_3 = arith.constant 0 : index
    %c0_4 = arith.constant 0 : index
    %3 = vector.load %arg3[%c0_3, %c0_4] : memref<1x128xf32, #tpu.memory_space<vmem>>, vector<1x128xf32>
    %4 = vector.broadcast %3 : vector<1x128xf32> to vector<256x128xf32>
    %5 = arith.addf %2, %4 : vector<256x128xf32>
    %cst_5 = arith.constant 0.000000e+00 : f32
    %6 = vector.broadcast %cst_5 : f32 to vector<256x128xf32>
    %7 = arith.cmpf oge, %5, %6 : vector<256x128xf32>
    %cst_6 = arith.constant 0.00999999977 : f32
    %8 = vector.broadcast %cst_6 : f32 to vector<256x128xf32>
    %9 = arith.mulf %8, %5 : vector<256x128xf32>
    %10 = arith.select %7, %5, %9 : vector<256x128xi1>, vector<256x128xf32>
    %11 = arith.truncf %10 : vector<256x128xf32> to vector<256x128xbf16>
    %c0_7 = arith.constant 0 : index
    %c0_8 = arith.constant 0 : index
    %12 = vector.load %arg4[%c0_7, %c0_8] : memref<128x128xbf16, #tpu.memory_space<vmem>>, vector<128x128xbf16>
    %cst_9 = arith.constant dense<0.000000e+00> : vector<256x128xf32>
    %13 = tpu.matmul %11, %12, %cst_9 {dimension_numbers = #tpu.dot_dimension_numbers<[1], [0], [0], [1], [0, 0, 1, 1], [], []>} : vector<256x128xbf16>, vector<128x128xbf16>, vector<256x128xf32> -> vector<256x128xf32>
    %c0_10 = arith.constant 0 : index
    %c0_11 = arith.constant 0 : index
    %14 = vector.load %arg5[%c0_10, %c0_11] : memref<1x128xf32, #tpu.memory_space<vmem>>, vector<1x128xf32>
    %15 = vector.broadcast %14 : vector<1x128xf32> to vector<256x128xf32>
    %16 = arith.addf %13, %15 : vector<256x128xf32>
    %17 = vector.extract_strided_slice %16 {offsets = [0, 0], sizes = [256, 1], strides = [1, 1]} : vector<256x128xf32> to vector<256x1xf32>
    %c0_12 = arith.constant 0 : index
    %c0_13 = arith.constant 0 : index
    %18 = vector.load %arg6[%c0_12, %c0_13] : memref<256x1xf32, #tpu.memory_space<vmem>>, vector<256x1xf32>
    tpu.vector_store %arg6[%c0_12, %c0_13], %17 {strides = array<i32>} : memref<256x1xf32, #tpu.memory_space<vmem>>, vector<256x1xf32>,
    return
  }
  func.func @transform_0(%arg0: i32) -> (i32, i32) {
    %c0_i32 = arith.constant 0 : i32
    %c0_i32_0 = arith.constant 0 : i32
    return %arg0, %c0_i32 : i32, i32
  }
  func.func @transform_1(%arg0: i32) -> (i32, i32) {
    %c0_i32 = arith.constant 0 : i32
    %c0_i32_0 = arith.constant 0 : i32
    %c0_i32_1 = arith.constant 0 : i32
    return %c0_i32, %c0_i32_0 : i32, i32
  }
  func.func @transform_2(%arg0: i32) -> (i32, i32) {
    %c0_i32 = arith.constant 0 : i32
    %c0_i32_0 = arith.constant 0 : i32
    %c0_i32_1 = arith.constant 0 : i32
    return %c0_i32, %c0_i32_0 : i32, i32
  }
  func.func @transform_3(%arg0: i32) -> (i32, i32) {
    %c0_i32 = arith.constant 0 : i32
    %c0_i32_0 = arith.constant 0 : i32
    %c0_i32_1 = arith.constant 0 : i32
    return %c0_i32, %c0_i32_0 : i32, i32
  }
  func.func @transform_4(%arg0: i32) -> (i32, i32) {
    %c0_i32 = arith.constant 0 : i32
    %c0_i32_0 = arith.constant 0 : i32
    %c0_i32_1 = arith.constant 0 : i32
    return %c0_i32, %c0_i32_0 : i32, i32
  }
  func.func @transform_5(%arg0: i32) -> (i32, i32) {
    %c0_i32 = arith.constant 0 : i32
    %c0_i32_0 = arith.constant 0 : i32
    return %arg0, %c0_i32 : i32, i32
  }
}

module attributes {stable_mosaic.version = 11 : i64} {
  func.func @_fused_mm_kernel(%arg0: i32, %arg1: memref<256x128xbf16, #tpu.memory_space<vmem>>, %arg2: memref<128x128xbf16, #tpu.memory_space<vmem>>, %arg3: memref<1x128xf32, #tpu.memory_space<vmem>>, %arg4: memref<256x8xf32, #tpu.memory_space<vmem>>) attributes {dimension_semantics = [#tpu.dimension_semantics<parallel>], iteration_bounds = array<i64: 2>, scalar_prefetch = 0 : i64, scratch_operands = 0 : i64, tpu.core_type = #tpu.core_type<tc>, window_params = [{transform_indices = @transform_0, window_bounds = array<i64: 256, 128>}, {pipeline_mode = #tpu.pipeline_mode<synchronous>, transform_indices = @transform_1, window_bounds = array<i64: 128, 128>}, {pipeline_mode = #tpu.pipeline_mode<synchronous>, transform_indices = @transform_2, window_bounds = array<i64: 1, 128>}, {transform_indices = @transform_3, window_bounds = array<i64: 256, 8>}]} {
    %c0 = arith.constant 0 : index
    %c0_0 = arith.constant 0 : index
    %0 = vector.load %arg1[%c0, %c0_0] : memref<256x128xbf16, #tpu.memory_space<vmem>>, vector<256x128xbf16>
    %c0_1 = arith.constant 0 : index
    %c0_2 = arith.constant 0 : index
    %1 = vector.load %arg2[%c0_1, %c0_2] : memref<128x128xbf16, #tpu.memory_space<vmem>>, vector<128x128xbf16>
    %cst = arith.constant dense<0.000000e+00> : vector<256x128xf32>
    %2 = tpu.matmul %0, %1, %cst {dimension_numbers = #tpu.dot_dimension_numbers<[1], [0], [0], [1], [0, 0, 1, 1], [], []>} : vector<256x128xbf16>, vector<128x128xbf16>, vector<256x128xf32> -> vector<256x128xf32>
    %c0_3 = arith.constant 0 : index
    %c0_4 = arith.constant 0 : index
    %3 = vector.load %arg3[%c0_3, %c0_4] : memref<1x128xf32, #tpu.memory_space<vmem>>, vector<1x128xf32>
    %4 = vector.broadcast %3 : vector<1x128xf32> to vector<256x128xf32>
    %5 = arith.addf %2, %4 : vector<256x128xf32>
    %cst_5 = arith.constant 0.000000e+00 : f32
    %6 = vector.broadcast %cst_5 : f32 to vector<256x128xf32>
    %7 = arith.cmpf oge, %5, %6 : vector<256x128xf32>
    %cst_6 = arith.constant 0.00999999977 : f32
    %8 = vector.broadcast %cst_6 : f32 to vector<256x128xf32>
    %9 = arith.mulf %8, %5 : vector<256x128xf32>
    %10 = arith.select %7, %5, %9 : vector<256x128xi1>, vector<256x128xf32>
    %11 = vector.extract_strided_slice %10 {offsets = [0, 0], sizes = [256, 8], strides = [1, 1]} : vector<256x128xf32> to vector<256x8xf32>
    %c0_7 = arith.constant 0 : index
    %c0_8 = arith.constant 0 : index
    %12 = vector.load %arg4[%c0_7, %c0_8] : memref<256x8xf32, #tpu.memory_space<vmem>>, vector<256x8xf32>
    tpu.vector_store %arg4[%c0_7, %c0_8], %11 {strides = array<i32>} : memref<256x8xf32, #tpu.memory_space<vmem>>, vector<256x8xf32>,
    return
  }
  func.func @transform_0(%arg0: i32) -> (i32, i32) {
    %c0_i32 = arith.constant 0 : i32
    %c0_i32_0 = arith.constant 0 : i32
    return %arg0, %c0_i32 : i32, i32
  }
  func.func @transform_1(%arg0: i32) -> (i32, i32) {
    %c0_i32 = arith.constant 0 : i32
    %c0_i32_0 = arith.constant 0 : i32
    %c0_i32_1 = arith.constant 0 : i32
    return %c0_i32, %c0_i32_0 : i32, i32
  }
  func.func @transform_2(%arg0: i32) -> (i32, i32) {
    %c0_i32 = arith.constant 0 : i32
    %c0_i32_0 = arith.constant 0 : i32
    %c0_i32_1 = arith.constant 0 : i32
    return %c0_i32, %c0_i32_0 : i32, i32
  }
  func.func @transform_3(%arg0: i32) -> (i32, i32) {
    %c0_i32 = arith.constant 0 : i32
    %c0_i32_0 = arith.constant 0 : i32
    return %arg0, %c0_i32 : i32, i32
  }
}

</mosaic_0001>

<bundles_post_ra>
// kernel: custom-call.46
= control target key start
LH: loop header
LB: loop body
LE: loop exit
PB: predicated region body
PF: predicated region fallthrough
CT: control target
= control target key end

     0   :  { %5 = vsyncpa [#allocation6], 0  ;;  %s896_s0 = inlined_call_operand.vmem [shape: f32[2,3,3], index: 0, kind: input, shape index: {}]   ;;  %s897_s1 = inlined_call_operand.vmem [shape: f32[2,3,3], index: 1, kind: output, shape index: {0}]   ;;  %s898_s2 = inlined_call_operand.hbm [shape: s32[2,3], index: 2, kind: output, shape index: {1}]   ;;  %s899_s3 = inlined_call_operand.vmem [shape: s32[2,3], index: 3, kind: output, shape index: {2}]  }
   0x1   :  { %7 = vsyncpa [#allocation6 + $0x1], 0  ;;  %s715_s12 = smov 0   ;;  %s717_s13 = smov 0  }
   0x2   :  { %s719_s14 = smov 0   ;;  %s721_s15 = smov 0  }
   0x3 LB: > { %s736_s16 = sadd.s32 4294967295, %s687_s15   ;;  %s550_s17 = sadd.s32 4294967294, %s687_s15   ;;  %s687_s15 = sphi %s721_s15, %s907_s15   ;;  %s683_s14 = sphi %s719_s14, %s906_s14   ;;  %s679_s13 = sphi %s717_s13, %s905_s13   ;;  %s675_s12 = sphi %s715_s12, %s904_s12  }
   0x4   : > { %s740_s18 = sadd.s32 1, %s687_s15   ;;  %s17_s19 = sshrl.u32 %s687_s15, 3 }
   0x5   : > { %s18_s20 = sshrl.u32 %s740_s18, 3  ;;  %s22_s21 = sadd.s32 1, %s683_s14 }
   0x6   : > { %s19_s22 = ssub.s32 %s17_s19, %s18_s20  ;;  %p32_p0 = scmp.ne.s32.totalorder %s683_s14, %s679_s13 }
   0x7   : > { %p20_p1 = scmp.eq.s32.totalorder %s19_s22, 0  ;;  %p33_p2 = scmp.eq.s32.totalorder %s736_s16, 1 }
   0x8   : > { %p38_p3 = scmp.ne.s32.totalorder %s679_s13, %s675_s12  ;;  %p39_p4 = scmp.eq.s32.totalorder %s550_s17, 1 }
   0x9   : > { %s751_s23 = scalar_select %p20_p1, %s683_s14, %s22_s21  }
   0xa   : > { %p753_p5 = por %p33_p2, %p32_p0  ;;  %p757_p6 = por %p39_p4, %p38_p3 }
   0xb   : > { %p552_p7 = scmp.ge.s32.totalorder %s687_s15, 2 }
   0xc   : > { %s85_s26 = sand.u32 (!%p552_p7), 1, %s687_s15   ;;  %s554_s27 = sshll.u32 (!%p552_p7), %s687_s15, 2 }
   0xd   : > { %83 = sbr.rel (%p552_p7) target bundleno = 20 (0x14), region = 16  ;;  %s553_s28 = sshll.u32 (!%p552_p7), %s85_s26, 2 }
   0xe   : > { %s89_s4 = scalar_lea.vmem (!%p552_p7), %s896_s0, %s554_s27  ;;  %s87_s5 = scalar_lea.vmem (!%p552_p7), [#allocation1], %s553_s28 }
   0xf   : > { %v105_v0 = vld [vmem:[%s89_s4] sm:$0xf] (!%p552_p7) }
  0x10   : > { %106 = vst [vmem:[%s87_s5] sm:$0xf] (!%p552_p7), %v105_v0 }
  0x14 PF: > { %p555_p8 = scmp.ge.s32.totalorder %s687_s15, 1  ;;  %p122_p9 = scmp.lt.s32.totalorder %s687_s15, 3 }
  0x16   : > { %p123_p10 = pnand %p555_p8, %p122_p9 }
  0x18   : > { %126 = sbr.rel (%p123_p10) target bundleno = 451 (0x1c3), region = 50 }
  0x1f   : > { %s133_s6 = sand.u32 1, %s736_s16   ;;  %s144_s7 = sand.u32 1, %s679_s13   ;;  %v166_v1 = vlaneseq  ;;  %v693_v4 = vmov 0  }
  0x20   : > { %s773_s8 = sshll.u32 %s133_s6, 2  ;;  %s777_s9 = sshll.u32 %s144_s7, 1 }
  0x21   : > { %v780_v2 = vshrl.u32 %v166_v1, 7  ;;  %s135_s10 = scalar_lea.vmem [#allocation1], %s773_s8  ;;  %s161_s11 = sand.u32 7, %s736_s16  }
  0x22   : > { %v155_v3 = vld [vmem:[%s135_s10] sm:$0xf]  ;;  %s785_s17 = scalar_lea.vmem [#allocation4], %s161_s11  ;;  %s139_s19 = scalar_lea.vmem [#allocation3], %s773_s8 }
  0x23   : > { %156 = vst [vmem:[#allocation0] sm:$0xf] %v155_v3  ;;  %170 = vst [vmem:[#allocation9] sm:$0xff] %v780_v2  ;;  %s146_s20 = scalar_lea.vmem [#allocation5], %s777_s9  ;;  %s152_s21 = scalar_lea.vmem [#allocation8], %s777_s9 }
  0x24   : > { %165 = vst [vmem:[%s785_s17] sm:$0x1] %v693_v4  ;;  %s791_s22 = scalar_lea.vmem [#allocation7], %s161_s11  ;;  %s793_s26 = smov 0  }
  0x2a   : > { %v159_v5 = vld [vmem:[#allocation0] sm:$0xff] }
  0x2b   : > { %160 = vst [vmem:[#allocation2] sm:$0xff] %v159_v5 }
  0x2c LB: >> { %vm186_vm0 = vcmp.lt.s32.totalorder %v780_v2, 3  ;;  %v800_v8 = vstv %s691_s26  ;;  %s227_s27 = ssub.s32 128, %s691_s26  ;;  %v233_v38 = vand.u32 127, %v166_v1  ;;  %v236_v40 = vld [vmem:[%s785_s17] ss:$0 sm:$0xff]  ;;  %s239_s28 = scalar_lea.vmem [#allocation2], %s691_s26  ;;  %s691_s26 = sphi %s793_s26, %s176_s26  }
  0x2d   : >> { %vm185_vm1 = vcmp.ge.s32.totalorder %v780_v2, %v800_v8  ;;  %s245_s30 = scalar_lea.vmem [#allocation9], %s691_s26  ;;  %vm265_vm15 = vcmp.gt.s32.totalorder %v780_v2, %v800_v8  ;;  %s176_s26 = sadd.s32 1, %s691_s26  }
  0x2e   : >> { %vm187_vm3 = vmand %vm185_vm1, %vm186_vm0  ;;  %vm257_vm12 = vcmp.gt.s32.totalorder %v233_v38, %v800_v8  ;;  %vm234_vm13 = vcmp.eq.s32.totalorder %v233_v38, %v800_v8  ;;  %v247_v42 = vld [vmem:[%s245_s30] ss:$0 sm:$0xff]  ;;  %p173_p11 = scmp.ge.s32.totalorder %s176_s26, 3  }
  0x2f   : >> { %vm269_vm1 = vmand %vm265_vm15, %vm234_vm13  ;;  %s900_s6 = sshrl.u32 (%p173_p11), %s736_s16, 3  ;;  %s564_s10 = sshll.u32 (%p173_p11), %s736_s16, 2 }
  0x30   : > { %s565_s11 = sshll.u32 (%p173_p11), %s900_s6, 5 }
  0x32   : >> { %v181_v6 = vld [vmem:[#allocation2] sm:$0xff]  ;;  %v241_v41 = vld [vmem:[%s239_s28] ss:$0 sm:$0xff] }
  0x33   : >> { %v182_v7 = vand.u32 2147483647, %v181_v6 }
  0x35   : >> { %vm560_vm2 = vcmp.gt.f32.partialorder %v182_v7, -inf }
  0x36   : >> { %vm189_vm4 = vmand %vm187_vm3, %vm560_vm2 }
  0x37   : >> { %v190_v9 = vsel %vm189_vm4, %v780_v2, %v800_v8  ;;  %v191_v10 = vsel %vm189_vm4, %v182_v7, -inf }
  0x38   : >> { %v192_v11 = vrot.slane %v191_v10, 1  ;;  %v193_v12 = vrot.slane %v190_v9, 1 }
  0x3a   : >> { %vm194_vm5 = vcmp.ge.f32.partialorder %v192_v11, %v191_v10  ;;  %v197_v13 = vrot.slane %v192_v11, 1  ;;  %v198_v14 = vrot.slane %v193_v12, 1 }
  0x3b   : >> { %v195_v15 = vsel %vm194_vm5, %v192_v11, %v191_v10  ;;  %v196_v16 = vsel %vm194_vm5, %v193_v12, %v190_v9 }
  0x3c   : >> { %vm199_vm6 = vcmp.ge.f32.partialorder %v197_v13, %v195_v15  ;;  %v202_v17 = vrot.slane %v197_v13, 1  ;;  %v203_v18 = vrot.slane %v198_v14, 1 }
  0x3d   : >> { %v200_v19 = vsel %vm199_vm6, %v197_v13, %v195_v15  ;;  %v201_v20 = vsel %vm199_vm6, %v198_v14, %v196_v16 }
  0x3e   : >> { %vm204_vm7 = vcmp.ge.f32.partialorder %v202_v17, %v200_v19  ;;  %v207_v21 = vrot.slane %v202_v17, 1  ;;  %v208_v22 = vrot.slane %v203_v18, 1 }
  0x3f   : >> { %v205_v23 = vsel %vm204_vm7, %v202_v17, %v200_v19  ;;  %v206_v24 = vsel %vm204_vm7, %v203_v18, %v201_v20 }
  0x40   : >> { %vm209_vm8 = vcmp.ge.f32.partialorder %v207_v21, %v205_v23  ;;  %v212_v25 = vrot.slane %v207_v21, 1  ;;  %v213_v26 = vrot.slane %v208_v22, 1 }
  0x41   : >> { %v210_v27 = vsel %vm209_vm8, %v207_v21, %v205_v23  ;;  %v211_v28 = vsel %vm209_vm8, %v208_v22, %v206_v24 }
  0x42   : >> { %vm214_vm9 = vcmp.ge.f32.partialorder %v212_v25, %v210_v27  ;;  %v217_v29 = vrot.slane %v212_v25, 1  ;;  %v218_v30 = vrot.slane %v213_v26, 1 }
  0x43   : >> { %v215_v31 = vsel %vm214_vm9, %v212_v25, %v210_v27  ;;  %v216_v32 = vsel %vm214_vm9, %v213_v26, %v211_v28 }
  0x44   : >> { %vm219_vm10 = vcmp.ge.f32.partialorder %v217_v29, %v215_v31  ;;  %v222_v33 = vrot.slane %v217_v29, 1  ;;  %v223_v34 = vrot.slane %v218_v30, 1 }
  0x45   : >> { %v220_v35 = vsel %vm219_vm10, %v217_v29, %v215_v31  ;;  %v221_v36 = vsel %vm219_vm10, %v218_v30, %v216_v32 }
  0x46   : >> { %vm224_vm11 = vcmp.ge.f32.partialorder %v222_v33, %v220_v35 }
  0x47   : >> { %v226_v37 = vsel %vm224_vm11, %v223_v34, %v221_v36 }
  0x48   : >> { %228 = vrot.lane.b32.xlu0 %v226_v37, %s227_s27  ;;  %s357_s27 = scalar_lea.vmem (%p173_p11), %s897_s1, %s564_s10 }
  0xba   : >> { %v229_v39 = vpop.permute.xlu0 %228 }
  0xbb   : >> { %569 = vpush %v229_v39 }
  0xec   : >> { %s570_s29 = spop %569 }
  0xed   : >> { %v235_v43 = vstv %s570_s29  ;;  %s240_s4 = scalar_lea.vmem [#allocation2], %s570_s29  ;;  %s246_s5 = scalar_lea.vmem [#allocation9], %s570_s29 }
  0xee   : >> { %v242_v44 = vld [vmem:[%s240_s4] ss:$0 sm:$0xff]  ;;  %v237_v46 = vsel %vm234_vm13, %v235_v43, %v236_v40 }
  0xef   : >> { %v248_v45 = vld [vmem:[%s246_s5] ss:$0 sm:$0xff]  ;;  %243 = vst [vmem:[%s240_s4] sm:$0x1] %v241_v41  ;;  %vm251_vm14 = vcmp.ne.f32.partialorder %v242_v44, 0.0  ;;  %238 = vst [vmem:[%s785_s17] sm:$0x1] %v237_v46  ;;  %v258_v53 = vsel %vm257_vm12, %v242_v44, 0.0 }
  0xf0   : >> { %249 = vst [vmem:[%s246_s5] sm:$0x1] %v247_v42  ;;  %244 = vst [vmem:[%s239_s28] sm:$0x1] %v242_v44  ;;  %s399_s4 = sshll.u32 (%p173_p11), %s146_s20, 4  ;;  %s348_s5 = scalar_lea.sflag (%p173_p11), [#allocation6], %s144_s7  ;;  %s400_s4 = int_to_ptr.vmem [resolvable:$true] %s399_s4 }
  0xf1   : >> { %250 = vst [vmem:[%s245_s30] sm:$0x1] %v248_v45  ;;  %vm252_vm0 = vmand %vm234_vm13, %vm251_vm14  ;;  %s843_s30 = scalar_lea.hbm (%p173_p11), %s898_s2, %s565_s11  ;;  %s621_s6 = scalar_lea.vmem (%p173_p11), %s400_s4, 32 }
  0xf2   : >> { %v253_v47 = vsel %vm252_vm0, %v242_v44, 1.0  ;;  %p622_p12 = scmp.ne.s32.totalorder (%p173_p11), %s400_s4, %s621_s6  ;;  %s694_s17 = smov (%p173_p11), [#allocation5]  }
  0xf3   : >> { %v266_v48 = vsel %vm265_vm15, %v253_v47, 1.0  ;;  %s625_s10 = sshll.u32 (%p173_p11), %s694_s17, 4  ;;  %s626_s10 = int_to_ptr.vmem [resolvable:$false] %s625_s10 }
  0xf4   : >> { %619 = vrcp.f32 %v266_v48  ;;  %p623_p13 = pnand (%p173_p11), %p622_p12, %p753_p5  ;;  %s627_s8 = scalar_lea.vmem (%p173_p11), %s626_s10, 64 }
  0xf5   : > { %p628_p1 = scmp.lt.s32.totalorder (%p173_p11), %s400_s4, %s626_s10  ;;  %p629_p2 = scmp.lt.s32.totalorder (%p173_p11), %s627_s8, %s621_s6 }
  0xf6   : > { %v334_v59 = vld [vmem:[#allocation4] sm:$0x3] (%p173_p11)  ;;  %p624_p0 = pneg (%p173_p11), %p623_p13 }
  0xf7   : >> { %v262_v50 = vld [vmem:[#allocation2] sm:$0xff]  ;;  %336 = vst [vmem:[%s146_s20] sm:$0x3] (%p173_p11), %v334_v59  ;;  %p630_p3 = por (%p173_p11), %p629_p2, %p628_p1 }
  0xf8   : > { %v276_v57 = vld [vmem:[#allocation9] sm:$0xff] (%p173_p11) }
  0xf9   : > { %p631_p4 = pnand (%p173_p11), %p630_p3, %p624_p0 }
  0xfe   : >> { %v620_v49 = vpop.eup %619 }
  0xff   : >> { %v268_v51 = vmul.f32 %v620_v49, %v262_v50 }
 0x101   : >> { %v270_v52 = vsel %vm269_vm1, %v268_v51, 0.0 }
 0x102   : >> { %271 = vadd.xlane.f32.xlu0 %v270_v52 }
 0x12f   : > { %292 = vxpose.xlu0.b32.start.end [1/1] (short) (narrow) (%p173_p11), %v276_v57, 8 }
 0x18e   : > { %175 = sbr.rel (!%p173_p11) target bundleno = 44 (0x2c), region = 202 }
 0x18f   : >> { %v272_v54 = vpop.xlane.xlu0 %271 }
 0x190   : >> { %v273_v55 = vmul.f32 %v272_v54, %v258_v53 }
 0x192   : >> { %v274_v56 = vsub.f32 %v268_v51, %v273_v55 }
 0x194   : >> { %275 = vst [vmem:[#allocation2] sm:$0xff] %v274_v56 }
 0x19b   : > { %v328_v58 = vld [vmem:[#allocation2] sm:$0xf] }
 0x19c   : > { %330 = vst [vmem:[%s139_s19] sm:$0xf] %v328_v58 }
 0x1a3   : > { %v373_v60 = vld [vmem:[%s139_s19] sm:$0xf] }
 0x1a4   : > { %374 = vst [vmem:[%s357_s27] sm:$0xf] %v373_v60 }
 0x1a5   : > { %634 = shalt.err (!%p631_p4)
}
 0x1a6   : > { %s635_s7 = scalar_lea.hbm %s843_s30, 32  ;;  %s639_s11 = scalar_lea.hbm %s898_s2, 32 }
 0x1a7   : > { %p636_p8 = scmp.ne.s32.totalorder %s843_s30, %s635_s7  ;;  %p640_p11 = scmp.lt.u32.totalorder %s843_s30, %s898_s2 }
 0x1a8   : > { %p641_p12 = scmp.lt.u32.totalorder %s639_s11, %s635_s7  ;;  %p643_p0 = scmp.lt.u32.totalorder %s635_s7, %s843_s30 }
 0x1a9   : > { %p637_p9 = pnand %p636_p8, %p753_p5 }
 0x1aa   : > { %p642_p13 = por %p641_p12, %p640_p11 }
 0x1ab   : > { %p638_p10 = pneg %p637_p9 }
 0x1ac   : > { %p644_p1 = por %p643_p0, %p642_p13 }
 0x1ae   : > { %p645_p2 = pnand %p644_p1, %p638_p10 }
 0x1b0   : > { %648 = shalt.err (!%p645_p2)
}
 0x1b1   : > { %571 = dma.vmem_to_hbm [thread:$0]  (%p753_p5), %s400_s4, 32, %s843_s30, %s348_s5   ;;  %v308_v61 = vpop.trf.xlu0 }
 0x1b2   : > { %324 = vst [vmem:[%s791_s22] sm:$0x1] %v308_v61  ;;  %s903_s6 = sshrl.u32 (%p753_p5), %s736_s16, 3 }
 0x1b3   : > { %s566_s28 = sshll.u32 (%p753_p5), %s903_s6, 1 }
 0x1b4   : > { %405 = sbr.rel (!%p753_p5) target bundleno = 451 (0x1c3), region = 96  ;;  %s408_s10 = scalar_lea.vmem (%p753_p5), %s899_s3, %s566_s28 }
 0x1b9   : > { %v340_v62 = vld [vmem:[#allocation7] sm:$0x3] }
 0x1ba   : > { %342 = vst [vmem:[%s152_s21] sm:$0x3] %v340_v62 }
 0x1c1   : > { %v424_v63 = vld [vmem:[%s152_s21] sm:$0x3] }
 0x1c2   : > { %425 = vst [vmem:[%s408_s10] sm:$0x3] %v424_v63 }
 0x1c3 PF: > { %s452_s22 = sand.u32 1, %s675_s12   ;;  %p574_p5 = pnand %p552_p7, %p757_p6 }
 0x1c4   : > { %s453_s24 = scalar_lea.sflag [#allocation6], %s452_s22 }
 0x1c5   : > { %670 = dma.done.wait (!%p574_p5), %s453_s24, 32  }
 0x1c6   : > { %672 = vsyncadd (!%p574_p5), %s453_s24, 4294967264  ;;  %p10_p3 = scmp.ge.s32.totalorder %s740_s18, 4   ;;  %s904_s12 = smov %s679_s13 }
 0x1c7   : > { %s905_s13 = smov %s683_s14  ;;  %s906_s14 = smov %s751_s23 }
 0x1c8   : > { %s907_s15 = smov %s740_s18  ;;  %12 = sbr.rel (!%p10_p3) target bundleno = 3 (0x3), region = 213 }
 0x1cf   :  { %465 = vsyncpa [#allocation6], 1 }
 0x1d0   :  { %467 = vsyncpa [#allocation6 + $0x1], 1 }

// kernel: custom-call.48
= control target key start
LH: loop header
LB: loop body
LE: loop exit
PB: predicated region body
PF: predicated region fallthrough
CT: control target
= control target key end

     0   :  { %s343_s6 = smov 0   ;;  %s345_s7 = smov 0   ;;  %s390_s0 = inlined_call_operand.vmem [shape: f32[2,1,3,3], index: 0, kind: input, shape index: {}]   ;;  %s391_s1 = inlined_call_operand.vmem [shape: f32[2,1,3,3], index: 1, kind: output, shape index: {}]  }
   0x1   :  { %s347_s8 = smov 0  }
   0x2 LB: > { %s269_s9 = sadd.s32 4294967295, %s330_s8   ;;  %s33_s10 = sadd.s32 1, %s326_s7  ;;  %s330_s8 = sphi %s347_s8, %s7_s8   ;;  %s326_s7 = sphi %s345_s7, %s393_s7   ;;  %s322_s6 = sphi %s343_s6, %s392_s6  }
   0x3   : > { %p35_p0 = scmp.ge.s32.totalorder %s33_s10, 2  ;;  %p271_p1 = scmp.ge.s32.totalorder %s330_s8, 2 }
   0x4   : > { %s49_s11 = sand.u32 (!%p271_p1), 1, %s330_s8   ;;  %s273_s12 = sshll.u32 (!%p271_p1), %s326_s7, 2 }
   0x5   : > { %s395_s10 = smov (%p35_p0, %s33_s10), 0  ;;  %47 = sbr.rel (%p271_p1) target bundleno = 12 (0xc), region = 16 }
   0x6   : > { %s272_s13 = sshll.u32 (!%p271_p1), %s49_s11, 2  ;;  %s56_s16 = scalar_lea.vmem (!%p271_p1), %s390_s0, %s273_s12 }
   0x7   : > { %v72_v0 = vld [vmem:[%s56_s16] sm:$0xf] (!%p271_p1)  ;;  %s51_s17 = scalar_lea.vmem (!%p271_p1), [#allocation1], %s272_s13 }
   0x8   : > { %73 = vst [vmem:[%s51_s17] sm:$0xf] (!%p271_p1), %v72_v0 }
   0xc PF: > { %p274_p2 = scmp.ge.s32.totalorder %s330_s8, 1  ;;  %p89_p3 = scmp.lt.s32.totalorder %s330_s8, 3 }
   0xe   : > { %p90_p4 = pnand %p274_p2, %p89_p3 }
  0x10   : > { %93 = sbr.rel (%p90_p4) target bundleno = 511 (0x1ff), region = 50 }
  0x17   : > { %s370_s18 = sand.u32 1, %s269_s9   ;;  %v111_v1 = vlaneseq  ;;  %v332_v11 = vmov -1.0   ;;  %s278_s22 = sshll.u32 %s322_s6, 2 }
  0x18   : > { %s275_s19 = sshll.u32 %s370_s18, 2  ;;  %s178_s25 = scalar_lea.vmem %s391_s1, %s278_s22 }
  0x19   : > { %s102_s20 = scalar_lea.vmem [#allocation1], %s275_s19  ;;  %v112_v3 = vand.u32 127, %v111_v1  ;;  %v115_v4 = vshrl.u32 %v111_v1, 7  ;;  %s106_s21 = scalar_lea.vmem [#allocation3], %s275_s19 }
  0x1a   : > { %v109_v2 = vld [vmem:[%s102_s20] sm:$0xf] }
  0x1b   : > { %110 = vst [vmem:[#allocation0] sm:$0xf] %v109_v2  ;;  %vm113_vm0 = vcmp.lt.s32.totalorder %v112_v3, 3  ;;  %vm122_vm1 = vcmp.ge.s32.totalorder %v115_v4, %v112_v3  ;;  %vm117_vm2 = vcmp.eq.s32.totalorder %v115_v4, %v112_v3  ;;  %vm136_vm4 = vcmp.eq.s32.totalorder %v112_v3, 0 }
  0x1c   : > { %vm123_vm3 = vmand %vm122_vm1, %vm113_vm0  ;;  %vm133_vm5 = vcmp.eq.s32.totalorder %v112_v3, %v115_v4  ;;  %v137_v12 = vsel %vm136_vm4, 1.0, %v332_v11  ;;  %vm144_vm6 = vcmp.eq.s32.totalorder %v112_v3, 1  ;;  %vm154_vm7 = vcmp.eq.s32.totalorder %v112_v3, 2 }
  0x1d   : > { %v138_v13 = vsel %vm133_vm5, %v137_v12, 0.0 }
  0x22   : > { %v118_v5 = vld [vmem:[#allocation0] sm:$0xff] }
  0x23   : > { %v119_v6 = vsel %vm117_vm2, %v118_v5, 0.0  ;;  %v124_v7 = vsel %vm123_vm3, %v118_v5, 0.0 }
  0x24   : > { %120 = vadd.xlane.f32.xlu0 %v119_v6 }
  0xb1   : > { %v121_v8 = vpop.xlane.xlu0 %120 }
  0xb2   : > { %306 = vrcp.f32 %v121_v8  ;;  %vm161_vm8 = vweird.f32 %v121_v8 }
  0xbc   : > { %v307_v9 = vpop.eup %306 }
  0xbd   : > { %v126_v10 = vmul.f32 %v307_v9, %v124_v7 }
  0xbf   : > { %127 = vst [vmem:[#allocation4] sm:$0xff] %v126_v10 }
  0xc6   : > { %v140_v14 = vld [vmem:[#allocation4 + $0x1] ss:$0 sm:$0xff]  ;;  %v150_v17 = vld [vmem:[#allocation4 + $0x2] ss:$0 sm:$0xff] }
  0xc7   : > { %v141_v15 = vxor.u32 2147483648, %v140_v14  ;;  %v151_v19 = vxor.u32 2147483648, %v150_v17 }
  0xc9   : > { %v145_v16 = vmul.f32 %v141_v15, %v138_v13 }
  0xcb   : > { %146 = vadd.xlane.f32.xlu0 %v145_v16 }
 0x158   : > { %v147_v18 = vpop.xlane.xlu0 %146 }
 0x159   : > { %v148_v20 = vsel %vm144_vm6, %v147_v18, %v138_v13 }
 0x15a   : > { %v155_v21 = vmul.f32 %v151_v19, %v148_v20 }
 0x15c   : > { %156 = vadd.xlane.f32.xlu1 %v155_v21 }
 0x1e9   : > { %v157_v22 = vpop.xlane.xlu1 %156 }
 0x1ea   : > { %v158_v23 = vsel %vm154_vm7, %v157_v22, %v148_v20 }
 0x1eb   : > { %v160_v24 = vmul.f32 %v307_v9, %v158_v23 }
 0x1ed   : > { %v162_v25 = vsel %vm161_vm8, %v158_v23, %v160_v24 }
 0x1ee   : > { %163 = vst [vmem:[#allocation2] sm:$0xff] %v162_v25 }
 0x1f5   : > { %v167_v26 = vld [vmem:[#allocation2] sm:$0xf] }
 0x1f6   : > { %169 = vst [vmem:[%s106_s21] sm:$0xf] %v167_v26 }
 0x1fd   : > { %v194_v27 = vld [vmem:[%s106_s21] sm:$0xf] }
 0x1fe   : > { %195 = vst [vmem:[%s178_s25] sm:$0xf] %v194_v27 }
 0x1ff PF: > { %s7_s8 = sadd.s32 1, %s330_s8   ;;  %s392_s6 = smov %s326_s7 }
 0x200   : > { %p4_p5 = scmp.ge.s32.totalorder %s7_s8, 4   ;;  %s393_s7 = smov %s395_s10 }
 0x202   :  { %6 = sbr.rel (!%p4_p5) target bundleno = 2 (0x2), region = 112 }

// kernel: custom-call.47
= control target key start
LH: loop header
LB: loop body
LE: loop exit
PB: predicated region body
PF: predicated region fallthrough
CT: control target
= control target key end

     0   :  { %s342_s6 = smov 0   ;;  %s344_s7 = smov 0   ;;  %s389_s0 = inlined_call_operand.vmem [shape: f32[2,1,3,3], index: 0, kind: input, shape index: {}]   ;;  %s390_s1 = inlined_call_operand.vmem [shape: f32[2,1,3,3], index: 1, kind: output, shape index: {}]  }
   0x1   :  { %s346_s8 = smov 0  }
   0x2 LB: > { %s268_s9 = sadd.s32 4294967295, %s329_s8   ;;  %s33_s10 = sadd.s32 1, %s325_s7  ;;  %s329_s8 = sphi %s346_s8, %s7_s8   ;;  %s325_s7 = sphi %s344_s7, %s392_s7   ;;  %s321_s6 = sphi %s342_s6, %s391_s6  }
   0x3   : > { %p35_p0 = scmp.ge.s32.totalorder %s33_s10, 2  ;;  %p270_p1 = scmp.ge.s32.totalorder %s329_s8, 2 }
   0x4   : > { %s49_s11 = sand.u32 (!%p270_p1), 1, %s329_s8   ;;  %s272_s12 = sshll.u32 (!%p270_p1), %s325_s7, 2 }
   0x5   : > { %s394_s10 = smov (%p35_p0, %s33_s10), 0  ;;  %47 = sbr.rel (%p270_p1) target bundleno = 12 (0xc), region = 16 }
   0x6   : > { %s271_s13 = sshll.u32 (!%p270_p1), %s49_s11, 2  ;;  %s56_s16 = scalar_lea.vmem (!%p270_p1), %s389_s0, %s272_s12 }
   0x7   : > { %v72_v0 = vld [vmem:[%s56_s16] sm:$0xf] (!%p270_p1)  ;;  %s51_s17 = scalar_lea.vmem (!%p270_p1), [#allocation1], %s271_s13 }
   0x8   : > { %73 = vst [vmem:[%s51_s17] sm:$0xf] (!%p270_p1), %v72_v0 }
   0xc PF: > { %p273_p2 = scmp.ge.s32.totalorder %s329_s8, 1  ;;  %p89_p3 = scmp.lt.s32.totalorder %s329_s8, 3 }
   0xe   : > { %p90_p4 = pnand %p273_p2, %p89_p3 }
  0x10   : > { %93 = sbr.rel (%p90_p4) target bundleno = 511 (0x1ff), region = 50 }
  0x17   : > { %s369_s18 = sand.u32 1, %s268_s9   ;;  %v111_v1 = vlaneseq  ;;  %v331_v11 = vmov -1.0   ;;  %s277_s22 = sshll.u32 %s321_s6, 2 }
  0x18   : > { %s274_s19 = sshll.u32 %s369_s18, 2  ;;  %s177_s25 = scalar_lea.vmem %s390_s1, %s277_s22 }
  0x19   : > { %s102_s20 = scalar_lea.vmem [#allocation1], %s274_s19  ;;  %v112_v3 = vand.u32 127, %v111_v1  ;;  %v115_v4 = vshrl.u32 %v111_v1, 7  ;;  %s106_s21 = scalar_lea.vmem [#allocation3], %s274_s19 }
  0x1a   : > { %v109_v2 = vld [vmem:[%s102_s20] sm:$0xf] }
  0x1b   : > { %110 = vst [vmem:[#allocation0] sm:$0xf] %v109_v2  ;;  %vm113_vm0 = vcmp.lt.s32.totalorder %v112_v3, 3  ;;  %vm122_vm1 = vcmp.le.s32.totalorder %v115_v4, %v112_v3  ;;  %vm117_vm2 = vcmp.eq.s32.totalorder %v115_v4, %v112_v3  ;;  %vm136_vm4 = vcmp.eq.s32.totalorder %v112_v3, 2 }
  0x1c   : > { %vm123_vm3 = vmand %vm122_vm1, %vm113_vm0  ;;  %vm133_vm5 = vcmp.eq.s32.totalorder %v112_v3, %v115_v4  ;;  %v137_v12 = vsel %vm136_vm4, 1.0, %v331_v11  ;;  %vm144_vm6 = vcmp.eq.s32.totalorder %v112_v3, 1  ;;  %vm153_vm7 = vcmp.eq.s32.totalorder %v112_v3, 0 }
  0x1d   : > { %v138_v13 = vsel %vm133_vm5, %v137_v12, 0.0 }
  0x22   : > { %v118_v5 = vld [vmem:[#allocation0] sm:$0xff] }
  0x23   : > { %v119_v6 = vsel %vm117_vm2, %v118_v5, 0.0  ;;  %v124_v7 = vsel %vm123_vm3, %v118_v5, 0.0 }
  0x24   : > { %120 = vadd.xlane.f32.xlu0 %v119_v6 }
  0xb1   : > { %v121_v8 = vpop.xlane.xlu0 %120 }
  0xb2   : > { %305 = vrcp.f32 %v121_v8  ;;  %vm160_vm8 = vweird.f32 %v121_v8 }
  0xbc   : > { %v306_v9 = vpop.eup %305 }
  0xbd   : > { %v126_v10 = vmul.f32 %v306_v9, %v124_v7 }
  0xbf   : > { %127 = vst [vmem:[#allocation4] sm:$0xff] %v126_v10 }
  0xc6   : > { %v140_v14 = vld [vmem:[#allocation4 + $0x1] ss:$0 sm:$0xff]  ;;  %v149_v17 = vld [vmem:[#allocation4] ss:$0 sm:$0xff] }
  0xc7   : > { %v141_v15 = vxor.u32 2147483648, %v140_v14  ;;  %v150_v19 = vxor.u32 2147483648, %v149_v17 }
  0xc9   : > { %v145_v16 = vmul.f32 %v141_v15, %v138_v13 }
  0xcb   : > { %146 = vadd.xlane.f32.xlu0 %v145_v16 }
 0x158   : > { %v147_v18 = vpop.xlane.xlu0 %146 }
 0x159   : > { %v148_v20 = vsel %vm144_vm6, %v147_v18, %v138_v13 }
 0x15a   : > { %v154_v21 = vmul.f32 %v150_v19, %v148_v20 }
 0x15c   : > { %155 = vadd.xlane.f32.xlu1 %v154_v21 }
 0x1e9   : > { %v156_v22 = vpop.xlane.xlu1 %155 }
 0x1ea   : > { %v157_v23 = vsel %vm153_vm7, %v156_v22, %v148_v20 }
 0x1eb   : > { %v159_v24 = vmul.f32 %v306_v9, %v157_v23 }
 0x1ed   : > { %v161_v25 = vsel %vm160_vm8, %v157_v23, %v159_v24 }
 0x1ee   : > { %162 = vst [vmem:[#allocation2] sm:$0xff] %v161_v25 }
 0x1f5   : > { %v166_v26 = vld [vmem:[#allocation2] sm:$0xf] }
 0x1f6   : > { %168 = vst [vmem:[%s106_s21] sm:$0xf] %v166_v26 }
 0x1fd   : > { %v193_v27 = vld [vmem:[%s106_s21] sm:$0xf] }
 0x1fe   : > { %194 = vst [vmem:[%s177_s25] sm:$0xf] %v193_v27 }
 0x1ff PF: > { %s7_s8 = sadd.s32 1, %s329_s8   ;;  %s391_s6 = smov %s325_s7 }
 0x200   : > { %p4_p5 = scmp.ge.s32.totalorder %s7_s8, 4   ;;  %s392_s7 = smov %s394_s10 }
 0x202   :  { %6 = sbr.rel (!%p4_p5) target bundleno = 2 (0x2), region = 111 }

// kernel: reverse.1
= control target key start
LH: loop header
LB: loop body
LE: loop exit
PB: predicated region body
PF: predicated region fallthrough
CT: control target
= control target key end

     0   :  { %s3158_s0 = inlined_call_operand.vmem [shape: bf16[2,16,16,8], index: 0, kind: input, shape index: {}]   ;;  %s3159_s1 = inlined_call_operand.vmem [shape: bf16[2,16,16,8], index: 1, kind: output, shape index: {}]  }
   0x1   :  { %v17_v0 = vld [vmem:[%s3158_s0] sm:$0xff]   ;;  %v21_v1 = vld [vmem:[%s3158_s0 + $0x8] sm:$0xff]   ;;  %v25_v2 = vld [vmem:[%s3158_s0 + $0x10] sm:$0xff]  }
   0x2   :  { %18 = vst [vmem:[#allocation1] sm:$0xff] %v17_v0   ;;  %22 = vst [vmem:[#allocation1 + $0x8] sm:$0xff] %v21_v1   ;;  %v29_v3 = vld [vmem:[%s3158_s0 + $0x18] sm:$0xff]   ;;  %v33_v4 = vld [vmem:[%s3158_s0 + $0x20] sm:$0xff]  }
   0x3   :  { %26 = vst [vmem:[#allocation1 + $0x10] sm:$0xff] %v25_v2   ;;  %v37_v5 = vld [vmem:[%s3158_s0 + $0x28] sm:$0xff]   ;;  %30 = vst [vmem:[#allocation1 + $0x18] sm:$0xff] %v29_v3   ;;  %v41_v6 = vld [vmem:[%s3158_s0 + $0x30] sm:$0xff]  }
   0x4   :  { %34 = vst [vmem:[#allocation1 + $0x20] sm:$0xff] %v33_v4   ;;  %38 = vst [vmem:[#allocation1 + $0x28] sm:$0xff] %v37_v5   ;;  %v45_v7 = vld [vmem:[%s3158_s0 + $0x38] sm:$0xff]   ;;  %v49_v8 = vld [vmem:[%s3158_s0 + $0x40] sm:$0xff]  }
   0x5   :  { %42 = vst [vmem:[#allocation1 + $0x30] sm:$0xff] %v41_v6   ;;  %46 = vst [vmem:[#allocation1 + $0x38] sm:$0xff] %v45_v7   ;;  %v53_v9 = vld [vmem:[%s3158_s0 + $0x48] sm:$0xff]   ;;  %v57_v10 = vld [vmem:[%s3158_s0 + $0x50] sm:$0xff]  }
   0x6   :  { %50 = vst [vmem:[#allocation1 + $0x40] sm:$0xff] %v49_v8   ;;  %v61_v11 = vld [vmem:[%s3158_s0 + $0x58] sm:$0xff]   ;;  %54 = vst [vmem:[#allocation1 + $0x48] sm:$0xff] %v53_v9   ;;  %v65_v12 = vld [vmem:[%s3158_s0 + $0x60] sm:$0xff]  }
   0x7   :  { %58 = vst [vmem:[#allocation1 + $0x50] sm:$0xff] %v57_v10   ;;  %62 = vst [vmem:[#allocation1 + $0x58] sm:$0xff] %v61_v11   ;;  %v69_v13 = vld [vmem:[%s3158_s0 + $0x68] sm:$0xff]   ;;  %v73_v14 = vld [vmem:[%s3158_s0 + $0x70] sm:$0xff]  }
   0x8   :  { %66 = vst [vmem:[#allocation1 + $0x60] sm:$0xff] %v65_v12   ;;  %70 = vst [vmem:[#allocation1 + $0x68] sm:$0xff] %v69_v13   ;;  %v77_v15 = vld [vmem:[%s3158_s0 + $0x78] sm:$0xff]   ;;  %v81_v16 = vld [vmem:[%s3158_s0 + $0x80] sm:$0xff]  }
   0x9   :  { %74 = vst [vmem:[#allocation1 + $0x70] sm:$0xff] %v73_v14   ;;  %v85_v17 = vld [vmem:[%s3158_s0 + $0x88] sm:$0xff]   ;;  %78 = vst [vmem:[#allocation1 + $0x78] sm:$0xff] %v77_v15   ;;  %v89_v18 = vld [vmem:[%s3158_s0 + $0x90] sm:$0xff]  }
   0xa   :  { %82 = vst [vmem:[#allocation1 + $0x80] sm:$0xff] %v81_v16   ;;  %86 = vst [vmem:[#allocation1 + $0x88] sm:$0xff] %v85_v17   ;;  %v93_v19 = vld [vmem:[%s3158_s0 + $0x98] sm:$0xff]   ;;  %v97_v20 = vld [vmem:[%s3158_s0 + $0xa0] sm:$0xff]  }
   0xb   :  { %90 = vst [vmem:[#allocation1 + $0x90] sm:$0xff] %v89_v18   ;;  %94 = vst [vmem:[#allocation1 + $0x98] sm:$0xff] %v93_v19   ;;  %v101_v21 = vld [vmem:[%s3158_s0 + $0xa8] sm:$0xff]   ;;  %v105_v22 = vld [vmem:[%s3158_s0 + $0xb0] sm:$0xff]  }
   0xc   :  { %98 = vst [vmem:[#allocation1 + $0xa0] sm:$0xff] %v97_v20   ;;  %v109_v23 = vld [vmem:[%s3158_s0 + $0xb8] sm:$0xff]   ;;  %102 = vst [vmem:[#allocation1 + $0xa8] sm:$0xff] %v101_v21   ;;  %v113_v24 = vld [vmem:[%s3158_s0 + $0xc0] sm:$0xff]  }
   0xd   :  { %106 = vst [vmem:[#allocation1 + $0xb0] sm:$0xff] %v105_v22   ;;  %110 = vst [vmem:[#allocation1 + $0xb8] sm:$0xff] %v109_v23   ;;  %v117_v25 = vld [vmem:[%s3158_s0 + $0xc8] sm:$0xff]   ;;  %v121_v26 = vld [vmem:[%s3158_s0 + $0xd0] sm:$0xff]  }
   0xe   :  { %114 = vst [vmem:[#allocation1 + $0xc0] sm:$0xff] %v113_v24   ;;  %118 = vst [vmem:[#allocation1 + $0xc8] sm:$0xff] %v117_v25   ;;  %v125_v27 = vld [vmem:[%s3158_s0 + $0xd8] sm:$0xff]   ;;  %v129_v28 = vld [vmem:[%s3158_s0 + $0xe0] sm:$0xff]  }
   0xf   :  { %122 = vst [vmem:[#allocation1 + $0xd0] sm:$0xff] %v121_v26   ;;  %v133_v29 = vld [vmem:[%s3158_s0 + $0xe8] sm:$0xff]   ;;  %126 = vst [vmem:[#allocation1 + $0xd8] sm:$0xff] %v125_v27   ;;  %v137_v30 = vld [vmem:[%s3158_s0 + $0xf0] sm:$0xff]  }
  0x10   :  { %130 = vst [vmem:[#allocation1 + $0xe0] sm:$0xff] %v129_v28   ;;  %134 = vst [vmem:[#allocation1 + $0xe8] sm:$0xff] %v133_v29   ;;  %v141_v31 = vld [vmem:[%s3158_s0 + $0xf8] sm:$0xff]   ;;  %v2723_v32 = vld [vmem:[#allocation1 + $0x40] sm:$0xff]  }
  0x11   :  { %138 = vst [vmem:[#allocation1 + $0xf0] sm:$0xff] %v137_v30   ;;  %142 = vst [vmem:[#allocation1 + $0xf8] sm:$0xff] %v141_v31   ;;  %v2711_v33 = vld [vmem:[#allocation1 + $0x58] sm:$0xff]   ;;  %v2715_v34 = vld [vmem:[#allocation1 + $0x50] sm:$0xff]   ;;  %v2724_v35 = vunpack.c.l.bf16 %v2723_v32  ;;  %v2725_v36 = vunpack.c.h.bf16 %v2723_v32 }
  0x12   :  { %v2699_v37 = vld [vmem:[#allocation1 + $0x70] sm:$0xff]   ;;  %v2703_v38 = vld [vmem:[#allocation1 + $0x68] sm:$0xff]   ;;  %v2712_v39 = vunpack.c.l.bf16 %v2711_v33  ;;  %v2713_v40 = vunpack.c.h.bf16 %v2711_v33  ;;  %v2716_v41 = vunpack.c.l.bf16 %v2715_v34  ;;  %v2717_v42 = vunpack.c.h.bf16 %v2715_v34  ;;  %v2691_v44 = vld [vmem:[#allocation1 + $0x80] sm:$0xff]  }
  0x13   :  { %v2687_v43 = vld [vmem:[#allocation1 + $0x88] sm:$0xff]   ;;  %v2700_v45 = vunpack.c.l.bf16 %v2699_v37  ;;  %v2701_v46 = vunpack.c.h.bf16 %v2699_v37  ;;  %v2704_v47 = vunpack.c.l.bf16 %v2703_v38  ;;  %v2705_v48 = vunpack.c.h.bf16 %v2703_v38  ;;  %1047 = vst [vmem:[#allocation0 + $0x88] sm:$0xff] %v2725_v36  ;;  %1063 = vst [vmem:[#allocation0 + $0x80] sm:$0xff] %v2724_v35  ;;  %v2675_v49 = vld [vmem:[#allocation1 + $0xa0] sm:$0xff]  }
  0x14   :  { %v2679_v50 = vld [vmem:[#allocation1 + $0x98] sm:$0xff]   ;;  %v2688_v51 = vunpack.c.l.bf16 %v2687_v43  ;;  %v2689_v52 = vunpack.c.h.bf16 %v2687_v43  ;;  %v2692_v53 = vunpack.c.l.bf16 %v2691_v44  ;;  %v2693_v54 = vunpack.c.h.bf16 %v2691_v44  ;;  %951 = vst [vmem:[#allocation0 + $0xb8] sm:$0xff] %v2713_v40  ;;  %967 = vst [vmem:[#allocation0 + $0xb0] sm:$0xff] %v2712_v39  ;;  %v2667_v56 = vld [vmem:[#allocation1 + $0xb0] sm:$0xff]  }
  0x15   :  { %983 = vst [vmem:[#allocation0 + $0xa8] sm:$0xff] %v2717_v42  ;;  %999 = vst [vmem:[#allocation0 + $0xa0] sm:$0xff] %v2716_v41  ;;  %v2663_v55 = vld [vmem:[#allocation1 + $0xb8] sm:$0xff]   ;;  %v2676_v57 = vunpack.c.l.bf16 %v2675_v49  ;;  %v2677_v58 = vunpack.c.h.bf16 %v2675_v49  ;;  %v2680_v59 = vunpack.c.l.bf16 %v2679_v50  ;;  %v2681_v60 = vunpack.c.h.bf16 %v2679_v50  ;;  %v2655_v62 = vld [vmem:[#allocation1 + $0xc8] sm:$0xff]  }
  0x16   :  { %855 = vst [vmem:[#allocation0 + $0xe8] sm:$0xff] %v2701_v46  ;;  %871 = vst [vmem:[#allocation0 + $0xe0] sm:$0xff] %v2700_v45  ;;  %v2651_v61 = vld [vmem:[#allocation1 + $0xd0] sm:$0xff]   ;;  %v3024_v63 = vld [vmem:[#allocation1 + $0xc0] sm:$0xff]   ;;  %v2664_v0 = vunpack.c.l.bf16 %v2663_v55  ;;  %v2665_v1 = vunpack.c.h.bf16 %v2663_v55  ;;  %v2668_v2 = vunpack.c.l.bf16 %v2667_v56  ;;  %v2669_v3 = vunpack.c.h.bf16 %v2667_v56 }
  0x17   :  { %887 = vst [vmem:[#allocation0 + $0xd8] sm:$0xff] %v2705_v48  ;;  %903 = vst [vmem:[#allocation0 + $0xd0] sm:$0xff] %v2704_v47  ;;  %v3026_v4 = vld [vmem:[#allocation1 + $0x90] sm:$0xff]   ;;  %v2639_v5 = vld [vmem:[#allocation1 + $0xe8] sm:$0xff]   ;;  %v2652_v8 = vunpack.c.l.bf16 %v2651_v61  ;;  %v2653_v9 = vunpack.c.h.bf16 %v2651_v61  ;;  %v2656_v10 = vunpack.c.l.bf16 %v2655_v62  ;;  %v2657_v11 = vunpack.c.h.bf16 %v2655_v62 }
  0x18   :  { %759 = vst [vmem:[#allocation0 + $0x118] sm:$0xff] %v2689_v52  ;;  %775 = vst [vmem:[#allocation0 + $0x110] sm:$0xff] %v2688_v51  ;;  %v2643_v6 = vld [vmem:[#allocation1 + $0xe0] sm:$0xff]   ;;  %v2647_v7 = vld [vmem:[#allocation1 + $0xd8] sm:$0xff]   ;;  %v2640_v14 = vunpack.c.l.bf16 %v2639_v5  ;;  %v2641_v15 = vunpack.c.h.bf16 %v2639_v5  ;;  %v2660_v28 = vunpack.c.l.bf16 %v3024_v63  ;;  %v2661_v29 = vunpack.c.h.bf16 %v3024_v63 }
  0x19   :  { %791 = vst [vmem:[#allocation0 + $0x108] sm:$0xff] %v2693_v54  ;;  %807 = vst [vmem:[#allocation0 + $0x100] sm:$0xff] %v2692_v53  ;;  %v2631_v12 = vld [vmem:[#allocation1 + $0xf8] sm:$0xff]   ;;  %v2635_v13 = vld [vmem:[#allocation1 + $0xf0] sm:$0xff]   ;;  %v2644_v16 = vunpack.c.l.bf16 %v2643_v6  ;;  %v2645_v17 = vunpack.c.h.bf16 %v2643_v6  ;;  %v2648_v26 = vunpack.c.l.bf16 %v2647_v7  ;;  %v2649_v27 = vunpack.c.h.bf16 %v2647_v7 }
  0x1a   :  { %663 = vst [vmem:[#allocation0 + $0x148] sm:$0xff] %v2677_v58  ;;  %679 = vst [vmem:[#allocation0 + $0x140] sm:$0xff] %v2676_v57  ;;  %v2671_v18 = vld [vmem:[#allocation1 + $0xa8] sm:$0xff]   ;;  %v2632_v19 = vunpack.c.l.bf16 %v2631_v12  ;;  %v2633_v20 = vunpack.c.h.bf16 %v2631_v12  ;;  %v2636_v21 = vunpack.c.l.bf16 %v2635_v13  ;;  %v2637_v22 = vunpack.c.h.bf16 %v2635_v13  ;;  %v2695_v23 = vld [vmem:[#allocation1 + $0x78] sm:$0xff]  }
  0x1b   :  { %695 = vst [vmem:[#allocation0 + $0x138] sm:$0xff] %v2681_v60  ;;  %711 = vst [vmem:[#allocation0 + $0x130] sm:$0xff] %v2680_v59  ;;  %v2707_v24 = vld [vmem:[#allocation1 + $0x60] sm:$0xff]   ;;  %v2719_v25 = vld [vmem:[#allocation1 + $0x48] sm:$0xff]   ;;  %v2672_v33 = vunpack.c.l.bf16 %v2671_v18  ;;  %v2673_v34 = vunpack.c.h.bf16 %v2671_v18  ;;  %v2684_v35 = vunpack.c.l.bf16 %v3026_v4  ;;  %v2685_v36 = vunpack.c.h.bf16 %v3026_v4 }
  0x1c   :  { %567 = vst [vmem:[#allocation0 + $0x178] sm:$0xff] %v2665_v1  ;;  %583 = vst [vmem:[#allocation0 + $0x170] sm:$0xff] %v2664_v0  ;;  %v2727_v30 = vld [vmem:[#allocation1 + $0x38] sm:$0xff]   ;;  %v2731_v31 = vld [vmem:[#allocation1 + $0x30] sm:$0xff]   ;;  %v2696_v40 = vunpack.c.l.bf16 %v2695_v23  ;;  %v2697_v41 = vunpack.c.h.bf16 %v2695_v23  ;;  %v2708_v42 = vunpack.c.l.bf16 %v2707_v24  ;;  %v2709_v43 = vunpack.c.h.bf16 %v2707_v24 }
  0x1d   :  { %599 = vst [vmem:[#allocation0 + $0x168] sm:$0xff] %v2669_v3  ;;  %615 = vst [vmem:[#allocation0 + $0x160] sm:$0xff] %v2668_v2  ;;  %v2735_v32 = vld [vmem:[#allocation1 + $0x28] sm:$0xff]   ;;  %v2739_v37 = vld [vmem:[#allocation1 + $0x20] sm:$0xff]   ;;  %v2720_v47 = vunpack.c.l.bf16 %v2719_v25  ;;  %v2721_v48 = vunpack.c.h.bf16 %v2719_v25  ;;  %v2728_v49 = vunpack.c.l.bf16 %v2727_v30  ;;  %v2729_v50 = vunpack.c.h.bf16 %v2727_v30 }
  0x1e   :  { %471 = vst [vmem:[#allocation0 + $0x1a8] sm:$0xff] %v2653_v9  ;;  %487 = vst [vmem:[#allocation0 + $0x1a0] sm:$0xff] %v2652_v8  ;;  %v2743_v38 = vld [vmem:[#allocation1 + $0x18] sm:$0xff]   ;;  %v3032_v39 = vld [vmem:[#allocation1 + $0x10] sm:$0xff]   ;;  %v2732_v56 = vunpack.c.l.bf16 %v2731_v31  ;;  %v2733_v57 = vunpack.c.h.bf16 %v2731_v31  ;;  %v2736_v58 = vunpack.c.l.bf16 %v2735_v32  ;;  %v2737_v59 = vunpack.c.h.bf16 %v2735_v32 }
  0x1f   :  { %503 = vst [vmem:[#allocation0 + $0x198] sm:$0xff] %v2657_v11  ;;  %519 = vst [vmem:[#allocation0 + $0x190] sm:$0xff] %v2656_v10  ;;  %v3034_v44 = vld [vmem:[#allocation1 + $0x8] sm:$0xff]   ;;  %v3036_v45 = vld [vmem:[#allocation1] sm:$0xff]   ;;  %v2740_v63 = vunpack.c.l.bf16 %v2739_v37  ;;  %v2741_v0 = vunpack.c.h.bf16 %v2739_v37  ;;  %v2744_v1 = vunpack.c.l.bf16 %v2743_v38  ;;  %v2745_v2 = vunpack.c.h.bf16 %v2743_v38 }
  0x20   :  { %375 = vst [vmem:[#allocation0 + $0x1d8] sm:$0xff] %v2641_v15  ;;  %391 = vst [vmem:[#allocation0 + $0x1d0] sm:$0xff] %v2640_v14  ;;  %v3038_v46 = vld [vmem:[#allocation0 + $0xef] ss:$-1 sm:$0xff]  ;;  %v3040_v51 = vld [vmem:[#allocation0 + $0xe7] ss:$-1 sm:$0xff]  ;;  %v2748_v6 = vunpack.c.l.bf16 %v3032_v39  ;;  %v2749_v7 = vunpack.c.h.bf16 %v3032_v39  ;;  %v2752_v8 = vunpack.c.l.bf16 %v3034_v44  ;;  %v2753_v9 = vunpack.c.h.bf16 %v3034_v44 }
  0x21   :  { %407 = vst [vmem:[#allocation0 + $0x1c8] sm:$0xff] %v2645_v17  ;;  %423 = vst [vmem:[#allocation0 + $0x1c0] sm:$0xff] %v2644_v16  ;;  %v3042_v52 = vld [vmem:[#allocation0 + $0xdf] ss:$-1 sm:$0xff]  ;;  %v3044_v53 = vld [vmem:[#allocation0 + $0xd7] ss:$-1 sm:$0xff]  ;;  %v2756_v13 = vunpack.c.l.bf16 %v3036_v45  ;;  %v2757_v14 = vunpack.c.h.bf16 %v3036_v45  ;;  %v2766_v18 = vpack.c.bf16 %v3040_v51, %v3038_v46 }
  0x22   :  { %311 = vst [vmem:[#allocation0 + $0x1f8] sm:$0xff] %v2633_v20  ;;  %327 = vst [vmem:[#allocation0 + $0x1f0] sm:$0xff] %v2632_v19  ;;  %v3046_v54 = vld [vmem:[#allocation0 + $0xbf] ss:$-1 sm:$0xff]  ;;  %v3048_v55 = vld [vmem:[#allocation0 + $0xb7] ss:$-1 sm:$0xff]  ;;  %v2771_v19 = vpack.c.bf16 %v3044_v53, %v3042_v52 }
  0x23   :  { %343 = vst [vmem:[#allocation0 + $0x1e8] sm:$0xff] %v2637_v22  ;;  %359 = vst [vmem:[#allocation0 + $0x1e0] sm:$0xff] %v2636_v21  ;;  %v1369_v60 = vld [vmem:[#allocation0 + $0xaf] ss:$-1 sm:$0xff]  ;;  %v1373_v61 = vld [vmem:[#allocation0 + $0xa7] ss:$-1 sm:$0xff]  ;;  %v2781_v23 = vpack.c.bf16 %v3048_v55, %v3046_v54 }
  0x24   :  { %439 = vst [vmem:[#allocation0 + $0x1b8] sm:$0xff] %v2649_v27  ;;  %455 = vst [vmem:[#allocation0 + $0x1b0] sm:$0xff] %v2648_v26  ;;  %v1389_v62 = vld [vmem:[#allocation0 + $0x8f] ss:$-1 sm:$0xff]  ;;  %v1393_v3 = vld [vmem:[#allocation0 + $0x87] ss:$-1 sm:$0xff]  ;;  %v2786_v24 = vpack.c.bf16 %v1373_v61, %v1369_v60 }
  0x25   :  { %535 = vst [vmem:[#allocation0 + $0x188] sm:$0xff] %v2661_v29  ;;  %551 = vst [vmem:[#allocation0 + $0x180] sm:$0xff] %v2660_v28  ;;  %v1558_v4 = vld [vmem:[#allocation0 + $0x17f] ss:$-1 sm:$0xff]  ;;  %v1562_v5 = vld [vmem:[#allocation0 + $0x177] ss:$-1 sm:$0xff]  ;;  %v2796_v25 = vpack.c.bf16 %v1393_v3, %v1389_v62 }
  0x26   :  { %631 = vst [vmem:[#allocation0 + $0x158] sm:$0xff] %v2673_v34  ;;  %647 = vst [vmem:[#allocation0 + $0x150] sm:$0xff] %v2672_v33  ;;  %v1528_v10 = vld [vmem:[#allocation0 + $0x1af] ss:$-1 sm:$0xff]  ;;  %v1532_v11 = vld [vmem:[#allocation0 + $0x1a7] ss:$-1 sm:$0xff]  ;;  %v2881_v32 = vpack.c.bf16 %v1562_v5, %v1558_v4 }
  0x27   :  { %727 = vst [vmem:[#allocation0 + $0x128] sm:$0xff] %v2685_v36  ;;  %743 = vst [vmem:[#allocation0 + $0x120] sm:$0xff] %v2684_v35  ;;  %v1538_v12 = vld [vmem:[#allocation0 + $0x19f] ss:$-1 sm:$0xff]  ;;  %v1502_v16 = vld [vmem:[#allocation0 + $0x1d7] ss:$-1 sm:$0xff]  ;;  %v2866_v31 = vpack.c.bf16 %v1532_v11, %v1528_v10 }
  0x28   :  { %823 = vst [vmem:[#allocation0 + $0xf8] sm:$0xff] %v2697_v41  ;;  %839 = vst [vmem:[#allocation0 + $0xf0] sm:$0xff] %v2696_v40  ;;  %v1498_v15 = vld [vmem:[#allocation0 + $0x1df] ss:$-1 sm:$0xff]  ;;  %v1508_v17 = vld [vmem:[#allocation0 + $0x1cf] ss:$-1 sm:$0xff] }
  0x29   :  { %919 = vst [vmem:[#allocation0 + $0xc8] sm:$0xff] %v2709_v43  ;;  %935 = vst [vmem:[#allocation0 + $0xc0] sm:$0xff] %v2708_v42  ;;  %v1478_v20 = vld [vmem:[#allocation0 + $0x1ff] ss:$-1 sm:$0xff]  ;;  %v1482_v21 = vld [vmem:[#allocation0 + $0x1f7] ss:$-1 sm:$0xff]  ;;  %v2851_v26 = vpack.c.bf16 %v1502_v16, %v1498_v15 }
  0x2a   :  { %1015 = vst [vmem:[#allocation0 + $0x98] sm:$0xff] %v2721_v48  ;;  %1031 = vst [vmem:[#allocation0 + $0x90] sm:$0xff] %v2720_v47  ;;  %v1488_v22 = vld [vmem:[#allocation0 + $0x1ef] ss:$-1 sm:$0xff]  ;;  %v1492_v27 = vld [vmem:[#allocation0 + $0x1e7] ss:$-1 sm:$0xff]  ;;  %v2841_v30 = vpack.c.bf16 %v1482_v21, %v1478_v20 }
  0x2b   :  { %1079 = vst [vmem:[#allocation0 + $0x78] sm:$0xff] %v2729_v50  ;;  %1095 = vst [vmem:[#allocation0 + $0x70] sm:$0xff] %v2728_v49  ;;  %v1512_v28 = vld [vmem:[#allocation0 + $0x1c7] ss:$-1 sm:$0xff]  ;;  %v1518_v29 = vld [vmem:[#allocation0 + $0x1bf] ss:$-1 sm:$0xff]  ;;  %v2846_v35 = vpack.c.bf16 %v1492_v27, %v1488_v22 }
  0x2c   :  { %1111 = vst [vmem:[#allocation0 + $0x68] sm:$0xff] %v2733_v57  ;;  %1127 = vst [vmem:[#allocation0 + $0x60] sm:$0xff] %v2732_v56  ;;  %v1522_v33 = vld [vmem:[#allocation0 + $0x1b7] ss:$-1 sm:$0xff]  ;;  %v2856_v36 = vpack.c.bf16 %v1512_v28, %v1508_v17  ;;  %v1548_v54 = vld [vmem:[#allocation0 + $0x18f] ss:$-1 sm:$0xff] }
  0x2d   :  { %1143 = vst [vmem:[#allocation0 + $0x58] sm:$0xff] %v2737_v59  ;;  %1159 = vst [vmem:[#allocation0 + $0x50] sm:$0xff] %v2736_v58  ;;  %v1542_v34 = vld [vmem:[#allocation0 + $0x197] ss:$-1 sm:$0xff]  ;;  %v2861_v40 = vpack.c.bf16 %v1522_v33, %v1518_v29  ;;  %v1568_v55 = vld [vmem:[#allocation0 + $0x16f] ss:$-1 sm:$0xff] }
  0x2e   :  { %1175 = vst [vmem:[#allocation0 + $0x48] sm:$0xff] %v2741_v0  ;;  %1191 = vst [vmem:[#allocation0 + $0x40] sm:$0xff] %v2740_v63  ;;  %v2871_v41 = vpack.c.bf16 %v1542_v34, %v1538_v12  ;;  %v1588_v60 = vld [vmem:[#allocation0 + $0x14f] ss:$-1 sm:$0xff]  ;;  %v1572_v10 = vld [vmem:[#allocation0 + $0x167] ss:$-1 sm:$0xff] }
  0x2f   :  { %1207 = vst [vmem:[#allocation0 + $0x38] sm:$0xff] %v2745_v2  ;;  %1223 = vst [vmem:[#allocation0 + $0x30] sm:$0xff] %v2744_v1  ;;  %v1319_v37 = vld [vmem:[#allocation0 + $0xff] ss:$-1 sm:$0xff]  ;;  %v1323_v38 = vld [vmem:[#allocation0 + $0xf7] ss:$-1 sm:$0xff]  ;;  %v2886_v17 = vpack.c.bf16 %v1572_v10, %v1568_v55 }
  0x30   :  { %1239 = vst [vmem:[#allocation0 + $0x28] sm:$0xff] %v2749_v7  ;;  %1255 = vst [vmem:[#allocation0 + $0x20] sm:$0xff] %v2748_v6  ;;  %v1349_v39 = vld [vmem:[#allocation0 + $0xcf] ss:$-1 sm:$0xff]  ;;  %v1353_v42 = vld [vmem:[#allocation0 + $0xc7] ss:$-1 sm:$0xff]  ;;  %v2761_v45 = vpack.c.bf16 %v1323_v38, %v1319_v37 }
  0x31   :  { %1271 = vst [vmem:[#allocation0 + $0x18] sm:$0xff] %v2753_v9  ;;  %1287 = vst [vmem:[#allocation0 + $0x10] sm:$0xff] %v2752_v8  ;;  %v1379_v43 = vld [vmem:[#allocation0 + $0x9f] ss:$-1 sm:$0xff]  ;;  %v1383_v44 = vld [vmem:[#allocation0 + $0x97] ss:$-1 sm:$0xff]  ;;  %v2776_v49 = vpack.c.bf16 %v1353_v42, %v1349_v39 }
  0x32   :  { %1302 = vst [vmem:[#allocation0 + $0x8] sm:$0xff] %v2757_v14  ;;  %1315 = vst [vmem:[#allocation0] sm:$0xff] %v2756_v13  ;;  %v1399_v46 = vld [vmem:[#allocation0 + $0x7f] ss:$-1 sm:$0xff]  ;;  %v1403_v47 = vld [vmem:[#allocation0 + $0x77] ss:$-1 sm:$0xff]  ;;  %v2791_v50 = vpack.c.bf16 %v1383_v44, %v1379_v43 }
  0x33   :  { %2767 = vst [vmem:[#allocation3 + $0x8] sm:$0xff] %v2766_v18   ;;  %2772 = vst [vmem:[#allocation3 + $0x10] sm:$0xff] %v2771_v19   ;;  %v1409_v48 = vld [vmem:[#allocation0 + $0x6f] ss:$-1 sm:$0xff]  ;;  %v1413_v51 = vld [vmem:[#allocation0 + $0x67] ss:$-1 sm:$0xff]  ;;  %v2801_v56 = vpack.c.bf16 %v1403_v47, %v1399_v46 }
  0x34   :  { %2782 = vst [vmem:[#allocation3 + $0x20] sm:$0xff] %v2781_v23   ;;  %2787 = vst [vmem:[#allocation3 + $0x28] sm:$0xff] %v2786_v24   ;;  %v1419_v52 = vld [vmem:[#allocation0 + $0x5f] ss:$-1 sm:$0xff]  ;;  %v1423_v53 = vld [vmem:[#allocation0 + $0x57] ss:$-1 sm:$0xff]  ;;  %v2806_v61 = vpack.c.bf16 %v1413_v51, %v1409_v48 }
  0x35   :  { %2797 = vst [vmem:[#allocation3 + $0x38] sm:$0xff] %v2796_v25   ;;  %2852 = vst [vmem:[#allocation3 + $0x90] sm:$0xff] %v2851_v26   ;;  %v1429_v57 = vld [vmem:[#allocation0 + $0x4f] ss:$-1 sm:$0xff]  ;;  %v1433_v58 = vld [vmem:[#allocation0 + $0x47] ss:$-1 sm:$0xff]  ;;  %v2811_v62 = vpack.c.bf16 %v1423_v53, %v1419_v52 }
  0x36   :  { %2842 = vst [vmem:[#allocation3 + $0x80] sm:$0xff] %v2841_v30   ;;  %2867 = vst [vmem:[#allocation3 + $0xa8] sm:$0xff] %v2866_v31   ;;  %v1439_v59 = vld [vmem:[#allocation0 + $0x3f] ss:$-1 sm:$0xff]  ;;  %v1443_v63 = vld [vmem:[#allocation0 + $0x37] ss:$-1 sm:$0xff]  ;;  %v2816_v2 = vpack.c.bf16 %v1433_v58, %v1429_v57 }
  0x37   :  { %2882 = vst [vmem:[#allocation3 + $0xc0] sm:$0xff] %v2881_v32   ;;  %2847 = vst [vmem:[#allocation3 + $0x88] sm:$0xff] %v2846_v35   ;;  %v1449_v0 = vld [vmem:[#allocation0 + $0x2f] ss:$-1 sm:$0xff]  ;;  %v1453_v1 = vld [vmem:[#allocation0 + $0x27] ss:$-1 sm:$0xff]  ;;  %v2821_v6 = vpack.c.bf16 %v1443_v63, %v1439_v59 }
  0x38   :  { %2857 = vst [vmem:[#allocation3 + $0x98] sm:$0xff] %v2856_v36   ;;  %2862 = vst [vmem:[#allocation3 + $0xa0] sm:$0xff] %v2861_v40   ;;  %v1459_v3 = vld [vmem:[#allocation0 + $0x1f] ss:$-1 sm:$0xff]  ;;  %v1463_v4 = vld [vmem:[#allocation0 + $0x17] ss:$-1 sm:$0xff]  ;;  %v2826_v7 = vpack.c.bf16 %v1453_v1, %v1449_v0 }
  0x39   :  { %2872 = vst [vmem:[#allocation3 + $0xb0] sm:$0xff] %v2871_v41   ;;  %2762 = vst [vmem:[#allocation3] sm:$0xff] %v2761_v45   ;;  %v1468_v5 = vld [vmem:[#allocation0 + $0xf] ss:$-1 sm:$0xff]  ;;  %v1472_v8 = vld [vmem:[#allocation0 + $0x7] ss:$-1 sm:$0xff]  ;;  %v2831_v11 = vpack.c.bf16 %v1463_v4, %v1459_v3 }
  0x3a   :  { %2777 = vst [vmem:[#allocation3 + $0x18] sm:$0xff] %v2776_v49   ;;  %2792 = vst [vmem:[#allocation3 + $0x30] sm:$0xff] %v2791_v50   ;;  %v1552_v9 = vld [vmem:[#allocation0 + $0x187] ss:$-1 sm:$0xff]  ;;  %v1578_v12 = vld [vmem:[#allocation0 + $0x15f] ss:$-1 sm:$0xff]  ;;  %v2836_v15 = vpack.c.bf16 %v1472_v8, %v1468_v5 }
  0x3b   :  { %2802 = vst [vmem:[#allocation3 + $0x40] sm:$0xff] %v2801_v56   ;;  %2807 = vst [vmem:[#allocation3 + $0x48] sm:$0xff] %v2806_v61   ;;  %v1582_v13 = vld [vmem:[#allocation0 + $0x157] ss:$-1 sm:$0xff]  ;;  %v1592_v14 = vld [vmem:[#allocation0 + $0x147] ss:$-1 sm:$0xff]  ;;  %v2876_v16 = vpack.c.bf16 %v1552_v9, %v1548_v54 }
  0x3c   :  { %2812 = vst [vmem:[#allocation3 + $0x50] sm:$0xff] %v2811_v62   ;;  %2817 = vst [vmem:[#allocation3 + $0x58] sm:$0xff] %v2816_v2   ;;  %v1598_v18 = vld [vmem:[#allocation0 + $0x13f] ss:$-1 sm:$0xff]  ;;  %v1602_v19 = vld [vmem:[#allocation0 + $0x137] ss:$-1 sm:$0xff]  ;;  %v2891_v21 = vpack.c.bf16 %v1582_v13, %v1578_v12  ;;  %v2896_v22 = vpack.c.bf16 %v1592_v14, %v1588_v60 }
  0x3d   :  { %2822 = vst [vmem:[#allocation3 + $0x60] sm:$0xff] %v2821_v6   ;;  %2827 = vst [vmem:[#allocation3 + $0x68] sm:$0xff] %v2826_v7   ;;  %v1608_v20 = vld [vmem:[#allocation0 + $0x12f] ss:$-1 sm:$0xff]  ;;  %v1612_v23 = vld [vmem:[#allocation0 + $0x127] ss:$-1 sm:$0xff]  ;;  %v2901_v26 = vpack.c.bf16 %v1602_v19, %v1598_v18 }
  0x3e   :  { %2832 = vst [vmem:[#allocation3 + $0x70] sm:$0xff] %v2831_v11   ;;  %v1618_v24 = vld [vmem:[#allocation0 + $0x11f] ss:$-1 sm:$0xff]  ;;  %v1622_v25 = vld [vmem:[#allocation0 + $0x117] ss:$-1 sm:$0xff]  ;;  %2837 = vst [vmem:[#allocation3 + $0x78] sm:$0xff] %v2836_v15   ;;  %v2906_v29 = vpack.c.bf16 %v1612_v23, %v1608_v20 }
  0x3f   :  { %2877 = vst [vmem:[#allocation3 + $0xb8] sm:$0xff] %v2876_v16   ;;  %2887 = vst [vmem:[#allocation3 + $0xc8] sm:$0xff] %v2886_v17   ;;  %v1628_v27 = vld [vmem:[#allocation0 + $0x10f] ss:$-1 sm:$0xff]  ;;  %v1632_v28 = vld [vmem:[#allocation0 + $0x107] ss:$-1 sm:$0xff]  ;;  %v2911_v30 = vpack.c.bf16 %v1622_v25, %v1618_v24 }
  0x40   :  { %2892 = vst [vmem:[#allocation3 + $0xd0] sm:$0xff] %v2891_v21   ;;  %2897 = vst [vmem:[#allocation3 + $0xd8] sm:$0xff] %v2896_v22   ;;  %v2097_v31 = vld [vmem:[#allocation3] sm:$0xff]   ;;  %v2916_v32 = vpack.c.bf16 %v1632_v28, %v1628_v27  ;;  %v2101_v33 = vld [vmem:[#allocation3 + $0x8] sm:$0xff]  }
  0x41   :  { %2902 = vst [vmem:[#allocation3 + $0xe0] sm:$0xff] %v2901_v26   ;;  %2098 = vst [vmem:[%s3159_s1] sm:$0xff] %v2097_v31   ;;  %v2105_v34 = vld [vmem:[#allocation3 + $0x10] sm:$0xff]   ;;  %v2109_v35 = vld [vmem:[#allocation3 + $0x18] sm:$0xff]  }
  0x42   :  { %2907 = vst [vmem:[#allocation3 + $0xe8] sm:$0xff] %v2906_v29   ;;  %2912 = vst [vmem:[#allocation3 + $0xf0] sm:$0xff] %v2911_v30   ;;  %v2113_v36 = vld [vmem:[#allocation3 + $0x20] sm:$0xff]   ;;  %v2117_v37 = vld [vmem:[#allocation3 + $0x28] sm:$0xff]  }
  0x43   :  { %2102 = vst [vmem:[%s3159_s1 + $0x8] sm:$0xff] %v2101_v33   ;;  %2106 = vst [vmem:[%s3159_s1 + $0x10] sm:$0xff] %v2105_v34   ;;  %v2121_v38 = vld [vmem:[#allocation3 + $0x30] sm:$0xff]   ;;  %v2125_v39 = vld [vmem:[#allocation3 + $0x38] sm:$0xff]  }
  0x44   :  { %2110 = vst [vmem:[%s3159_s1 + $0x18] sm:$0xff] %v2109_v35   ;;  %2917 = vst [vmem:[#allocation3 + $0xf8] sm:$0xff] %v2916_v32   ;;  %v2129_v40 = vld [vmem:[#allocation3 + $0x40] sm:$0xff]   ;;  %v2133_v41 = vld [vmem:[#allocation3 + $0x48] sm:$0xff]  }
  0x45   :  { %2114 = vst [vmem:[%s3159_s1 + $0x20] sm:$0xff] %v2113_v36   ;;  %2118 = vst [vmem:[%s3159_s1 + $0x28] sm:$0xff] %v2117_v37   ;;  %v2137_v42 = vld [vmem:[#allocation3 + $0x50] sm:$0xff]   ;;  %v2141_v43 = vld [vmem:[#allocation3 + $0x58] sm:$0xff]  }
  0x46   :  { %2122 = vst [vmem:[%s3159_s1 + $0x30] sm:$0xff] %v2121_v38   ;;  %2126 = vst [vmem:[%s3159_s1 + $0x38] sm:$0xff] %v2125_v39   ;;  %v2145_v44 = vld [vmem:[#allocation3 + $0x60] sm:$0xff]   ;;  %v2149_v45 = vld [vmem:[#allocation3 + $0x68] sm:$0xff]  }
  0x47   :  { %2130 = vst [vmem:[%s3159_s1 + $0x40] sm:$0xff] %v2129_v40   ;;  %2134 = vst [vmem:[%s3159_s1 + $0x48] sm:$0xff] %v2133_v41   ;;  %v2153_v46 = vld [vmem:[#allocation3 + $0x70] sm:$0xff]   ;;  %v2161_v47 = vld [vmem:[#allocation3 + $0x80] sm:$0xff]  }
  0x48   :  { %2138 = vst [vmem:[%s3159_s1 + $0x50] sm:$0xff] %v2137_v42   ;;  %2142 = vst [vmem:[%s3159_s1 + $0x58] sm:$0xff] %v2141_v43   ;;  %v2157_v48 = vld [vmem:[#allocation3 + $0x78] sm:$0xff]   ;;  %v2165_v49 = vld [vmem:[#allocation3 + $0x88] sm:$0xff]  }
  0x49   :  { %2146 = vst [vmem:[%s3159_s1 + $0x60] sm:$0xff] %v2145_v44   ;;  %2150 = vst [vmem:[%s3159_s1 + $0x68] sm:$0xff] %v2149_v45   ;;  %v2169_v50 = vld [vmem:[#allocation3 + $0x90] sm:$0xff]   ;;  %v2173_v51 = vld [vmem:[#allocation3 + $0x98] sm:$0xff]  }
  0x4a   :  { %2154 = vst [vmem:[%s3159_s1 + $0x70] sm:$0xff] %v2153_v46   ;;  %2162 = vst [vmem:[%s3159_s1 + $0x80] sm:$0xff] %v2161_v47   ;;  %v2177_v52 = vld [vmem:[#allocation3 + $0xa0] sm:$0xff]   ;;  %v2181_v53 = vld [vmem:[#allocation3 + $0xa8] sm:$0xff]  }
  0x4b   :  { %2158 = vst [vmem:[%s3159_s1 + $0x78] sm:$0xff] %v2157_v48   ;;  %2166 = vst [vmem:[%s3159_s1 + $0x88] sm:$0xff] %v2165_v49   ;;  %v2185_v54 = vld [vmem:[#allocation3 + $0xb0] sm:$0xff]   ;;  %v2189_v55 = vld [vmem:[#allocation3 + $0xb8] sm:$0xff]  }
  0x4c   :  { %2170 = vst [vmem:[%s3159_s1 + $0x90] sm:$0xff] %v2169_v50   ;;  %2174 = vst [vmem:[%s3159_s1 + $0x98] sm:$0xff] %v2173_v51   ;;  %v2193_v56 = vld [vmem:[#allocation3 + $0xc0] sm:$0xff]   ;;  %v2197_v57 = vld [vmem:[#allocation3 + $0xc8] sm:$0xff]  }
  0x4d   :  { %2178 = vst [vmem:[%s3159_s1 + $0xa0] sm:$0xff] %v2177_v52   ;;  %2182 = vst [vmem:[%s3159_s1 + $0xa8] sm:$0xff] %v2181_v53   ;;  %v2201_v58 = vld [vmem:[#allocation3 + $0xd0] sm:$0xff]   ;;  %v2205_v59 = vld [vmem:[#allocation3 + $0xd8] sm:$0xff]  }
  0x4e   :  { %2186 = vst [vmem:[%s3159_s1 + $0xb0] sm:$0xff] %v2185_v54   ;;  %2190 = vst [vmem:[%s3159_s1 + $0xb8] sm:$0xff] %v2189_v55   ;;  %v2209_v60 = vld [vmem:[#allocation3 + $0xe0] sm:$0xff]   ;;  %v2213_v61 = vld [vmem:[#allocation3 + $0xe8] sm:$0xff]  }
  0x4f   :  { %2194 = vst [vmem:[%s3159_s1 + $0xc0] sm:$0xff] %v2193_v56   ;;  %2198 = vst [vmem:[%s3159_s1 + $0xc8] sm:$0xff] %v2197_v57   ;;  %v2217_v62 = vld [vmem:[#allocation3 + $0xf0] sm:$0xff]   ;;  %v2221_v63 = vld [vmem:[#allocation3 + $0xf8] sm:$0xff]  }
  0x50   :  { %2202 = vst [vmem:[%s3159_s1 + $0xd0] sm:$0xff] %v2201_v58   ;;  %2206 = vst [vmem:[%s3159_s1 + $0xd8] sm:$0xff] %v2205_v59  }
  0x51   :  { %2210 = vst [vmem:[%s3159_s1 + $0xe0] sm:$0xff] %v2209_v60   ;;  %2214 = vst [vmem:[%s3159_s1 + $0xe8] sm:$0xff] %v2213_v61  }
  0x52   :  { %2218 = vst [vmem:[%s3159_s1 + $0xf0] sm:$0xff] %v2217_v62   ;;  %2222 = vst [vmem:[%s3159_s1 + $0xf8] sm:$0xff] %v2221_v63  }

// kernel: _lambda_.11
= control target key start
LH: loop header
LB: loop body
LE: loop exit
PB: predicated region body
PF: predicated region fallthrough
CT: control target
= control target key end

     0   :  { %s1575_s18 = smov 0   ;;  %s1757_s0 = inlined_call_operand.vmem [shape: bf16[512,128], index: 0, kind: input, shape index: {}]   ;;  %s1758_s1 = inlined_call_operand.vmem [shape: bf16[128,128], index: 1, kind: input, shape index: {}]   ;;  %s1759_s2 = inlined_call_operand.vmem [shape: f32[1,128], index: 2, kind: input, shape index: {}]   ;;  %s1760_s3 = inlined_call_operand.vmem [shape: bf16[128,128], index: 3, kind: input, shape index: {}]   ;;  %s1761_s4 = inlined_call_operand.vmem [shape: f32[1,128], index: 4, kind: input, shape index: {}]   ;;  %s1762_s5 = inlined_call_operand.vmem [shape: bf16[512,128], index: 5, kind: output, shape index: {}]  }
   0x1 LB: > { %s1149_s19 = sadd.s32 4294967295, %s1543_s18   ;;  %p1153_p0 = scmp.ge.s32.totalorder %s1543_s18, 1  ;;  %s1543_s18 = sphi %s1575_s18, %s15_s18  }
   0x2   : > { %p188_p1 = scmp.lt.s32.totalorder %s1543_s18, 3 }
   0x4   : > { %p189_p2 = pnand %p1153_p0, %p188_p1 }
   0x5   : > { %v1505_v0 = vld [vmem:[%s1758_s1] sm:$0xff] (!%p189_p2)   ;;  %s1154_s22 = sshll.u32 (!%p189_p2), %s1149_s19, 5  ;;  %v1506_v1 = vld [vmem:[%s1758_s1 + $0x8] sm:$0xff] (!%p189_p2)   ;;  %v1507_v2 = vld [vmem:[%s1758_s1 + $0x10] sm:$0xff] (!%p189_p2)  }
   0x6   : > { %192 = sbr.rel (%p189_p2) target bundleno = 537 (0x219), region = 40  ;;  %p217_p3 = scmp.lt.s32.totalorder (!%p189_p2), %s1154_s22, 63  ;;  %1401 = vmatprep.subr.bf16.mxu0 (!%p189_p2), %v1505_v0  ;;  %v1508_v3 = vld [vmem:[%s1758_s1 + $0x18] sm:$0xff] (!%p189_p2)   ;;  %v1509_v5 = vld [vmem:[%s1758_s1 + $0x20] sm:$0xff] (!%p189_p2)   ;;  %v1510_v6 = vld [vmem:[%s1758_s1 + $0x28] sm:$0xff] (!%p189_p2)  }
   0x7   : > { %1402 = vmatpush3.bf16.msra.mxu0 (!%p189_p2), %v1505_v0  ;;  %v1511_v7 = vld [vmem:[%s1758_s1 + $0x30] sm:$0xff] (!%p189_p2)   ;;  %v1512_v8 = vld [vmem:[%s1758_s1 + $0x38] sm:$0xff] (!%p189_p2)   ;;  %v1529_v9 = vld [vmem:[%s1760_s3] sm:$0xff] (!%p189_p2)  }
   0x8   : > { %1403 = vmatprep.subr.bf16.mxu0 (!%p189_p2), %v1506_v1  ;;  %v1530_v10 = vld [vmem:[%s1760_s3 + $0x8] sm:$0xff] (!%p189_p2)   ;;  %1449 = vmatprep.subr.bf16.mxu1 (!%p189_p2), %v1529_v9  ;;  %v1531_v12 = vld [vmem:[%s1760_s3 + $0x10] sm:$0xff] (!%p189_p2)   ;;  %v1532_v14 = vld [vmem:[%s1760_s3 + $0x18] sm:$0xff] (!%p189_p2)  }
   0x9   : > { %1450 = vmatpush3.bf16.msra.mxu1 (!%p189_p2), %v1529_v9  ;;  %v1533_v15 = vld [vmem:[%s1760_s3 + $0x20] sm:$0xff] (!%p189_p2)   ;;  %v1534_v29 = vld [vmem:[%s1760_s3 + $0x28] sm:$0xff] (!%p189_p2)   ;;  %v1535_v30 = vld [vmem:[%s1760_s3 + $0x30] sm:$0xff] (!%p189_p2)  }
   0xa   : > { %1451 = vmatprep.subr.bf16.mxu1 (!%p189_p2), %v1530_v10  ;;  %v1536_v31 = vld [vmem:[%s1760_s3 + $0x38] sm:$0xff] (!%p189_p2)   ;;  %v1660_v32 = vld [vmem:[%s1759_s2] ss:$0 sm:$0xff] (!%p189_p2) }
   0xb   : > { %1404 = vmatpush3.bf16.msra.mxu0 (!%p189_p2), %v1506_v1 }
   0xc   : > { %1405 = vmatprep.subr.bf16.mxu0 (!%p189_p2), %v1507_v2 }
   0xd   : > { %s1764_s22 = smov (!%p217_p3, %s1154_s22), 63  ;;  %1452 = vmatpush3.bf16.msra.mxu1 %v1530_v10 }
   0xe   : > { %s1155_s27 = sshll.u32 %s1764_s22, 2  ;;  %1453 = vmatprep.subr.bf16.mxu1 %v1531_v12 }
   0xf   : > { %s1600_s30 = scalar_lea.vmem %s1757_s0, %s1155_s27  ;;  %1406 = vmatpush3.bf16.msra.mxu0 %v1507_v2  ;;  %s1707_s16 = scalar_lea.vmem %s1762_s5, %s1155_s27 }
  0x10   : > { %v1513_v4 = vld [vmem:[%s1600_s30] sm:$0xff]   ;;  %1407 = vmatprep.subr.bf16.mxu0 %v1508_v3  ;;  %v1514_v11 = vld [vmem:[%s1600_s30 + $0x8] sm:$0xff]   ;;  %v1515_v13 = vld [vmem:[%s1600_s30 + $0x10] sm:$0xff]  }
  0x11   : > { %1417 = vmatprep.mubr.bf16.mxu0 %v1513_v4  ;;  %1454 = vmatpush3.bf16.msra.mxu1 %v1531_v12  ;;  %v1516_v16 = vld [vmem:[%s1600_s30 + $0x18] sm:$0xff]   ;;  %v1517_v17 = vld [vmem:[%s1600_s30 + $0x20] sm:$0xff]   ;;  %v1518_v18 = vld [vmem:[%s1600_s30 + $0x28] sm:$0xff]  }
  0x12   : > { %1455 = vmatprep.subr.bf16.mxu1 %v1532_v14  ;;  %v1519_v19 = vld [vmem:[%s1600_s30 + $0x30] sm:$0xff]   ;;  %v1520_v20 = vld [vmem:[%s1600_s30 + $0x38] sm:$0xff]   ;;  %v1521_v21 = vld [vmem:[%s1600_s30 + $0x40] sm:$0xff]  }
  0x13   : > { %1408 = vmatpush3.bf16.msra.mxu0 %v1508_v3  ;;  %v1522_v22 = vld [vmem:[%s1600_s30 + $0x48] sm:$0xff]   ;;  %v1523_v23 = vld [vmem:[%s1600_s30 + $0x50] sm:$0xff]   ;;  %v1524_v24 = vld [vmem:[%s1600_s30 + $0x58] sm:$0xff]  }
  0x14   : > { %1409 = vmatprep.subr.bf16.mxu0 %v1509_v5  ;;  %v1525_v25 = vld [vmem:[%s1600_s30 + $0x60] sm:$0xff]   ;;  %v1526_v26 = vld [vmem:[%s1600_s30 + $0x68] sm:$0xff]   ;;  %v1527_v27 = vld [vmem:[%s1600_s30 + $0x70] sm:$0xff]  }
  0x15   : > { %1456 = vmatpush3.bf16.msra.mxu1 %v1532_v14  ;;  %v1528_v28 = vld [vmem:[%s1600_s30 + $0x78] sm:$0xff]  }
  0x16   : > { %1457 = vmatprep.subr.bf16.mxu1 %v1533_v15 }
  0x17   : > { %1410 = vmatpush3.bf16.msra.mxu0 %v1509_v5 }
  0x18   : > { %1411 = vmatprep.subr.bf16.mxu0 %v1510_v6 }
  0x19   : > { %1458 = vmatpush3.bf16.msra.mxu1 %v1533_v15 }
  0x1a   : > { %1459 = vmatprep.subr.bf16.mxu1 %v1534_v29 }
  0x1b   : > { %1412 = vmatpush3.bf16.msra.mxu0 %v1510_v6 }
  0x1c   : > { %1413 = vmatprep.subr.bf16.mxu0 %v1511_v7 }
  0x1d   : > { %1460 = vmatpush3.bf16.msra.mxu1 %v1534_v29 }
  0x1e   : > { %1461 = vmatprep.subr.bf16.mxu1 %v1535_v30 }
  0x1f   : > { %1414 = vmatpush3.bf16.msra.mxu0 %v1511_v7 }
  0x20   : > { %1415 = vmatprep.subr.bf16.mxu0 %v1512_v8 }
  0x21   : > { %1462 = vmatpush3.bf16.msra.mxu1 %v1535_v30 }
  0x22   : > { %1463 = vmatprep.subr.bf16.mxu1 %v1536_v31 }
  0x23   : > { %1416 = vmatpush3.bf16.msra.mxu0 %v1512_v8 }
  0x25   : > { %1464 = vmatpush3.bf16.msra.mxu1 %v1536_v31 }
  0x26   : > { %1418 = vmatmul.mubr.bf16.vlgmr.msra.gmra.mrb[0].mxu0 %v1514_v11 }
  0x27   : > { %1421 = vmatprep.mubr.bf16.mxu0 %v1515_v13 }
  0x2e   : > { %1422 = vmatmul.mubr.bf16.gmra.mrb[4].mxu0 %v1516_v16 }
  0x2f   : > { %1425 = vmatprep.mubr.bf16.mxu0 %v1517_v17 }
  0x36   : > { %1426 = vmatmul.mubr.bf16.gmra.mrb[8].mxu0 %v1518_v18 }
  0x37   : > { %1429 = vmatprep.mubr.bf16.mxu0 %v1519_v19 }
  0x3e   : > { %1430 = vmatmul.mubr.bf16.gmra.mrb[12].mxu0 %v1520_v20 }
  0x3f   : > { %1433 = vmatprep.mubr.bf16.mxu0 %v1521_v21 }
  0x46   : > { %1434 = vmatmul.mubr.bf16.gmra.mrb[16].mxu0 %v1522_v22 }
  0x47   : > { %1437 = vmatprep.mubr.bf16.mxu0 %v1523_v23 }
  0x4e   : > { %1438 = vmatmul.mubr.bf16.gmra.mrb[20].mxu0 %v1524_v24 }
  0x4f   : > { %1441 = vmatprep.mubr.bf16.mxu0 %v1525_v25 }
  0x56   : > { %1442 = vmatmul.mubr.bf16.gmra.mrb[24].mxu0 %v1526_v26 }
  0x57   : > { %1445 = vmatprep.mubr.bf16.mxu0 %v1527_v27 }
  0x5e   : > { %1446 = vmatmul.mubr.bf16.gmra.mrb[28].mxu0 %v1528_v28 }
  0xf9   : > { %v1419_v33 = vpop.f32.mrb[0].mxu0 }
  0xfa   : > { %v471_v34 = vadd.f32 %v1419_v33, %v1660_v32  ;;  %v462_v35 = vpop.f32.mrb[1].mxu0 }
  0xfb   : > { %v463_v36 = vadd.f32 %v1660_v32, %v462_v35  ;;  %v1420_v37 = vpop.f32.mrb[2].mxu0 }
  0xfc   : > { %v623_v38 = vmul.f32 0.01, %v471_v34  ;;  %v474_v39 = vadd.f32 %v1420_v37, %v1660_v32  ;;  %v465_v40 = vpop.f32.mrb[3].mxu0  ;;  %vm591_vm0 = vcmp.ge.f32.partialorder %v471_v34, 0.0 }
  0xfd   : > { %v621_v41 = vmul.f32 0.01, %v463_v36  ;;  %v466_v42 = vadd.f32 %v1660_v32, %v465_v40  ;;  %vm589_vm2 = vcmp.ge.f32.partialorder %v463_v36, 0.0 }
  0xfe   : > { %vm592_vm1 = vcmp.ge.f32.partialorder %v474_v39, 0.0  ;;  %v624_v43 = vmul.f32 0.01, %v474_v39  ;;  %v655_v45 = vsel %vm591_vm0, %v471_v34, %v623_v38 }
  0xff   : > { %v622_v44 = vmul.f32 0.01, %v466_v42  ;;  %vm590_vm3 = vcmp.ge.f32.partialorder %v466_v42, 0.0  ;;  %v653_v48 = vsel %vm589_vm2, %v463_v36, %v621_v41 }
 0x100   : > { %v656_v46 = vsel %vm592_vm1, %v474_v39, %v624_v43 }
 0x101   : > { %v1423_v47 = vpop.f32.mrb[4].mxu0  ;;  %v654_v49 = vsel %vm590_vm3, %v466_v42, %v622_v44  ;;  %v686_v50 = vpack.c.bf16 %v656_v46, %v655_v45 }
 0x102   : > { %v487_v51 = vadd.f32 %v1423_v47, %v1660_v32  ;;  %v478_v52 = vpop.f32.mrb[5].mxu0  ;;  %v685_v53 = vpack.c.bf16 %v654_v49, %v653_v48 }
 0x103   : > { %v479_v54 = vadd.f32 %v1660_v32, %v478_v52  ;;  %v1424_v55 = vpop.f32.mrb[6].mxu0 }
 0x104   : > { %v627_v56 = vmul.f32 0.01, %v487_v51  ;;  %v490_v57 = vadd.f32 %v1424_v55, %v1660_v32  ;;  %v481_v58 = vpop.f32.mrb[7].mxu0  ;;  %1465 = vmatprep.mubr.bf16.mxu1 %v685_v53  ;;  %vm595_vm4 = vcmp.ge.f32.partialorder %v487_v51, 0.0 }
 0x105   : > { %v625_v59 = vmul.f32 0.01, %v479_v54  ;;  %v482_v60 = vadd.f32 %v1660_v32, %v481_v58  ;;  %1466 = vmatmul.mubr.bf16.vlgmr.msra.gmra.mrb[0].mxu1 %v686_v50  ;;  %vm593_vm5 = vcmp.ge.f32.partialorder %v479_v54, 0.0 }
 0x106   : > { %vm596_vm6 = vcmp.ge.f32.partialorder %v490_v57, 0.0  ;;  %v628_v61 = vmul.f32 0.01, %v490_v57  ;;  %v659_v63 = vsel %vm595_vm4, %v487_v51, %v627_v56 }
 0x107   : > { %vm594_vm7 = vcmp.ge.f32.partialorder %v482_v60, 0.0  ;;  %v626_v62 = vmul.f32 0.01, %v482_v60  ;;  %v657_v2 = vsel %vm593_vm5, %v479_v54, %v625_v59 }
 0x108   : > { %v660_v0 = vsel %vm596_vm6, %v490_v57, %v628_v61 }
 0x109   : > { %v1427_v1 = vpop.f32.mrb[8].mxu0  ;;  %v658_v3 = vsel %vm594_vm7, %v482_v60, %v626_v62  ;;  %v688_v4 = vpack.c.bf16 %v660_v0, %v659_v63 }
 0x10a   : > { %v503_v5 = vadd.f32 %v1427_v1, %v1660_v32  ;;  %v494_v6 = vpop.f32.mrb[9].mxu0  ;;  %v687_v7 = vpack.c.bf16 %v658_v3, %v657_v2 }
 0x10b   : > { %v495_v8 = vadd.f32 %v1660_v32, %v494_v6  ;;  %v1428_v9 = vpop.f32.mrb[10].mxu0 }
 0x10c   : > { %v631_v10 = vmul.f32 0.01, %v503_v5  ;;  %v506_v11 = vadd.f32 %v1428_v9, %v1660_v32  ;;  %v497_v12 = vpop.f32.mrb[11].mxu0  ;;  %1469 = vmatprep.mubr.bf16.mxu1 %v687_v7  ;;  %vm599_vm8 = vcmp.ge.f32.partialorder %v503_v5, 0.0 }
 0x10d   : > { %v629_v13 = vmul.f32 0.01, %v495_v8  ;;  %v498_v14 = vadd.f32 %v1660_v32, %v497_v12  ;;  %1470 = vmatmul.mubr.bf16.gmra.mrb[4].mxu1 %v688_v4  ;;  %vm597_vm9 = vcmp.ge.f32.partialorder %v495_v8, 0.0 }
 0x10e   : > { %vm600_vm10 = vcmp.ge.f32.partialorder %v506_v11, 0.0  ;;  %v632_v15 = vmul.f32 0.01, %v506_v11  ;;  %v663_v17 = vsel %vm599_vm8, %v503_v5, %v631_v10 }
 0x10f   : > { %vm598_vm11 = vcmp.ge.f32.partialorder %v498_v14, 0.0  ;;  %v630_v16 = vmul.f32 0.01, %v498_v14  ;;  %v661_v20 = vsel %vm597_vm9, %v495_v8, %v629_v13 }
 0x110   : > { %v664_v18 = vsel %vm600_vm10, %v506_v11, %v632_v15 }
 0x111   : > { %v1431_v19 = vpop.f32.mrb[12].mxu0  ;;  %v662_v21 = vsel %vm598_vm11, %v498_v14, %v630_v16  ;;  %v690_v22 = vpack.c.bf16 %v664_v18, %v663_v17 }
 0x112   : > { %v519_v23 = vadd.f32 %v1431_v19, %v1660_v32  ;;  %v510_v24 = vpop.f32.mrb[13].mxu0  ;;  %v689_v25 = vpack.c.bf16 %v662_v21, %v661_v20 }
 0x113   : > { %v511_v26 = vadd.f32 %v1660_v32, %v510_v24  ;;  %v1432_v27 = vpop.f32.mrb[14].mxu0 }
 0x114   : > { %v635_v28 = vmul.f32 0.01, %v519_v23  ;;  %v522_v29 = vadd.f32 %v1432_v27, %v1660_v32  ;;  %v513_v30 = vpop.f32.mrb[15].mxu0  ;;  %1473 = vmatprep.mubr.bf16.mxu1 %v689_v25  ;;  %vm603_vm12 = vcmp.ge.f32.partialorder %v519_v23, 0.0 }
 0x115   : > { %v633_v31 = vmul.f32 0.01, %v511_v26  ;;  %v514_v33 = vadd.f32 %v1660_v32, %v513_v30  ;;  %1474 = vmatmul.mubr.bf16.gmra.mrb[8].mxu1 %v690_v22  ;;  %vm601_vm13 = vcmp.ge.f32.partialorder %v511_v26, 0.0 }
 0x116   : > { %vm604_vm14 = vcmp.ge.f32.partialorder %v522_v29, 0.0  ;;  %v636_v34 = vmul.f32 0.01, %v522_v29  ;;  %v667_v36 = vsel %vm603_vm12, %v519_v23, %v635_v28 }
 0x117   : > { %vm602_vm15 = vcmp.ge.f32.partialorder %v514_v33, 0.0  ;;  %v634_v35 = vmul.f32 0.01, %v514_v33  ;;  %v665_v39 = vsel %vm601_vm13, %v511_v26, %v633_v31 }
 0x118   : > { %v668_v37 = vsel %vm604_vm14, %v522_v29, %v636_v34 }
 0x119   : > { %v1435_v38 = vpop.f32.mrb[16].mxu0  ;;  %v666_v40 = vsel %vm602_vm15, %v514_v33, %v634_v35  ;;  %v692_v41 = vpack.c.bf16 %v668_v37, %v667_v36 }
 0x11a   : > { %v535_v42 = vadd.f32 %v1435_v38, %v1660_v32  ;;  %v526_v43 = vpop.f32.mrb[17].mxu0  ;;  %v691_v44 = vpack.c.bf16 %v666_v40, %v665_v39 }
 0x11b   : > { %v527_v45 = vadd.f32 %v1660_v32, %v526_v43  ;;  %v1436_v46 = vpop.f32.mrb[18].mxu0 }
 0x11c   : > { %v639_v47 = vmul.f32 0.01, %v535_v42  ;;  %v538_v48 = vadd.f32 %v1436_v46, %v1660_v32  ;;  %v529_v49 = vpop.f32.mrb[19].mxu0  ;;  %1477 = vmatprep.mubr.bf16.mxu1 %v691_v44  ;;  %vm607_vm0 = vcmp.ge.f32.partialorder %v535_v42, 0.0 }
 0x11d   : > { %v637_v50 = vmul.f32 0.01, %v527_v45  ;;  %v530_v51 = vadd.f32 %v1660_v32, %v529_v49  ;;  %1478 = vmatmul.mubr.bf16.gmra.mrb[12].mxu1 %v692_v41  ;;  %vm605_vm1 = vcmp.ge.f32.partialorder %v527_v45, 0.0 }
 0x11e   : > { %vm608_vm2 = vcmp.ge.f32.partialorder %v538_v48, 0.0  ;;  %v640_v52 = vmul.f32 0.01, %v538_v48  ;;  %v671_v54 = vsel %vm607_vm0, %v535_v42, %v639_v47 }
 0x11f   : > { %vm606_vm3 = vcmp.ge.f32.partialorder %v530_v51, 0.0  ;;  %v638_v53 = vmul.f32 0.01, %v530_v51  ;;  %v669_v57 = vsel %vm605_vm1, %v527_v45, %v637_v50 }
 0x120   : > { %v672_v55 = vsel %vm608_vm2, %v538_v48, %v640_v52 }
 0x121   : > { %v1439_v56 = vpop.f32.mrb[20].mxu0  ;;  %v670_v58 = vsel %vm606_vm3, %v530_v51, %v638_v53  ;;  %v694_v59 = vpack.c.bf16 %v672_v55, %v671_v54 }
 0x122   : > { %v551_v60 = vadd.f32 %v1439_v56, %v1660_v32  ;;  %v542_v61 = vpop.f32.mrb[21].mxu0  ;;  %v693_v62 = vpack.c.bf16 %v670_v58, %v669_v57 }
 0x123   : > { %v543_v63 = vadd.f32 %v1660_v32, %v542_v61  ;;  %v1440_v0 = vpop.f32.mrb[22].mxu0 }
 0x124   : > { %v643_v1 = vmul.f32 0.01, %v551_v60  ;;  %v554_v2 = vadd.f32 %v1440_v0, %v1660_v32  ;;  %v545_v3 = vpop.f32.mrb[23].mxu0  ;;  %1481 = vmatprep.mubr.bf16.mxu1 %v693_v62  ;;  %vm611_vm4 = vcmp.ge.f32.partialorder %v551_v60, 0.0 }
 0x125   : > { %v641_v4 = vmul.f32 0.01, %v543_v63  ;;  %v546_v5 = vadd.f32 %v1660_v32, %v545_v3  ;;  %1482 = vmatmul.mubr.bf16.gmra.mrb[16].mxu1 %v694_v59  ;;  %vm609_vm5 = vcmp.ge.f32.partialorder %v543_v63, 0.0 }
 0x126   : > { %vm612_vm6 = vcmp.ge.f32.partialorder %v554_v2, 0.0  ;;  %v644_v6 = vmul.f32 0.01, %v554_v2  ;;  %v675_v8 = vsel %vm611_vm4, %v551_v60, %v643_v1 }
 0x127   : > { %vm610_vm7 = vcmp.ge.f32.partialorder %v546_v5, 0.0  ;;  %v642_v7 = vmul.f32 0.01, %v546_v5  ;;  %v673_v11 = vsel %vm609_vm5, %v543_v63, %v641_v4 }
 0x128   : > { %v676_v9 = vsel %vm612_vm6, %v554_v2, %v644_v6 }
 0x129   : > { %v1443_v10 = vpop.f32.mrb[24].mxu0  ;;  %v674_v12 = vsel %vm610_vm7, %v546_v5, %v642_v7  ;;  %v696_v13 = vpack.c.bf16 %v676_v9, %v675_v8 }
 0x12a   : > { %v567_v14 = vadd.f32 %v1443_v10, %v1660_v32  ;;  %v558_v15 = vpop.f32.mrb[25].mxu0  ;;  %v695_v16 = vpack.c.bf16 %v674_v12, %v673_v11 }
 0x12b   : > { %v559_v17 = vadd.f32 %v1660_v32, %v558_v15  ;;  %v1444_v18 = vpop.f32.mrb[26].mxu0 }
 0x12c   : > { %v647_v19 = vmul.f32 0.01, %v567_v14  ;;  %v570_v20 = vadd.f32 %v1444_v18, %v1660_v32  ;;  %v561_v21 = vpop.f32.mrb[27].mxu0  ;;  %1485 = vmatprep.mubr.bf16.mxu1 %v695_v16  ;;  %vm615_vm8 = vcmp.ge.f32.partialorder %v567_v14, 0.0 }
 0x12d   : > { %v645_v22 = vmul.f32 0.01, %v559_v17  ;;  %v562_v23 = vadd.f32 %v1660_v32, %v561_v21  ;;  %1486 = vmatmul.mubr.bf16.gmra.mrb[20].mxu1 %v696_v13  ;;  %vm613_vm9 = vcmp.ge.f32.partialorder %v559_v17, 0.0 }
 0x12e   : > { %vm616_vm10 = vcmp.ge.f32.partialorder %v570_v20, 0.0  ;;  %v648_v24 = vmul.f32 0.01, %v570_v20  ;;  %v679_v26 = vsel %vm615_vm8, %v567_v14, %v647_v19 }
 0x12f   : > { %vm614_vm11 = vcmp.ge.f32.partialorder %v562_v23, 0.0  ;;  %v646_v25 = vmul.f32 0.01, %v562_v23  ;;  %v677_v29 = vsel %vm613_vm9, %v559_v17, %v645_v22 }
 0x130   : > { %v680_v27 = vsel %vm616_vm10, %v570_v20, %v648_v24 }
 0x131   : > { %v1447_v28 = vpop.f32.mrb[28].mxu0  ;;  %v678_v30 = vsel %vm614_vm11, %v562_v23, %v646_v25  ;;  %v698_v31 = vpack.c.bf16 %v680_v27, %v679_v26 }
 0x132   : > { %v583_v33 = vadd.f32 %v1447_v28, %v1660_v32  ;;  %v574_v34 = vpop.f32.mrb[29].mxu0  ;;  %v697_v35 = vpack.c.bf16 %v678_v30, %v677_v29 }
 0x133   : > { %v575_v36 = vadd.f32 %v1660_v32, %v574_v34  ;;  %v1448_v37 = vpop.f32.mrb[30].mxu0 }
 0x134   : > { %v651_v38 = vmul.f32 0.01, %v583_v33  ;;  %v586_v39 = vadd.f32 %v1448_v37, %v1660_v32  ;;  %v577_v40 = vpop.f32.mrb[31].mxu0  ;;  %1489 = vmatprep.mubr.bf16.mxu1 %v697_v35  ;;  %vm619_vm12 = vcmp.ge.f32.partialorder %v583_v33, 0.0 }
 0x135   : > { %v649_v41 = vmul.f32 0.01, %v575_v36  ;;  %v578_v42 = vadd.f32 %v1660_v32, %v577_v40  ;;  %1490 = vmatmul.mubr.bf16.gmra.mrb[24].mxu1 %v698_v31  ;;  %vm617_vm13 = vcmp.ge.f32.partialorder %v575_v36, 0.0  ;;  %v1697_v32 = vld [vmem:[%s1761_s4] ss:$0 sm:$0xff] }
 0x136   : > { %vm620_vm14 = vcmp.ge.f32.partialorder %v586_v39, 0.0  ;;  %v652_v43 = vmul.f32 0.01, %v586_v39  ;;  %v683_v45 = vsel %vm619_vm12, %v583_v33, %v651_v38 }
 0x137   : > { %vm618_vm15 = vcmp.ge.f32.partialorder %v578_v42, 0.0  ;;  %v650_v44 = vmul.f32 0.01, %v578_v42  ;;  %v681_v47 = vsel %vm617_vm13, %v575_v36, %v649_v41 }
 0x138   : > { %v684_v46 = vsel %vm620_vm14, %v586_v39, %v652_v43 }
 0x139   : > { %v682_v48 = vsel %vm618_vm15, %v578_v42, %v650_v44  ;;  %v700_v49 = vpack.c.bf16 %v684_v46, %v683_v45 }
 0x13a   : > { %v699_v50 = vpack.c.bf16 %v682_v48, %v681_v47 }
 0x13c   : > { %1493 = vmatprep.mubr.bf16.mxu1 %v699_v50 }
 0x13d   : > { %1494 = vmatmul.mubr.bf16.gmra.mrb[28].mxu1 %v700_v49 }
 0x1d8   : > { %v1467_v51 = vpop.f32.mrb[0].mxu1 }
 0x1d9   : > { %v806_v52 = vpop.f32.mrb[1].mxu1  ;;  %v815_v54 = vadd.f32 %v1467_v51, %v1697_v32 }
 0x1da   : > { %v1468_v53 = vpop.f32.mrb[2].mxu1  ;;  %v807_v57 = vadd.f32 %v1697_v32, %v806_v52 }
 0x1db   : > { %v818_v55 = vadd.f32 %v1468_v53, %v1697_v32  ;;  %v809_v56 = vpop.f32.mrb[3].mxu1 }
 0x1dc   : > { %v810_v58 = vadd.f32 %v1697_v32, %v809_v56 }
 0x1dd   : > { %v1266_v59 = vpack.c.bf16 %v818_v55, %v815_v54 }
 0x1de   : > { %v1261_v60 = vpack.c.bf16 %v810_v58, %v807_v57 }
 0x1df   : > { %1338 = vst [vmem:[%s1707_s16 + $0x8] sm:$0xff] %v1266_v59  }
 0x1e0   : > { %1262 = vst [vmem:[%s1707_s16] sm:$0xff] %v1261_v60   ;;  %v1471_v61 = vpop.f32.mrb[4].mxu1 }
 0x1e1   : > { %v822_v62 = vpop.f32.mrb[5].mxu1  ;;  %v831_v0 = vadd.f32 %v1471_v61, %v1697_v32 }
 0x1e2   : > { %v1472_v63 = vpop.f32.mrb[6].mxu1  ;;  %v823_v3 = vadd.f32 %v1697_v32, %v822_v62 }
 0x1e3   : > { %v834_v1 = vadd.f32 %v1472_v63, %v1697_v32  ;;  %v825_v2 = vpop.f32.mrb[7].mxu1 }
 0x1e4   : > { %v826_v4 = vadd.f32 %v1697_v32, %v825_v2 }
 0x1e5   : > { %v1276_v5 = vpack.c.bf16 %v834_v1, %v831_v0 }
 0x1e6   : > { %v1271_v6 = vpack.c.bf16 %v826_v4, %v823_v3 }
 0x1e7   : > { %1340 = vst [vmem:[%s1707_s16 + $0x18] sm:$0xff] %v1276_v5  }
 0x1e8   : > { %1339 = vst [vmem:[%s1707_s16 + $0x10] sm:$0xff] %v1271_v6   ;;  %v1475_v7 = vpop.f32.mrb[8].mxu1 }
 0x1e9   : > { %v838_v8 = vpop.f32.mrb[9].mxu1  ;;  %v847_v10 = vadd.f32 %v1475_v7, %v1697_v32 }
 0x1ea   : > { %v1476_v9 = vpop.f32.mrb[10].mxu1  ;;  %v839_v13 = vadd.f32 %v1697_v32, %v838_v8 }
 0x1eb   : > { %v850_v11 = vadd.f32 %v1476_v9, %v1697_v32  ;;  %v841_v12 = vpop.f32.mrb[11].mxu1 }
 0x1ec   : > { %v842_v14 = vadd.f32 %v1697_v32, %v841_v12 }
 0x1ed   : > { %v1286_v15 = vpack.c.bf16 %v850_v11, %v847_v10 }
 0x1ee   : > { %v1281_v16 = vpack.c.bf16 %v842_v14, %v839_v13 }
 0x1ef   : > { %1342 = vst [vmem:[%s1707_s16 + $0x28] sm:$0xff] %v1286_v15  }
 0x1f0   : > { %1341 = vst [vmem:[%s1707_s16 + $0x20] sm:$0xff] %v1281_v16   ;;  %v1479_v17 = vpop.f32.mrb[12].mxu1 }
 0x1f1   : > { %v854_v18 = vpop.f32.mrb[13].mxu1  ;;  %v863_v20 = vadd.f32 %v1479_v17, %v1697_v32 }
 0x1f2   : > { %v1480_v19 = vpop.f32.mrb[14].mxu1  ;;  %v855_v23 = vadd.f32 %v1697_v32, %v854_v18 }
 0x1f3   : > { %v866_v21 = vadd.f32 %v1480_v19, %v1697_v32  ;;  %v857_v22 = vpop.f32.mrb[15].mxu1 }
 0x1f4   : > { %v858_v24 = vadd.f32 %v1697_v32, %v857_v22 }
 0x1f5   : > { %v1296_v25 = vpack.c.bf16 %v866_v21, %v863_v20 }
 0x1f6   : > { %v1291_v26 = vpack.c.bf16 %v858_v24, %v855_v23 }
 0x1f7   : > { %1344 = vst [vmem:[%s1707_s16 + $0x38] sm:$0xff] %v1296_v25  }
 0x1f8   : > { %1343 = vst [vmem:[%s1707_s16 + $0x30] sm:$0xff] %v1291_v26   ;;  %v1483_v27 = vpop.f32.mrb[16].mxu1 }
 0x1f9   : > { %v870_v28 = vpop.f32.mrb[17].mxu1  ;;  %v879_v30 = vadd.f32 %v1483_v27, %v1697_v32 }
 0x1fa   : > { %v1484_v29 = vpop.f32.mrb[18].mxu1  ;;  %v871_v34 = vadd.f32 %v1697_v32, %v870_v28 }
 0x1fb   : > { %v882_v31 = vadd.f32 %v1484_v29, %v1697_v32  ;;  %v873_v33 = vpop.f32.mrb[19].mxu1 }
 0x1fc   : > { %v874_v35 = vadd.f32 %v1697_v32, %v873_v33 }
 0x1fd   : > { %v1306_v36 = vpack.c.bf16 %v882_v31, %v879_v30 }
 0x1fe   : > { %v1301_v37 = vpack.c.bf16 %v874_v35, %v871_v34 }
 0x1ff   : > { %1346 = vst [vmem:[%s1707_s16 + $0x48] sm:$0xff] %v1306_v36  }
 0x200   : > { %1345 = vst [vmem:[%s1707_s16 + $0x40] sm:$0xff] %v1301_v37   ;;  %v1487_v38 = vpop.f32.mrb[20].mxu1 }
 0x201   : > { %v886_v39 = vpop.f32.mrb[21].mxu1  ;;  %v895_v41 = vadd.f32 %v1487_v38, %v1697_v32 }
 0x202   : > { %v1488_v40 = vpop.f32.mrb[22].mxu1  ;;  %v887_v44 = vadd.f32 %v1697_v32, %v886_v39 }
 0x203   : > { %v898_v42 = vadd.f32 %v1488_v40, %v1697_v32  ;;  %v889_v43 = vpop.f32.mrb[23].mxu1 }
 0x204   : > { %v890_v45 = vadd.f32 %v1697_v32, %v889_v43 }
 0x205   : > { %v1316_v46 = vpack.c.bf16 %v898_v42, %v895_v41 }
 0x206   : > { %v1311_v47 = vpack.c.bf16 %v890_v45, %v887_v44 }
 0x207   : > { %1348 = vst [vmem:[%s1707_s16 + $0x58] sm:$0xff] %v1316_v46  }
 0x208   : > { %1347 = vst [vmem:[%s1707_s16 + $0x50] sm:$0xff] %v1311_v47   ;;  %v1491_v48 = vpop.f32.mrb[24].mxu1 }
 0x209   : > { %v902_v49 = vpop.f32.mrb[25].mxu1  ;;  %v911_v51 = vadd.f32 %v1491_v48, %v1697_v32 }
 0x20a   : > { %v1492_v50 = vpop.f32.mrb[26].mxu1  ;;  %v903_v54 = vadd.f32 %v1697_v32, %v902_v49 }
 0x20b   : > { %v914_v52 = vadd.f32 %v1492_v50, %v1697_v32  ;;  %v905_v53 = vpop.f32.mrb[27].mxu1 }
 0x20c   : > { %v906_v55 = vadd.f32 %v1697_v32, %v905_v53 }
 0x20d   : > { %v1326_v56 = vpack.c.bf16 %v914_v52, %v911_v51 }
 0x20e   : > { %v1321_v57 = vpack.c.bf16 %v906_v55, %v903_v54 }
 0x20f   : > { %1350 = vst [vmem:[%s1707_s16 + $0x68] sm:$0xff] %v1326_v56  }
 0x210   : > { %1349 = vst [vmem:[%s1707_s16 + $0x60] sm:$0xff] %v1321_v57   ;;  %v1495_v58 = vpop.f32.mrb[28].mxu1 }
 0x211   : > { %v918_v59 = vpop.f32.mrb[29].mxu1  ;;  %v927_v61 = vadd.f32 %v1495_v58, %v1697_v32 }
 0x212   : > { %v1496_v60 = vpop.f32.mrb[30].mxu1  ;;  %v919_v0 = vadd.f32 %v1697_v32, %v918_v59 }
 0x213   : > { %v930_v62 = vadd.f32 %v1496_v60, %v1697_v32  ;;  %v921_v63 = vpop.f32.mrb[31].mxu1 }
 0x214   : > { %v922_v1 = vadd.f32 %v1697_v32, %v921_v63 }
 0x215   : > { %v1336_v2 = vpack.c.bf16 %v930_v62, %v927_v61 }
 0x216   : > { %v1331_v3 = vpack.c.bf16 %v922_v1, %v919_v0 }
 0x217   : > { %1352 = vst [vmem:[%s1707_s16 + $0x78] sm:$0xff] %v1336_v2  }
 0x218   : > { %1351 = vst [vmem:[%s1707_s16 + $0x70] sm:$0xff] %v1331_v3  }
 0x219 PF: > { %s15_s18 = sadd.s32 1, %s1543_s18  }
 0x21a   : > { %p12_p4 = scmp.ge.s32.totalorder %s15_s18, 4  }
 0x21c   :  { %14 = sbr.rel (!%p12_p4) target bundleno = 1 (0x1), region = 70 }

// kernel: _lambda_.12
= control target key start
LH: loop header
LB: loop body
LE: loop exit
PB: predicated region body
PF: predicated region fallthrough
CT: control target
= control target key end

     0   :  { %s1673_s18 = smov 0   ;;  %s1900_s0 = inlined_call_operand.vmem [shape: bf16[512,128], index: 0, kind: input, shape index: {}]   ;;  %s1901_s1 = inlined_call_operand.vmem [shape: bf16[128,128], index: 1, kind: input, shape index: {}]   ;;  %s1902_s2 = inlined_call_operand.vmem [shape: f32[1,128], index: 2, kind: input, shape index: {}]   ;;  %s1903_s3 = inlined_call_operand.vmem [shape: bf16[128,128], index: 3, kind: input, shape index: {}]   ;;  %s1904_s4 = inlined_call_operand.vmem [shape: f32[1,128], index: 4, kind: input, shape index: {}]   ;;  %s1905_s5 = inlined_call_operand.vmem [shape: f32[512,1], index: 5, kind: output, shape index: {}]  }
   0x1 LB: > { %s1246_s19 = sadd.s32 4294967295, %s1641_s18   ;;  %p1250_p0 = scmp.ge.s32.totalorder %s1641_s18, 1  ;;  %s1641_s18 = sphi %s1673_s18, %s15_s18  }
   0x2   : > { %p188_p1 = scmp.lt.s32.totalorder %s1641_s18, 3 }
   0x4   : > { %p189_p2 = pnand %p1250_p0, %p188_p1 }
   0x5   : > { %v1475_v0 = vld [vmem:[%s1901_s1] sm:$0xff] (!%p189_p2)   ;;  %s1251_s22 = sshll.u32 (!%p189_p2), %s1246_s19, 5  ;;  %v1476_v1 = vld [vmem:[%s1901_s1 + $0x8] sm:$0xff] (!%p189_p2)   ;;  %v1477_v2 = vld [vmem:[%s1901_s1 + $0x10] sm:$0xff] (!%p189_p2)  }
   0x6   : > { %192 = sbr.rel (%p189_p2) target bundleno = 566 (0x236), region = 40  ;;  %p217_p3 = scmp.lt.s32.totalorder (!%p189_p2), %s1251_s22, 63  ;;  %1371 = vmatprep.subr.bf16.mxu0 (!%p189_p2), %v1475_v0  ;;  %v1478_v3 = vld [vmem:[%s1901_s1 + $0x18] sm:$0xff] (!%p189_p2)   ;;  %v1479_v5 = vld [vmem:[%s1901_s1 + $0x20] sm:$0xff] (!%p189_p2)   ;;  %v1480_v6 = vld [vmem:[%s1901_s1 + $0x28] sm:$0xff] (!%p189_p2)  }
   0x7   : > { %1372 = vmatpush3.bf16.msra.mxu0 (!%p189_p2), %v1475_v0  ;;  %v1481_v7 = vld [vmem:[%s1901_s1 + $0x30] sm:$0xff] (!%p189_p2)   ;;  %v1482_v8 = vld [vmem:[%s1901_s1 + $0x38] sm:$0xff] (!%p189_p2)   ;;  %v1499_v9 = vld [vmem:[%s1903_s3] sm:$0xff] (!%p189_p2)  }
   0x8   : > { %1373 = vmatprep.subr.bf16.mxu0 (!%p189_p2), %v1476_v1  ;;  %v1500_v10 = vld [vmem:[%s1903_s3 + $0x8] sm:$0xff] (!%p189_p2)   ;;  %1419 = vmatprep.subr.bf16.mxu1 (!%p189_p2), %v1499_v9  ;;  %v1501_v12 = vld [vmem:[%s1903_s3 + $0x10] sm:$0xff] (!%p189_p2)   ;;  %v1502_v14 = vld [vmem:[%s1903_s3 + $0x18] sm:$0xff] (!%p189_p2)  }
   0x9   : > { %1420 = vmatpush3.bf16.msra.mxu1 (!%p189_p2), %v1499_v9  ;;  %v1503_v15 = vld [vmem:[%s1903_s3 + $0x20] sm:$0xff] (!%p189_p2)   ;;  %v1504_v29 = vld [vmem:[%s1903_s3 + $0x28] sm:$0xff] (!%p189_p2)   ;;  %v1505_v30 = vld [vmem:[%s1903_s3 + $0x30] sm:$0xff] (!%p189_p2)  }
   0xa   : > { %1421 = vmatprep.subr.bf16.mxu1 (!%p189_p2), %v1500_v10  ;;  %v1506_v31 = vld [vmem:[%s1903_s3 + $0x38] sm:$0xff] (!%p189_p2)   ;;  %v1756_v32 = vld [vmem:[%s1902_s2] ss:$0 sm:$0xff] (!%p189_p2) }
   0xb   : > { %1374 = vmatpush3.bf16.msra.mxu0 (!%p189_p2), %v1476_v1 }
   0xc   : > { %1375 = vmatprep.subr.bf16.mxu0 (!%p189_p2), %v1477_v2 }
   0xd   : > { %s1907_s22 = smov (!%p217_p3, %s1251_s22), 63  ;;  %1422 = vmatpush3.bf16.msra.mxu1 %v1500_v10 }
   0xe   : > { %s1252_s27 = sshll.u32 %s1907_s22, 2  ;;  %1423 = vmatprep.subr.bf16.mxu1 %v1501_v12  ;;  %s1254_s13 = sshll.u32 %s1907_s22, 3 }
   0xf   : > { %s1696_s30 = scalar_lea.vmem %s1900_s0, %s1252_s27  ;;  %1376 = vmatpush3.bf16.msra.mxu0 %v1477_v2  ;;  %s1814_s15 = scalar_lea.vmem %s1905_s5, %s1254_s13 }
  0x10   : > { %v1483_v4 = vld [vmem:[%s1696_s30] sm:$0xff]   ;;  %1377 = vmatprep.subr.bf16.mxu0 %v1478_v3  ;;  %v1484_v11 = vld [vmem:[%s1696_s30 + $0x8] sm:$0xff]   ;;  %v1485_v13 = vld [vmem:[%s1696_s30 + $0x10] sm:$0xff]  }
  0x11   : > { %1387 = vmatprep.mubr.bf16.mxu0 %v1483_v4  ;;  %1424 = vmatpush3.bf16.msra.mxu1 %v1501_v12  ;;  %v1486_v16 = vld [vmem:[%s1696_s30 + $0x18] sm:$0xff]   ;;  %v1487_v17 = vld [vmem:[%s1696_s30 + $0x20] sm:$0xff]   ;;  %v1488_v18 = vld [vmem:[%s1696_s30 + $0x28] sm:$0xff]  }
  0x12   : > { %1425 = vmatprep.subr.bf16.mxu1 %v1502_v14  ;;  %v1489_v19 = vld [vmem:[%s1696_s30 + $0x30] sm:$0xff]   ;;  %v1490_v20 = vld [vmem:[%s1696_s30 + $0x38] sm:$0xff]   ;;  %v1491_v21 = vld [vmem:[%s1696_s30 + $0x40] sm:$0xff]  }
  0x13   : > { %1378 = vmatpush3.bf16.msra.mxu0 %v1478_v3  ;;  %v1492_v22 = vld [vmem:[%s1696_s30 + $0x48] sm:$0xff]   ;;  %v1493_v23 = vld [vmem:[%s1696_s30 + $0x50] sm:$0xff]   ;;  %v1494_v24 = vld [vmem:[%s1696_s30 + $0x58] sm:$0xff]  }
  0x14   : > { %1379 = vmatprep.subr.bf16.mxu0 %v1479_v5  ;;  %v1495_v25 = vld [vmem:[%s1696_s30 + $0x60] sm:$0xff]   ;;  %v1496_v26 = vld [vmem:[%s1696_s30 + $0x68] sm:$0xff]   ;;  %v1497_v27 = vld [vmem:[%s1696_s30 + $0x70] sm:$0xff]  }
  0x15   : > { %1426 = vmatpush3.bf16.msra.mxu1 %v1502_v14  ;;  %v1498_v28 = vld [vmem:[%s1696_s30 + $0x78] sm:$0xff]  }
  0x16   : > { %1427 = vmatprep.subr.bf16.mxu1 %v1503_v15 }
  0x17   : > { %1380 = vmatpush3.bf16.msra.mxu0 %v1479_v5 }
  0x18   : > { %1381 = vmatprep.subr.bf16.mxu0 %v1480_v6 }
  0x19   : > { %1428 = vmatpush3.bf16.msra.mxu1 %v1503_v15 }
  0x1a   : > { %1429 = vmatprep.subr.bf16.mxu1 %v1504_v29 }
  0x1b   : > { %1382 = vmatpush3.bf16.msra.mxu0 %v1480_v6 }
  0x1c   : > { %1383 = vmatprep.subr.bf16.mxu0 %v1481_v7 }
  0x1d   : > { %1430 = vmatpush3.bf16.msra.mxu1 %v1504_v29 }
  0x1e   : > { %1431 = vmatprep.subr.bf16.mxu1 %v1505_v30 }
  0x1f   : > { %1384 = vmatpush3.bf16.msra.mxu0 %v1481_v7 }
  0x20   : > { %1385 = vmatprep.subr.bf16.mxu0 %v1482_v8 }
  0x21   : > { %1432 = vmatpush3.bf16.msra.mxu1 %v1505_v30 }
  0x22   : > { %1433 = vmatprep.subr.bf16.mxu1 %v1506_v31 }
  0x23   : > { %1386 = vmatpush3.bf16.msra.mxu0 %v1482_v8 }
  0x25   : > { %1434 = vmatpush3.bf16.msra.mxu1 %v1506_v31 }
  0x26   : > { %1388 = vmatmul.mubr.bf16.vlgmr.msra.gmra.mrb[0].mxu0 %v1484_v11 }
  0x27   : > { %1391 = vmatprep.mubr.bf16.mxu0 %v1485_v13 }
  0x2e   : > { %1392 = vmatmul.mubr.bf16.gmra.mrb[4].mxu0 %v1486_v16 }
  0x2f   : > { %1395 = vmatprep.mubr.bf16.mxu0 %v1487_v17 }
  0x36   : > { %1396 = vmatmul.mubr.bf16.gmra.mrb[8].mxu0 %v1488_v18 }
  0x37   : > { %1399 = vmatprep.mubr.bf16.mxu0 %v1489_v19 }
  0x3e   : > { %1400 = vmatmul.mubr.bf16.gmra.mrb[12].mxu0 %v1490_v20 }
  0x3f   : > { %1403 = vmatprep.mubr.bf16.mxu0 %v1491_v21 }
  0x46   : > { %1404 = vmatmul.mubr.bf16.gmra.mrb[16].mxu0 %v1492_v22 }
  0x47   : > { %1407 = vmatprep.mubr.bf16.mxu0 %v1493_v23 }
  0x4e   : > { %1408 = vmatmul.mubr.bf16.gmra.mrb[20].mxu0 %v1494_v24 }
  0x4f   : > { %1411 = vmatprep.mubr.bf16.mxu0 %v1495_v25 }
  0x56   : > { %1412 = vmatmul.mubr.bf16.gmra.mrb[24].mxu0 %v1496_v26 }
  0x57   : > { %1415 = vmatprep.mubr.bf16.mxu0 %v1497_v27 }
  0x5e   : > { %1416 = vmatmul.mubr.bf16.gmra.mrb[28].mxu0 %v1498_v28 }
  0xf9   : > { %v1389_v33 = vpop.f32.mrb[0].mxu0 }
  0xfa   : > { %v471_v34 = vadd.f32 %v1389_v33, %v1756_v32  ;;  %v462_v35 = vpop.f32.mrb[1].mxu0 }
  0xfb   : > { %v463_v36 = vadd.f32 %v1756_v32, %v462_v35  ;;  %v1390_v37 = vpop.f32.mrb[2].mxu0 }
  0xfc   : > { %v623_v38 = vmul.f32 0.01, %v471_v34  ;;  %v474_v39 = vadd.f32 %v1390_v37, %v1756_v32  ;;  %v465_v40 = vpop.f32.mrb[3].mxu0  ;;  %vm591_vm0 = vcmp.ge.f32.partialorder %v471_v34, 0.0 }
  0xfd   : > { %v621_v41 = vmul.f32 0.01, %v463_v36  ;;  %v466_v42 = vadd.f32 %v1756_v32, %v465_v40  ;;  %vm589_vm2 = vcmp.ge.f32.partialorder %v463_v36, 0.0 }
  0xfe   : > { %vm592_vm1 = vcmp.ge.f32.partialorder %v474_v39, 0.0  ;;  %v624_v43 = vmul.f32 0.01, %v474_v39  ;;  %v655_v45 = vsel %vm591_vm0, %v471_v34, %v623_v38 }
  0xff   : > { %v622_v44 = vmul.f32 0.01, %v466_v42  ;;  %vm590_vm3 = vcmp.ge.f32.partialorder %v466_v42, 0.0  ;;  %v653_v48 = vsel %vm589_vm2, %v463_v36, %v621_v41 }
 0x100   : > { %v656_v46 = vsel %vm592_vm1, %v474_v39, %v624_v43 }
 0x101   : > { %v1393_v47 = vpop.f32.mrb[4].mxu0  ;;  %v654_v49 = vsel %vm590_vm3, %v466_v42, %v622_v44  ;;  %v686_v50 = vpack.c.bf16 %v656_v46, %v655_v45 }
 0x102   : > { %v487_v51 = vadd.f32 %v1393_v47, %v1756_v32  ;;  %v478_v52 = vpop.f32.mrb[5].mxu0  ;;  %v685_v53 = vpack.c.bf16 %v654_v49, %v653_v48 }
 0x103   : > { %v479_v54 = vadd.f32 %v1756_v32, %v478_v52  ;;  %v1394_v55 = vpop.f32.mrb[6].mxu0 }
 0x104   : > { %v627_v56 = vmul.f32 0.01, %v487_v51  ;;  %v490_v57 = vadd.f32 %v1394_v55, %v1756_v32  ;;  %v481_v58 = vpop.f32.mrb[7].mxu0  ;;  %1435 = vmatprep.mubr.bf16.mxu1 %v685_v53  ;;  %vm595_vm4 = vcmp.ge.f32.partialorder %v487_v51, 0.0 }
 0x105   : > { %v625_v59 = vmul.f32 0.01, %v479_v54  ;;  %v482_v60 = vadd.f32 %v1756_v32, %v481_v58  ;;  %1436 = vmatmul.mubr.bf16.vlgmr.msra.gmra.mrb[0].mxu1 %v686_v50  ;;  %vm593_vm5 = vcmp.ge.f32.partialorder %v479_v54, 0.0 }
 0x106   : > { %vm596_vm6 = vcmp.ge.f32.partialorder %v490_v57, 0.0  ;;  %v628_v61 = vmul.f32 0.01, %v490_v57  ;;  %v659_v63 = vsel %vm595_vm4, %v487_v51, %v627_v56 }
 0x107   : > { %vm594_vm7 = vcmp.ge.f32.partialorder %v482_v60, 0.0  ;;  %v626_v62 = vmul.f32 0.01, %v482_v60  ;;  %v657_v2 = vsel %vm593_vm5, %v479_v54, %v625_v59 }
 0x108   : > { %v660_v0 = vsel %vm596_vm6, %v490_v57, %v628_v61 }
 0x109   : > { %v1397_v1 = vpop.f32.mrb[8].mxu0  ;;  %v658_v3 = vsel %vm594_vm7, %v482_v60, %v626_v62  ;;  %v688_v4 = vpack.c.bf16 %v660_v0, %v659_v63 }
 0x10a   : > { %v503_v5 = vadd.f32 %v1397_v1, %v1756_v32  ;;  %v494_v6 = vpop.f32.mrb[9].mxu0  ;;  %v687_v7 = vpack.c.bf16 %v658_v3, %v657_v2 }
 0x10b   : > { %v495_v8 = vadd.f32 %v1756_v32, %v494_v6  ;;  %v1398_v9 = vpop.f32.mrb[10].mxu0 }
 0x10c   : > { %v631_v10 = vmul.f32 0.01, %v503_v5  ;;  %v506_v11 = vadd.f32 %v1398_v9, %v1756_v32  ;;  %v497_v12 = vpop.f32.mrb[11].mxu0  ;;  %1439 = vmatprep.mubr.bf16.mxu1 %v687_v7  ;;  %vm599_vm8 = vcmp.ge.f32.partialorder %v503_v5, 0.0 }
 0x10d   : > { %v629_v13 = vmul.f32 0.01, %v495_v8  ;;  %v498_v14 = vadd.f32 %v1756_v32, %v497_v12  ;;  %1440 = vmatmul.mubr.bf16.gmra.mrb[4].mxu1 %v688_v4  ;;  %vm597_vm9 = vcmp.ge.f32.partialorder %v495_v8, 0.0 }
 0x10e   : > { %vm600_vm10 = vcmp.ge.f32.partialorder %v506_v11, 0.0  ;;  %v632_v15 = vmul.f32 0.01, %v506_v11  ;;  %v663_v17 = vsel %vm599_vm8, %v503_v5, %v631_v10 }
 0x10f   : > { %vm598_vm11 = vcmp.ge.f32.partialorder %v498_v14, 0.0  ;;  %v630_v16 = vmul.f32 0.01, %v498_v14  ;;  %v661_v20 = vsel %vm597_vm9, %v495_v8, %v629_v13 }
 0x110   : > { %v664_v18 = vsel %vm600_vm10, %v506_v11, %v632_v15 }
 0x111   : > { %v1401_v19 = vpop.f32.mrb[12].mxu0  ;;  %v662_v21 = vsel %vm598_vm11, %v498_v14, %v630_v16  ;;  %v690_v22 = vpack.c.bf16 %v664_v18, %v663_v17 }
 0x112   : > { %v519_v23 = vadd.f32 %v1401_v19, %v1756_v32  ;;  %v510_v24 = vpop.f32.mrb[13].mxu0  ;;  %v689_v25 = vpack.c.bf16 %v662_v21, %v661_v20 }
 0x113   : > { %v511_v26 = vadd.f32 %v1756_v32, %v510_v24  ;;  %v1402_v27 = vpop.f32.mrb[14].mxu0 }
 0x114   : > { %v635_v28 = vmul.f32 0.01, %v519_v23  ;;  %v522_v29 = vadd.f32 %v1402_v27, %v1756_v32  ;;  %v513_v30 = vpop.f32.mrb[15].mxu0  ;;  %1443 = vmatprep.mubr.bf16.mxu1 %v689_v25  ;;  %vm603_vm12 = vcmp.ge.f32.partialorder %v519_v23, 0.0 }
 0x115   : > { %v633_v31 = vmul.f32 0.01, %v511_v26  ;;  %v514_v33 = vadd.f32 %v1756_v32, %v513_v30  ;;  %1444 = vmatmul.mubr.bf16.gmra.mrb[8].mxu1 %v690_v22  ;;  %vm601_vm13 = vcmp.ge.f32.partialorder %v511_v26, 0.0 }
 0x116   : > { %vm604_vm14 = vcmp.ge.f32.partialorder %v522_v29, 0.0  ;;  %v636_v34 = vmul.f32 0.01, %v522_v29  ;;  %v667_v36 = vsel %vm603_vm12, %v519_v23, %v635_v28 }
 0x117   : > { %vm602_vm15 = vcmp.ge.f32.partialorder %v514_v33, 0.0  ;;  %v634_v35 = vmul.f32 0.01, %v514_v33  ;;  %v665_v39 = vsel %vm601_vm13, %v511_v26, %v633_v31 }
 0x118   : > { %v668_v37 = vsel %vm604_vm14, %v522_v29, %v636_v34 }
 0x119   : > { %v1405_v38 = vpop.f32.mrb[16].mxu0  ;;  %v666_v40 = vsel %vm602_vm15, %v514_v33, %v634_v35  ;;  %v692_v41 = vpack.c.bf16 %v668_v37, %v667_v36 }
 0x11a   : > { %v535_v42 = vadd.f32 %v1405_v38, %v1756_v32  ;;  %v526_v43 = vpop.f32.mrb[17].mxu0  ;;  %v691_v44 = vpack.c.bf16 %v666_v40, %v665_v39 }
 0x11b   : > { %v527_v45 = vadd.f32 %v1756_v32, %v526_v43  ;;  %v1406_v46 = vpop.f32.mrb[18].mxu0 }
 0x11c   : > { %v639_v47 = vmul.f32 0.01, %v535_v42  ;;  %v538_v48 = vadd.f32 %v1406_v46, %v1756_v32  ;;  %v529_v49 = vpop.f32.mrb[19].mxu0  ;;  %1447 = vmatprep.mubr.bf16.mxu1 %v691_v44  ;;  %vm607_vm0 = vcmp.ge.f32.partialorder %v535_v42, 0.0 }
 0x11d   : > { %v637_v50 = vmul.f32 0.01, %v527_v45  ;;  %v530_v51 = vadd.f32 %v1756_v32, %v529_v49  ;;  %1448 = vmatmul.mubr.bf16.gmra.mrb[12].mxu1 %v692_v41  ;;  %vm605_vm1 = vcmp.ge.f32.partialorder %v527_v45, 0.0 }
 0x11e   : > { %vm608_vm2 = vcmp.ge.f32.partialorder %v538_v48, 0.0  ;;  %v640_v52 = vmul.f32 0.01, %v538_v48  ;;  %v671_v54 = vsel %vm607_vm0, %v535_v42, %v639_v47  ;;  %vm1157_vm0 = vcmask 7168  }
 0x11f   : > { %vm606_vm3 = vcmp.ge.f32.partialorder %v530_v51, 0.0  ;;  %v638_v53 = vmul.f32 0.01, %v530_v51  ;;  %v669_v57 = vsel %vm605_vm1, %v527_v45, %v637_v50 }
 0x120   : > { %v672_v55 = vsel %vm608_vm2, %v538_v48, %v640_v52 }
 0x121   : > { %v1409_v56 = vpop.f32.mrb[20].mxu0  ;;  %v670_v58 = vsel %vm606_vm3, %v530_v51, %v638_v53  ;;  %v694_v59 = vpack.c.bf16 %v672_v55, %v671_v54  ;;  %v1793_v51 = vld [vmem:[%s1904_s4] ss:$0 sm:$0xff] }
 0x122   : > { %v551_v60 = vadd.f32 %v1409_v56, %v1756_v32  ;;  %v542_v61 = vpop.f32.mrb[21].mxu0  ;;  %v693_v62 = vpack.c.bf16 %v670_v58, %v669_v57 }
 0x123   : > { %v543_v63 = vadd.f32 %v1756_v32, %v542_v61  ;;  %v1410_v0 = vpop.f32.mrb[22].mxu0 }
 0x124   : > { %v643_v1 = vmul.f32 0.01, %v551_v60  ;;  %v554_v2 = vadd.f32 %v1410_v0, %v1756_v32  ;;  %v545_v3 = vpop.f32.mrb[23].mxu0  ;;  %1451 = vmatprep.mubr.bf16.mxu1 %v693_v62  ;;  %vm611_vm4 = vcmp.ge.f32.partialorder %v551_v60, 0.0 }
 0x125   : > { %v641_v4 = vmul.f32 0.01, %v543_v63  ;;  %v546_v5 = vadd.f32 %v1756_v32, %v545_v3  ;;  %1452 = vmatmul.mubr.bf16.gmra.mrb[16].mxu1 %v694_v59  ;;  %vm609_vm5 = vcmp.ge.f32.partialorder %v543_v63, 0.0 }
 0x126   : > { %vm612_vm6 = vcmp.ge.f32.partialorder %v554_v2, 0.0  ;;  %v644_v6 = vmul.f32 0.01, %v554_v2  ;;  %v675_v8 = vsel %vm611_vm4, %v551_v60, %v643_v1 }
 0x127   : > { %vm610_vm7 = vcmp.ge.f32.partialorder %v546_v5, 0.0  ;;  %v642_v7 = vmul.f32 0.01, %v546_v5  ;;  %v673_v11 = vsel %vm609_vm5, %v543_v63, %v641_v4 }
 0x128   : > { %v676_v9 = vsel %vm612_vm6, %v554_v2, %v644_v6 }
 0x129   : > { %v1413_v10 = vpop.f32.mrb[24].mxu0  ;;  %v674_v12 = vsel %vm610_vm7, %v546_v5, %v642_v7  ;;  %v696_v13 = vpack.c.bf16 %v676_v9, %v675_v8 }
 0x12a   : > { %v567_v14 = vadd.f32 %v1413_v10, %v1756_v32  ;;  %v558_v15 = vpop.f32.mrb[25].mxu0  ;;  %v695_v16 = vpack.c.bf16 %v674_v12, %v673_v11 }
 0x12b   : > { %v559_v17 = vadd.f32 %v1756_v32, %v558_v15  ;;  %v1414_v18 = vpop.f32.mrb[26].mxu0 }
 0x12c   : > { %v647_v19 = vmul.f32 0.01, %v567_v14  ;;  %v570_v20 = vadd.f32 %v1414_v18, %v1756_v32  ;;  %v561_v21 = vpop.f32.mrb[27].mxu0  ;;  %1455 = vmatprep.mubr.bf16.mxu1 %v695_v16  ;;  %vm615_vm8 = vcmp.ge.f32.partialorder %v567_v14, 0.0 }
 0x12d   : > { %v645_v22 = vmul.f32 0.01, %v559_v17  ;;  %v562_v23 = vadd.f32 %v1756_v32, %v561_v21  ;;  %1456 = vmatmul.mubr.bf16.gmra.mrb[20].mxu1 %v696_v13  ;;  %vm613_vm9 = vcmp.ge.f32.partialorder %v559_v17, 0.0 }
 0x12e   : > { %vm616_vm10 = vcmp.ge.f32.partialorder %v570_v20, 0.0  ;;  %v648_v24 = vmul.f32 0.01, %v570_v20  ;;  %v679_v26 = vsel %vm615_vm8, %v567_v14, %v647_v19 }
 0x12f   : > { %vm614_vm11 = vcmp.ge.f32.partialorder %v562_v23, 0.0  ;;  %v646_v25 = vmul.f32 0.01, %v562_v23  ;;  %v677_v29 = vsel %vm613_vm9, %v559_v17, %v645_v22 }
 0x130   : > { %v680_v27 = vsel %vm616_vm10, %v570_v20, %v648_v24 }
 0x131   : > { %v1417_v28 = vpop.f32.mrb[28].mxu0  ;;  %v678_v30 = vsel %vm614_vm11, %v562_v23, %v646_v25  ;;  %v698_v31 = vpack.c.bf16 %v680_v27, %v679_v26 }
 0x132   : > { %v583_v33 = vadd.f32 %v1417_v28, %v1756_v32  ;;  %v574_v34 = vpop.f32.mrb[29].mxu0  ;;  %v697_v35 = vpack.c.bf16 %v678_v30, %v677_v29 }
 0x133   : > { %v575_v36 = vadd.f32 %v1756_v32, %v574_v34  ;;  %v1418_v37 = vpop.f32.mrb[30].mxu0 }
 0x134   : > { %v651_v38 = vmul.f32 0.01, %v583_v33  ;;  %v586_v39 = vadd.f32 %v1418_v37, %v1756_v32  ;;  %v577_v40 = vpop.f32.mrb[31].mxu0  ;;  %1459 = vmatprep.mubr.bf16.mxu1 %v697_v35  ;;  %vm619_vm12 = vcmp.ge.f32.partialorder %v583_v33, 0.0 }
 0x135   : > { %v649_v41 = vmul.f32 0.01, %v575_v36  ;;  %v578_v42 = vadd.f32 %v1756_v32, %v577_v40  ;;  %1460 = vmatmul.mubr.bf16.gmra.mrb[24].mxu1 %v698_v31  ;;  %vm617_vm13 = vcmp.ge.f32.partialorder %v575_v36, 0.0 }
 0x136   : > { %vm620_vm14 = vcmp.ge.f32.partialorder %v586_v39, 0.0  ;;  %v652_v43 = vmul.f32 0.01, %v586_v39  ;;  %v683_v45 = vsel %vm619_vm12, %v583_v33, %v651_v38 }
 0x137   : > { %vm618_vm15 = vcmp.ge.f32.partialorder %v578_v42, 0.0  ;;  %v650_v44 = vmul.f32 0.01, %v578_v42  ;;  %v681_v47 = vsel %vm617_vm13, %v575_v36, %v649_v41 }
 0x138   : > { %v684_v46 = vsel %vm620_vm14, %v586_v39, %v652_v43 }
 0x139   : > { %v682_v48 = vsel %vm618_vm15, %v578_v42, %v650_v44  ;;  %v700_v49 = vpack.c.bf16 %v684_v46, %v683_v45 }
 0x13a   : > { %v699_v50 = vpack.c.bf16 %v682_v48, %v681_v47 }
 0x13c   : > { %1463 = vmatprep.mubr.bf16.mxu1 %v699_v50 }
 0x13d   : > { %1464 = vmatmul.mubr.bf16.gmra.mrb[28].mxu1 %v700_v49 }
 0x1d8   : > { %v1437_v32 = vpop.f32.mrb[0].mxu1 }
 0x1d9   : > { %v815_v52 = vadd.f32 %v1437_v32, %v1793_v51  ;;  %v806_v53 = vpop.f32.mrb[1].mxu1 }
 0x1da   : > { %v807_v54 = vadd.f32 %v1793_v51, %v806_v53  ;;  %v1438_v55 = vpop.f32.mrb[2].mxu1 }
 0x1db   : > { %v1291_v56 = vmul.f32 -1.442695, %v815_v52  ;;  %v818_v57 = vadd.f32 %v1438_v55, %v1793_v51  ;;  %v809_v58 = vpop.f32.mrb[3].mxu1 }
 0x1dc   : > { %v1289_v59 = vmul.f32 -1.442695, %v807_v54  ;;  %v810_v60 = vadd.f32 %v1793_v51, %v809_v58 }
 0x1dd   : > { %1507 = vpow2.f32 %v1291_v56  ;;  %v1292_v61 = vmul.f32 -1.442695, %v818_v57 }
 0x1de   : > { %1509 = vpow2.f32 %v1289_v59  ;;  %v1290_v62 = vmul.f32 -1.442695, %v810_v60 }
 0x1df   : > { %1511 = vpow2.f32 %v1292_v61 }
 0x1e0   : > { %1513 = vpow2.f32 %v1290_v62  ;;  %v1441_v63 = vpop.f32.mrb[4].mxu1 }
 0x1e1   : > { %v831_v0 = vadd.f32 %v1441_v63, %v1793_v51  ;;  %v822_v1 = vpop.f32.mrb[5].mxu1 }
 0x1e2   : > { %v823_v2 = vadd.f32 %v1793_v51, %v822_v1  ;;  %v1442_v3 = vpop.f32.mrb[6].mxu1 }
 0x1e3   : > { %v1295_v4 = vmul.f32 -1.442695, %v831_v0  ;;  %v834_v5 = vadd.f32 %v1442_v3, %v1793_v51  ;;  %v825_v6 = vpop.f32.mrb[7].mxu1 }
 0x1e4   : > { %v1293_v7 = vmul.f32 -1.442695, %v823_v2  ;;  %v826_v8 = vadd.f32 %v1793_v51, %v825_v6 }
 0x1e5   : > { %1515 = vpow2.f32 %v1295_v4  ;;  %v1296_v9 = vmul.f32 -1.442695, %v834_v5 }
 0x1e6   : > { %1517 = vpow2.f32 %v1293_v7  ;;  %v1294_v10 = vmul.f32 -1.442695, %v826_v8 }
 0x1e7   : > { %v1508_v11 = vpop.eup %1507  ;;  %1519 = vpow2.f32 %v1296_v9 }
 0x1e8   : > { %v1510_v12 = vpop.eup %1509  ;;  %v1031_v13 = vadd.f32 1.0, %v1508_v11  ;;  %1521 = vpow2.f32 %v1294_v10  ;;  %v1445_v14 = vpop.f32.mrb[8].mxu1 }
 0x1e9   : > { %v1512_v15 = vpop.eup %1511  ;;  %v1029_v16 = vadd.f32 1.0, %v1510_v12  ;;  %v847_v17 = vadd.f32 %v1445_v14, %v1793_v51  ;;  %v838_v18 = vpop.f32.mrb[9].mxu1 }
 0x1ea   : > { %v1514_v19 = vpop.eup %1513  ;;  %1523 = vrcp.f32 %v1031_v13  ;;  %v1032_v20 = vadd.f32 1.0, %v1512_v15  ;;  %v839_v21 = vadd.f32 %v1793_v51, %v838_v18  ;;  %v1446_v22 = vpop.f32.mrb[10].mxu1 }
 0x1eb   : > { %1525 = vrcp.f32 %v1029_v16  ;;  %v1030_v23 = vadd.f32 1.0, %v1514_v19  ;;  %v1299_v24 = vmul.f32 -1.442695, %v847_v17  ;;  %v850_v25 = vadd.f32 %v1446_v22, %v1793_v51  ;;  %v841_v26 = vpop.f32.mrb[11].mxu1 }
 0x1ec   : > { %1527 = vrcp.f32 %v1032_v20  ;;  %v1297_v27 = vmul.f32 -1.442695, %v839_v21  ;;  %v842_v28 = vadd.f32 %v1793_v51, %v841_v26 }
 0x1ed   : > { %1529 = vrcp.f32 %v1030_v23  ;;  %v1300_v29 = vmul.f32 -1.442695, %v850_v25 }
 0x1ee   : > { %1531 = vpow2.f32 %v1299_v24  ;;  %v1298_v30 = vmul.f32 -1.442695, %v842_v28 }
 0x1ef   : > { %v1516_v31 = vpop.eup %1515  ;;  %1533 = vpow2.f32 %v1297_v27 }
 0x1f0   : > { %v1518_v33 = vpop.eup %1517  ;;  %v1035_v34 = vadd.f32 1.0, %v1516_v31  ;;  %1535 = vpow2.f32 %v1300_v29  ;;  %v1449_v35 = vpop.f32.mrb[12].mxu1 }
 0x1f1   : > { %v1520_v36 = vpop.eup %1519  ;;  %v1033_v37 = vadd.f32 1.0, %v1518_v33  ;;  %1537 = vpow2.f32 %v1298_v30  ;;  %v863_v38 = vadd.f32 %v1449_v35, %v1793_v51  ;;  %v854_v39 = vpop.f32.mrb[13].mxu1 }
 0x1f2   : > { %v1522_v40 = vpop.eup %1521  ;;  %1539 = vrcp.f32 %v1035_v34  ;;  %v1036_v41 = vadd.f32 1.0, %v1520_v36  ;;  %v855_v42 = vadd.f32 %v1793_v51, %v854_v39  ;;  %v1450_v43 = vpop.f32.mrb[14].mxu1 }
 0x1f3   : > { %1541 = vrcp.f32 %v1033_v37  ;;  %v1034_v44 = vadd.f32 1.0, %v1522_v40  ;;  %v1303_v45 = vmul.f32 -1.442695, %v863_v38  ;;  %v866_v46 = vadd.f32 %v1450_v43, %v1793_v51  ;;  %v857_v47 = vpop.f32.mrb[15].mxu1 }
 0x1f4   : > { %v1524_v48 = vpop.eup %1523  ;;  %1543 = vrcp.f32 %v1036_v41  ;;  %v1301_v49 = vmul.f32 -1.442695, %v855_v42  ;;  %v858_v50 = vadd.f32 %v1793_v51, %v857_v47 }
 0x1f5   : > { %v1526_v32 = vpop.eup %1525  ;;  %v1127_v52 = vsub.f32 1.0, %v1524_v48  ;;  %1545 = vrcp.f32 %v1034_v44  ;;  %v1304_v53 = vmul.f32 -1.442695, %v866_v46 }
 0x1f6   : > { %v1528_v54 = vpop.eup %1527  ;;  %v1125_v55 = vsub.f32 1.0, %v1526_v32  ;;  %1547 = vpow2.f32 %v1303_v45  ;;  %v1302_v56 = vmul.f32 -1.442695, %v858_v50 }
 0x1f7   : > { %v1530_v57 = vpop.eup %1529  ;;  %1160 = vst.msk [vmem:[%s1814_s15 + $0x10] sm:$0xff] %vm1157_vm0, %v1127_v52  ;;  %v1128_v58 = vsub.f32 1.0, %v1528_v54  ;;  %1549 = vpow2.f32 %v1301_v49 }
 0x1f8   : > { %v1532_v59 = vpop.eup %1531  ;;  %1158 = vst.msk [vmem:[%s1814_s15] sm:$0xff] %vm1157_vm0, %v1125_v55  ;;  %v1126_v60 = vsub.f32 1.0, %v1530_v57  ;;  %1551 = vpow2.f32 %v1304_v53  ;;  %v1453_v61 = vpop.f32.mrb[16].mxu1 }
 0x1f9   : > { %v1534_v62 = vpop.eup %1533  ;;  %1161 = vst.msk [vmem:[%s1814_s15 + $0x18] sm:$0xff] %vm1157_vm0, %v1128_v58  ;;  %v1039_v63 = vadd.f32 1.0, %v1532_v59  ;;  %1553 = vpow2.f32 %v1302_v56  ;;  %v879_v0 = vadd.f32 %v1453_v61, %v1793_v51  ;;  %v870_v1 = vpop.f32.mrb[17].mxu1 }
 0x1fa   : > { %v1536_v2 = vpop.eup %1535  ;;  %1159 = vst.msk [vmem:[%s1814_s15 + $0x8] sm:$0xff] %vm1157_vm0, %v1126_v60  ;;  %v1037_v3 = vadd.f32 1.0, %v1534_v62  ;;  %v871_v4 = vadd.f32 %v1793_v51, %v870_v1  ;;  %v1454_v5 = vpop.f32.mrb[18].mxu1 }
 0x1fb   : > { %v1538_v6 = vpop.eup %1537  ;;  %1555 = vrcp.f32 %v1039_v63  ;;  %v1040_v7 = vadd.f32 1.0, %v1536_v2  ;;  %v1307_v8 = vmul.f32 -1.442695, %v879_v0  ;;  %v882_v9 = vadd.f32 %v1454_v5, %v1793_v51  ;;  %v873_v10 = vpop.f32.mrb[19].mxu1 }
 0x1fc   : > { %v1540_v11 = vpop.eup %1539  ;;  %1557 = vrcp.f32 %v1037_v3  ;;  %v1038_v12 = vadd.f32 1.0, %v1538_v6  ;;  %v1305_v13 = vmul.f32 -1.442695, %v871_v4  ;;  %v874_v14 = vadd.f32 %v1793_v51, %v873_v10 }
 0x1fd   : > { %v1542_v15 = vpop.eup %1541  ;;  %v1131_v16 = vsub.f32 1.0, %v1540_v11  ;;  %1559 = vrcp.f32 %v1040_v7  ;;  %v1308_v17 = vmul.f32 -1.442695, %v882_v9 }
 0x1fe   : > { %v1544_v18 = vpop.eup %1543  ;;  %v1129_v19 = vsub.f32 1.0, %v1542_v15  ;;  %1561 = vrcp.f32 %v1038_v12  ;;  %v1306_v20 = vmul.f32 -1.442695, %v874_v14 }
 0x1ff   : > { %v1546_v21 = vpop.eup %1545  ;;  %1164 = vst.msk [vmem:[%s1814_s15 + $0x30] sm:$0xff] %vm1157_vm0, %v1131_v16  ;;  %v1132_v22 = vsub.f32 1.0, %v1544_v18  ;;  %1563 = vpow2.f32 %v1307_v8 }
 0x200   : > { %v1548_v23 = vpop.eup %1547  ;;  %1162 = vst.msk [vmem:[%s1814_s15 + $0x20] sm:$0xff] %vm1157_vm0, %v1129_v19  ;;  %v1130_v24 = vsub.f32 1.0, %v1546_v21  ;;  %1565 = vpow2.f32 %v1305_v13  ;;  %v1457_v25 = vpop.f32.mrb[20].mxu1 }
 0x201   : > { %v1550_v26 = vpop.eup %1549  ;;  %1165 = vst.msk [vmem:[%s1814_s15 + $0x38] sm:$0xff] %vm1157_vm0, %v1132_v22  ;;  %v1043_v27 = vadd.f32 1.0, %v1548_v23  ;;  %1567 = vpow2.f32 %v1308_v17  ;;  %v895_v28 = vadd.f32 %v1457_v25, %v1793_v51  ;;  %v886_v29 = vpop.f32.mrb[21].mxu1 }
 0x202   : > { %v1552_v30 = vpop.eup %1551  ;;  %1163 = vst.msk [vmem:[%s1814_s15 + $0x28] sm:$0xff] %vm1157_vm0, %v1130_v24  ;;  %v1041_v31 = vadd.f32 1.0, %v1550_v26  ;;  %1569 = vpow2.f32 %v1306_v20  ;;  %v887_v33 = vadd.f32 %v1793_v51, %v886_v29  ;;  %v1458_v34 = vpop.f32.mrb[22].mxu1 }
 0x203   : > { %v1554_v35 = vpop.eup %1553  ;;  %1571 = vrcp.f32 %v1043_v27  ;;  %v1044_v36 = vadd.f32 1.0, %v1552_v30  ;;  %v1311_v37 = vmul.f32 -1.442695, %v895_v28  ;;  %v898_v38 = vadd.f32 %v1458_v34, %v1793_v51  ;;  %v889_v39 = vpop.f32.mrb[23].mxu1 }
 0x204   : > { %1573 = vrcp.f32 %v1041_v31  ;;  %v1042_v40 = vadd.f32 1.0, %v1554_v35  ;;  %v1309_v41 = vmul.f32 -1.442695, %v887_v33  ;;  %v890_v42 = vadd.f32 %v1793_v51, %v889_v39 }
 0x205   : > { %v1556_v43 = vpop.eup %1555  ;;  %1575 = vrcp.f32 %v1044_v36  ;;  %v1312_v44 = vmul.f32 -1.442695, %v898_v38 }
 0x206   : > { %v1558_v45 = vpop.eup %1557  ;;  %v1135_v46 = vsub.f32 1.0, %v1556_v43  ;;  %1577 = vrcp.f32 %v1042_v40  ;;  %v1310_v47 = vmul.f32 -1.442695, %v890_v42 }
 0x207   : > { %v1560_v48 = vpop.eup %1559  ;;  %v1133_v49 = vsub.f32 1.0, %v1558_v45  ;;  %1579 = vpow2.f32 %v1311_v37 }
 0x208   : > { %v1562_v50 = vpop.eup %1561  ;;  %1168 = vst.msk [vmem:[%s1814_s15 + $0x50] sm:$0xff] %vm1157_vm0, %v1135_v46  ;;  %v1136_v32 = vsub.f32 1.0, %v1560_v48  ;;  %1581 = vpow2.f32 %v1309_v41  ;;  %v1461_v52 = vpop.f32.mrb[24].mxu1 }
 0x209   : > { %v1564_v53 = vpop.eup %1563  ;;  %1166 = vst.msk [vmem:[%s1814_s15 + $0x40] sm:$0xff] %vm1157_vm0, %v1133_v49  ;;  %v1134_v54 = vsub.f32 1.0, %v1562_v50  ;;  %1583 = vpow2.f32 %v1312_v44  ;;  %v911_v55 = vadd.f32 %v1461_v52, %v1793_v51  ;;  %v902_v56 = vpop.f32.mrb[25].mxu1 }
 0x20a   : > { %v1566_v57 = vpop.eup %1565  ;;  %1169 = vst.msk [vmem:[%s1814_s15 + $0x58] sm:$0xff] %vm1157_vm0, %v1136_v32  ;;  %v1047_v58 = vadd.f32 1.0, %v1564_v53  ;;  %1585 = vpow2.f32 %v1310_v47  ;;  %v903_v59 = vadd.f32 %v1793_v51, %v902_v56  ;;  %v1462_v60 = vpop.f32.mrb[26].mxu1 }
 0x20b   : > { %v1568_v61 = vpop.eup %1567  ;;  %1167 = vst.msk [vmem:[%s1814_s15 + $0x48] sm:$0xff] %vm1157_vm0, %v1134_v54  ;;  %v1045_v62 = vadd.f32 1.0, %v1566_v57  ;;  %v914_v63 = vadd.f32 %v1462_v60, %v1793_v51  ;;  %v905_v0 = vpop.f32.mrb[27].mxu1  ;;  %v1315_v3 = vmul.f32 -1.442695, %v911_v55 }
 0x20c   : > { %v1570_v1 = vpop.eup %1569  ;;  %1587 = vrcp.f32 %v1047_v58  ;;  %v1048_v2 = vadd.f32 1.0, %v1568_v61  ;;  %v906_v4 = vadd.f32 %v1793_v51, %v905_v0  ;;  %v1313_v7 = vmul.f32 -1.442695, %v903_v59 }
 0x20d   : > { %v1572_v5 = vpop.eup %1571  ;;  %1589 = vrcp.f32 %v1045_v62  ;;  %v1046_v6 = vadd.f32 1.0, %v1570_v1  ;;  %v1316_v10 = vmul.f32 -1.442695, %v914_v63 }
 0x20e   : > { %v1574_v8 = vpop.eup %1573  ;;  %v1139_v9 = vsub.f32 1.0, %v1572_v5  ;;  %1591 = vrcp.f32 %v1048_v2  ;;  %v1314_v13 = vmul.f32 -1.442695, %v906_v4 }
 0x20f   : > { %v1576_v11 = vpop.eup %1575  ;;  %v1137_v12 = vsub.f32 1.0, %v1574_v8  ;;  %1593 = vrcp.f32 %v1046_v6 }
 0x210   : > { %v1578_v14 = vpop.eup %1577  ;;  %1172 = vst.msk [vmem:[%s1814_s15 + $0x70] sm:$0xff] %vm1157_vm0, %v1139_v9  ;;  %v1140_v15 = vsub.f32 1.0, %v1576_v11  ;;  %1595 = vpow2.f32 %v1315_v3  ;;  %v1465_v16 = vpop.f32.mrb[28].mxu1 }
 0x211   : > { %v1580_v17 = vpop.eup %1579  ;;  %1170 = vst.msk [vmem:[%s1814_s15 + $0x60] sm:$0xff] %vm1157_vm0, %v1137_v12  ;;  %v1138_v18 = vsub.f32 1.0, %v1578_v14  ;;  %1597 = vpow2.f32 %v1313_v7  ;;  %v927_v19 = vadd.f32 %v1465_v16, %v1793_v51  ;;  %v918_v20 = vpop.f32.mrb[29].mxu1 }
 0x212   : > { %v1582_v21 = vpop.eup %1581  ;;  %1173 = vst.msk [vmem:[%s1814_s15 + $0x78] sm:$0xff] %vm1157_vm0, %v1140_v15  ;;  %v1051_v22 = vadd.f32 1.0, %v1580_v17  ;;  %1599 = vpow2.f32 %v1316_v10  ;;  %v919_v23 = vadd.f32 %v1793_v51, %v918_v20  ;;  %v1466_v24 = vpop.f32.mrb[30].mxu1 }
 0x213   : > { %v1584_v25 = vpop.eup %1583  ;;  %1171 = vst.msk [vmem:[%s1814_s15 + $0x68] sm:$0xff] %vm1157_vm0, %v1138_v18  ;;  %v1049_v26 = vadd.f32 1.0, %v1582_v21  ;;  %1601 = vpow2.f32 %v1314_v13  ;;  %v930_v27 = vadd.f32 %v1466_v24, %v1793_v51  ;;  %v921_v28 = vpop.f32.mrb[31].mxu1  ;;  %v1319_v31 = vmul.f32 -1.442695, %v927_v19 }
 0x214   : > { %v1586_v29 = vpop.eup %1585  ;;  %1603 = vrcp.f32 %v1051_v22  ;;  %v1052_v30 = vadd.f32 1.0, %v1584_v25  ;;  %v922_v33 = vadd.f32 %v1793_v51, %v921_v28  ;;  %v1317_v35 = vmul.f32 -1.442695, %v919_v23 }
 0x215   : > { %1605 = vrcp.f32 %v1049_v26  ;;  %v1050_v34 = vadd.f32 1.0, %v1586_v29  ;;  %v1320_v37 = vmul.f32 -1.442695, %v930_v27 }
 0x216   : > { %v1588_v36 = vpop.eup %1587  ;;  %1607 = vrcp.f32 %v1052_v30  ;;  %v1318_v40 = vmul.f32 -1.442695, %v922_v33 }
 0x217   : > { %v1590_v38 = vpop.eup %1589  ;;  %v1143_v39 = vsub.f32 1.0, %v1588_v36  ;;  %1609 = vrcp.f32 %v1050_v34 }
 0x218   : > { %v1592_v41 = vpop.eup %1591  ;;  %v1141_v42 = vsub.f32 1.0, %v1590_v38  ;;  %1611 = vpow2.f32 %v1319_v31 }
 0x219   : > { %v1594_v43 = vpop.eup %1593  ;;  %1176 = vst.msk [vmem:[%s1814_s15 + $0x90] sm:$0xff] %vm1157_vm0, %v1143_v39  ;;  %v1144_v51 = vsub.f32 1.0, %v1592_v41  ;;  %1613 = vpow2.f32 %v1317_v35 }
 0x21a   : > { %v1596_v44 = vpop.eup %1595  ;;  %1174 = vst.msk [vmem:[%s1814_s15 + $0x80] sm:$0xff] %vm1157_vm0, %v1141_v42  ;;  %v1142_v45 = vsub.f32 1.0, %v1594_v43  ;;  %1615 = vpow2.f32 %v1320_v37 }
 0x21b   : > { %v1598_v46 = vpop.eup %1597  ;;  %1177 = vst.msk [vmem:[%s1814_s15 + $0x98] sm:$0xff] %vm1157_vm0, %v1144_v51  ;;  %v1055_v47 = vadd.f32 1.0, %v1596_v44  ;;  %1617 = vpow2.f32 %v1318_v40 }
 0x21c   : > { %v1600_v48 = vpop.eup %1599  ;;  %1175 = vst.msk [vmem:[%s1814_s15 + $0x88] sm:$0xff] %vm1157_vm0, %v1142_v45  ;;  %v1053_v49 = vadd.f32 1.0, %v1598_v46 }
 0x21d   : > { %v1602_v50 = vpop.eup %1601  ;;  %1619 = vrcp.f32 %v1055_v47  ;;  %v1056_v32 = vadd.f32 1.0, %v1600_v48 }
 0x21e   : > { %v1604_v52 = vpop.eup %1603  ;;  %1621 = vrcp.f32 %v1053_v49  ;;  %v1054_v53 = vadd.f32 1.0, %v1602_v50 }
 0x21f   : > { %v1606_v54 = vpop.eup %1605  ;;  %v1147_v55 = vsub.f32 1.0, %v1604_v52  ;;  %1623 = vrcp.f32 %v1056_v32 }
 0x220   : > { %v1608_v56 = vpop.eup %1607  ;;  %v1145_v57 = vsub.f32 1.0, %v1606_v54  ;;  %1625 = vrcp.f32 %v1054_v53 }
 0x221   : > { %v1610_v58 = vpop.eup %1609  ;;  %1180 = vst.msk [vmem:[%s1814_s15 + $0xb0] sm:$0xff] %vm1157_vm0, %v1147_v55  ;;  %v1148_v59 = vsub.f32 1.0, %v1608_v56 }
 0x222   : > { %v1612_v60 = vpop.eup %1611  ;;  %1178 = vst.msk [vmem:[%s1814_s15 + $0xa0] sm:$0xff] %vm1157_vm0, %v1145_v57  ;;  %v1146_v61 = vsub.f32 1.0, %v1610_v58 }
 0x223   : > { %v1614_v62 = vpop.eup %1613  ;;  %1181 = vst.msk [vmem:[%s1814_s15 + $0xb8] sm:$0xff] %vm1157_vm0, %v1148_v59  ;;  %v1059_v63 = vadd.f32 1.0, %v1612_v60 }
 0x224   : > { %v1616_v0 = vpop.eup %1615  ;;  %1179 = vst.msk [vmem:[%s1814_s15 + $0xa8] sm:$0xff] %vm1157_vm0, %v1146_v61  ;;  %v1057_v1 = vadd.f32 1.0, %v1614_v62 }
 0x225   : > { %v1618_v2 = vpop.eup %1617  ;;  %1627 = vrcp.f32 %v1059_v63  ;;  %v1060_v3 = vadd.f32 1.0, %v1616_v0 }
 0x226   : > { %1629 = vrcp.f32 %v1057_v1  ;;  %v1058_v4 = vadd.f32 1.0, %v1618_v2 }
 0x227   : > { %v1620_v5 = vpop.eup %1619  ;;  %1631 = vrcp.f32 %v1060_v3 }
 0x228   : > { %v1622_v6 = vpop.eup %1621  ;;  %v1151_v7 = vsub.f32 1.0, %v1620_v5  ;;  %1633 = vrcp.f32 %v1058_v4 }
 0x229   : > { %v1624_v8 = vpop.eup %1623  ;;  %v1149_v9 = vsub.f32 1.0, %v1622_v6 }
 0x22a   : > { %v1626_v10 = vpop.eup %1625  ;;  %1184 = vst.msk [vmem:[%s1814_s15 + $0xd0] sm:$0xff] %vm1157_vm0, %v1151_v7  ;;  %v1152_v11 = vsub.f32 1.0, %v1624_v8 }
 0x22b   : > { %1182 = vst.msk [vmem:[%s1814_s15 + $0xc0] sm:$0xff] %vm1157_vm0, %v1149_v9  ;;  %v1150_v12 = vsub.f32 1.0, %v1626_v10 }
 0x22c   : > { %1185 = vst.msk [vmem:[%s1814_s15 + $0xd8] sm:$0xff] %vm1157_vm0, %v1152_v11 }
 0x22d   : > { %1183 = vst.msk [vmem:[%s1814_s15 + $0xc8] sm:$0xff] %vm1157_vm0, %v1150_v12 }
 0x22f   : > { %v1628_v13 = vpop.eup %1627 }
 0x230   : > { %v1630_v14 = vpop.eup %1629  ;;  %v1155_v15 = vsub.f32 1.0, %v1628_v13 }
 0x231   : > { %v1632_v16 = vpop.eup %1631  ;;  %v1153_v17 = vsub.f32 1.0, %v1630_v14 }
 0x232   : > { %v1634_v18 = vpop.eup %1633  ;;  %1188 = vst.msk [vmem:[%s1814_s15 + $0xf0] sm:$0xff] %vm1157_vm0, %v1155_v15  ;;  %v1156_v19 = vsub.f32 1.0, %v1632_v16 }
 0x233   : > { %1186 = vst.msk [vmem:[%s1814_s15 + $0xe0] sm:$0xff] %vm1157_vm0, %v1153_v17  ;;  %v1154_v20 = vsub.f32 1.0, %v1634_v18 }
 0x234   : > { %1189 = vst.msk [vmem:[%s1814_s15 + $0xf8] sm:$0xff] %vm1157_vm0, %v1156_v19 }
 0x235   : > { %1187 = vst.msk [vmem:[%s1814_s15 + $0xe8] sm:$0xff] %vm1157_vm0, %v1154_v20 }
 0x236 PF: > { %s15_s18 = sadd.s32 1, %s1641_s18  }
 0x237   : > { %p12_p4 = scmp.ge.s32.totalorder %s15_s18, 4  }
 0x239   :  { %14 = sbr.rel (!%p12_p4) target bundleno = 1 (0x1), region = 70 }

// kernel: _lambda_.13
= control target key start
LH: loop header
LB: loop body
LE: loop exit
PB: predicated region body
PF: predicated region fallthrough
CT: control target
= control target key end

     0   :  { %s923_s12 = smov 0   ;;  %s1041_s0 = inlined_call_operand.vmem [shape: bf16[256,256], index: 0, kind: input, shape index: {}]   ;;  %s1042_s1 = inlined_call_operand.vmem [shape: bf16[256,128], index: 1, kind: input, shape index: {}]   ;;  %s1043_s2 = inlined_call_operand.vmem [shape: f32[1,128], index: 2, kind: input, shape index: {}]   ;;  %s1044_s3 = inlined_call_operand.vmem [shape: bf16[256,128], index: 3, kind: output, shape index: {}]  }
   0x1 LB: > { %s642_s13 = sadd.s32 4294967295, %s901_s12   ;;  %p646_p0 = scmp.ge.s32.totalorder %s901_s12, 1  ;;  %s901_s12 = sphi %s923_s12, %s13_s12  }
   0x2   : > { %p139_p1 = scmp.lt.s32.totalorder %s901_s12, 3 }
   0x4   : > { %p140_p2 = pnand %p646_p0, %p139_p1 }
   0x5   : > { %v855_v0 = vld [vmem:[%s1042_s1 + $0x40] sm:$0xff] (!%p140_p2)   ;;  %s647_s16 = sshll.u32 (!%p140_p2), %s642_s13, 4  ;;  %v857_v2 = vld [vmem:[%s1042_s1 + $0x48] sm:$0xff] (!%p140_p2)   ;;  %v859_v4 = vld [vmem:[%s1042_s1 + $0x50] sm:$0xff] (!%p140_p2)  }
   0x6   : > { %143 = sbr.rel (%p140_p2) target bundleno = 284 (0x11c), region = 32  ;;  %v856_v1 = vld [vmem:[%s1042_s1] sm:$0xff] (!%p140_p2)   ;;  %767 = vmatprep.subr.bf16.mxu0 (!%p140_p2), %v855_v0  ;;  %831 = vmatprep.subr.bf16.mxu1 (!%p140_p2), %v855_v0  ;;  %v858_v3 = vld [vmem:[%s1042_s1 + $0x8] sm:$0xff] (!%p140_p2)   ;;  %p165_p3 = scmp.lt.s32.totalorder (!%p140_p2), %s647_s16, 31  ;;  %v860_v5 = vld [vmem:[%s1042_s1 + $0x10] sm:$0xff] (!%p140_p2)  }
   0x7   : > { %768 = vmatpush3.bf16.msra.mxu0 (!%p140_p2), %v856_v1  ;;  %839 = vmatpush3.bf16.msra.mxu1 (!%p140_p2), %v856_v1  ;;  %v861_v6 = vld [vmem:[%s1042_s1 + $0x58] sm:$0xff] (!%p140_p2)   ;;  %v863_v8 = vld [vmem:[%s1042_s1 + $0x60] sm:$0xff] (!%p140_p2)   ;;  %v865_v10 = vld [vmem:[%s1042_s1 + $0x68] sm:$0xff] (!%p140_p2)  }
   0x8   : > { %769 = vmatprep.subr.bf16.mxu0 (!%p140_p2), %v857_v2  ;;  %832 = vmatprep.subr.bf16.mxu1 (!%p140_p2), %v857_v2  ;;  %v862_v7 = vld [vmem:[%s1042_s1 + $0x18] sm:$0xff] (!%p140_p2)   ;;  %v864_v9 = vld [vmem:[%s1042_s1 + $0x20] sm:$0xff] (!%p140_p2)   ;;  %v866_v13 = vld [vmem:[%s1042_s1 + $0x28] sm:$0xff] (!%p140_p2)  }
   0x9   : > { %v867_v14 = vld [vmem:[%s1042_s1 + $0x70] sm:$0xff] (!%p140_p2)   ;;  %v869_v16 = vld [vmem:[%s1042_s1 + $0x78] sm:$0xff] (!%p140_p2)   ;;  %v1006_v40 = vld [vmem:[%s1043_s2] ss:$0 sm:$0xff] (!%p140_p2) }
   0xa   : > { %v868_v15 = vld [vmem:[%s1042_s1 + $0x30] sm:$0xff] (!%p140_p2)   ;;  %v870_v17 = vld [vmem:[%s1042_s1 + $0x38] sm:$0xff] (!%p140_p2)  }
   0xb   : > { %770 = vmatpush3.bf16.msra.mxu0 (!%p140_p2), %v858_v3  ;;  %840 = vmatpush3.bf16.msra.mxu1 (!%p140_p2), %v858_v3 }
   0xc   : > { %771 = vmatprep.subr.bf16.mxu0 (!%p140_p2), %v859_v4  ;;  %833 = vmatprep.subr.bf16.mxu1 (!%p140_p2), %v859_v4 }
   0xd   : > { %s1046_s16 = smov (!%p165_p3, %s647_s16), 31 }
   0xe   : > { %s703_s4 = sshll.u32 %s1046_s16, 3  ;;  %s651_s28 = sshll.u32 %s1046_s16, 2 }
   0xf   : > { %772 = vmatpush3.bf16.msra.mxu0 %v860_v5  ;;  %841 = vmatpush3.bf16.msra.mxu1 %v860_v5  ;;  %s964_s9 = scalar_lea.vmem %s1041_s0, %s703_s4  ;;  %s1016_s4 = scalar_lea.vmem %s1044_s3, %s651_s28 }
  0x10   : > { %773 = vmatprep.subr.bf16.mxu0 %v861_v6  ;;  %834 = vmatprep.subr.bf16.mxu1 %v861_v6  ;;  %v873_v11 = vld [vmem:[%s964_s9 + $0x4] ss:$8 sps:$4 sm:$0xff]   ;;  %v871_v18 = vld [vmem:[%s964_s9] ss:$8 sps:$4 sm:$0xff]   ;;  %v877_v20 = vld [vmem:[%s964_s9 + $0x14] ss:$8 sps:$4 sm:$0xff]  }
  0x11   : > { %v876_v12 = vld [vmem:[%s964_s9 + $0x44] ss:$8 sps:$4 sm:$0xff]   ;;  %441 = vmatprep.mubr.bf16.mxu0 %v873_v11  ;;  %v874_v19 = vld [vmem:[%s964_s9 + $0x40] ss:$8 sps:$4 sm:$0xff]   ;;  %v879_v21 = vld [vmem:[%s964_s9 + $0x54] ss:$8 sps:$4 sm:$0xff]  }
  0x12   : > { %473 = vmatprep.mubr.bf16.mxu1 %v876_v12  ;;  %v881_v22 = vld [vmem:[%s964_s9 + $0x10] ss:$8 sps:$4 sm:$0xff]   ;;  %v883_v24 = vld [vmem:[%s964_s9 + $0x24] ss:$8 sps:$4 sm:$0xff]   ;;  %v887_v26 = vld [vmem:[%s964_s9 + $0x20] ss:$8 sps:$4 sm:$0xff]  }
  0x13   : > { %774 = vmatpush3.bf16.msra.mxu0 %v862_v7  ;;  %842 = vmatpush3.bf16.msra.mxu1 %v862_v7  ;;  %v882_v23 = vld [vmem:[%s964_s9 + $0x50] ss:$8 sps:$4 sm:$0xff]   ;;  %v885_v25 = vld [vmem:[%s964_s9 + $0x64] ss:$8 sps:$4 sm:$0xff]   ;;  %v888_v27 = vld [vmem:[%s964_s9 + $0x60] ss:$8 sps:$4 sm:$0xff]  }
  0x14   : > { %775 = vmatprep.subr.bf16.mxu0 %v863_v8  ;;  %835 = vmatprep.subr.bf16.mxu1 %v863_v8  ;;  %v889_v28 = vld [vmem:[%s964_s9 + $0x34] ss:$8 sps:$4 sm:$0xff]   ;;  %v893_v30 = vld [vmem:[%s964_s9 + $0x30] ss:$8 sps:$4 sm:$0xff]  }
  0x15   : > { %v891_v29 = vld [vmem:[%s964_s9 + $0x74] ss:$8 sps:$4 sm:$0xff]   ;;  %v894_v31 = vld [vmem:[%s964_s9 + $0x70] ss:$8 sps:$4 sm:$0xff]  }
  0x17   : > { %776 = vmatpush3.bf16.msra.mxu0 %v864_v9  ;;  %843 = vmatpush3.bf16.msra.mxu1 %v864_v9 }
  0x18   : > { %777 = vmatprep.subr.bf16.mxu0 %v865_v10  ;;  %836 = vmatprep.subr.bf16.mxu1 %v865_v10 }
  0x1b   : > { %778 = vmatpush3.bf16.msra.mxu0 %v866_v13  ;;  %844 = vmatpush3.bf16.msra.mxu1 %v866_v13 }
  0x1c   : > { %779 = vmatprep.subr.bf16.mxu0 %v867_v14  ;;  %837 = vmatprep.subr.bf16.mxu1 %v867_v14 }
  0x1f   : > { %780 = vmatpush3.bf16.msra.mxu0 %v868_v15  ;;  %845 = vmatpush3.bf16.msra.mxu1 %v868_v15 }
  0x20   : > { %781 = vmatprep.subr.bf16.mxu0 %v869_v16  ;;  %838 = vmatprep.subr.bf16.mxu1 %v869_v16 }
  0x23   : > { %782 = vmatpush3.bf16.msra.mxu0 %v870_v17  ;;  %846 = vmatpush3.bf16.msra.mxu1 %v870_v17 }
  0x26   : > { %442 = vmatmul.mubr.bf16.vlgmr.msra.gmra.mrb[0].mxu0 %v871_v18  ;;  %474 = vmatmul.mubr.bf16.vlgmr.msra.gmra.mrb[0].mxu1 %v874_v19 }
  0x27   : > { %449 = vmatprep.mubr.bf16.mxu0 %v877_v20  ;;  %481 = vmatprep.mubr.bf16.mxu1 %v879_v21 }
  0x2e   : > { %450 = vmatmul.mubr.bf16.gmra.mrb[4].mxu0 %v881_v22  ;;  %482 = vmatmul.mubr.bf16.gmra.mrb[4].mxu1 %v882_v23 }
  0x2f   : > { %457 = vmatprep.mubr.bf16.mxu0 %v883_v24  ;;  %489 = vmatprep.mubr.bf16.mxu1 %v885_v25 }
  0x36   : > { %458 = vmatmul.mubr.bf16.gmra.mrb[8].mxu0 %v887_v26  ;;  %490 = vmatmul.mubr.bf16.gmra.mrb[8].mxu1 %v888_v27 }
  0x37   : > { %465 = vmatprep.mubr.bf16.mxu0 %v889_v28  ;;  %497 = vmatprep.mubr.bf16.mxu1 %v891_v29 }
  0x3e   : > { %466 = vmatmul.mubr.bf16.gmra.mrb[12].mxu0 %v893_v30  ;;  %498 = vmatmul.mubr.bf16.gmra.mrb[12].mxu1 %v894_v31 }
  0xf9   : > { %v783_v32 = vpop.f32.mrb[0].mxu0  ;;  %v807_v33 = vpop.f32.mrb[0].mxu1 }
  0xfa   : > { %v784_v34 = vpop.f32.mrb[1].mxu0  ;;  %v808_v35 = vpop.f32.mrb[1].mxu1 }
  0xfb   : > { %v785_v36 = vadd.f32 %v784_v34, %v783_v32  ;;  %v809_v37 = vadd.f32 %v808_v35, %v807_v33  ;;  %v786_v38 = vpop.f32.mrb[2].mxu0  ;;  %v810_v39 = vpop.f32.mrb[2].mxu1 }
  0xfc   : > { %v787_v41 = vpop.f32.mrb[3].mxu0  ;;  %v811_v42 = vpop.f32.mrb[3].mxu1 }
  0xfd   : > { %v788_v43 = vadd.f32 %v787_v41, %v786_v38  ;;  %v812_v44 = vadd.f32 %v811_v42, %v810_v39  ;;  %v444_v45 = vadd.f32 %v785_v36, %v1006_v40  ;;  %v476_v46 = vadd.f32 %v809_v37, %v1006_v40 }
  0xff   : > { %v447_v47 = vadd.f32 %v788_v43, %v1006_v40  ;;  %v479_v48 = vadd.f32 %v812_v44, %v1006_v40 }
 0x101   : > { %v723_v49 = vpack.c.bf16 %v447_v47, %v444_v45  ;;  %v743_v50 = vpack.c.bf16 %v479_v48, %v476_v46  ;;  %v789_v51 = vpop.f32.mrb[4].mxu0  ;;  %v813_v52 = vpop.f32.mrb[4].mxu1 }
 0x102   : > { %v790_v53 = vpop.f32.mrb[5].mxu0  ;;  %v814_v54 = vpop.f32.mrb[5].mxu1 }
 0x103   : > { %724 = vst [vmem:[%s1016_s4] sm:$0xff] %v723_v49   ;;  %763 = vst [vmem:[%s1016_s4 + $0x20] sm:$0xff] %v743_v50   ;;  %v791_v55 = vadd.f32 %v790_v53, %v789_v51  ;;  %v815_v56 = vadd.f32 %v814_v54, %v813_v52  ;;  %v792_v57 = vpop.f32.mrb[6].mxu0  ;;  %v816_v58 = vpop.f32.mrb[6].mxu1 }
 0x104   : > { %v793_v59 = vpop.f32.mrb[7].mxu0  ;;  %v817_v60 = vpop.f32.mrb[7].mxu1 }
 0x105   : > { %v794_v61 = vadd.f32 %v793_v59, %v792_v57  ;;  %v818_v62 = vadd.f32 %v817_v60, %v816_v58  ;;  %v452_v63 = vadd.f32 %v791_v55, %v1006_v40  ;;  %v484_v0 = vadd.f32 %v815_v56, %v1006_v40 }
 0x107   : > { %v455_v1 = vadd.f32 %v794_v61, %v1006_v40  ;;  %v487_v2 = vadd.f32 %v818_v62, %v1006_v40 }
 0x109   : > { %v728_v3 = vpack.c.bf16 %v455_v1, %v452_v63  ;;  %v748_v4 = vpack.c.bf16 %v487_v2, %v484_v0  ;;  %v795_v5 = vpop.f32.mrb[8].mxu0  ;;  %v819_v6 = vpop.f32.mrb[8].mxu1 }
 0x10a   : > { %v796_v7 = vpop.f32.mrb[9].mxu0  ;;  %v820_v8 = vpop.f32.mrb[9].mxu1 }
 0x10b   : > { %760 = vst [vmem:[%s1016_s4 + $0x8] sm:$0xff] %v728_v3   ;;  %764 = vst [vmem:[%s1016_s4 + $0x28] sm:$0xff] %v748_v4   ;;  %v797_v9 = vadd.f32 %v796_v7, %v795_v5  ;;  %v821_v10 = vadd.f32 %v820_v8, %v819_v6  ;;  %v798_v11 = vpop.f32.mrb[10].mxu0  ;;  %v822_v12 = vpop.f32.mrb[10].mxu1 }
 0x10c   : > { %v799_v13 = vpop.f32.mrb[11].mxu0  ;;  %v823_v14 = vpop.f32.mrb[11].mxu1 }
 0x10d   : > { %v800_v15 = vadd.f32 %v799_v13, %v798_v11  ;;  %v824_v16 = vadd.f32 %v823_v14, %v822_v12  ;;  %v460_v17 = vadd.f32 %v797_v9, %v1006_v40  ;;  %v492_v18 = vadd.f32 %v821_v10, %v1006_v40 }
 0x10f   : > { %v463_v19 = vadd.f32 %v800_v15, %v1006_v40  ;;  %v495_v20 = vadd.f32 %v824_v16, %v1006_v40 }
 0x111   : > { %v733_v21 = vpack.c.bf16 %v463_v19, %v460_v17  ;;  %v753_v22 = vpack.c.bf16 %v495_v20, %v492_v18  ;;  %v801_v23 = vpop.f32.mrb[12].mxu0  ;;  %v825_v24 = vpop.f32.mrb[12].mxu1 }
 0x112   : > { %v802_v25 = vpop.f32.mrb[13].mxu0  ;;  %v826_v26 = vpop.f32.mrb[13].mxu1 }
 0x113   : > { %761 = vst [vmem:[%s1016_s4 + $0x10] sm:$0xff] %v733_v21   ;;  %765 = vst [vmem:[%s1016_s4 + $0x30] sm:$0xff] %v753_v22   ;;  %v803_v27 = vadd.f32 %v802_v25, %v801_v23  ;;  %v827_v28 = vadd.f32 %v826_v26, %v825_v24  ;;  %v804_v29 = vpop.f32.mrb[14].mxu0  ;;  %v828_v30 = vpop.f32.mrb[14].mxu1 }
 0x114   : > { %v805_v31 = vpop.f32.mrb[15].mxu0  ;;  %v829_v32 = vpop.f32.mrb[15].mxu1 }
 0x115   : > { %v806_v33 = vadd.f32 %v805_v31, %v804_v29  ;;  %v830_v34 = vadd.f32 %v829_v32, %v828_v30  ;;  %v468_v35 = vadd.f32 %v803_v27, %v1006_v40  ;;  %v500_v36 = vadd.f32 %v827_v28, %v1006_v40 }
 0x117   : > { %v471_v37 = vadd.f32 %v806_v33, %v1006_v40  ;;  %v503_v38 = vadd.f32 %v830_v34, %v1006_v40 }
 0x119   : > { %v738_v39 = vpack.c.bf16 %v471_v37, %v468_v35  ;;  %v758_v41 = vpack.c.bf16 %v503_v38, %v500_v36 }
 0x11b   : > { %762 = vst [vmem:[%s1016_s4 + $0x18] sm:$0xff] %v738_v39   ;;  %766 = vst [vmem:[%s1016_s4 + $0x38] sm:$0xff] %v758_v41  }
 0x11c PF: > { %s13_s12 = sadd.s32 1, %s901_s12  }
 0x11d   : > { %p10_p4 = scmp.ge.s32.totalorder %s13_s12, 4  }
 0x11f   :  { %12 = sbr.rel (!%p10_p4) target bundleno = 1 (0x1), region = 62 }

// kernel: _lambda_.14
= control target key start
LH: loop header
LB: loop body
LE: loop exit
PB: predicated region body
PF: predicated region fallthrough
CT: control target
= control target key end

     0   :  { %s766_s12 = smov 0   ;;  %s837_s0 = inlined_call_operand.vmem [shape: bf16[256,128], index: 0, kind: input, shape index: {}]   ;;  %s838_s1 = inlined_call_operand.vmem [shape: bf16[128,128], index: 1, kind: input, shape index: {}]   ;;  %s839_s2 = inlined_call_operand.vmem [shape: f32[1,128], index: 2, kind: input, shape index: {}]   ;;  %s840_s3 = inlined_call_operand.vmem [shape: bf16[256,128], index: 3, kind: output, shape index: {}]  }
   0x1 LB: > { %s543_s13 = sadd.s32 4294967295, %s744_s12   ;;  %p547_p0 = scmp.ge.s32.totalorder %s744_s12, 1  ;;  %s744_s12 = sphi %s766_s12, %s13_s12  }
   0x2   : > { %p138_p1 = scmp.lt.s32.totalorder %s744_s12, 3 }
   0x4   : > { %p139_p2 = pnand %p547_p0, %p138_p1 }
   0x5   : > { %v722_v0 = vld [vmem:[%s838_s1] sm:$0xff] (!%p139_p2)   ;;  %s548_s16 = sshll.u32 (!%p139_p2), %s543_s13, 4  ;;  %v723_v1 = vld [vmem:[%s838_s1 + $0x8] sm:$0xff] (!%p139_p2)   ;;  %v724_v2 = vld [vmem:[%s838_s1 + $0x10] sm:$0xff] (!%p139_p2)  }
   0x6   : > { %142 = sbr.rel (%p139_p2) target bundleno = 266 (0x10a), region = 32  ;;  %p163_p3 = scmp.lt.s32.totalorder (!%p139_p2), %s548_s16, 31  ;;  %666 = vmatprep.subr.bf16.mxu0 (!%p139_p2), %v722_v0  ;;  %698 = vmatprep.subr.bf16.mxu1 (!%p139_p2), %v722_v0  ;;  %v725_v3 = vld [vmem:[%s838_s1 + $0x18] sm:$0xff] (!%p139_p2)   ;;  %v726_v6 = vld [vmem:[%s838_s1 + $0x20] sm:$0xff] (!%p139_p2)   ;;  %v727_v7 = vld [vmem:[%s838_s1 + $0x28] sm:$0xff] (!%p139_p2)  }
   0x7   : > { %667 = vmatpush3.bf16.msra.mxu0 (!%p139_p2), %v722_v0  ;;  %706 = vmatpush3.bf16.msra.mxu1 (!%p139_p2), %v722_v0  ;;  %v728_v8 = vld [vmem:[%s838_s1 + $0x30] sm:$0xff] (!%p139_p2)   ;;  %v729_v9 = vld [vmem:[%s838_s1 + $0x38] sm:$0xff] (!%p139_p2)   ;;  %v552_v17 = vld [vmem:[%s839_s2] ss:$0 sm:$0xff] (!%p139_p2) }
   0x8   : > { %668 = vmatprep.subr.bf16.mxu0 (!%p139_p2), %v723_v1  ;;  %699 = vmatprep.subr.bf16.mxu1 (!%p139_p2), %v723_v1 }
   0xb   : > { %669 = vmatpush3.bf16.msra.mxu0 (!%p139_p2), %v723_v1  ;;  %707 = vmatpush3.bf16.msra.mxu1 (!%p139_p2), %v723_v1 }
   0xc   : > { %670 = vmatprep.subr.bf16.mxu0 (!%p139_p2), %v724_v2  ;;  %700 = vmatprep.subr.bf16.mxu1 (!%p139_p2), %v724_v2 }
   0xd   : > { %s842_s16 = smov (!%p163_p3, %s548_s16), 31 }
   0xe   : > { %s549_s21 = sshll.u32 %s842_s16, 2 }
   0xf   : > { %s791_s24 = scalar_lea.vmem %s837_s0, %s549_s21  ;;  %671 = vmatpush3.bf16.msra.mxu0 %v724_v2  ;;  %708 = vmatpush3.bf16.msra.mxu1 %v724_v2  ;;  %s824_s13 = scalar_lea.vmem %s840_s3, %s549_s21 }
  0x10   : > { %v730_v4 = vld [vmem:[%s791_s24] sm:$0xff]   ;;  %672 = vmatprep.subr.bf16.mxu0 %v725_v3  ;;  %701 = vmatprep.subr.bf16.mxu1 %v725_v3  ;;  %v732_v10 = vld [vmem:[%s791_s24 + $0x8] sm:$0xff]   ;;  %v734_v12 = vld [vmem:[%s791_s24 + $0x10] sm:$0xff]  }
  0x11   : > { %v731_v5 = vld [vmem:[%s791_s24 + $0x20] sm:$0xff]   ;;  %682 = vmatprep.mubr.bf16.mxu0 %v730_v4  ;;  %v733_v11 = vld [vmem:[%s791_s24 + $0x28] sm:$0xff]   ;;  %v735_v13 = vld [vmem:[%s791_s24 + $0x30] sm:$0xff]  }
  0x12   : > { %690 = vmatprep.mubr.bf16.mxu1 %v731_v5  ;;  %v736_v14 = vld [vmem:[%s791_s24 + $0x18] sm:$0xff]  }
  0x13   : > { %673 = vmatpush3.bf16.msra.mxu0 %v725_v3  ;;  %709 = vmatpush3.bf16.msra.mxu1 %v725_v3  ;;  %v737_v15 = vld [vmem:[%s791_s24 + $0x38] sm:$0xff]  }
  0x14   : > { %674 = vmatprep.subr.bf16.mxu0 %v726_v6  ;;  %702 = vmatprep.subr.bf16.mxu1 %v726_v6 }
  0x17   : > { %675 = vmatpush3.bf16.msra.mxu0 %v726_v6  ;;  %710 = vmatpush3.bf16.msra.mxu1 %v726_v6 }
  0x18   : > { %676 = vmatprep.subr.bf16.mxu0 %v727_v7  ;;  %703 = vmatprep.subr.bf16.mxu1 %v727_v7 }
  0x1b   : > { %677 = vmatpush3.bf16.msra.mxu0 %v727_v7  ;;  %711 = vmatpush3.bf16.msra.mxu1 %v727_v7 }
  0x1c   : > { %678 = vmatprep.subr.bf16.mxu0 %v728_v8  ;;  %704 = vmatprep.subr.bf16.mxu1 %v728_v8 }
  0x1f   : > { %679 = vmatpush3.bf16.msra.mxu0 %v728_v8  ;;  %712 = vmatpush3.bf16.msra.mxu1 %v728_v8 }
  0x20   : > { %680 = vmatprep.subr.bf16.mxu0 %v729_v9  ;;  %705 = vmatprep.subr.bf16.mxu1 %v729_v9 }
  0x23   : > { %681 = vmatpush3.bf16.msra.mxu0 %v729_v9  ;;  %713 = vmatpush3.bf16.msra.mxu1 %v729_v9 }
  0x26   : > { %683 = vmatmul.mubr.bf16.vlgmr.msra.gmra.mrb[0].mxu0 %v732_v10  ;;  %691 = vmatmul.mubr.bf16.vlgmr.msra.gmra.mrb[0].mxu1 %v733_v11 }
  0x27   : > { %686 = vmatprep.mubr.bf16.mxu0 %v734_v12  ;;  %694 = vmatprep.mubr.bf16.mxu1 %v735_v13 }
  0x2e   : > { %687 = vmatmul.mubr.bf16.gmra.mrb[4].mxu0 %v736_v14  ;;  %695 = vmatmul.mubr.bf16.gmra.mrb[4].mxu1 %v737_v15 }
  0xf9   : > { %v684_v16 = vpop.f32.mrb[0].mxu0  ;;  %v692_v18 = vpop.f32.mrb[0].mxu1 }
  0xfa   : > { %v344_v19 = vpop.f32.mrb[1].mxu0  ;;  %v376_v20 = vpop.f32.mrb[1].mxu1  ;;  %v353_v23 = vadd.f32 %v684_v16, %v552_v17  ;;  %v385_v24 = vadd.f32 %v692_v18, %v552_v17 }
  0xfb   : > { %v685_v21 = vpop.f32.mrb[2].mxu0  ;;  %v693_v22 = vpop.f32.mrb[2].mxu1  ;;  %v345_v29 = vadd.f32 %v552_v17, %v344_v19  ;;  %v377_v30 = vadd.f32 %v552_v17, %v376_v20 }
  0xfc   : > { %v356_v25 = vadd.f32 %v685_v21, %v552_v17  ;;  %v388_v26 = vadd.f32 %v693_v22, %v552_v17  ;;  %v347_v27 = vpop.f32.mrb[3].mxu0  ;;  %v379_v28 = vpop.f32.mrb[3].mxu1 }
  0xfd   : > { %v348_v31 = vadd.f32 %v552_v17, %v347_v27  ;;  %v380_v32 = vadd.f32 %v552_v17, %v379_v28 }
  0xfe   : > { %v611_v33 = vpack.c.bf16 %v356_v25, %v353_v23  ;;  %v631_v34 = vpack.c.bf16 %v388_v26, %v385_v24 }
  0xff   : > { %v606_v35 = vpack.c.bf16 %v348_v31, %v345_v29  ;;  %v626_v36 = vpack.c.bf16 %v380_v32, %v377_v30 }
 0x100   : > { %643 = vst [vmem:[%s824_s13 + $0x8] sm:$0xff] %v611_v33   ;;  %647 = vst [vmem:[%s824_s13 + $0x28] sm:$0xff] %v631_v34  }
 0x101   : > { %607 = vst [vmem:[%s824_s13] sm:$0xff] %v606_v35   ;;  %646 = vst [vmem:[%s824_s13 + $0x20] sm:$0xff] %v626_v36   ;;  %v688_v37 = vpop.f32.mrb[4].mxu0  ;;  %v696_v38 = vpop.f32.mrb[4].mxu1 }
 0x102   : > { %v360_v39 = vpop.f32.mrb[5].mxu0  ;;  %v392_v40 = vpop.f32.mrb[5].mxu1  ;;  %v369_v43 = vadd.f32 %v688_v37, %v552_v17  ;;  %v401_v44 = vadd.f32 %v696_v38, %v552_v17 }
 0x103   : > { %v689_v41 = vpop.f32.mrb[6].mxu0  ;;  %v697_v42 = vpop.f32.mrb[6].mxu1  ;;  %v361_v49 = vadd.f32 %v552_v17, %v360_v39  ;;  %v393_v50 = vadd.f32 %v552_v17, %v392_v40 }
 0x104   : > { %v372_v45 = vadd.f32 %v689_v41, %v552_v17  ;;  %v404_v46 = vadd.f32 %v697_v42, %v552_v17  ;;  %v363_v47 = vpop.f32.mrb[7].mxu0  ;;  %v395_v48 = vpop.f32.mrb[7].mxu1 }
 0x105   : > { %v364_v51 = vadd.f32 %v552_v17, %v363_v47  ;;  %v396_v52 = vadd.f32 %v552_v17, %v395_v48 }
 0x106   : > { %v621_v53 = vpack.c.bf16 %v372_v45, %v369_v43  ;;  %v641_v54 = vpack.c.bf16 %v404_v46, %v401_v44 }
 0x107   : > { %v616_v55 = vpack.c.bf16 %v364_v51, %v361_v49  ;;  %v636_v56 = vpack.c.bf16 %v396_v52, %v393_v50 }
 0x108   : > { %645 = vst [vmem:[%s824_s13 + $0x18] sm:$0xff] %v621_v53   ;;  %649 = vst [vmem:[%s824_s13 + $0x38] sm:$0xff] %v641_v54  }
 0x109   : > { %644 = vst [vmem:[%s824_s13 + $0x10] sm:$0xff] %v616_v55   ;;  %648 = vst [vmem:[%s824_s13 + $0x30] sm:$0xff] %v636_v56  }
 0x10a PF: > { %s13_s12 = sadd.s32 1, %s744_s12  }
 0x10b   : > { %p10_p4 = scmp.ge.s32.totalorder %s13_s12, 4  }
 0x10d   :  { %12 = sbr.rel (!%p10_p4) target bundleno = 1 (0x1), region = 62 }

// kernel: _lambda_.16
= control target key start
LH: loop header
LB: loop body
LE: loop exit
PB: predicated region body
PF: predicated region fallthrough
CT: control target
= control target key end

     0   :  { %s1094_s12 = smov 0   ;;  %s1215_s0 = inlined_call_operand.vmem [shape: bf16[512,128], index: 0, kind: input, shape index: {}]   ;;  %s1216_s1 = inlined_call_operand.vmem [shape: bf16[128,128], index: 1, kind: input, shape index: {}]   ;;  %s1217_s2 = inlined_call_operand.vmem [shape: f32[1,128], index: 2, kind: input, shape index: {}]   ;;  %s1218_s3 = inlined_call_operand.vmem [shape: bf16[512,128], index: 3, kind: output, shape index: {}]  }
   0x1 LB: > { %s751_s13 = sadd.s32 4294967295, %s1072_s12   ;;  %p755_p0 = scmp.ge.s32.totalorder %s1072_s12, 1  ;;  %s1072_s12 = sphi %s1094_s12, %s13_s12  }
   0x2   : > { %p138_p1 = scmp.lt.s32.totalorder %s1072_s12, 3 }
   0x4   : > { %p139_p2 = pnand %p755_p0, %p138_p1 }
   0x5   : > { %v1042_v0 = vld [vmem:[%s1216_s1] sm:$0xff] (!%p139_p2)   ;;  %s756_s16 = sshll.u32 (!%p139_p2), %s751_s13, 5  ;;  %v1043_v1 = vld [vmem:[%s1216_s1 + $0x8] sm:$0xff] (!%p139_p2)   ;;  %v1044_v2 = vld [vmem:[%s1216_s1 + $0x10] sm:$0xff] (!%p139_p2)  }
   0x6   : > { %142 = sbr.rel (%p139_p2) target bundleno = 282 (0x11a), region = 32  ;;  %p163_p3 = scmp.lt.s32.totalorder (!%p139_p2), %s756_s16, 63  ;;  %970 = vmatprep.subr.bf16.mxu0 (!%p139_p2), %v1042_v0  ;;  %1018 = vmatprep.subr.bf16.mxu1 (!%p139_p2), %v1042_v0  ;;  %v1045_v3 = vld [vmem:[%s1216_s1 + $0x18] sm:$0xff] (!%p139_p2)   ;;  %v1046_v6 = vld [vmem:[%s1216_s1 + $0x20] sm:$0xff] (!%p139_p2)   ;;  %v1047_v7 = vld [vmem:[%s1216_s1 + $0x28] sm:$0xff] (!%p139_p2)  }
   0x7   : > { %971 = vmatpush3.bf16.msra.mxu0 (!%p139_p2), %v1042_v0  ;;  %1026 = vmatpush3.bf16.msra.mxu1 (!%p139_p2), %v1042_v0  ;;  %v1048_v8 = vld [vmem:[%s1216_s1 + $0x30] sm:$0xff] (!%p139_p2)   ;;  %v1049_v9 = vld [vmem:[%s1216_s1 + $0x38] sm:$0xff] (!%p139_p2)   ;;  %v1155_v25 = vld [vmem:[%s1217_s2] ss:$0 sm:$0xff] (!%p139_p2) }
   0x8   : > { %972 = vmatprep.subr.bf16.mxu0 (!%p139_p2), %v1043_v1  ;;  %1019 = vmatprep.subr.bf16.mxu1 (!%p139_p2), %v1043_v1 }
   0xb   : > { %973 = vmatpush3.bf16.msra.mxu0 (!%p139_p2), %v1043_v1  ;;  %1027 = vmatpush3.bf16.msra.mxu1 (!%p139_p2), %v1043_v1 }
   0xc   : > { %974 = vmatprep.subr.bf16.mxu0 (!%p139_p2), %v1044_v2  ;;  %1020 = vmatprep.subr.bf16.mxu1 (!%p139_p2), %v1044_v2 }
   0xd   : > { %s1220_s16 = smov (!%p163_p3, %s756_s16), 63 }
   0xe   : > { %s757_s21 = sshll.u32 %s1220_s16, 2 }
   0xf   : > { %s1119_s24 = scalar_lea.vmem %s1215_s0, %s757_s21  ;;  %975 = vmatpush3.bf16.msra.mxu0 %v1044_v2  ;;  %1028 = vmatpush3.bf16.msra.mxu1 %v1044_v2  ;;  %s1168_s13 = scalar_lea.vmem %s1218_s3, %s757_s21 }
  0x10   : > { %v1050_v4 = vld [vmem:[%s1119_s24] sm:$0xff]   ;;  %976 = vmatprep.subr.bf16.mxu0 %v1045_v3  ;;  %1021 = vmatprep.subr.bf16.mxu1 %v1045_v3  ;;  %v1052_v10 = vld [vmem:[%s1119_s24 + $0x8] sm:$0xff]   ;;  %v1054_v12 = vld [vmem:[%s1119_s24 + $0x10] sm:$0xff]  }
  0x11   : > { %v1051_v5 = vld [vmem:[%s1119_s24 + $0x40] sm:$0xff]   ;;  %986 = vmatprep.mubr.bf16.mxu0 %v1050_v4  ;;  %v1053_v11 = vld [vmem:[%s1119_s24 + $0x48] sm:$0xff]   ;;  %v1055_v13 = vld [vmem:[%s1119_s24 + $0x50] sm:$0xff]  }
  0x12   : > { %1002 = vmatprep.mubr.bf16.mxu1 %v1051_v5  ;;  %v1056_v14 = vld [vmem:[%s1119_s24 + $0x18] sm:$0xff]   ;;  %v1058_v16 = vld [vmem:[%s1119_s24 + $0x20] sm:$0xff]   ;;  %v1060_v18 = vld [vmem:[%s1119_s24 + $0x28] sm:$0xff]  }
  0x13   : > { %977 = vmatpush3.bf16.msra.mxu0 %v1045_v3  ;;  %1029 = vmatpush3.bf16.msra.mxu1 %v1045_v3  ;;  %v1057_v15 = vld [vmem:[%s1119_s24 + $0x58] sm:$0xff]   ;;  %v1059_v17 = vld [vmem:[%s1119_s24 + $0x60] sm:$0xff]   ;;  %v1061_v19 = vld [vmem:[%s1119_s24 + $0x68] sm:$0xff]  }
  0x14   : > { %978 = vmatprep.subr.bf16.mxu0 %v1046_v6  ;;  %1022 = vmatprep.subr.bf16.mxu1 %v1046_v6  ;;  %v1062_v20 = vld [vmem:[%s1119_s24 + $0x30] sm:$0xff]   ;;  %v1064_v22 = vld [vmem:[%s1119_s24 + $0x38] sm:$0xff]  }
  0x15   : > { %v1063_v21 = vld [vmem:[%s1119_s24 + $0x70] sm:$0xff]   ;;  %v1065_v23 = vld [vmem:[%s1119_s24 + $0x78] sm:$0xff]  }
  0x17   : > { %979 = vmatpush3.bf16.msra.mxu0 %v1046_v6  ;;  %1030 = vmatpush3.bf16.msra.mxu1 %v1046_v6 }
  0x18   : > { %980 = vmatprep.subr.bf16.mxu0 %v1047_v7  ;;  %1023 = vmatprep.subr.bf16.mxu1 %v1047_v7 }
  0x1b   : > { %981 = vmatpush3.bf16.msra.mxu0 %v1047_v7  ;;  %1031 = vmatpush3.bf16.msra.mxu1 %v1047_v7 }
  0x1c   : > { %982 = vmatprep.subr.bf16.mxu0 %v1048_v8  ;;  %1024 = vmatprep.subr.bf16.mxu1 %v1048_v8 }
  0x1f   : > { %983 = vmatpush3.bf16.msra.mxu0 %v1048_v8  ;;  %1032 = vmatpush3.bf16.msra.mxu1 %v1048_v8 }
  0x20   : > { %984 = vmatprep.subr.bf16.mxu0 %v1049_v9  ;;  %1025 = vmatprep.subr.bf16.mxu1 %v1049_v9 }
  0x23   : > { %985 = vmatpush3.bf16.msra.mxu0 %v1049_v9  ;;  %1033 = vmatpush3.bf16.msra.mxu1 %v1049_v9 }
  0x26   : > { %987 = vmatmul.mubr.bf16.vlgmr.msra.gmra.mrb[0].mxu0 %v1052_v10  ;;  %1003 = vmatmul.mubr.bf16.vlgmr.msra.gmra.mrb[0].mxu1 %v1053_v11 }
  0x27   : > { %990 = vmatprep.mubr.bf16.mxu0 %v1054_v12  ;;  %1006 = vmatprep.mubr.bf16.mxu1 %v1055_v13 }
  0x2e   : > { %991 = vmatmul.mubr.bf16.gmra.mrb[4].mxu0 %v1056_v14  ;;  %1007 = vmatmul.mubr.bf16.gmra.mrb[4].mxu1 %v1057_v15 }
  0x2f   : > { %994 = vmatprep.mubr.bf16.mxu0 %v1058_v16  ;;  %1010 = vmatprep.mubr.bf16.mxu1 %v1059_v17 }
  0x36   : > { %995 = vmatmul.mubr.bf16.gmra.mrb[8].mxu0 %v1060_v18  ;;  %1011 = vmatmul.mubr.bf16.gmra.mrb[8].mxu1 %v1061_v19 }
  0x37   : > { %998 = vmatprep.mubr.bf16.mxu0 %v1062_v20  ;;  %1014 = vmatprep.mubr.bf16.mxu1 %v1063_v21 }
  0x3e   : > { %999 = vmatmul.mubr.bf16.gmra.mrb[12].mxu0 %v1064_v22  ;;  %1015 = vmatmul.mubr.bf16.gmra.mrb[12].mxu1 %v1065_v23 }
  0xf9   : > { %v988_v24 = vpop.f32.mrb[0].mxu0  ;;  %v1004_v26 = vpop.f32.mrb[0].mxu1 }
  0xfa   : > { %v408_v27 = vpop.f32.mrb[1].mxu0  ;;  %v472_v28 = vpop.f32.mrb[1].mxu1  ;;  %v417_v31 = vadd.f32 %v988_v24, %v1155_v25  ;;  %v481_v32 = vadd.f32 %v1004_v26, %v1155_v25 }
  0xfb   : > { %v989_v29 = vpop.f32.mrb[2].mxu0  ;;  %v1005_v30 = vpop.f32.mrb[2].mxu1  ;;  %v409_v37 = vadd.f32 %v1155_v25, %v408_v27  ;;  %v473_v38 = vadd.f32 %v1155_v25, %v472_v28 }
  0xfc   : > { %v420_v33 = vadd.f32 %v989_v29, %v1155_v25  ;;  %v484_v34 = vadd.f32 %v1005_v30, %v1155_v25  ;;  %v411_v35 = vpop.f32.mrb[3].mxu0  ;;  %v475_v36 = vpop.f32.mrb[3].mxu1 }
  0xfd   : > { %v412_v39 = vadd.f32 %v1155_v25, %v411_v35  ;;  %v476_v40 = vadd.f32 %v1155_v25, %v475_v36 }
  0xfe   : > { %v859_v41 = vpack.c.bf16 %v420_v33, %v417_v31  ;;  %v899_v42 = vpack.c.bf16 %v484_v34, %v481_v32 }
  0xff   : > { %v854_v43 = vpack.c.bf16 %v412_v39, %v409_v37  ;;  %v894_v44 = vpack.c.bf16 %v476_v40, %v473_v38 }
 0x100   : > { %931 = vst [vmem:[%s1168_s13 + $0x8] sm:$0xff] %v859_v41   ;;  %939 = vst [vmem:[%s1168_s13 + $0x48] sm:$0xff] %v899_v42  }
 0x101   : > { %855 = vst [vmem:[%s1168_s13] sm:$0xff] %v854_v43   ;;  %938 = vst [vmem:[%s1168_s13 + $0x40] sm:$0xff] %v894_v44   ;;  %v992_v45 = vpop.f32.mrb[4].mxu0  ;;  %v1008_v46 = vpop.f32.mrb[4].mxu1 }
 0x102   : > { %v424_v47 = vpop.f32.mrb[5].mxu0  ;;  %v488_v48 = vpop.f32.mrb[5].mxu1  ;;  %v433_v51 = vadd.f32 %v992_v45, %v1155_v25  ;;  %v497_v52 = vadd.f32 %v1008_v46, %v1155_v25 }
 0x103   : > { %v993_v49 = vpop.f32.mrb[6].mxu0  ;;  %v1009_v50 = vpop.f32.mrb[6].mxu1  ;;  %v425_v57 = vadd.f32 %v1155_v25, %v424_v47  ;;  %v489_v58 = vadd.f32 %v1155_v25, %v488_v48 }
 0x104   : > { %v436_v53 = vadd.f32 %v993_v49, %v1155_v25  ;;  %v500_v54 = vadd.f32 %v1009_v50, %v1155_v25  ;;  %v427_v55 = vpop.f32.mrb[7].mxu0  ;;  %v491_v56 = vpop.f32.mrb[7].mxu1 }
 0x105   : > { %v428_v59 = vadd.f32 %v1155_v25, %v427_v55  ;;  %v492_v60 = vadd.f32 %v1155_v25, %v491_v56 }
 0x106   : > { %v869_v61 = vpack.c.bf16 %v436_v53, %v433_v51  ;;  %v909_v62 = vpack.c.bf16 %v500_v54, %v497_v52 }
 0x107   : > { %v864_v63 = vpack.c.bf16 %v428_v59, %v425_v57  ;;  %v904_v0 = vpack.c.bf16 %v492_v60, %v489_v58 }
 0x108   : > { %933 = vst [vmem:[%s1168_s13 + $0x18] sm:$0xff] %v869_v61   ;;  %941 = vst [vmem:[%s1168_s13 + $0x58] sm:$0xff] %v909_v62  }
 0x109   : > { %932 = vst [vmem:[%s1168_s13 + $0x10] sm:$0xff] %v864_v63   ;;  %940 = vst [vmem:[%s1168_s13 + $0x50] sm:$0xff] %v904_v0   ;;  %v996_v1 = vpop.f32.mrb[8].mxu0  ;;  %v1012_v2 = vpop.f32.mrb[8].mxu1 }
 0x10a   : > { %v440_v3 = vpop.f32.mrb[9].mxu0  ;;  %v504_v4 = vpop.f32.mrb[9].mxu1  ;;  %v449_v7 = vadd.f32 %v996_v1, %v1155_v25  ;;  %v513_v8 = vadd.f32 %v1012_v2, %v1155_v25 }
 0x10b   : > { %v997_v5 = vpop.f32.mrb[10].mxu0  ;;  %v1013_v6 = vpop.f32.mrb[10].mxu1  ;;  %v441_v13 = vadd.f32 %v1155_v25, %v440_v3  ;;  %v505_v14 = vadd.f32 %v1155_v25, %v504_v4 }
 0x10c   : > { %v452_v9 = vadd.f32 %v997_v5, %v1155_v25  ;;  %v516_v10 = vadd.f32 %v1013_v6, %v1155_v25  ;;  %v443_v11 = vpop.f32.mrb[11].mxu0  ;;  %v507_v12 = vpop.f32.mrb[11].mxu1 }
 0x10d   : > { %v444_v15 = vadd.f32 %v1155_v25, %v443_v11  ;;  %v508_v16 = vadd.f32 %v1155_v25, %v507_v12 }
 0x10e   : > { %v879_v17 = vpack.c.bf16 %v452_v9, %v449_v7  ;;  %v919_v18 = vpack.c.bf16 %v516_v10, %v513_v8 }
 0x10f   : > { %v874_v19 = vpack.c.bf16 %v444_v15, %v441_v13  ;;  %v914_v20 = vpack.c.bf16 %v508_v16, %v505_v14 }
 0x110   : > { %935 = vst [vmem:[%s1168_s13 + $0x28] sm:$0xff] %v879_v17   ;;  %943 = vst [vmem:[%s1168_s13 + $0x68] sm:$0xff] %v919_v18  }
 0x111   : > { %934 = vst [vmem:[%s1168_s13 + $0x20] sm:$0xff] %v874_v19   ;;  %942 = vst [vmem:[%s1168_s13 + $0x60] sm:$0xff] %v914_v20   ;;  %v1000_v21 = vpop.f32.mrb[12].mxu0  ;;  %v1016_v22 = vpop.f32.mrb[12].mxu1 }
 0x112   : > { %v456_v23 = vpop.f32.mrb[13].mxu0  ;;  %v520_v24 = vpop.f32.mrb[13].mxu1  ;;  %v465_v28 = vadd.f32 %v1000_v21, %v1155_v25  ;;  %v529_v29 = vadd.f32 %v1016_v22, %v1155_v25 }
 0x113   : > { %v1001_v26 = vpop.f32.mrb[14].mxu0  ;;  %v1017_v27 = vpop.f32.mrb[14].mxu1  ;;  %v457_v34 = vadd.f32 %v1155_v25, %v456_v23  ;;  %v521_v35 = vadd.f32 %v1155_v25, %v520_v24 }
 0x114   : > { %v468_v30 = vadd.f32 %v1001_v26, %v1155_v25  ;;  %v532_v31 = vadd.f32 %v1017_v27, %v1155_v25  ;;  %v459_v32 = vpop.f32.mrb[15].mxu0  ;;  %v523_v33 = vpop.f32.mrb[15].mxu1 }
 0x115   : > { %v460_v36 = vadd.f32 %v1155_v25, %v459_v32  ;;  %v524_v37 = vadd.f32 %v1155_v25, %v523_v33 }
 0x116   : > { %v889_v38 = vpack.c.bf16 %v468_v30, %v465_v28  ;;  %v929_v39 = vpack.c.bf16 %v532_v31, %v529_v29 }
 0x117   : > { %v884_v40 = vpack.c.bf16 %v460_v36, %v457_v34  ;;  %v924_v41 = vpack.c.bf16 %v524_v37, %v521_v35 }
 0x118   : > { %937 = vst [vmem:[%s1168_s13 + $0x38] sm:$0xff] %v889_v38   ;;  %945 = vst [vmem:[%s1168_s13 + $0x78] sm:$0xff] %v929_v39  }
 0x119   : > { %936 = vst [vmem:[%s1168_s13 + $0x30] sm:$0xff] %v884_v40   ;;  %944 = vst [vmem:[%s1168_s13 + $0x70] sm:$0xff] %v924_v41  }
 0x11a PF: > { %s13_s12 = sadd.s32 1, %s1072_s12  }
 0x11b   : > { %p10_p4 = scmp.ge.s32.totalorder %s13_s12, 4  }
 0x11d   :  { %12 = sbr.rel (!%p10_p4) target bundleno = 1 (0x1), region = 62 }

// kernel: _lambda_.17
= control target key start
LH: loop header
LB: loop body
LE: loop exit
PB: predicated region body
PF: predicated region fallthrough
CT: control target
= control target key end

     0   :  { %s1190_s12 = smov 0   ;;  %s1317_s0 = inlined_call_operand.vmem [shape: bf16[512,128], index: 0, kind: input, shape index: {}]   ;;  %s1318_s1 = inlined_call_operand.vmem [shape: bf16[128,128], index: 1, kind: input, shape index: {}]   ;;  %s1319_s2 = inlined_call_operand.vmem [shape: f32[1,128], index: 2, kind: input, shape index: {}]   ;;  %s1320_s3 = inlined_call_operand.vmem [shape: bf16[512,128], index: 3, kind: output, shape index: {}]  }
   0x1 LB: > { %s847_s13 = sadd.s32 4294967295, %s1168_s12   ;;  %p851_p0 = scmp.ge.s32.totalorder %s1168_s12, 1  ;;  %s1168_s12 = sphi %s1190_s12, %s13_s12  }
   0x2   : > { %p138_p1 = scmp.lt.s32.totalorder %s1168_s12, 3 }
   0x4   : > { %p139_p2 = pnand %p851_p0, %p138_p1 }
   0x5   : > { %v1138_v0 = vld [vmem:[%s1318_s1] sm:$0xff] (!%p139_p2)   ;;  %s852_s16 = sshll.u32 (!%p139_p2), %s847_s13, 5  ;;  %v1139_v1 = vld [vmem:[%s1318_s1 + $0x8] sm:$0xff] (!%p139_p2)   ;;  %v1140_v2 = vld [vmem:[%s1318_s1 + $0x10] sm:$0xff] (!%p139_p2)  }
   0x6   : > { %142 = sbr.rel (%p139_p2) target bundleno = 293 (0x125), region = 32  ;;  %p163_p3 = scmp.lt.s32.totalorder (!%p139_p2), %s852_s16, 63  ;;  %1066 = vmatprep.subr.bf16.mxu0 (!%p139_p2), %v1138_v0  ;;  %1114 = vmatprep.subr.bf16.mxu1 (!%p139_p2), %v1138_v0  ;;  %v1141_v3 = vld [vmem:[%s1318_s1 + $0x18] sm:$0xff] (!%p139_p2)   ;;  %v1142_v6 = vld [vmem:[%s1318_s1 + $0x20] sm:$0xff] (!%p139_p2)   ;;  %v1143_v7 = vld [vmem:[%s1318_s1 + $0x28] sm:$0xff] (!%p139_p2)  }
   0x7   : > { %1067 = vmatpush3.bf16.msra.mxu0 (!%p139_p2), %v1138_v0  ;;  %1122 = vmatpush3.bf16.msra.mxu1 (!%p139_p2), %v1138_v0  ;;  %v1144_v8 = vld [vmem:[%s1318_s1 + $0x30] sm:$0xff] (!%p139_p2)   ;;  %v1145_v9 = vld [vmem:[%s1318_s1 + $0x38] sm:$0xff] (!%p139_p2)   ;;  %v1251_v24 = vld [vmem:[%s1319_s2] ss:$0 sm:$0xff] (!%p139_p2) }
   0x8   : > { %1068 = vmatprep.subr.bf16.mxu0 (!%p139_p2), %v1139_v1  ;;  %1115 = vmatprep.subr.bf16.mxu1 (!%p139_p2), %v1139_v1 }
   0xb   : > { %1069 = vmatpush3.bf16.msra.mxu0 (!%p139_p2), %v1139_v1  ;;  %1123 = vmatpush3.bf16.msra.mxu1 (!%p139_p2), %v1139_v1 }
   0xc   : > { %1070 = vmatprep.subr.bf16.mxu0 (!%p139_p2), %v1140_v2  ;;  %1116 = vmatprep.subr.bf16.mxu1 (!%p139_p2), %v1140_v2 }
   0xd   : > { %s1322_s16 = smov (!%p163_p3, %s852_s16), 63 }
   0xe   : > { %s853_s21 = sshll.u32 %s1322_s16, 2 }
   0xf   : > { %s1215_s24 = scalar_lea.vmem %s1317_s0, %s853_s21  ;;  %1071 = vmatpush3.bf16.msra.mxu0 %v1140_v2  ;;  %1124 = vmatpush3.bf16.msra.mxu1 %v1140_v2  ;;  %s1268_s13 = scalar_lea.vmem %s1320_s3, %s853_s21 }
  0x10   : > { %v1146_v4 = vld [vmem:[%s1215_s24] sm:$0xff]   ;;  %1072 = vmatprep.subr.bf16.mxu0 %v1141_v3  ;;  %1117 = vmatprep.subr.bf16.mxu1 %v1141_v3  ;;  %v1148_v10 = vld [vmem:[%s1215_s24 + $0x8] sm:$0xff]   ;;  %v1150_v12 = vld [vmem:[%s1215_s24 + $0x10] sm:$0xff]  }
  0x11   : > { %v1147_v5 = vld [vmem:[%s1215_s24 + $0x40] sm:$0xff]   ;;  %1082 = vmatprep.mubr.bf16.mxu0 %v1146_v4  ;;  %v1149_v11 = vld [vmem:[%s1215_s24 + $0x48] sm:$0xff]   ;;  %v1151_v13 = vld [vmem:[%s1215_s24 + $0x50] sm:$0xff]  }
  0x12   : > { %1098 = vmatprep.mubr.bf16.mxu1 %v1147_v5  ;;  %v1152_v14 = vld [vmem:[%s1215_s24 + $0x18] sm:$0xff]   ;;  %v1154_v16 = vld [vmem:[%s1215_s24 + $0x20] sm:$0xff]   ;;  %v1156_v18 = vld [vmem:[%s1215_s24 + $0x28] sm:$0xff]  }
  0x13   : > { %1073 = vmatpush3.bf16.msra.mxu0 %v1141_v3  ;;  %1125 = vmatpush3.bf16.msra.mxu1 %v1141_v3  ;;  %v1153_v15 = vld [vmem:[%s1215_s24 + $0x58] sm:$0xff]   ;;  %v1155_v17 = vld [vmem:[%s1215_s24 + $0x60] sm:$0xff]   ;;  %v1157_v19 = vld [vmem:[%s1215_s24 + $0x68] sm:$0xff]  }
  0x14   : > { %1074 = vmatprep.subr.bf16.mxu0 %v1142_v6  ;;  %1118 = vmatprep.subr.bf16.mxu1 %v1142_v6  ;;  %v1158_v20 = vld [vmem:[%s1215_s24 + $0x30] sm:$0xff]   ;;  %v1160_v22 = vld [vmem:[%s1215_s24 + $0x38] sm:$0xff]  }
  0x15   : > { %v1159_v21 = vld [vmem:[%s1215_s24 + $0x70] sm:$0xff]   ;;  %v1161_v23 = vld [vmem:[%s1215_s24 + $0x78] sm:$0xff]  }
  0x17   : > { %1075 = vmatpush3.bf16.msra.mxu0 %v1142_v6  ;;  %1126 = vmatpush3.bf16.msra.mxu1 %v1142_v6 }
  0x18   : > { %1076 = vmatprep.subr.bf16.mxu0 %v1143_v7  ;;  %1119 = vmatprep.subr.bf16.mxu1 %v1143_v7 }
  0x1b   : > { %1077 = vmatpush3.bf16.msra.mxu0 %v1143_v7  ;;  %1127 = vmatpush3.bf16.msra.mxu1 %v1143_v7 }
  0x1c   : > { %1078 = vmatprep.subr.bf16.mxu0 %v1144_v8  ;;  %1120 = vmatprep.subr.bf16.mxu1 %v1144_v8 }
  0x1f   : > { %1079 = vmatpush3.bf16.msra.mxu0 %v1144_v8  ;;  %1128 = vmatpush3.bf16.msra.mxu1 %v1144_v8 }
  0x20   : > { %1080 = vmatprep.subr.bf16.mxu0 %v1145_v9  ;;  %1121 = vmatprep.subr.bf16.mxu1 %v1145_v9 }
  0x23   : > { %1081 = vmatpush3.bf16.msra.mxu0 %v1145_v9  ;;  %1129 = vmatpush3.bf16.msra.mxu1 %v1145_v9 }
  0x26   : > { %1083 = vmatmul.mubr.bf16.vlgmr.msra.gmra.mrb[0].mxu0 %v1148_v10  ;;  %1099 = vmatmul.mubr.bf16.vlgmr.msra.gmra.mrb[0].mxu1 %v1149_v11 }
  0x27   : > { %1086 = vmatprep.mubr.bf16.mxu0 %v1150_v12  ;;  %1102 = vmatprep.mubr.bf16.mxu1 %v1151_v13 }
  0x2e   : > { %1087 = vmatmul.mubr.bf16.gmra.mrb[4].mxu0 %v1152_v14  ;;  %1103 = vmatmul.mubr.bf16.gmra.mrb[4].mxu1 %v1153_v15 }
  0x2f   : > { %1090 = vmatprep.mubr.bf16.mxu0 %v1154_v16  ;;  %1106 = vmatprep.mubr.bf16.mxu1 %v1155_v17 }
  0x36   : > { %1091 = vmatmul.mubr.bf16.gmra.mrb[8].mxu0 %v1156_v18  ;;  %1107 = vmatmul.mubr.bf16.gmra.mrb[8].mxu1 %v1157_v19 }
  0x37   : > { %1094 = vmatprep.mubr.bf16.mxu0 %v1158_v20  ;;  %1110 = vmatprep.mubr.bf16.mxu1 %v1159_v21 }
  0x3e   : > { %1095 = vmatmul.mubr.bf16.gmra.mrb[12].mxu0 %v1160_v22  ;;  %1111 = vmatmul.mubr.bf16.gmra.mrb[12].mxu1 %v1161_v23 }
  0xf9   : > { %v1084_v25 = vpop.f32.mrb[0].mxu0  ;;  %v1100_v26 = vpop.f32.mrb[0].mxu1 }
  0xfa   : > { %v417_v27 = vadd.f32 %v1084_v25, %v1251_v24  ;;  %v481_v28 = vadd.f32 %v1100_v26, %v1251_v24  ;;  %v408_v29 = vpop.f32.mrb[1].mxu0  ;;  %v472_v30 = vpop.f32.mrb[1].mxu1 }
  0xfb   : > { %v409_v31 = vadd.f32 %v1251_v24, %v408_v29  ;;  %v473_v32 = vadd.f32 %v1251_v24, %v472_v30  ;;  %v1085_v33 = vpop.f32.mrb[2].mxu0  ;;  %v1101_v34 = vpop.f32.mrb[2].mxu1 }
  0xfc   : > { %vm537_vm0 = vcmp.ge.f32.partialorder %v417_v27, 0.0  ;;  %v569_v35 = vmul.f32 0.01, %v417_v27  ;;  %vm553_vm1 = vcmp.ge.f32.partialorder %v481_v28, 0.0  ;;  %v585_v36 = vmul.f32 0.01, %v481_v28 }
  0xfd   : > { %vm535_vm2 = vcmp.ge.f32.partialorder %v409_v31, 0.0  ;;  %v567_v37 = vmul.f32 0.01, %v409_v31  ;;  %vm551_vm3 = vcmp.ge.f32.partialorder %v473_v32, 0.0  ;;  %v583_v38 = vmul.f32 0.01, %v473_v32 }
  0xfe   : > { %v420_v39 = vadd.f32 %v1085_v33, %v1251_v24  ;;  %v484_v40 = vadd.f32 %v1101_v34, %v1251_v24  ;;  %v411_v41 = vpop.f32.mrb[3].mxu0  ;;  %v475_v42 = vpop.f32.mrb[3].mxu1  ;;  %v601_v43 = vsel %vm537_vm0, %v417_v27, %v569_v35  ;;  %v617_v44 = vsel %vm553_vm1, %v481_v28, %v585_v36 }
  0xff   : > { %v412_v45 = vadd.f32 %v1251_v24, %v411_v41  ;;  %v476_v46 = vadd.f32 %v1251_v24, %v475_v42  ;;  %v599_v51 = vsel %vm535_vm2, %v409_v31, %v567_v37  ;;  %v615_v52 = vsel %vm551_vm3, %v473_v32, %v583_v38 }
 0x100   : > { %vm538_vm4 = vcmp.ge.f32.partialorder %v420_v39, 0.0  ;;  %v570_v47 = vmul.f32 0.01, %v420_v39  ;;  %vm554_vm5 = vcmp.ge.f32.partialorder %v484_v40, 0.0  ;;  %v586_v48 = vmul.f32 0.01, %v484_v40 }
 0x101   : > { %vm536_vm6 = vcmp.ge.f32.partialorder %v412_v45, 0.0  ;;  %v568_v49 = vmul.f32 0.01, %v412_v45  ;;  %vm552_vm7 = vcmp.ge.f32.partialorder %v476_v46, 0.0  ;;  %v584_v50 = vmul.f32 0.01, %v476_v46 }
 0x102   : > { %v602_v53 = vsel %vm538_vm4, %v420_v39, %v570_v47  ;;  %v618_v54 = vsel %vm554_vm5, %v484_v40, %v586_v48  ;;  %v1088_v55 = vpop.f32.mrb[4].mxu0  ;;  %v1104_v56 = vpop.f32.mrb[4].mxu1 }
 0x103   : > { %v955_v57 = vpack.c.bf16 %v602_v53, %v601_v43  ;;  %v995_v58 = vpack.c.bf16 %v618_v54, %v617_v44  ;;  %v600_v59 = vsel %vm536_vm6, %v412_v45, %v568_v49  ;;  %v616_v60 = vsel %vm552_vm7, %v476_v46, %v584_v50  ;;  %v424_v61 = vpop.f32.mrb[5].mxu0  ;;  %v488_v62 = vpop.f32.mrb[5].mxu1 }
 0x104   : > { %v950_v63 = vpack.c.bf16 %v600_v59, %v599_v51  ;;  %v990_v0 = vpack.c.bf16 %v616_v60, %v615_v52  ;;  %v433_v1 = vadd.f32 %v1088_v55, %v1251_v24  ;;  %v497_v2 = vadd.f32 %v1104_v56, %v1251_v24  ;;  %v1089_v3 = vpop.f32.mrb[6].mxu0  ;;  %v1105_v4 = vpop.f32.mrb[6].mxu1 }
 0x105   : > { %1027 = vst [vmem:[%s1268_s13 + $0x8] sm:$0xff] %v955_v57   ;;  %1035 = vst [vmem:[%s1268_s13 + $0x48] sm:$0xff] %v995_v58   ;;  %v425_v5 = vadd.f32 %v1251_v24, %v424_v61  ;;  %v489_v6 = vadd.f32 %v1251_v24, %v488_v62  ;;  %v436_v7 = vadd.f32 %v1089_v3, %v1251_v24  ;;  %v427_v9 = vpop.f32.mrb[7].mxu0  ;;  %v491_v10 = vpop.f32.mrb[7].mxu1 }
 0x106   : > { %v500_v8 = vadd.f32 %v1105_v4, %v1251_v24  ;;  %951 = vst [vmem:[%s1268_s13] sm:$0xff] %v950_v63   ;;  %1034 = vst [vmem:[%s1268_s13 + $0x40] sm:$0xff] %v990_v0   ;;  %vm541_vm8 = vcmp.ge.f32.partialorder %v433_v1, 0.0  ;;  %v573_v11 = vmul.f32 0.01, %v433_v1  ;;  %vm557_vm9 = vcmp.ge.f32.partialorder %v497_v2, 0.0 }
 0x107   : > { %v589_v12 = vmul.f32 0.01, %v497_v2  ;;  %vm539_vm10 = vcmp.ge.f32.partialorder %v425_v5, 0.0  ;;  %v571_v13 = vmul.f32 0.01, %v425_v5  ;;  %vm555_vm11 = vcmp.ge.f32.partialorder %v489_v6, 0.0 }
 0x108   : > { %v605_v14 = vsel %vm541_vm8, %v433_v1, %v573_v11  ;;  %v587_v15 = vmul.f32 0.01, %v489_v6  ;;  %vm542_vm12 = vcmp.ge.f32.partialorder %v436_v7, 0.0  ;;  %v574_v16 = vmul.f32 0.01, %v436_v7 }
 0x109   : > { %v621_v17 = vsel %vm557_vm9, %v497_v2, %v589_v12  ;;  %v603_v18 = vsel %vm539_vm10, %v425_v5, %v571_v13  ;;  %vm558_vm13 = vcmp.ge.f32.partialorder %v500_v8, 0.0  ;;  %v590_v19 = vmul.f32 0.01, %v500_v8  ;;  %v1092_v20 = vpop.f32.mrb[8].mxu0  ;;  %v1108_v21 = vpop.f32.mrb[8].mxu1 }
 0x10a   : > { %v606_v22 = vsel %vm542_vm12, %v436_v7, %v574_v16  ;;  %v428_v23 = vadd.f32 %v1251_v24, %v427_v9  ;;  %v492_v25 = vadd.f32 %v1251_v24, %v491_v10  ;;  %v449_v26 = vadd.f32 %v1092_v20, %v1251_v24  ;;  %v440_v27 = vpop.f32.mrb[9].mxu0  ;;  %v504_v28 = vpop.f32.mrb[9].mxu1 }
 0x10b   : > { %v965_v29 = vpack.c.bf16 %v606_v22, %v605_v14  ;;  %v622_v30 = vsel %vm558_vm13, %v500_v8, %v590_v19  ;;  %v513_v31 = vadd.f32 %v1108_v21, %v1251_v24  ;;  %v441_v32 = vadd.f32 %v1251_v24, %v440_v27  ;;  %v1093_v33 = vpop.f32.mrb[10].mxu0  ;;  %v1109_v34 = vpop.f32.mrb[10].mxu1 }
 0x10c   : > { %v1005_v35 = vpack.c.bf16 %v622_v30, %v621_v17  ;;  %vm540_vm14 = vcmp.ge.f32.partialorder %v428_v23, 0.0  ;;  %v572_v36 = vmul.f32 0.01, %v428_v23  ;;  %vm556_vm15 = vcmp.ge.f32.partialorder %v492_v25, 0.0  ;;  %v443_v37 = vpop.f32.mrb[11].mxu0  ;;  %v507_v38 = vpop.f32.mrb[11].mxu1 }
 0x10d   : > { %1029 = vst [vmem:[%s1268_s13 + $0x18] sm:$0xff] %v965_v29   ;;  %v588_v39 = vmul.f32 0.01, %v492_v25  ;;  %vm545_vm0 = vcmp.ge.f32.partialorder %v449_v26, 0.0  ;;  %v577_v40 = vmul.f32 0.01, %v449_v26  ;;  %v619_v41 = vsel %vm555_vm11, %v489_v6, %v587_v15 }
 0x10e   : > { %vm561_vm1 = vcmp.ge.f32.partialorder %v513_v31, 0.0  ;;  %1037 = vst [vmem:[%s1268_s13 + $0x58] sm:$0xff] %v1005_v35   ;;  %v604_v42 = vsel %vm540_vm14, %v428_v23, %v572_v36  ;;  %v593_v43 = vmul.f32 0.01, %v513_v31  ;;  %vm543_vm2 = vcmp.ge.f32.partialorder %v441_v32, 0.0 }
 0x10f   : > { %v960_v44 = vpack.c.bf16 %v604_v42, %v603_v18  ;;  %v620_v45 = vsel %vm556_vm15, %v492_v25, %v588_v39  ;;  %v575_v46 = vmul.f32 0.01, %v441_v32  ;;  %v505_v47 = vadd.f32 %v1251_v24, %v504_v28 }
 0x110   : > { %v1000_v48 = vpack.c.bf16 %v620_v45, %v619_v41  ;;  %v609_v49 = vsel %vm545_vm0, %v449_v26, %v577_v40  ;;  %v625_v50 = vsel %vm561_vm1, %v513_v31, %v593_v43  ;;  %v452_v51 = vadd.f32 %v1093_v33, %v1251_v24 }
 0x111   : > { %1028 = vst [vmem:[%s1268_s13 + $0x10] sm:$0xff] %v960_v44   ;;  %vm559_vm3 = vcmp.ge.f32.partialorder %v505_v47, 0.0  ;;  %v591_v52 = vmul.f32 0.01, %v505_v47  ;;  %v516_v53 = vadd.f32 %v1109_v34, %v1251_v24  ;;  %v444_v54 = vadd.f32 %v1251_v24, %v443_v37  ;;  %v1096_v55 = vpop.f32.mrb[12].mxu0  ;;  %v1112_v56 = vpop.f32.mrb[12].mxu1 }
 0x112   : > { %1036 = vst [vmem:[%s1268_s13 + $0x50] sm:$0xff] %v1000_v48   ;;  %vm546_vm4 = vcmp.ge.f32.partialorder %v452_v51, 0.0  ;;  %v578_v57 = vmul.f32 0.01, %v452_v51  ;;  %v508_v58 = vadd.f32 %v1251_v24, %v507_v38  ;;  %v465_v59 = vadd.f32 %v1096_v55, %v1251_v24  ;;  %v456_v60 = vpop.f32.mrb[13].mxu0  ;;  %v520_v61 = vpop.f32.mrb[13].mxu1 }
 0x113   : > { %v607_v62 = vsel %vm543_vm2, %v441_v32, %v575_v46  ;;  %vm562_vm5 = vcmp.ge.f32.partialorder %v516_v53, 0.0  ;;  %v594_v63 = vmul.f32 0.01, %v516_v53  ;;  %vm544_vm6 = vcmp.ge.f32.partialorder %v444_v54, 0.0  ;;  %v1097_v0 = vpop.f32.mrb[14].mxu0  ;;  %v1113_v1 = vpop.f32.mrb[14].mxu1 }
 0x114   : > { %v610_v2 = vsel %vm546_vm4, %v452_v51, %v578_v57  ;;  %v576_v3 = vmul.f32 0.01, %v444_v54  ;;  %vm560_vm7 = vcmp.ge.f32.partialorder %v508_v58, 0.0  ;;  %v592_v4 = vmul.f32 0.01, %v508_v58  ;;  %v459_v5 = vpop.f32.mrb[15].mxu0 }
 0x115   : > { %v623_v6 = vsel %vm559_vm3, %v505_v47, %v591_v52  ;;  %v975_v7 = vpack.c.bf16 %v610_v2, %v609_v49  ;;  %v626_v8 = vsel %vm562_vm5, %v516_v53, %v594_v63  ;;  %v581_v9 = vmul.f32 0.01, %v465_v59  ;;  %v523_v10 = vpop.f32.mrb[15].mxu1 }
 0x116   : > { %v1015_v11 = vpack.c.bf16 %v626_v8, %v625_v50  ;;  %v608_v12 = vsel %vm544_vm6, %v444_v54, %v576_v3  ;;  %v624_v13 = vsel %vm560_vm7, %v508_v58, %v592_v4  ;;  %v529_v14 = vadd.f32 %v1112_v56, %v1251_v24 }
 0x117   : > { %1031 = vst [vmem:[%s1268_s13 + $0x28] sm:$0xff] %v975_v7   ;;  %v970_v15 = vpack.c.bf16 %v608_v12, %v607_v62  ;;  %v1010_v16 = vpack.c.bf16 %v624_v13, %v623_v6  ;;  %vm549_vm8 = vcmp.ge.f32.partialorder %v465_v59, 0.0  ;;  %v457_v17 = vadd.f32 %v1251_v24, %v456_v60 }
 0x118   : > { %1039 = vst [vmem:[%s1268_s13 + $0x68] sm:$0xff] %v1015_v11   ;;  %vm565_vm9 = vcmp.ge.f32.partialorder %v529_v14, 0.0  ;;  %v597_v18 = vmul.f32 0.01, %v529_v14  ;;  %v521_v19 = vadd.f32 %v1251_v24, %v520_v61  ;;  %v468_v20 = vadd.f32 %v1097_v0, %v1251_v24 }
 0x119   : > { %1030 = vst [vmem:[%s1268_s13 + $0x20] sm:$0xff] %v970_v15   ;;  %1038 = vst [vmem:[%s1268_s13 + $0x60] sm:$0xff] %v1010_v16   ;;  %v579_v21 = vmul.f32 0.01, %v457_v17  ;;  %v532_v22 = vadd.f32 %v1113_v1, %v1251_v24  ;;  %v460_v23 = vadd.f32 %v1251_v24, %v459_v5  ;;  %v613_v25 = vsel %vm549_vm8, %v465_v59, %v581_v9 }
 0x11a   : > { %vm547_vm10 = vcmp.ge.f32.partialorder %v457_v17, 0.0  ;;  %vm550_vm11 = vcmp.ge.f32.partialorder %v468_v20, 0.0  ;;  %v629_v26 = vsel %vm565_vm9, %v529_v14, %v597_v18  ;;  %v582_v27 = vmul.f32 0.01, %v468_v20 }
 0x11b   : > { %vm566_vm12 = vcmp.ge.f32.partialorder %v532_v22, 0.0  ;;  %v598_v28 = vmul.f32 0.01, %v532_v22  ;;  %vm563_vm13 = vcmp.ge.f32.partialorder %v521_v19, 0.0  ;;  %vm548_vm14 = vcmp.ge.f32.partialorder %v460_v23, 0.0 }
 0x11c   : > { %v580_v29 = vmul.f32 0.01, %v460_v23  ;;  %v524_v30 = vadd.f32 %v1251_v24, %v523_v10  ;;  %v611_v31 = vsel %vm547_vm10, %v457_v17, %v579_v21  ;;  %v595_v32 = vmul.f32 0.01, %v521_v19 }
 0x11d   : > { %v614_v33 = vsel %vm550_vm11, %v468_v20, %v582_v27  ;;  %v630_v34 = vsel %vm566_vm12, %v532_v22, %v598_v28 }
 0x11e   : > { %v985_v35 = vpack.c.bf16 %v614_v33, %v613_v25  ;;  %v1025_v36 = vpack.c.bf16 %v630_v34, %v629_v26  ;;  %v612_v37 = vsel %vm548_vm14, %v460_v23, %v580_v29  ;;  %vm564_vm15 = vcmp.ge.f32.partialorder %v524_v30, 0.0 }
 0x11f   : > { %v980_v38 = vpack.c.bf16 %v612_v37, %v611_v31  ;;  %v596_v39 = vmul.f32 0.01, %v524_v30  ;;  %v627_v40 = vsel %vm563_vm13, %v521_v19, %v595_v32 }
 0x120   : > { %1033 = vst [vmem:[%s1268_s13 + $0x38] sm:$0xff] %v985_v35   ;;  %1041 = vst [vmem:[%s1268_s13 + $0x78] sm:$0xff] %v1025_v36  }
 0x121   : > { %1032 = vst [vmem:[%s1268_s13 + $0x30] sm:$0xff] %v980_v38   ;;  %v628_v41 = vsel %vm564_vm15, %v524_v30, %v596_v39 }
 0x122   : > { %v1020_v42 = vpack.c.bf16 %v628_v41, %v627_v40 }
 0x124   : > { %1040 = vst [vmem:[%s1268_s13 + $0x70] sm:$0xff] %v1020_v42  }
 0x125 PF: > { %s13_s12 = sadd.s32 1, %s1168_s12  }
 0x126   : > { %p10_p4 = scmp.ge.s32.totalorder %s13_s12, 4  }
 0x128   :  { %12 = sbr.rel (!%p10_p4) target bundleno = 1 (0x1), region = 62 }

// kernel: _lambda_.19
= control target key start
LH: loop header
LB: loop body
LE: loop exit
PB: predicated region body
PF: predicated region fallthrough
CT: control target
= control target key end

     0   :  { %s1337_s15 = smov 0   ;;  %s1477_s0 = inlined_call_operand.vmem [shape: bf16[512,128], index: 0, kind: input, shape index: {}]   ;;  %s1478_s1 = inlined_call_operand.vmem [shape: bf16[128,128], index: 1, kind: input, shape index: {}]   ;;  %s1479_s2 = inlined_call_operand.vmem [shape: f32[1,128], index: 2, kind: input, shape index: {}]   ;;  %s1480_s3 = inlined_call_operand.vmem [shape: bf16[512,128], index: 3, kind: input, shape index: {}]   ;;  %s1481_s4 = inlined_call_operand.vmem [shape: bf16[512,128], index: 4, kind: output, shape index: {}]  }
   0x1 LB: > { %s908_s16 = sadd.s32 4294967295, %s1310_s15   ;;  %p912_p0 = scmp.ge.s32.totalorder %s1310_s15, 1  ;;  %s1310_s15 = sphi %s1337_s15, %s14_s15  }
   0x2   : > { %p174_p1 = scmp.lt.s32.totalorder %s1310_s15, 3 }
   0x4   : > { %p175_p2 = pnand %p912_p0, %p174_p1 }
   0x5   : > { %v1280_v0 = vld [vmem:[%s1478_s1] sm:$0xff] (!%p175_p2)   ;;  %s913_s19 = sshll.u32 (!%p175_p2), %s908_s16, 5  ;;  %v1281_v1 = vld [vmem:[%s1478_s1 + $0x8] sm:$0xff] (!%p175_p2)   ;;  %v1282_v2 = vld [vmem:[%s1478_s1 + $0x10] sm:$0xff] (!%p175_p2)  }
   0x6   : > { %178 = sbr.rel (%p175_p2) target bundleno = 284 (0x11c), region = 36  ;;  %p206_p3 = scmp.lt.s32.totalorder (!%p175_p2), %s913_s19, 63  ;;  %1208 = vmatprep.subr.bf16.mxu0 (!%p175_p2), %v1280_v0  ;;  %1256 = vmatprep.subr.bf16.mxu1 (!%p175_p2), %v1280_v0  ;;  %v1283_v3 = vld [vmem:[%s1478_s1 + $0x18] sm:$0xff] (!%p175_p2)   ;;  %v1284_v6 = vld [vmem:[%s1478_s1 + $0x20] sm:$0xff] (!%p175_p2)   ;;  %v1285_v7 = vld [vmem:[%s1478_s1 + $0x28] sm:$0xff] (!%p175_p2)  }
   0x7   : > { %1209 = vmatpush3.bf16.msra.mxu0 (!%p175_p2), %v1280_v0  ;;  %1264 = vmatpush3.bf16.msra.mxu1 (!%p175_p2), %v1280_v0  ;;  %v1286_v8 = vld [vmem:[%s1478_s1 + $0x30] sm:$0xff] (!%p175_p2)   ;;  %v1287_v9 = vld [vmem:[%s1478_s1 + $0x38] sm:$0xff] (!%p175_p2)   ;;  %v1406_v28 = vld [vmem:[%s1479_s2] ss:$0 sm:$0xff] (!%p175_p2) }
   0x8   : > { %1210 = vmatprep.subr.bf16.mxu0 (!%p175_p2), %v1281_v1  ;;  %1257 = vmatprep.subr.bf16.mxu1 (!%p175_p2), %v1281_v1 }
   0xb   : > { %1211 = vmatpush3.bf16.msra.mxu0 (!%p175_p2), %v1281_v1  ;;  %1265 = vmatpush3.bf16.msra.mxu1 (!%p175_p2), %v1281_v1 }
   0xc   : > { %1212 = vmatprep.subr.bf16.mxu0 (!%p175_p2), %v1282_v2  ;;  %1258 = vmatprep.subr.bf16.mxu1 (!%p175_p2), %v1282_v2 }
   0xd   : > { %s1483_s19 = smov (!%p206_p3, %s913_s19), 63 }
   0xe   : > { %s1354_s24 = sshll.u32 %s1483_s19, 2 }
   0xf   : > { %s1360_s27 = scalar_lea.vmem %s1477_s0, %s1354_s24  ;;  %1213 = vmatpush3.bf16.msra.mxu0 %v1282_v2  ;;  %1266 = vmatpush3.bf16.msra.mxu1 %v1282_v2  ;;  %s1397_s14 = scalar_lea.vmem %s1480_s3, %s1354_s24 }
  0x10   : > { %v1288_v4 = vld [vmem:[%s1360_s27] sm:$0xff]   ;;  %1214 = vmatprep.subr.bf16.mxu0 %v1283_v3  ;;  %1259 = vmatprep.subr.bf16.mxu1 %v1283_v3  ;;  %v1290_v10 = vld [vmem:[%s1360_s27 + $0x8] sm:$0xff]   ;;  %v1292_v12 = vld [vmem:[%s1360_s27 + $0x10] sm:$0xff]   ;;  %s1424_s20 = scalar_lea.vmem %s1481_s4, %s1354_s24 }
  0x11   : > { %v1289_v5 = vld [vmem:[%s1360_s27 + $0x40] sm:$0xff]   ;;  %1224 = vmatprep.mubr.bf16.mxu0 %v1288_v4  ;;  %v1291_v11 = vld [vmem:[%s1360_s27 + $0x48] sm:$0xff]   ;;  %v1293_v13 = vld [vmem:[%s1360_s27 + $0x50] sm:$0xff]  }
  0x12   : > { %1240 = vmatprep.mubr.bf16.mxu1 %v1289_v5  ;;  %v1294_v14 = vld [vmem:[%s1360_s27 + $0x18] sm:$0xff]   ;;  %v1296_v16 = vld [vmem:[%s1360_s27 + $0x20] sm:$0xff]   ;;  %v1298_v18 = vld [vmem:[%s1360_s27 + $0x28] sm:$0xff]  }
  0x13   : > { %1215 = vmatpush3.bf16.msra.mxu0 %v1283_v3  ;;  %1267 = vmatpush3.bf16.msra.mxu1 %v1283_v3  ;;  %v1295_v15 = vld [vmem:[%s1360_s27 + $0x58] sm:$0xff]   ;;  %v1297_v17 = vld [vmem:[%s1360_s27 + $0x60] sm:$0xff]   ;;  %v1299_v19 = vld [vmem:[%s1360_s27 + $0x68] sm:$0xff]  }
  0x14   : > { %1216 = vmatprep.subr.bf16.mxu0 %v1284_v6  ;;  %1260 = vmatprep.subr.bf16.mxu1 %v1284_v6  ;;  %v1300_v20 = vld [vmem:[%s1360_s27 + $0x30] sm:$0xff]   ;;  %v1302_v22 = vld [vmem:[%s1360_s27 + $0x38] sm:$0xff]   ;;  %v1154_v24 = vld [vmem:[%s1397_s14 + $0x8] sm:$0xff]  }
  0x15   : > { %v1301_v21 = vld [vmem:[%s1360_s27 + $0x70] sm:$0xff]   ;;  %v1303_v23 = vld [vmem:[%s1360_s27 + $0x78] sm:$0xff]   ;;  %v1162_v25 = vld [vmem:[%s1397_s14 + $0x48] sm:$0xff]   ;;  %v1016_v30 = vunpack.c.l.bf16 %v1154_v24  ;;  %v1017_v39 = vunpack.c.h.bf16 %v1154_v24 }
  0x16   : > { %v1011_v26 = vld [vmem:[%s1397_s14] sm:$0xff]   ;;  %v1048_v32 = vunpack.c.l.bf16 %v1162_v25  ;;  %v1049_v40 = vunpack.c.h.bf16 %v1162_v25  ;;  %v1156_v53 = vld [vmem:[%s1397_s14 + $0x18] sm:$0xff]   ;;  %v1155_v59 = vld [vmem:[%s1397_s14 + $0x10] sm:$0xff]  }
  0x17   : > { %1217 = vmatpush3.bf16.msra.mxu0 %v1284_v6  ;;  %1268 = vmatpush3.bf16.msra.mxu1 %v1284_v6  ;;  %v1161_v27 = vld [vmem:[%s1397_s14 + $0x40] sm:$0xff]   ;;  %v1012_v33 = vunpack.c.l.bf16 %v1011_v26  ;;  %v1013_v45 = vunpack.c.h.bf16 %v1011_v26  ;;  %v1164_v54 = vld [vmem:[%s1397_s14 + $0x58] sm:$0xff]   ;;  %v1163_v60 = vld [vmem:[%s1397_s14 + $0x50] sm:$0xff]   ;;  %v1024_v3 = vunpack.c.l.bf16 %v1156_v53 }
  0x18   : > { %1218 = vmatprep.subr.bf16.mxu0 %v1285_v7  ;;  %1261 = vmatprep.subr.bf16.mxu1 %v1285_v7  ;;  %v1044_v34 = vunpack.c.l.bf16 %v1161_v27  ;;  %v1045_v46 = vunpack.c.h.bf16 %v1161_v27  ;;  %v1056_v4 = vunpack.c.l.bf16 %v1164_v54 }
  0x1b   : > { %1219 = vmatpush3.bf16.msra.mxu0 %v1285_v7  ;;  %1269 = vmatpush3.bf16.msra.mxu1 %v1285_v7 }
  0x1c   : > { %1220 = vmatprep.subr.bf16.mxu0 %v1286_v8  ;;  %1262 = vmatprep.subr.bf16.mxu1 %v1286_v8 }
  0x1f   : > { %1221 = vmatpush3.bf16.msra.mxu0 %v1286_v8  ;;  %1270 = vmatpush3.bf16.msra.mxu1 %v1286_v8 }
  0x20   : > { %1222 = vmatprep.subr.bf16.mxu0 %v1287_v9  ;;  %1263 = vmatprep.subr.bf16.mxu1 %v1287_v9 }
  0x23   : > { %1223 = vmatpush3.bf16.msra.mxu0 %v1287_v9  ;;  %1271 = vmatpush3.bf16.msra.mxu1 %v1287_v9  ;;  %v1020_v9 = vunpack.c.l.bf16 %v1155_v59 }
  0x26   : > { %1225 = vmatmul.mubr.bf16.vlgmr.msra.gmra.mrb[0].mxu0 %v1290_v10  ;;  %1241 = vmatmul.mubr.bf16.vlgmr.msra.gmra.mrb[0].mxu1 %v1291_v11  ;;  %v1052_v10 = vunpack.c.l.bf16 %v1163_v60 }
  0x27   : > { %1228 = vmatprep.mubr.bf16.mxu0 %v1292_v12  ;;  %1244 = vmatprep.mubr.bf16.mxu1 %v1293_v13 }
  0x2e   : > { %1229 = vmatmul.mubr.bf16.gmra.mrb[4].mxu0 %v1294_v14  ;;  %1245 = vmatmul.mubr.bf16.gmra.mrb[4].mxu1 %v1295_v15  ;;  %v1025_v15 = vunpack.c.h.bf16 %v1156_v53 }
  0x2f   : > { %1232 = vmatprep.mubr.bf16.mxu0 %v1296_v16  ;;  %1248 = vmatprep.mubr.bf16.mxu1 %v1297_v17  ;;  %v1057_v16 = vunpack.c.h.bf16 %v1164_v54 }
  0x36   : > { %1233 = vmatmul.mubr.bf16.gmra.mrb[8].mxu0 %v1298_v18  ;;  %1249 = vmatmul.mubr.bf16.gmra.mrb[8].mxu1 %v1299_v19 }
  0x37   : > { %1236 = vmatprep.mubr.bf16.mxu0 %v1300_v20  ;;  %1252 = vmatprep.mubr.bf16.mxu1 %v1301_v21  ;;  %v1021_v21 = vunpack.c.h.bf16 %v1155_v59 }
  0x3e   : > { %1237 = vmatmul.mubr.bf16.gmra.mrb[12].mxu0 %v1302_v22  ;;  %1253 = vmatmul.mubr.bf16.gmra.mrb[12].mxu1 %v1303_v23  ;;  %v1053_v22 = vunpack.c.h.bf16 %v1163_v60 }
  0xf9   : > { %v1226_v29 = vpop.f32.mrb[0].mxu0  ;;  %v1242_v31 = vpop.f32.mrb[0].mxu1 }
  0xfa   : > { %v466_v35 = vadd.f32 %v1226_v29, %v1406_v28  ;;  %v530_v36 = vadd.f32 %v1242_v31, %v1406_v28  ;;  %v457_v37 = vpop.f32.mrb[1].mxu0  ;;  %v521_v38 = vpop.f32.mrb[1].mxu1  ;;  %v1166_v31 = vld [vmem:[%s1397_s14 + $0x68] sm:$0xff]  }
  0xfb   : > { %v458_v41 = vadd.f32 %v1406_v28, %v457_v37  ;;  %v522_v42 = vadd.f32 %v1406_v28, %v521_v38  ;;  %v1227_v43 = vpop.f32.mrb[2].mxu0  ;;  %v1243_v44 = vpop.f32.mrb[2].mxu1  ;;  %v1165_v37 = vld [vmem:[%s1397_s14 + $0x60] sm:$0xff]  }
  0xfc   : > { %v469_v47 = vadd.f32 %v1227_v43, %v1406_v28  ;;  %v533_v48 = vadd.f32 %v1243_v44, %v1406_v28  ;;  %v460_v49 = vpop.f32.mrb[3].mxu0  ;;  %v524_v50 = vpop.f32.mrb[3].mxu1  ;;  %v650_v55 = vadd.f32 %v1016_v30, %v466_v35  ;;  %v666_v56 = vadd.f32 %v1048_v32, %v530_v36  ;;  %v1158_v30 = vld [vmem:[%s1397_s14 + $0x28] sm:$0xff]   ;;  %v1157_v36 = vld [vmem:[%s1397_s14 + $0x20] sm:$0xff]  }
  0xfd   : > { %v461_v51 = vadd.f32 %v1406_v28, %v460_v49  ;;  %v525_v52 = vadd.f32 %v1406_v28, %v524_v50  ;;  %v648_v61 = vadd.f32 %v1012_v33, %v458_v41  ;;  %v664_v62 = vadd.f32 %v1044_v34, %v522_v42 }
  0xfe   : > { %v651_v57 = vadd.f32 %v1017_v39, %v469_v47  ;;  %v667_v58 = vadd.f32 %v1049_v40, %v533_v48  ;;  %v1032_v44 = vunpack.c.l.bf16 %v1158_v30  ;;  %v1028_v50 = vunpack.c.l.bf16 %v1157_v36 }
  0xff   : > { %v649_v63 = vadd.f32 %v1013_v45, %v461_v51  ;;  %v665_v0 = vadd.f32 %v1045_v46, %v525_v52  ;;  %v1064_v45 = vunpack.c.l.bf16 %v1166_v31  ;;  %v1060_v51 = vunpack.c.l.bf16 %v1165_v37 }
 0x100   : > { %v1082_v1 = vpack.c.bf16 %v651_v57, %v650_v55  ;;  %v1122_v2 = vpack.c.bf16 %v667_v58, %v666_v56  ;;  %v1033_v56 = vunpack.c.h.bf16 %v1158_v30  ;;  %v1065_v57 = vunpack.c.h.bf16 %v1166_v31 }
 0x101   : > { %v1077_v5 = vpack.c.bf16 %v649_v63, %v648_v61  ;;  %v1117_v6 = vpack.c.bf16 %v665_v0, %v664_v62  ;;  %v1230_v7 = vpop.f32.mrb[4].mxu0  ;;  %v1246_v8 = vpop.f32.mrb[4].mxu1  ;;  %v1029_v62 = vunpack.c.h.bf16 %v1157_v36  ;;  %v1061_v63 = vunpack.c.h.bf16 %v1165_v37 }
 0x102   : > { %1169 = vst [vmem:[%s1424_s20 + $0x8] sm:$0xff] %v1082_v1   ;;  %1177 = vst [vmem:[%s1424_s20 + $0x48] sm:$0xff] %v1122_v2   ;;  %v482_v11 = vadd.f32 %v1230_v7, %v1406_v28  ;;  %v546_v12 = vadd.f32 %v1246_v8, %v1406_v28  ;;  %v473_v13 = vpop.f32.mrb[5].mxu0  ;;  %v537_v14 = vpop.f32.mrb[5].mxu1  ;;  %v1168_v7 = vld [vmem:[%s1397_s14 + $0x78] sm:$0xff]  }
 0x103   : > { %1078 = vst [vmem:[%s1424_s20] sm:$0xff] %v1077_v5   ;;  %1176 = vst [vmem:[%s1424_s20 + $0x40] sm:$0xff] %v1117_v6   ;;  %v474_v17 = vadd.f32 %v1406_v28, %v473_v13  ;;  %v538_v18 = vadd.f32 %v1406_v28, %v537_v14  ;;  %v1231_v19 = vpop.f32.mrb[6].mxu0  ;;  %v1247_v20 = vpop.f32.mrb[6].mxu1  ;;  %v1160_v6 = vld [vmem:[%s1397_s14 + $0x38] sm:$0xff]   ;;  %v1167_v13 = vld [vmem:[%s1397_s14 + $0x70] sm:$0xff]  }
 0x104   : > { %v485_v23 = vadd.f32 %v1231_v19, %v1406_v28  ;;  %v549_v24 = vadd.f32 %v1247_v20, %v1406_v28  ;;  %v476_v25 = vpop.f32.mrb[7].mxu0  ;;  %v540_v26 = vpop.f32.mrb[7].mxu1  ;;  %v654_v32 = vadd.f32 %v1024_v3, %v482_v11  ;;  %v670_v33 = vadd.f32 %v1056_v4, %v546_v12  ;;  %v1159_v12 = vld [vmem:[%s1397_s14 + $0x30] sm:$0xff]  }
 0x105   : > { %v477_v27 = vadd.f32 %v1406_v28, %v476_v25  ;;  %v541_v29 = vadd.f32 %v1406_v28, %v540_v26  ;;  %v652_v38 = vadd.f32 %v1020_v9, %v474_v17  ;;  %v668_v39 = vadd.f32 %v1052_v10, %v538_v18 }
 0x106   : > { %v655_v34 = vadd.f32 %v1025_v15, %v485_v23  ;;  %v671_v35 = vadd.f32 %v1057_v16, %v549_v24  ;;  %v1040_v20 = vunpack.c.l.bf16 %v1160_v6  ;;  %v1036_v26 = vunpack.c.l.bf16 %v1159_v12 }
 0x107   : > { %v653_v40 = vadd.f32 %v1021_v21, %v477_v27  ;;  %v669_v41 = vadd.f32 %v1053_v22, %v541_v29  ;;  %v1072_v21 = vunpack.c.l.bf16 %v1168_v7  ;;  %v1068_v27 = vunpack.c.l.bf16 %v1167_v13 }
 0x108   : > { %v1092_v42 = vpack.c.bf16 %v655_v34, %v654_v32  ;;  %v1132_v43 = vpack.c.bf16 %v671_v35, %v670_v33  ;;  %v1041_v33 = vunpack.c.h.bf16 %v1160_v6  ;;  %v1073_v34 = vunpack.c.h.bf16 %v1168_v7 }
 0x109   : > { %v1087_v46 = vpack.c.bf16 %v653_v40, %v652_v38  ;;  %v1127_v47 = vpack.c.bf16 %v669_v41, %v668_v39  ;;  %v1234_v48 = vpop.f32.mrb[8].mxu0  ;;  %v1250_v49 = vpop.f32.mrb[8].mxu1  ;;  %v1037_v39 = vunpack.c.h.bf16 %v1159_v12  ;;  %v1069_v40 = vunpack.c.h.bf16 %v1167_v13 }
 0x10a   : > { %1171 = vst [vmem:[%s1424_s20 + $0x18] sm:$0xff] %v1092_v42   ;;  %1179 = vst [vmem:[%s1424_s20 + $0x58] sm:$0xff] %v1132_v43   ;;  %v498_v52 = vadd.f32 %v1234_v48, %v1406_v28  ;;  %v562_v53 = vadd.f32 %v1250_v49, %v1406_v28  ;;  %v489_v54 = vpop.f32.mrb[9].mxu0  ;;  %v553_v55 = vpop.f32.mrb[9].mxu1 }
 0x10b   : > { %1170 = vst [vmem:[%s1424_s20 + $0x10] sm:$0xff] %v1087_v46   ;;  %1178 = vst [vmem:[%s1424_s20 + $0x50] sm:$0xff] %v1127_v47   ;;  %v490_v58 = vadd.f32 %v1406_v28, %v489_v54  ;;  %v554_v59 = vadd.f32 %v1406_v28, %v553_v55  ;;  %v1235_v60 = vpop.f32.mrb[10].mxu0  ;;  %v1251_v61 = vpop.f32.mrb[10].mxu1 }
 0x10c   : > { %v501_v0 = vadd.f32 %v1235_v60, %v1406_v28  ;;  %v565_v1 = vadd.f32 %v1251_v61, %v1406_v28  ;;  %v492_v2 = vpop.f32.mrb[11].mxu0  ;;  %v556_v3 = vpop.f32.mrb[11].mxu1  ;;  %v658_v8 = vadd.f32 %v1032_v44, %v498_v52  ;;  %v674_v9 = vadd.f32 %v1064_v45, %v562_v53 }
 0x10d   : > { %v493_v4 = vadd.f32 %v1406_v28, %v492_v2  ;;  %v557_v5 = vadd.f32 %v1406_v28, %v556_v3  ;;  %v656_v14 = vadd.f32 %v1028_v50, %v490_v58  ;;  %v672_v15 = vadd.f32 %v1060_v51, %v554_v59 }
 0x10e   : > { %v659_v10 = vadd.f32 %v1033_v56, %v501_v0  ;;  %v675_v11 = vadd.f32 %v1065_v57, %v565_v1 }
 0x10f   : > { %v657_v16 = vadd.f32 %v1029_v62, %v493_v4  ;;  %v673_v17 = vadd.f32 %v1061_v63, %v557_v5 }
 0x110   : > { %v1102_v18 = vpack.c.bf16 %v659_v10, %v658_v8  ;;  %v1142_v19 = vpack.c.bf16 %v675_v11, %v674_v9 }
 0x111   : > { %v1097_v22 = vpack.c.bf16 %v657_v16, %v656_v14  ;;  %v1137_v23 = vpack.c.bf16 %v673_v17, %v672_v15  ;;  %v1238_v24 = vpop.f32.mrb[12].mxu0  ;;  %v1254_v25 = vpop.f32.mrb[12].mxu1 }
 0x112   : > { %1173 = vst [vmem:[%s1424_s20 + $0x28] sm:$0xff] %v1102_v18   ;;  %1181 = vst [vmem:[%s1424_s20 + $0x68] sm:$0xff] %v1142_v19   ;;  %v514_v29 = vadd.f32 %v1238_v24, %v1406_v28  ;;  %v578_v30 = vadd.f32 %v1254_v25, %v1406_v28  ;;  %v505_v31 = vpop.f32.mrb[13].mxu0  ;;  %v569_v32 = vpop.f32.mrb[13].mxu1 }
 0x113   : > { %1172 = vst [vmem:[%s1424_s20 + $0x20] sm:$0xff] %v1097_v22   ;;  %1180 = vst [vmem:[%s1424_s20 + $0x60] sm:$0xff] %v1137_v23   ;;  %v506_v35 = vadd.f32 %v1406_v28, %v505_v31  ;;  %v570_v36 = vadd.f32 %v1406_v28, %v569_v32  ;;  %v1239_v37 = vpop.f32.mrb[14].mxu0  ;;  %v1255_v38 = vpop.f32.mrb[14].mxu1 }
 0x114   : > { %v517_v41 = vadd.f32 %v1239_v37, %v1406_v28  ;;  %v581_v42 = vadd.f32 %v1255_v38, %v1406_v28  ;;  %v508_v43 = vpop.f32.mrb[15].mxu0  ;;  %v572_v44 = vpop.f32.mrb[15].mxu1  ;;  %v662_v47 = vadd.f32 %v1040_v20, %v514_v29  ;;  %v678_v48 = vadd.f32 %v1072_v21, %v578_v30 }
 0x115   : > { %v509_v45 = vadd.f32 %v1406_v28, %v508_v43  ;;  %v573_v46 = vadd.f32 %v1406_v28, %v572_v44  ;;  %v660_v51 = vadd.f32 %v1036_v26, %v506_v35  ;;  %v676_v52 = vadd.f32 %v1068_v27, %v570_v36 }
 0x116   : > { %v663_v49 = vadd.f32 %v1041_v33, %v517_v41  ;;  %v679_v50 = vadd.f32 %v1073_v34, %v581_v42 }
 0x117   : > { %v661_v53 = vadd.f32 %v1037_v39, %v509_v45  ;;  %v677_v54 = vadd.f32 %v1069_v40, %v573_v46 }
 0x118   : > { %v1112_v55 = vpack.c.bf16 %v663_v49, %v662_v47  ;;  %v1152_v56 = vpack.c.bf16 %v679_v50, %v678_v48 }
 0x119   : > { %v1107_v57 = vpack.c.bf16 %v661_v53, %v660_v51  ;;  %v1147_v58 = vpack.c.bf16 %v677_v54, %v676_v52 }
 0x11a   : > { %1175 = vst [vmem:[%s1424_s20 + $0x38] sm:$0xff] %v1112_v55   ;;  %1183 = vst [vmem:[%s1424_s20 + $0x78] sm:$0xff] %v1152_v56  }
 0x11b   : > { %1174 = vst [vmem:[%s1424_s20 + $0x30] sm:$0xff] %v1107_v57   ;;  %1182 = vst [vmem:[%s1424_s20 + $0x70] sm:$0xff] %v1147_v58  }
 0x11c PF: > { %s14_s15 = sadd.s32 1, %s1310_s15  }
 0x11d   : > { %p11_p4 = scmp.ge.s32.totalorder %s14_s15, 4  }
 0x11f   :  { %13 = sbr.rel (!%p11_p4) target bundleno = 1 (0x1), region = 69 }

// kernel: _lambda_.20
= control target key start
LH: loop header
LB: loop body
LE: loop exit
PB: predicated region body
PF: predicated region fallthrough
CT: control target
= control target key end

     0   :  { %s1289_s18 = smov 0   ;;  %s1516_s0 = inlined_call_operand.vmem [shape: bf16[512,128], index: 0, kind: input, shape index: {}]   ;;  %s1517_s1 = inlined_call_operand.vmem [shape: bf16[128,128], index: 1, kind: input, shape index: {}]   ;;  %s1518_s2 = inlined_call_operand.vmem [shape: f32[1,128], index: 2, kind: input, shape index: {}]   ;;  %s1519_s3 = inlined_call_operand.vmem [shape: bf16[128,128], index: 3, kind: input, shape index: {}]   ;;  %s1520_s4 = inlined_call_operand.vmem [shape: f32[1,128], index: 4, kind: input, shape index: {}]   ;;  %s1521_s5 = inlined_call_operand.vmem [shape: f32[512,1], index: 5, kind: output, shape index: {}]  }
   0x1 LB: > { %s1022_s19 = sadd.s32 4294967295, %s1257_s18   ;;  %p1026_p0 = scmp.ge.s32.totalorder %s1257_s18, 1  ;;  %s1257_s18 = sphi %s1289_s18, %s15_s18  }
   0x2   : > { %p188_p1 = scmp.lt.s32.totalorder %s1257_s18, 3 }
   0x4   : > { %p189_p2 = pnand %p1026_p0, %p188_p1 }
   0x5   : > { %v1219_v0 = vld [vmem:[%s1517_s1] sm:$0xff] (!%p189_p2)   ;;  %s1027_s22 = sshll.u32 (!%p189_p2), %s1022_s19, 5  ;;  %v1220_v1 = vld [vmem:[%s1517_s1 + $0x8] sm:$0xff] (!%p189_p2)   ;;  %v1221_v2 = vld [vmem:[%s1517_s1 + $0x10] sm:$0xff] (!%p189_p2)  }
   0x6   : > { %192 = sbr.rel (%p189_p2) target bundleno = 535 (0x217), region = 40  ;;  %p217_p3 = scmp.lt.s32.totalorder (!%p189_p2), %s1027_s22, 63  ;;  %1115 = vmatprep.subr.bf16.mxu0 (!%p189_p2), %v1219_v0  ;;  %v1222_v3 = vld [vmem:[%s1517_s1 + $0x18] sm:$0xff] (!%p189_p2)   ;;  %v1223_v5 = vld [vmem:[%s1517_s1 + $0x20] sm:$0xff] (!%p189_p2)   ;;  %v1224_v6 = vld [vmem:[%s1517_s1 + $0x28] sm:$0xff] (!%p189_p2)  }
   0x7   : > { %1116 = vmatpush3.bf16.msra.mxu0 (!%p189_p2), %v1219_v0  ;;  %v1225_v7 = vld [vmem:[%s1517_s1 + $0x30] sm:$0xff] (!%p189_p2)   ;;  %v1226_v8 = vld [vmem:[%s1517_s1 + $0x38] sm:$0xff] (!%p189_p2)   ;;  %v1243_v9 = vld [vmem:[%s1519_s3] sm:$0xff] (!%p189_p2)  }
   0x8   : > { %1117 = vmatprep.subr.bf16.mxu0 (!%p189_p2), %v1220_v1  ;;  %v1244_v10 = vld [vmem:[%s1519_s3 + $0x8] sm:$0xff] (!%p189_p2)   ;;  %1163 = vmatprep.subr.bf16.mxu1 (!%p189_p2), %v1243_v9  ;;  %v1245_v12 = vld [vmem:[%s1519_s3 + $0x10] sm:$0xff] (!%p189_p2)   ;;  %v1246_v14 = vld [vmem:[%s1519_s3 + $0x18] sm:$0xff] (!%p189_p2)  }
   0x9   : > { %1164 = vmatpush3.bf16.msra.mxu1 (!%p189_p2), %v1243_v9  ;;  %v1247_v15 = vld [vmem:[%s1519_s3 + $0x20] sm:$0xff] (!%p189_p2)   ;;  %v1248_v29 = vld [vmem:[%s1519_s3 + $0x28] sm:$0xff] (!%p189_p2)   ;;  %v1249_v30 = vld [vmem:[%s1519_s3 + $0x30] sm:$0xff] (!%p189_p2)  }
   0xa   : > { %1165 = vmatprep.subr.bf16.mxu1 (!%p189_p2), %v1244_v10  ;;  %v1250_v31 = vld [vmem:[%s1519_s3 + $0x38] sm:$0xff] (!%p189_p2)   ;;  %v1372_v32 = vld [vmem:[%s1518_s2] ss:$0 sm:$0xff] (!%p189_p2) }
   0xb   : > { %1118 = vmatpush3.bf16.msra.mxu0 (!%p189_p2), %v1220_v1 }
   0xc   : > { %1119 = vmatprep.subr.bf16.mxu0 (!%p189_p2), %v1221_v2 }
   0xd   : > { %s1523_s22 = smov (!%p217_p3, %s1027_s22), 63  ;;  %1166 = vmatpush3.bf16.msra.mxu1 %v1244_v10 }
   0xe   : > { %s1028_s27 = sshll.u32 %s1523_s22, 2  ;;  %1167 = vmatprep.subr.bf16.mxu1 %v1245_v12  ;;  %s1030_s11 = sshll.u32 %s1523_s22, 3 }
   0xf   : > { %s1312_s30 = scalar_lea.vmem %s1516_s0, %s1028_s27  ;;  %1120 = vmatpush3.bf16.msra.mxu0 %v1221_v2  ;;  %s1415_s16 = scalar_lea.vmem %s1521_s5, %s1030_s11 }
  0x10   : > { %v1227_v4 = vld [vmem:[%s1312_s30] sm:$0xff]   ;;  %1121 = vmatprep.subr.bf16.mxu0 %v1222_v3  ;;  %v1228_v11 = vld [vmem:[%s1312_s30 + $0x8] sm:$0xff]   ;;  %v1229_v13 = vld [vmem:[%s1312_s30 + $0x10] sm:$0xff]  }
  0x11   : > { %1131 = vmatprep.mubr.bf16.mxu0 %v1227_v4  ;;  %1168 = vmatpush3.bf16.msra.mxu1 %v1245_v12  ;;  %v1230_v16 = vld [vmem:[%s1312_s30 + $0x18] sm:$0xff]   ;;  %v1231_v17 = vld [vmem:[%s1312_s30 + $0x20] sm:$0xff]   ;;  %v1232_v18 = vld [vmem:[%s1312_s30 + $0x28] sm:$0xff]  }
  0x12   : > { %1169 = vmatprep.subr.bf16.mxu1 %v1246_v14  ;;  %v1233_v19 = vld [vmem:[%s1312_s30 + $0x30] sm:$0xff]   ;;  %v1234_v20 = vld [vmem:[%s1312_s30 + $0x38] sm:$0xff]   ;;  %v1235_v21 = vld [vmem:[%s1312_s30 + $0x40] sm:$0xff]  }
  0x13   : > { %1122 = vmatpush3.bf16.msra.mxu0 %v1222_v3  ;;  %v1236_v22 = vld [vmem:[%s1312_s30 + $0x48] sm:$0xff]   ;;  %v1237_v23 = vld [vmem:[%s1312_s30 + $0x50] sm:$0xff]   ;;  %v1238_v24 = vld [vmem:[%s1312_s30 + $0x58] sm:$0xff]  }
  0x14   : > { %1123 = vmatprep.subr.bf16.mxu0 %v1223_v5  ;;  %v1239_v25 = vld [vmem:[%s1312_s30 + $0x60] sm:$0xff]   ;;  %v1240_v26 = vld [vmem:[%s1312_s30 + $0x68] sm:$0xff]   ;;  %v1241_v27 = vld [vmem:[%s1312_s30 + $0x70] sm:$0xff]  }
  0x15   : > { %1170 = vmatpush3.bf16.msra.mxu1 %v1246_v14  ;;  %v1242_v28 = vld [vmem:[%s1312_s30 + $0x78] sm:$0xff]  }
  0x16   : > { %1171 = vmatprep.subr.bf16.mxu1 %v1247_v15 }
  0x17   : > { %1124 = vmatpush3.bf16.msra.mxu0 %v1223_v5 }
  0x18   : > { %1125 = vmatprep.subr.bf16.mxu0 %v1224_v6 }
  0x19   : > { %1172 = vmatpush3.bf16.msra.mxu1 %v1247_v15 }
  0x1a   : > { %1173 = vmatprep.subr.bf16.mxu1 %v1248_v29 }
  0x1b   : > { %1126 = vmatpush3.bf16.msra.mxu0 %v1224_v6 }
  0x1c   : > { %1127 = vmatprep.subr.bf16.mxu0 %v1225_v7 }
  0x1d   : > { %1174 = vmatpush3.bf16.msra.mxu1 %v1248_v29 }
  0x1e   : > { %1175 = vmatprep.subr.bf16.mxu1 %v1249_v30 }
  0x1f   : > { %1128 = vmatpush3.bf16.msra.mxu0 %v1225_v7 }
  0x20   : > { %1129 = vmatprep.subr.bf16.mxu0 %v1226_v8 }
  0x21   : > { %1176 = vmatpush3.bf16.msra.mxu1 %v1249_v30 }
  0x22   : > { %1177 = vmatprep.subr.bf16.mxu1 %v1250_v31 }
  0x23   : > { %1130 = vmatpush3.bf16.msra.mxu0 %v1226_v8 }
  0x25   : > { %1178 = vmatpush3.bf16.msra.mxu1 %v1250_v31 }
  0x26   : > { %1132 = vmatmul.mubr.bf16.vlgmr.msra.gmra.mrb[0].mxu0 %v1228_v11 }
  0x27   : > { %1135 = vmatprep.mubr.bf16.mxu0 %v1229_v13 }
  0x2e   : > { %1136 = vmatmul.mubr.bf16.gmra.mrb[4].mxu0 %v1230_v16 }
  0x2f   : > { %1139 = vmatprep.mubr.bf16.mxu0 %v1231_v17 }
  0x36   : > { %1140 = vmatmul.mubr.bf16.gmra.mrb[8].mxu0 %v1232_v18 }
  0x37   : > { %1143 = vmatprep.mubr.bf16.mxu0 %v1233_v19 }
  0x3e   : > { %1144 = vmatmul.mubr.bf16.gmra.mrb[12].mxu0 %v1234_v20 }
  0x3f   : > { %1147 = vmatprep.mubr.bf16.mxu0 %v1235_v21 }
  0x46   : > { %1148 = vmatmul.mubr.bf16.gmra.mrb[16].mxu0 %v1236_v22 }
  0x47   : > { %1151 = vmatprep.mubr.bf16.mxu0 %v1237_v23 }
  0x4e   : > { %1152 = vmatmul.mubr.bf16.gmra.mrb[20].mxu0 %v1238_v24 }
  0x4f   : > { %1155 = vmatprep.mubr.bf16.mxu0 %v1239_v25 }
  0x56   : > { %1156 = vmatmul.mubr.bf16.gmra.mrb[24].mxu0 %v1240_v26 }
  0x57   : > { %1159 = vmatprep.mubr.bf16.mxu0 %v1241_v27 }
  0x5e   : > { %1160 = vmatmul.mubr.bf16.gmra.mrb[28].mxu0 %v1242_v28 }
  0xf9   : > { %v1133_v33 = vpop.f32.mrb[0].mxu0 }
  0xfa   : > { %v471_v34 = vadd.f32 %v1133_v33, %v1372_v32  ;;  %v462_v35 = vpop.f32.mrb[1].mxu0 }
  0xfb   : > { %v463_v36 = vadd.f32 %v1372_v32, %v462_v35  ;;  %v1134_v37 = vpop.f32.mrb[2].mxu0 }
  0xfc   : > { %v623_v38 = vmul.f32 0.01, %v471_v34  ;;  %v474_v39 = vadd.f32 %v1134_v37, %v1372_v32  ;;  %v465_v40 = vpop.f32.mrb[3].mxu0  ;;  %vm591_vm0 = vcmp.ge.f32.partialorder %v471_v34, 0.0 }
  0xfd   : > { %v621_v41 = vmul.f32 0.01, %v463_v36  ;;  %v466_v42 = vadd.f32 %v1372_v32, %v465_v40  ;;  %vm589_vm2 = vcmp.ge.f32.partialorder %v463_v36, 0.0 }
  0xfe   : > { %vm592_vm1 = vcmp.ge.f32.partialorder %v474_v39, 0.0  ;;  %v624_v43 = vmul.f32 0.01, %v474_v39  ;;  %v655_v45 = vsel %vm591_vm0, %v471_v34, %v623_v38 }
  0xff   : > { %v622_v44 = vmul.f32 0.01, %v466_v42  ;;  %vm590_vm3 = vcmp.ge.f32.partialorder %v466_v42, 0.0  ;;  %v653_v48 = vsel %vm589_vm2, %v463_v36, %v621_v41 }
 0x100   : > { %v656_v46 = vsel %vm592_vm1, %v474_v39, %v624_v43 }
 0x101   : > { %v1137_v47 = vpop.f32.mrb[4].mxu0  ;;  %v654_v49 = vsel %vm590_vm3, %v466_v42, %v622_v44  ;;  %v686_v50 = vpack.c.bf16 %v656_v46, %v655_v45 }
 0x102   : > { %v487_v51 = vadd.f32 %v1137_v47, %v1372_v32  ;;  %v478_v52 = vpop.f32.mrb[5].mxu0  ;;  %v685_v53 = vpack.c.bf16 %v654_v49, %v653_v48 }
 0x103   : > { %v479_v54 = vadd.f32 %v1372_v32, %v478_v52  ;;  %v1138_v55 = vpop.f32.mrb[6].mxu0 }
 0x104   : > { %v627_v56 = vmul.f32 0.01, %v487_v51  ;;  %v490_v57 = vadd.f32 %v1138_v55, %v1372_v32  ;;  %v481_v58 = vpop.f32.mrb[7].mxu0  ;;  %1179 = vmatprep.mubr.bf16.mxu1 %v685_v53  ;;  %vm595_vm4 = vcmp.ge.f32.partialorder %v487_v51, 0.0 }
 0x105   : > { %v625_v59 = vmul.f32 0.01, %v479_v54  ;;  %v482_v60 = vadd.f32 %v1372_v32, %v481_v58  ;;  %1180 = vmatmul.mubr.bf16.vlgmr.msra.gmra.mrb[0].mxu1 %v686_v50  ;;  %vm593_vm5 = vcmp.ge.f32.partialorder %v479_v54, 0.0 }
 0x106   : > { %vm596_vm6 = vcmp.ge.f32.partialorder %v490_v57, 0.0  ;;  %v628_v61 = vmul.f32 0.01, %v490_v57  ;;  %v659_v63 = vsel %vm595_vm4, %v487_v51, %v627_v56 }
 0x107   : > { %vm594_vm7 = vcmp.ge.f32.partialorder %v482_v60, 0.0  ;;  %v626_v62 = vmul.f32 0.01, %v482_v60  ;;  %v657_v2 = vsel %vm593_vm5, %v479_v54, %v625_v59 }
 0x108   : > { %v660_v0 = vsel %vm596_vm6, %v490_v57, %v628_v61 }
 0x109   : > { %v1141_v1 = vpop.f32.mrb[8].mxu0  ;;  %v658_v3 = vsel %vm594_vm7, %v482_v60, %v626_v62  ;;  %v688_v4 = vpack.c.bf16 %v660_v0, %v659_v63 }
 0x10a   : > { %v503_v5 = vadd.f32 %v1141_v1, %v1372_v32  ;;  %v494_v6 = vpop.f32.mrb[9].mxu0  ;;  %v687_v7 = vpack.c.bf16 %v658_v3, %v657_v2 }
 0x10b   : > { %v495_v8 = vadd.f32 %v1372_v32, %v494_v6  ;;  %v1142_v9 = vpop.f32.mrb[10].mxu0 }
 0x10c   : > { %v631_v10 = vmul.f32 0.01, %v503_v5  ;;  %v506_v11 = vadd.f32 %v1142_v9, %v1372_v32  ;;  %v497_v12 = vpop.f32.mrb[11].mxu0  ;;  %1183 = vmatprep.mubr.bf16.mxu1 %v687_v7  ;;  %vm599_vm8 = vcmp.ge.f32.partialorder %v503_v5, 0.0 }
 0x10d   : > { %v629_v13 = vmul.f32 0.01, %v495_v8  ;;  %v498_v14 = vadd.f32 %v1372_v32, %v497_v12  ;;  %1184 = vmatmul.mubr.bf16.gmra.mrb[4].mxu1 %v688_v4  ;;  %vm597_vm9 = vcmp.ge.f32.partialorder %v495_v8, 0.0 }
 0x10e   : > { %vm600_vm10 = vcmp.ge.f32.partialorder %v506_v11, 0.0  ;;  %v632_v15 = vmul.f32 0.01, %v506_v11  ;;  %v663_v17 = vsel %vm599_vm8, %v503_v5, %v631_v10 }
 0x10f   : > { %vm598_vm11 = vcmp.ge.f32.partialorder %v498_v14, 0.0  ;;  %v630_v16 = vmul.f32 0.01, %v498_v14  ;;  %v661_v20 = vsel %vm597_vm9, %v495_v8, %v629_v13 }
 0x110   : > { %v664_v18 = vsel %vm600_vm10, %v506_v11, %v632_v15 }
 0x111   : > { %v1145_v19 = vpop.f32.mrb[12].mxu0  ;;  %v662_v21 = vsel %vm598_vm11, %v498_v14, %v630_v16  ;;  %v690_v22 = vpack.c.bf16 %v664_v18, %v663_v17 }
 0x112   : > { %v519_v23 = vadd.f32 %v1145_v19, %v1372_v32  ;;  %v510_v24 = vpop.f32.mrb[13].mxu0  ;;  %v689_v25 = vpack.c.bf16 %v662_v21, %v661_v20 }
 0x113   : > { %v511_v26 = vadd.f32 %v1372_v32, %v510_v24  ;;  %v1146_v27 = vpop.f32.mrb[14].mxu0 }
 0x114   : > { %v635_v28 = vmul.f32 0.01, %v519_v23  ;;  %v522_v29 = vadd.f32 %v1146_v27, %v1372_v32  ;;  %v513_v30 = vpop.f32.mrb[15].mxu0  ;;  %1187 = vmatprep.mubr.bf16.mxu1 %v689_v25  ;;  %vm603_vm12 = vcmp.ge.f32.partialorder %v519_v23, 0.0 }
 0x115   : > { %v633_v31 = vmul.f32 0.01, %v511_v26  ;;  %v514_v33 = vadd.f32 %v1372_v32, %v513_v30  ;;  %1188 = vmatmul.mubr.bf16.gmra.mrb[8].mxu1 %v690_v22  ;;  %vm601_vm13 = vcmp.ge.f32.partialorder %v511_v26, 0.0 }
 0x116   : > { %vm604_vm14 = vcmp.ge.f32.partialorder %v522_v29, 0.0  ;;  %v636_v34 = vmul.f32 0.01, %v522_v29  ;;  %v667_v36 = vsel %vm603_vm12, %v519_v23, %v635_v28 }
 0x117   : > { %vm602_vm15 = vcmp.ge.f32.partialorder %v514_v33, 0.0  ;;  %v634_v35 = vmul.f32 0.01, %v514_v33  ;;  %v665_v39 = vsel %vm601_vm13, %v511_v26, %v633_v31 }
 0x118   : > { %v668_v37 = vsel %vm604_vm14, %v522_v29, %v636_v34 }
 0x119   : > { %v1149_v38 = vpop.f32.mrb[16].mxu0  ;;  %v666_v40 = vsel %vm602_vm15, %v514_v33, %v634_v35  ;;  %v692_v41 = vpack.c.bf16 %v668_v37, %v667_v36 }
 0x11a   : > { %v535_v42 = vadd.f32 %v1149_v38, %v1372_v32  ;;  %v526_v43 = vpop.f32.mrb[17].mxu0  ;;  %v691_v44 = vpack.c.bf16 %v666_v40, %v665_v39 }
 0x11b   : > { %v527_v45 = vadd.f32 %v1372_v32, %v526_v43  ;;  %v1150_v46 = vpop.f32.mrb[18].mxu0 }
 0x11c   : > { %v639_v47 = vmul.f32 0.01, %v535_v42  ;;  %v538_v48 = vadd.f32 %v1150_v46, %v1372_v32  ;;  %v529_v49 = vpop.f32.mrb[19].mxu0  ;;  %1191 = vmatprep.mubr.bf16.mxu1 %v691_v44  ;;  %vm607_vm0 = vcmp.ge.f32.partialorder %v535_v42, 0.0 }
 0x11d   : > { %v637_v50 = vmul.f32 0.01, %v527_v45  ;;  %v530_v51 = vadd.f32 %v1372_v32, %v529_v49  ;;  %1192 = vmatmul.mubr.bf16.gmra.mrb[12].mxu1 %v692_v41  ;;  %vm605_vm1 = vcmp.ge.f32.partialorder %v527_v45, 0.0 }
 0x11e   : > { %vm608_vm2 = vcmp.ge.f32.partialorder %v538_v48, 0.0  ;;  %v640_v52 = vmul.f32 0.01, %v538_v48  ;;  %v671_v54 = vsel %vm607_vm0, %v535_v42, %v639_v47  ;;  %vm933_vm0 = vcmask 7168  }
 0x11f   : > { %vm606_vm3 = vcmp.ge.f32.partialorder %v530_v51, 0.0  ;;  %v638_v53 = vmul.f32 0.01, %v530_v51  ;;  %v669_v57 = vsel %vm605_vm1, %v527_v45, %v637_v50 }
 0x120   : > { %v672_v55 = vsel %vm608_vm2, %v538_v48, %v640_v52 }
 0x121   : > { %v1153_v56 = vpop.f32.mrb[20].mxu0  ;;  %v670_v58 = vsel %vm606_vm3, %v530_v51, %v638_v53  ;;  %v694_v59 = vpack.c.bf16 %v672_v55, %v671_v54  ;;  %v1410_v51 = vld [vmem:[%s1520_s4] ss:$0 sm:$0xff] }
 0x122   : > { %v551_v60 = vadd.f32 %v1153_v56, %v1372_v32  ;;  %v542_v61 = vpop.f32.mrb[21].mxu0  ;;  %v693_v62 = vpack.c.bf16 %v670_v58, %v669_v57 }
 0x123   : > { %v543_v63 = vadd.f32 %v1372_v32, %v542_v61  ;;  %v1154_v0 = vpop.f32.mrb[22].mxu0 }
 0x124   : > { %v643_v1 = vmul.f32 0.01, %v551_v60  ;;  %v554_v2 = vadd.f32 %v1154_v0, %v1372_v32  ;;  %v545_v3 = vpop.f32.mrb[23].mxu0  ;;  %1195 = vmatprep.mubr.bf16.mxu1 %v693_v62  ;;  %vm611_vm4 = vcmp.ge.f32.partialorder %v551_v60, 0.0 }
 0x125   : > { %v641_v4 = vmul.f32 0.01, %v543_v63  ;;  %v546_v5 = vadd.f32 %v1372_v32, %v545_v3  ;;  %1196 = vmatmul.mubr.bf16.gmra.mrb[16].mxu1 %v694_v59  ;;  %vm609_vm5 = vcmp.ge.f32.partialorder %v543_v63, 0.0 }
 0x126   : > { %vm612_vm6 = vcmp.ge.f32.partialorder %v554_v2, 0.0  ;;  %v644_v6 = vmul.f32 0.01, %v554_v2  ;;  %v675_v8 = vsel %vm611_vm4, %v551_v60, %v643_v1 }
 0x127   : > { %vm610_vm7 = vcmp.ge.f32.partialorder %v546_v5, 0.0  ;;  %v642_v7 = vmul.f32 0.01, %v546_v5  ;;  %v673_v11 = vsel %vm609_vm5, %v543_v63, %v641_v4 }
 0x128   : > { %v676_v9 = vsel %vm612_vm6, %v554_v2, %v644_v6 }
 0x129   : > { %v1157_v10 = vpop.f32.mrb[24].mxu0  ;;  %v674_v12 = vsel %vm610_vm7, %v546_v5, %v642_v7  ;;  %v696_v13 = vpack.c.bf16 %v676_v9, %v675_v8 }
 0x12a   : > { %v567_v14 = vadd.f32 %v1157_v10, %v1372_v32  ;;  %v558_v15 = vpop.f32.mrb[25].mxu0  ;;  %v695_v16 = vpack.c.bf16 %v674_v12, %v673_v11 }
 0x12b   : > { %v559_v17 = vadd.f32 %v1372_v32, %v558_v15  ;;  %v1158_v18 = vpop.f32.mrb[26].mxu0 }
 0x12c   : > { %v647_v19 = vmul.f32 0.01, %v567_v14  ;;  %v570_v20 = vadd.f32 %v1158_v18, %v1372_v32  ;;  %v561_v21 = vpop.f32.mrb[27].mxu0  ;;  %1199 = vmatprep.mubr.bf16.mxu1 %v695_v16  ;;  %vm615_vm8 = vcmp.ge.f32.partialorder %v567_v14, 0.0 }
 0x12d   : > { %v645_v22 = vmul.f32 0.01, %v559_v17  ;;  %v562_v23 = vadd.f32 %v1372_v32, %v561_v21  ;;  %1200 = vmatmul.mubr.bf16.gmra.mrb[20].mxu1 %v696_v13  ;;  %vm613_vm9 = vcmp.ge.f32.partialorder %v559_v17, 0.0 }
 0x12e   : > { %vm616_vm10 = vcmp.ge.f32.partialorder %v570_v20, 0.0  ;;  %v648_v24 = vmul.f32 0.01, %v570_v20  ;;  %v679_v26 = vsel %vm615_vm8, %v567_v14, %v647_v19 }
 0x12f   : > { %vm614_vm11 = vcmp.ge.f32.partialorder %v562_v23, 0.0  ;;  %v646_v25 = vmul.f32 0.01, %v562_v23  ;;  %v677_v29 = vsel %vm613_vm9, %v559_v17, %v645_v22 }
 0x130   : > { %v680_v27 = vsel %vm616_vm10, %v570_v20, %v648_v24 }
 0x131   : > { %v1161_v28 = vpop.f32.mrb[28].mxu0  ;;  %v678_v30 = vsel %vm614_vm11, %v562_v23, %v646_v25  ;;  %v698_v31 = vpack.c.bf16 %v680_v27, %v679_v26 }
 0x132   : > { %v583_v33 = vadd.f32 %v1161_v28, %v1372_v32  ;;  %v574_v34 = vpop.f32.mrb[29].mxu0  ;;  %v697_v35 = vpack.c.bf16 %v678_v30, %v677_v29 }
 0x133   : > { %v575_v36 = vadd.f32 %v1372_v32, %v574_v34  ;;  %v1162_v37 = vpop.f32.mrb[30].mxu0 }
 0x134   : > { %v651_v38 = vmul.f32 0.01, %v583_v33  ;;  %v586_v39 = vadd.f32 %v1162_v37, %v1372_v32  ;;  %v577_v40 = vpop.f32.mrb[31].mxu0  ;;  %1203 = vmatprep.mubr.bf16.mxu1 %v697_v35  ;;  %vm619_vm12 = vcmp.ge.f32.partialorder %v583_v33, 0.0 }
 0x135   : > { %v649_v41 = vmul.f32 0.01, %v575_v36  ;;  %v578_v42 = vadd.f32 %v1372_v32, %v577_v40  ;;  %1204 = vmatmul.mubr.bf16.gmra.mrb[24].mxu1 %v698_v31  ;;  %vm617_vm13 = vcmp.ge.f32.partialorder %v575_v36, 0.0 }
 0x136   : > { %vm620_vm14 = vcmp.ge.f32.partialorder %v586_v39, 0.0  ;;  %v652_v43 = vmul.f32 0.01, %v586_v39  ;;  %v683_v45 = vsel %vm619_vm12, %v583_v33, %v651_v38 }
 0x137   : > { %vm618_vm15 = vcmp.ge.f32.partialorder %v578_v42, 0.0  ;;  %v650_v44 = vmul.f32 0.01, %v578_v42  ;;  %v681_v47 = vsel %vm617_vm13, %v575_v36, %v649_v41 }
 0x138   : > { %v684_v46 = vsel %vm620_vm14, %v586_v39, %v652_v43 }
 0x139   : > { %v682_v48 = vsel %vm618_vm15, %v578_v42, %v650_v44  ;;  %v700_v49 = vpack.c.bf16 %v684_v46, %v683_v45 }
 0x13a   : > { %v699_v50 = vpack.c.bf16 %v682_v48, %v681_v47 }
 0x13c   : > { %1207 = vmatprep.mubr.bf16.mxu1 %v699_v50 }
 0x13d   : > { %1208 = vmatmul.mubr.bf16.gmra.mrb[28].mxu1 %v700_v49 }
 0x1d8   : > { %v1181_v32 = vpop.f32.mrb[0].mxu1 }
 0x1d9   : > { %v815_v52 = vadd.f32 %v1181_v32, %v1410_v51  ;;  %v806_v53 = vpop.f32.mrb[1].mxu1 }
 0x1da   : > { %v807_v54 = vadd.f32 %v1410_v51, %v806_v53  ;;  %v1182_v55 = vpop.f32.mrb[2].mxu1 }
 0x1db   : > { %936 = vst.msk [vmem:[%s1415_s16 + $0x10] sm:$0xff] %vm933_vm0, %v815_v52  ;;  %v818_v56 = vadd.f32 %v1182_v55, %v1410_v51  ;;  %v809_v57 = vpop.f32.mrb[3].mxu1 }
 0x1dc   : > { %934 = vst.msk [vmem:[%s1415_s16] sm:$0xff] %vm933_vm0, %v807_v54  ;;  %v810_v58 = vadd.f32 %v1410_v51, %v809_v57 }
 0x1dd   : > { %937 = vst.msk [vmem:[%s1415_s16 + $0x18] sm:$0xff] %vm933_vm0, %v818_v56 }
 0x1de   : > { %935 = vst.msk [vmem:[%s1415_s16 + $0x8] sm:$0xff] %vm933_vm0, %v810_v58 }
 0x1e0   : > { %v1185_v59 = vpop.f32.mrb[4].mxu1 }
 0x1e1   : > { %v831_v60 = vadd.f32 %v1185_v59, %v1410_v51  ;;  %v822_v61 = vpop.f32.mrb[5].mxu1 }
 0x1e2   : > { %v823_v62 = vadd.f32 %v1410_v51, %v822_v61  ;;  %v1186_v63 = vpop.f32.mrb[6].mxu1 }
 0x1e3   : > { %940 = vst.msk [vmem:[%s1415_s16 + $0x30] sm:$0xff] %vm933_vm0, %v831_v60  ;;  %v834_v0 = vadd.f32 %v1186_v63, %v1410_v51  ;;  %v825_v1 = vpop.f32.mrb[7].mxu1 }
 0x1e4   : > { %938 = vst.msk [vmem:[%s1415_s16 + $0x20] sm:$0xff] %vm933_vm0, %v823_v62  ;;  %v826_v2 = vadd.f32 %v1410_v51, %v825_v1 }
 0x1e5   : > { %941 = vst.msk [vmem:[%s1415_s16 + $0x38] sm:$0xff] %vm933_vm0, %v834_v0 }
 0x1e6   : > { %939 = vst.msk [vmem:[%s1415_s16 + $0x28] sm:$0xff] %vm933_vm0, %v826_v2 }
 0x1e8   : > { %v1189_v3 = vpop.f32.mrb[8].mxu1 }
 0x1e9   : > { %v847_v4 = vadd.f32 %v1189_v3, %v1410_v51  ;;  %v838_v5 = vpop.f32.mrb[9].mxu1 }
 0x1ea   : > { %v839_v6 = vadd.f32 %v1410_v51, %v838_v5  ;;  %v1190_v7 = vpop.f32.mrb[10].mxu1 }
 0x1eb   : > { %944 = vst.msk [vmem:[%s1415_s16 + $0x50] sm:$0xff] %vm933_vm0, %v847_v4  ;;  %v850_v8 = vadd.f32 %v1190_v7, %v1410_v51  ;;  %v841_v9 = vpop.f32.mrb[11].mxu1 }
 0x1ec   : > { %942 = vst.msk [vmem:[%s1415_s16 + $0x40] sm:$0xff] %vm933_vm0, %v839_v6  ;;  %v842_v10 = vadd.f32 %v1410_v51, %v841_v9 }
 0x1ed   : > { %945 = vst.msk [vmem:[%s1415_s16 + $0x58] sm:$0xff] %vm933_vm0, %v850_v8 }
 0x1ee   : > { %943 = vst.msk [vmem:[%s1415_s16 + $0x48] sm:$0xff] %vm933_vm0, %v842_v10 }
 0x1f0   : > { %v1193_v11 = vpop.f32.mrb[12].mxu1 }
 0x1f1   : > { %v863_v12 = vadd.f32 %v1193_v11, %v1410_v51  ;;  %v854_v13 = vpop.f32.mrb[13].mxu1 }
 0x1f2   : > { %v855_v14 = vadd.f32 %v1410_v51, %v854_v13  ;;  %v1194_v15 = vpop.f32.mrb[14].mxu1 }
 0x1f3   : > { %948 = vst.msk [vmem:[%s1415_s16 + $0x70] sm:$0xff] %vm933_vm0, %v863_v12  ;;  %v866_v16 = vadd.f32 %v1194_v15, %v1410_v51  ;;  %v857_v17 = vpop.f32.mrb[15].mxu1 }
 0x1f4   : > { %946 = vst.msk [vmem:[%s1415_s16 + $0x60] sm:$0xff] %vm933_vm0, %v855_v14  ;;  %v858_v18 = vadd.f32 %v1410_v51, %v857_v17 }
 0x1f5   : > { %949 = vst.msk [vmem:[%s1415_s16 + $0x78] sm:$0xff] %vm933_vm0, %v866_v16 }
 0x1f6   : > { %947 = vst.msk [vmem:[%s1415_s16 + $0x68] sm:$0xff] %vm933_vm0, %v858_v18 }
 0x1f8   : > { %v1197_v19 = vpop.f32.mrb[16].mxu1 }
 0x1f9   : > { %v879_v20 = vadd.f32 %v1197_v19, %v1410_v51  ;;  %v870_v21 = vpop.f32.mrb[17].mxu1 }
 0x1fa   : > { %v871_v22 = vadd.f32 %v1410_v51, %v870_v21  ;;  %v1198_v23 = vpop.f32.mrb[18].mxu1 }
 0x1fb   : > { %952 = vst.msk [vmem:[%s1415_s16 + $0x90] sm:$0xff] %vm933_vm0, %v879_v20  ;;  %v882_v24 = vadd.f32 %v1198_v23, %v1410_v51  ;;  %v873_v25 = vpop.f32.mrb[19].mxu1 }
 0x1fc   : > { %950 = vst.msk [vmem:[%s1415_s16 + $0x80] sm:$0xff] %vm933_vm0, %v871_v22  ;;  %v874_v26 = vadd.f32 %v1410_v51, %v873_v25 }
 0x1fd   : > { %953 = vst.msk [vmem:[%s1415_s16 + $0x98] sm:$0xff] %vm933_vm0, %v882_v24 }
 0x1fe   : > { %951 = vst.msk [vmem:[%s1415_s16 + $0x88] sm:$0xff] %vm933_vm0, %v874_v26 }
 0x200   : > { %v1201_v27 = vpop.f32.mrb[20].mxu1 }
 0x201   : > { %v895_v28 = vadd.f32 %v1201_v27, %v1410_v51  ;;  %v886_v29 = vpop.f32.mrb[21].mxu1 }
 0x202   : > { %v887_v30 = vadd.f32 %v1410_v51, %v886_v29  ;;  %v1202_v31 = vpop.f32.mrb[22].mxu1 }
 0x203   : > { %956 = vst.msk [vmem:[%s1415_s16 + $0xb0] sm:$0xff] %vm933_vm0, %v895_v28  ;;  %v898_v33 = vadd.f32 %v1202_v31, %v1410_v51  ;;  %v889_v34 = vpop.f32.mrb[23].mxu1 }
 0x204   : > { %954 = vst.msk [vmem:[%s1415_s16 + $0xa0] sm:$0xff] %vm933_vm0, %v887_v30  ;;  %v890_v35 = vadd.f32 %v1410_v51, %v889_v34 }
 0x205   : > { %957 = vst.msk [vmem:[%s1415_s16 + $0xb8] sm:$0xff] %vm933_vm0, %v898_v33 }
 0x206   : > { %955 = vst.msk [vmem:[%s1415_s16 + $0xa8] sm:$0xff] %vm933_vm0, %v890_v35 }
 0x208   : > { %v1205_v36 = vpop.f32.mrb[24].mxu1 }
 0x209   : > { %v911_v37 = vadd.f32 %v1205_v36, %v1410_v51  ;;  %v902_v38 = vpop.f32.mrb[25].mxu1 }
 0x20a   : > { %v903_v39 = vadd.f32 %v1410_v51, %v902_v38  ;;  %v1206_v40 = vpop.f32.mrb[26].mxu1 }
 0x20b   : > { %960 = vst.msk [vmem:[%s1415_s16 + $0xd0] sm:$0xff] %vm933_vm0, %v911_v37  ;;  %v914_v41 = vadd.f32 %v1206_v40, %v1410_v51  ;;  %v905_v42 = vpop.f32.mrb[27].mxu1 }
 0x20c   : > { %958 = vst.msk [vmem:[%s1415_s16 + $0xc0] sm:$0xff] %vm933_vm0, %v903_v39  ;;  %v906_v43 = vadd.f32 %v1410_v51, %v905_v42 }
 0x20d   : > { %961 = vst.msk [vmem:[%s1415_s16 + $0xd8] sm:$0xff] %vm933_vm0, %v914_v41 }
 0x20e   : > { %959 = vst.msk [vmem:[%s1415_s16 + $0xc8] sm:$0xff] %vm933_vm0, %v906_v43 }
 0x210   : > { %v1209_v44 = vpop.f32.mrb[28].mxu1 }
 0x211   : > { %v927_v45 = vadd.f32 %v1209_v44, %v1410_v51  ;;  %v918_v46 = vpop.f32.mrb[29].mxu1 }
 0x212   : > { %v919_v47 = vadd.f32 %v1410_v51, %v918_v46  ;;  %v1210_v48 = vpop.f32.mrb[30].mxu1 }
 0x213   : > { %964 = vst.msk [vmem:[%s1415_s16 + $0xf0] sm:$0xff] %vm933_vm0, %v927_v45  ;;  %v930_v49 = vadd.f32 %v1210_v48, %v1410_v51  ;;  %v921_v50 = vpop.f32.mrb[31].mxu1 }
 0x214   : > { %962 = vst.msk [vmem:[%s1415_s16 + $0xe0] sm:$0xff] %vm933_vm0, %v919_v47  ;;  %v922_v32 = vadd.f32 %v1410_v51, %v921_v50 }
 0x215   : > { %965 = vst.msk [vmem:[%s1415_s16 + $0xf8] sm:$0xff] %vm933_vm0, %v930_v49 }
 0x216   : > { %963 = vst.msk [vmem:[%s1415_s16 + $0xe8] sm:$0xff] %vm933_vm0, %v922_v32 }
 0x217 PF: > { %s15_s18 = sadd.s32 1, %s1257_s18  }
 0x218   : > { %p12_p4 = scmp.ge.s32.totalorder %s15_s18, 4  }
 0x21a   :  { %14 = sbr.rel (!%p12_p4) target bundleno = 1 (0x1), region = 70 }

// kernel: _lambda_.21
= control target key start
LH: loop header
LB: loop body
LE: loop exit
PB: predicated region body
PF: predicated region fallthrough
CT: control target
= control target key end

     0   :  { %s904_s12 = smov 0   ;;  %s1070_s0 = inlined_call_operand.vmem [shape: bf16[512,128], index: 0, kind: input, shape index: {}]   ;;  %s1071_s1 = inlined_call_operand.vmem [shape: bf16[128,128], index: 1, kind: input, shape index: {}]   ;;  %s1072_s2 = inlined_call_operand.vmem [shape: f32[1,128], index: 2, kind: input, shape index: {}]   ;;  %s1073_s3 = inlined_call_operand.vmem [shape: f32[512,8], index: 3, kind: output, shape index: {}]  }
   0x1 LB: > { %s720_s13 = sadd.s32 4294967295, %s882_s12   ;;  %p724_p0 = scmp.ge.s32.totalorder %s882_s12, 1  ;;  %s882_s12 = sphi %s904_s12, %s13_s12  }
   0x2   : > { %p138_p1 = scmp.lt.s32.totalorder %s882_s12, 3 }
   0x4   : > { %p139_p2 = pnand %p724_p0, %p138_p1 }
   0x5   : > { %v852_v0 = vld [vmem:[%s1071_s1] sm:$0xff] (!%p139_p2)   ;;  %s725_s16 = sshll.u32 (!%p139_p2), %s720_s13, 5  ;;  %v853_v1 = vld [vmem:[%s1071_s1 + $0x8] sm:$0xff] (!%p139_p2)   ;;  %v854_v2 = vld [vmem:[%s1071_s1 + $0x10] sm:$0xff] (!%p139_p2)   ;;  %vm631_vm0 = vcmask (!%p139_p2), 64512  }
   0x6   : > { %142 = sbr.rel (%p139_p2) target bundleno = 287 (0x11f), region = 32  ;;  %p163_p3 = scmp.lt.s32.totalorder (!%p139_p2), %s725_s16, 63  ;;  %780 = vmatprep.subr.bf16.mxu0 (!%p139_p2), %v852_v0  ;;  %828 = vmatprep.subr.bf16.mxu1 (!%p139_p2), %v852_v0  ;;  %v855_v3 = vld [vmem:[%s1071_s1 + $0x18] sm:$0xff] (!%p139_p2)   ;;  %v856_v6 = vld [vmem:[%s1071_s1 + $0x20] sm:$0xff] (!%p139_p2)   ;;  %v857_v7 = vld [vmem:[%s1071_s1 + $0x28] sm:$0xff] (!%p139_p2)  }
   0x7   : > { %781 = vmatpush3.bf16.msra.mxu0 (!%p139_p2), %v852_v0  ;;  %836 = vmatpush3.bf16.msra.mxu1 (!%p139_p2), %v852_v0  ;;  %v858_v8 = vld [vmem:[%s1071_s1 + $0x30] sm:$0xff] (!%p139_p2)   ;;  %v859_v9 = vld [vmem:[%s1071_s1 + $0x38] sm:$0xff] (!%p139_p2)   ;;  %v963_v24 = vld [vmem:[%s1072_s2] ss:$0 sm:$0xff] (!%p139_p2) }
   0x8   : > { %782 = vmatprep.subr.bf16.mxu0 (!%p139_p2), %v853_v1  ;;  %829 = vmatprep.subr.bf16.mxu1 (!%p139_p2), %v853_v1 }
   0xb   : > { %783 = vmatpush3.bf16.msra.mxu0 (!%p139_p2), %v853_v1  ;;  %837 = vmatpush3.bf16.msra.mxu1 (!%p139_p2), %v853_v1 }
   0xc   : > { %784 = vmatprep.subr.bf16.mxu0 (!%p139_p2), %v854_v2  ;;  %830 = vmatprep.subr.bf16.mxu1 (!%p139_p2), %v854_v2 }
   0xd   : > { %s1075_s16 = smov (!%p163_p3, %s725_s16), 63 }
   0xe   : > { %s726_s21 = sshll.u32 %s1075_s16, 2  ;;  %s728_s10 = sshll.u32 %s1075_s16, 3 }
   0xf   : > { %s927_s24 = scalar_lea.vmem %s1070_s0, %s726_s21  ;;  %785 = vmatpush3.bf16.msra.mxu0 %v854_v2  ;;  %838 = vmatpush3.bf16.msra.mxu1 %v854_v2  ;;  %s973_s14 = scalar_lea.vmem %s1073_s3, %s728_s10 }
  0x10   : > { %v860_v4 = vld [vmem:[%s927_s24] sm:$0xff]   ;;  %786 = vmatprep.subr.bf16.mxu0 %v855_v3  ;;  %831 = vmatprep.subr.bf16.mxu1 %v855_v3  ;;  %v862_v10 = vld [vmem:[%s927_s24 + $0x8] sm:$0xff]   ;;  %v864_v12 = vld [vmem:[%s927_s24 + $0x10] sm:$0xff]  }
  0x11   : > { %v861_v5 = vld [vmem:[%s927_s24 + $0x40] sm:$0xff]   ;;  %796 = vmatprep.mubr.bf16.mxu0 %v860_v4  ;;  %v863_v11 = vld [vmem:[%s927_s24 + $0x48] sm:$0xff]   ;;  %v865_v13 = vld [vmem:[%s927_s24 + $0x50] sm:$0xff]  }
  0x12   : > { %812 = vmatprep.mubr.bf16.mxu1 %v861_v5  ;;  %v866_v14 = vld [vmem:[%s927_s24 + $0x18] sm:$0xff]   ;;  %v868_v16 = vld [vmem:[%s927_s24 + $0x20] sm:$0xff]   ;;  %v870_v18 = vld [vmem:[%s927_s24 + $0x28] sm:$0xff]  }
  0x13   : > { %787 = vmatpush3.bf16.msra.mxu0 %v855_v3  ;;  %839 = vmatpush3.bf16.msra.mxu1 %v855_v3  ;;  %v867_v15 = vld [vmem:[%s927_s24 + $0x58] sm:$0xff]   ;;  %v869_v17 = vld [vmem:[%s927_s24 + $0x60] sm:$0xff]   ;;  %v871_v19 = vld [vmem:[%s927_s24 + $0x68] sm:$0xff]  }
  0x14   : > { %788 = vmatprep.subr.bf16.mxu0 %v856_v6  ;;  %832 = vmatprep.subr.bf16.mxu1 %v856_v6  ;;  %v872_v20 = vld [vmem:[%s927_s24 + $0x30] sm:$0xff]   ;;  %v874_v22 = vld [vmem:[%s927_s24 + $0x38] sm:$0xff]  }
  0x15   : > { %v873_v21 = vld [vmem:[%s927_s24 + $0x70] sm:$0xff]   ;;  %v875_v23 = vld [vmem:[%s927_s24 + $0x78] sm:$0xff]  }
  0x17   : > { %789 = vmatpush3.bf16.msra.mxu0 %v856_v6  ;;  %840 = vmatpush3.bf16.msra.mxu1 %v856_v6 }
  0x18   : > { %790 = vmatprep.subr.bf16.mxu0 %v857_v7  ;;  %833 = vmatprep.subr.bf16.mxu1 %v857_v7 }
  0x1b   : > { %791 = vmatpush3.bf16.msra.mxu0 %v857_v7  ;;  %841 = vmatpush3.bf16.msra.mxu1 %v857_v7 }
  0x1c   : > { %792 = vmatprep.subr.bf16.mxu0 %v858_v8  ;;  %834 = vmatprep.subr.bf16.mxu1 %v858_v8 }
  0x1f   : > { %793 = vmatpush3.bf16.msra.mxu0 %v858_v8  ;;  %842 = vmatpush3.bf16.msra.mxu1 %v858_v8 }
  0x20   : > { %794 = vmatprep.subr.bf16.mxu0 %v859_v9  ;;  %835 = vmatprep.subr.bf16.mxu1 %v859_v9 }
  0x23   : > { %795 = vmatpush3.bf16.msra.mxu0 %v859_v9  ;;  %843 = vmatpush3.bf16.msra.mxu1 %v859_v9 }
  0x26   : > { %797 = vmatmul.mubr.bf16.vlgmr.msra.gmra.mrb[0].mxu0 %v862_v10  ;;  %813 = vmatmul.mubr.bf16.vlgmr.msra.gmra.mrb[0].mxu1 %v863_v11 }
  0x27   : > { %800 = vmatprep.mubr.bf16.mxu0 %v864_v12  ;;  %816 = vmatprep.mubr.bf16.mxu1 %v865_v13 }
  0x2e   : > { %801 = vmatmul.mubr.bf16.gmra.mrb[4].mxu0 %v866_v14  ;;  %817 = vmatmul.mubr.bf16.gmra.mrb[4].mxu1 %v867_v15 }
  0x2f   : > { %804 = vmatprep.mubr.bf16.mxu0 %v868_v16  ;;  %820 = vmatprep.mubr.bf16.mxu1 %v869_v17 }
  0x36   : > { %805 = vmatmul.mubr.bf16.gmra.mrb[8].mxu0 %v870_v18  ;;  %821 = vmatmul.mubr.bf16.gmra.mrb[8].mxu1 %v871_v19 }
  0x37   : > { %808 = vmatprep.mubr.bf16.mxu0 %v872_v20  ;;  %824 = vmatprep.mubr.bf16.mxu1 %v873_v21 }
  0x3e   : > { %809 = vmatmul.mubr.bf16.gmra.mrb[12].mxu0 %v874_v22  ;;  %825 = vmatmul.mubr.bf16.gmra.mrb[12].mxu1 %v875_v23 }
  0xf9   : > { %v798_v25 = vpop.f32.mrb[0].mxu0  ;;  %v814_v26 = vpop.f32.mrb[0].mxu1 }
  0xfa   : > { %v417_v27 = vadd.f32 %v798_v25, %v963_v24  ;;  %v481_v28 = vadd.f32 %v814_v26, %v963_v24  ;;  %v408_v29 = vpop.f32.mrb[1].mxu0  ;;  %v472_v30 = vpop.f32.mrb[1].mxu1 }
  0xfb   : > { %v409_v31 = vadd.f32 %v963_v24, %v408_v29  ;;  %v473_v32 = vadd.f32 %v963_v24, %v472_v30  ;;  %v799_v33 = vpop.f32.mrb[2].mxu0  ;;  %v815_v34 = vpop.f32.mrb[2].mxu1 }
  0xfc   : > { %vm537_vm1 = vcmp.ge.f32.partialorder %v417_v27, 0.0  ;;  %v569_v35 = vmul.f32 0.01, %v417_v27  ;;  %vm553_vm2 = vcmp.ge.f32.partialorder %v481_v28, 0.0  ;;  %v585_v36 = vmul.f32 0.01, %v481_v28 }
  0xfd   : > { %vm535_vm3 = vcmp.ge.f32.partialorder %v409_v31, 0.0  ;;  %v567_v37 = vmul.f32 0.01, %v409_v31  ;;  %vm551_vm4 = vcmp.ge.f32.partialorder %v473_v32, 0.0  ;;  %v583_v38 = vmul.f32 0.01, %v473_v32 }
  0xfe   : > { %v601_v39 = vsel %vm537_vm1, %v417_v27, %v569_v35  ;;  %v617_v40 = vsel %vm553_vm2, %v481_v28, %v585_v36  ;;  %v420_v41 = vadd.f32 %v799_v33, %v963_v24  ;;  %v484_v42 = vadd.f32 %v815_v34, %v963_v24  ;;  %v411_v43 = vpop.f32.mrb[3].mxu0  ;;  %v475_v44 = vpop.f32.mrb[3].mxu1 }
  0xff   : > { %634 = vst.msk [vmem:[%s973_s14 + $0x10] sm:$0xff] %vm631_vm0, %v601_v39  ;;  %650 = vst.msk [vmem:[%s973_s14 + $0x90] sm:$0xff] %vm631_vm0, %v617_v40  ;;  %v599_v45 = vsel %vm535_vm3, %v409_v31, %v567_v37  ;;  %v615_v46 = vsel %vm551_vm4, %v473_v32, %v583_v38  ;;  %v412_v47 = vadd.f32 %v963_v24, %v411_v43 }
 0x100   : > { %v476_v48 = vadd.f32 %v963_v24, %v475_v44  ;;  %632 = vst.msk [vmem:[%s973_s14] sm:$0xff] %vm631_vm0, %v599_v45  ;;  %648 = vst.msk [vmem:[%s973_s14 + $0x80] sm:$0xff] %vm631_vm0, %v615_v46  ;;  %vm538_vm5 = vcmp.ge.f32.partialorder %v420_v41, 0.0  ;;  %v570_v49 = vmul.f32 0.01, %v420_v41  ;;  %vm554_vm6 = vcmp.ge.f32.partialorder %v484_v42, 0.0 }
 0x101   : > { %v586_v50 = vmul.f32 0.01, %v484_v42  ;;  %vm536_vm7 = vcmp.ge.f32.partialorder %v412_v47, 0.0  ;;  %v568_v51 = vmul.f32 0.01, %v412_v47  ;;  %v802_v55 = vpop.f32.mrb[4].mxu0 }
 0x102   : > { %vm552_vm8 = vcmp.ge.f32.partialorder %v476_v48, 0.0  ;;  %v584_v52 = vmul.f32 0.01, %v476_v48  ;;  %v602_v53 = vsel %vm538_vm5, %v420_v41, %v570_v49  ;;  %v818_v56 = vpop.f32.mrb[4].mxu1  ;;  %v433_v59 = vadd.f32 %v802_v55, %v963_v24  ;;  %v424_v61 = vpop.f32.mrb[5].mxu0 }
 0x103   : > { %v618_v54 = vsel %vm554_vm6, %v484_v42, %v586_v50  ;;  %635 = vst.msk [vmem:[%s973_s14 + $0x18] sm:$0xff] %vm631_vm0, %v602_v53  ;;  %v600_v57 = vsel %vm536_vm7, %v412_v47, %v568_v51  ;;  %v497_v60 = vadd.f32 %v818_v56, %v963_v24  ;;  %v488_v62 = vpop.f32.mrb[5].mxu1  ;;  %v425_v63 = vadd.f32 %v963_v24, %v424_v61  ;;  %v803_v1 = vpop.f32.mrb[6].mxu0 }
 0x104   : > { %651 = vst.msk [vmem:[%s973_s14 + $0x98] sm:$0xff] %vm631_vm0, %v618_v54  ;;  %v616_v58 = vsel %vm552_vm8, %v476_v48, %v584_v52  ;;  %633 = vst.msk [vmem:[%s973_s14 + $0x8] sm:$0xff] %vm631_vm0, %v600_v57  ;;  %v489_v0 = vadd.f32 %v963_v24, %v488_v62  ;;  %v819_v2 = vpop.f32.mrb[6].mxu1  ;;  %vm541_vm9 = vcmp.ge.f32.partialorder %v433_v59, 0.0  ;;  %v573_v3 = vmul.f32 0.01, %v433_v59 }
 0x105   : > { %649 = vst.msk [vmem:[%s973_s14 + $0x88] sm:$0xff] %vm631_vm0, %v616_v58  ;;  %vm557_vm10 = vcmp.ge.f32.partialorder %v497_v60, 0.0  ;;  %v589_v4 = vmul.f32 0.01, %v497_v60  ;;  %vm539_vm11 = vcmp.ge.f32.partialorder %v425_v63, 0.0  ;;  %v436_v9 = vadd.f32 %v803_v1, %v963_v24  ;;  %v427_v11 = vpop.f32.mrb[7].mxu0 }
 0x106   : > { %v571_v5 = vmul.f32 0.01, %v425_v63  ;;  %vm555_vm12 = vcmp.ge.f32.partialorder %v489_v0, 0.0  ;;  %v587_v6 = vmul.f32 0.01, %v489_v0  ;;  %v605_v7 = vsel %vm541_vm9, %v433_v59, %v573_v3  ;;  %v491_v12 = vpop.f32.mrb[7].mxu1 }
 0x107   : > { %v621_v8 = vsel %vm557_vm10, %v497_v60, %v589_v4  ;;  %v500_v10 = vadd.f32 %v819_v2, %v963_v24  ;;  %638 = vst.msk [vmem:[%s973_s14 + $0x30] sm:$0xff] %vm631_vm0, %v605_v7  ;;  %v428_v15 = vadd.f32 %v963_v24, %v427_v11  ;;  %v492_v16 = vadd.f32 %v963_v24, %v491_v12 }
 0x108   : > { %654 = vst.msk [vmem:[%s973_s14 + $0xb0] sm:$0xff] %vm631_vm0, %v621_v8  ;;  %v603_v13 = vsel %vm539_vm11, %v425_v63, %v571_v5  ;;  %v619_v14 = vsel %vm555_vm12, %v489_v0, %v587_v6  ;;  %vm542_vm13 = vcmp.ge.f32.partialorder %v436_v9, 0.0  ;;  %v574_v17 = vmul.f32 0.01, %v436_v9 }
 0x109   : > { %636 = vst.msk [vmem:[%s973_s14 + $0x20] sm:$0xff] %vm631_vm0, %v603_v13  ;;  %652 = vst.msk [vmem:[%s973_s14 + $0xa0] sm:$0xff] %vm631_vm0, %v619_v14  ;;  %vm558_vm14 = vcmp.ge.f32.partialorder %v500_v10, 0.0  ;;  %v590_v18 = vmul.f32 0.01, %v500_v10  ;;  %vm540_vm15 = vcmp.ge.f32.partialorder %v428_v15, 0.0 }
 0x10a   : > { %v572_v19 = vmul.f32 0.01, %v428_v15  ;;  %vm556_vm1 = vcmp.ge.f32.partialorder %v492_v16, 0.0  ;;  %v588_v20 = vmul.f32 0.01, %v492_v16  ;;  %v606_v21 = vsel %vm542_vm13, %v436_v9, %v574_v17  ;;  %v806_v23 = vpop.f32.mrb[8].mxu0 }
 0x10b   : > { %v622_v22 = vsel %vm558_vm14, %v500_v10, %v590_v18  ;;  %v822_v25 = vpop.f32.mrb[8].mxu1  ;;  %639 = vst.msk [vmem:[%s973_s14 + $0x38] sm:$0xff] %vm631_vm0, %v606_v21  ;;  %v449_v28 = vadd.f32 %v806_v23, %v963_v24  ;;  %v440_v30 = vpop.f32.mrb[9].mxu0 }
 0x10c   : > { %655 = vst.msk [vmem:[%s973_s14 + $0xb8] sm:$0xff] %vm631_vm0, %v622_v22  ;;  %v604_v26 = vsel %vm540_vm15, %v428_v15, %v572_v19  ;;  %v620_v27 = vsel %vm556_vm1, %v492_v16, %v588_v20  ;;  %v513_v29 = vadd.f32 %v822_v25, %v963_v24  ;;  %v504_v31 = vpop.f32.mrb[9].mxu1  ;;  %v441_v32 = vadd.f32 %v963_v24, %v440_v30  ;;  %v807_v34 = vpop.f32.mrb[10].mxu0 }
 0x10d   : > { %637 = vst.msk [vmem:[%s973_s14 + $0x28] sm:$0xff] %vm631_vm0, %v604_v26  ;;  %653 = vst.msk [vmem:[%s973_s14 + $0xa8] sm:$0xff] %vm631_vm0, %v620_v27  ;;  %v505_v33 = vadd.f32 %v963_v24, %v504_v31  ;;  %v823_v35 = vpop.f32.mrb[10].mxu1  ;;  %vm545_vm2 = vcmp.ge.f32.partialorder %v449_v28, 0.0  ;;  %v577_v36 = vmul.f32 0.01, %v449_v28  ;;  %v452_v42 = vadd.f32 %v807_v34, %v963_v24 }
 0x10e   : > { %vm561_vm3 = vcmp.ge.f32.partialorder %v513_v29, 0.0  ;;  %v593_v37 = vmul.f32 0.01, %v513_v29  ;;  %vm543_vm4 = vcmp.ge.f32.partialorder %v441_v32, 0.0  ;;  %v575_v38 = vmul.f32 0.01, %v441_v32 }
 0x10f   : > { %vm559_vm5 = vcmp.ge.f32.partialorder %v505_v33, 0.0  ;;  %v591_v39 = vmul.f32 0.01, %v505_v33  ;;  %v609_v40 = vsel %vm545_vm2, %v449_v28, %v577_v36  ;;  %v516_v43 = vadd.f32 %v823_v35, %v963_v24  ;;  %v443_v44 = vpop.f32.mrb[11].mxu0  ;;  %v507_v45 = vpop.f32.mrb[11].mxu1 }
 0x110   : > { %v625_v41 = vsel %vm561_vm3, %v513_v29, %v593_v37  ;;  %642 = vst.msk [vmem:[%s973_s14 + $0x50] sm:$0xff] %vm631_vm0, %v609_v40  ;;  %v607_v46 = vsel %vm543_vm4, %v441_v32, %v575_v38  ;;  %v444_v48 = vadd.f32 %v963_v24, %v443_v44  ;;  %v508_v49 = vadd.f32 %v963_v24, %v507_v45 }
 0x111   : > { %658 = vst.msk [vmem:[%s973_s14 + $0xd0] sm:$0xff] %vm631_vm0, %v625_v41  ;;  %v623_v47 = vsel %vm559_vm5, %v505_v33, %v591_v39  ;;  %v810_v50 = vpop.f32.mrb[12].mxu0  ;;  %v826_v51 = vpop.f32.mrb[12].mxu1  ;;  %640 = vst.msk [vmem:[%s973_s14 + $0x40] sm:$0xff] %vm631_vm0, %v607_v46  ;;  %vm546_vm6 = vcmp.ge.f32.partialorder %v452_v42, 0.0  ;;  %vm562_vm7 = vcmp.ge.f32.partialorder %v516_v43, 0.0 }
 0x112   : > { %656 = vst.msk [vmem:[%s973_s14 + $0xc0] sm:$0xff] %vm631_vm0, %v623_v47  ;;  %v578_v52 = vmul.f32 0.01, %v452_v42  ;;  %v594_v53 = vmul.f32 0.01, %v516_v43  ;;  %vm544_vm8 = vcmp.ge.f32.partialorder %v444_v48, 0.0  ;;  %v465_v58 = vadd.f32 %v810_v50, %v963_v24 }
 0x113   : > { %v576_v54 = vmul.f32 0.01, %v444_v48  ;;  %vm560_vm9 = vcmp.ge.f32.partialorder %v508_v49, 0.0  ;;  %v592_v55 = vmul.f32 0.01, %v508_v49  ;;  %v529_v59 = vadd.f32 %v826_v51, %v963_v24  ;;  %v456_v60 = vpop.f32.mrb[13].mxu0 }
 0x114   : > { %v610_v56 = vsel %vm546_vm6, %v452_v42, %v578_v52  ;;  %v626_v57 = vsel %vm562_vm7, %v516_v43, %v594_v53  ;;  %v520_v61 = vpop.f32.mrb[13].mxu1  ;;  %v457_v0 = vadd.f32 %v963_v24, %v456_v60  ;;  %v811_v2 = vpop.f32.mrb[14].mxu0  ;;  %vm549_vm10 = vcmp.ge.f32.partialorder %v465_v58, 0.0 }
 0x115   : > { %643 = vst.msk [vmem:[%s973_s14 + $0x58] sm:$0xff] %vm631_vm0, %v610_v56  ;;  %659 = vst.msk [vmem:[%s973_s14 + $0xd8] sm:$0xff] %vm631_vm0, %v626_v57  ;;  %v608_v62 = vsel %vm544_vm8, %v444_v48, %v576_v54  ;;  %v624_v63 = vsel %vm560_vm9, %v508_v49, %v592_v55  ;;  %v521_v1 = vadd.f32 %v963_v24, %v520_v61  ;;  %v827_v3 = vpop.f32.mrb[14].mxu1  ;;  %v581_v4 = vmul.f32 0.01, %v465_v58  ;;  %v459_v12 = vpop.f32.mrb[15].mxu0 }
 0x116   : > { %641 = vst.msk [vmem:[%s973_s14 + $0x48] sm:$0xff] %vm631_vm0, %v608_v62  ;;  %657 = vst.msk [vmem:[%s973_s14 + $0xc8] sm:$0xff] %vm631_vm0, %v624_v63  ;;  %vm565_vm11 = vcmp.ge.f32.partialorder %v529_v59, 0.0  ;;  %v597_v5 = vmul.f32 0.01, %v529_v59  ;;  %vm547_vm12 = vcmp.ge.f32.partialorder %v457_v0, 0.0  ;;  %v468_v10 = vadd.f32 %v811_v2, %v963_v24 }
 0x117   : > { %v579_v6 = vmul.f32 0.01, %v457_v0  ;;  %vm563_vm13 = vcmp.ge.f32.partialorder %v521_v1, 0.0  ;;  %v595_v7 = vmul.f32 0.01, %v521_v1  ;;  %v613_v8 = vsel %vm549_vm10, %v465_v58, %v581_v4  ;;  %v523_v13 = vpop.f32.mrb[15].mxu1 }
 0x118   : > { %v629_v9 = vsel %vm565_vm11, %v529_v59, %v597_v5  ;;  %v532_v11 = vadd.f32 %v827_v3, %v963_v24  ;;  %646 = vst.msk [vmem:[%s973_s14 + $0x70] sm:$0xff] %vm631_vm0, %v613_v8  ;;  %v460_v16 = vadd.f32 %v963_v24, %v459_v12  ;;  %v524_v17 = vadd.f32 %v963_v24, %v523_v13 }
 0x119   : > { %662 = vst.msk [vmem:[%s973_s14 + $0xf0] sm:$0xff] %vm631_vm0, %v629_v9  ;;  %v611_v14 = vsel %vm547_vm12, %v457_v0, %v579_v6  ;;  %v627_v15 = vsel %vm563_vm13, %v521_v1, %v595_v7  ;;  %vm550_vm14 = vcmp.ge.f32.partialorder %v468_v10, 0.0  ;;  %v582_v18 = vmul.f32 0.01, %v468_v10 }
 0x11a   : > { %644 = vst.msk [vmem:[%s973_s14 + $0x60] sm:$0xff] %vm631_vm0, %v611_v14  ;;  %660 = vst.msk [vmem:[%s973_s14 + $0xe0] sm:$0xff] %vm631_vm0, %v627_v15  ;;  %vm566_vm15 = vcmp.ge.f32.partialorder %v532_v11, 0.0  ;;  %v598_v19 = vmul.f32 0.01, %v532_v11  ;;  %vm548_vm1 = vcmp.ge.f32.partialorder %v460_v16, 0.0 }
 0x11b   : > { %v580_v20 = vmul.f32 0.01, %v460_v16  ;;  %vm564_vm2 = vcmp.ge.f32.partialorder %v524_v17, 0.0  ;;  %v596_v21 = vmul.f32 0.01, %v524_v17  ;;  %v614_v22 = vsel %vm550_vm14, %v468_v10, %v582_v18 }
 0x11c   : > { %v630_v23 = vsel %vm566_vm15, %v532_v11, %v598_v19  ;;  %647 = vst.msk [vmem:[%s973_s14 + $0x78] sm:$0xff] %vm631_vm0, %v614_v22 }
 0x11d   : > { %663 = vst.msk [vmem:[%s973_s14 + $0xf8] sm:$0xff] %vm631_vm0, %v630_v23  ;;  %v612_v24 = vsel %vm548_vm1, %v460_v16, %v580_v20  ;;  %v628_v25 = vsel %vm564_vm2, %v524_v17, %v596_v21 }
 0x11e   : > { %645 = vst.msk [vmem:[%s973_s14 + $0x68] sm:$0xff] %vm631_vm0, %v612_v24  ;;  %661 = vst.msk [vmem:[%s973_s14 + $0xe8] sm:$0xff] %vm631_vm0, %v628_v25 }
 0x11f PF: > { %s13_s12 = sadd.s32 1, %s882_s12  }
 0x120   : > { %p10_p4 = scmp.ge.s32.totalorder %s13_s12, 4  }
 0x122   :  { %12 = sbr.rel (!%p10_p4) target bundleno = 1 (0x1), region = 62 }

</bundles_post_ra>
